<compile_context>
chip_gen: v6e
topology: v6e:2x2x1
jax: 0.10.0
libtpu: 0.0.40
codegen_flags: <defaults>
</compile_context>

<pallas_src>
import jax
import jax.numpy as jnp
from jax.experimental import pallas as pl

# ----------------------------- configuration --------------------------------
IN_PLANES = 4                       # C
HIDDEN_SIZE = 4                     # hidden multiplier -> H = C * hidden_size
KERNEL1 = 5                         # first conv kernel size (module arg `kernel_size`)
KERNEL2 = 3                         # second conv kernel size (fixed in the module)
PAD = (KERNEL1 - 1) // 2 + 1        # ReplicationPad1d (pad_l == pad_r, odd kernel) -> 3
LEVEL = 2                           # current_level of the SCINet tree
NEG_SLOPE = 0.01                    # LeakyReLU slope


# ------------------------------ Pallas kernel --------------------------------
def _scinet_tree_kernel(x_ref, w1_ref, b1_ref, w2_ref, b2_ref, out_ref):
    """Whole SCINet_Tree (all depths, all batches) in one invocation.

    x_ref  : (B, C, T)         input in Conv1d NCL layout
    w1_ref : (Gtot, H, K1*C)   packed first-conv weights  (group axis: see pack_tree_params)
    b1_ref : (Gtot, H, 1)
    w2_ref : (Gtot, C, K2*H)   packed second-conv weights
    b2_ref : (Gtot, C, 1)
    out_ref: (B, C, T)
    """
    B, C, T = x_ref.shape

    x = x_ref[...]
    w1_all = w1_ref[...]
    b1_all = b1_ref[...]
    w2_all = w2_ref[...]
    b2_all = b2_ref[...]

    def sel_matrices(G, S):
        # (G, S, S//2) one-hot "take even time steps" / "take odd time steps" matrices.
        # Used for both the even/odd split (contract S) and the zip (contract S//2).
        L = S // 2
        rows = jax.lax.broadcasted_iota(jnp.int32, (S, L), 0)
        cols = jax.lax.broadcasted_iota(jnp.int32, (S, L), 1)
        se = jnp.where(rows == 2 * cols, 1.0, 0.0).astype(jnp.float32)
        so = jnp.where(rows == 2 * cols + 1, 1.0, 0.0).astype(jnp.float32)
        return (jnp.broadcast_to(se, (G, S, L)),
                jnp.broadcast_to(so, (G, S, L)))

    def conv_branch(xin, w1, b1, w2, b2):
        # Grouped [rep-pad -> conv1d(k=5) -> LeakyReLU -> conv1d(k=3) -> tanh].
        # xin: (G2, C, L); w1: (G2, H, K1*C); b1: (G2, H, 1); w2: (G2, C, K2*H); b2: (G2, C, 1)
        G2, _, L = xin.shape
        L1 = L + 2 * PAD - (KERNEL1 - 1)                 # = L + 2
        left = jnp.broadcast_to(xin[:, :, 0:1], (G2, C, PAD))
        right = jnp.broadcast_to(xin[:, :, L - 1:L], (G2, C, PAD))
        xp = jnp.concatenate([left, xin, right], axis=-1)          # (G2, C, L + 2*PAD)
        # im2col: rows ordered (k, c) to match the packed (H, K1*C) weights.
        cols1 = jnp.concatenate([xp[:, :, k:k + L1] for k in range(KERNEL1)],
                                axis=1)                            # (G2, K1*C, L1)
        h = jnp.einsum('ghq,gql->ghl', w1, cols1,
                       preferred_element_type=jnp.float32) + b1
        h = jnp.where(h >= 0, h, NEG_SLOPE * h)                    # LeakyReLU(0.01)
        # Dropout: identity (eval-mode semantics)
        cols2 = jnp.concatenate([h[:, :, k:k + L] for k in range(KERNEL2)],
                                axis=1)                            # (G2, K2*H, L)
        o = jnp.einsum('gcq,gql->gcl', w2, cols2,
                       preferred_element_type=jnp.float32) + b2
        return jnp.tanh(o)

    # ---- top-down: run every Interactor, depth by depth ---------------------
    # Group ordering at depth d: (node, batch), with the node list enumerated as
    #   nodes_{d+1} = [even-child(n) for n in nodes_d] + [odd-child(n) for n in nodes_d]
    A = x                                    # (G0 = B, C, S0 = T) node inputs at current depth
    sels = []
    leaf_even = leaf_odd = None
    woff = 0
    for d in range(LEVEL + 1):
        G = B * (2 ** d)                     # groups = nodes_at_depth * batch
        S = T // (2 ** d)                    # per-node input length
        se, so = sel_matrices(G, S)
        sels.append((se, so))

        # even/odd time split via selection matmuls (no strided lane slices)
        xe = jnp.einsum('gcs,gsl->gcl', A, se, preferred_element_type=jnp.float32)
        xo = jnp.einsum('gcs,gsl->gcl', A, so, preferred_element_type=jnp.float32)

        g2 = 2 * G
        # pass 1: phi(x_even) and psi(x_odd) fused into one grouped conv
        p1 = conv_branch(jnp.concatenate([xe, xo], axis=0),
                         w1_all[woff:woff + g2], b1_all[woff:woff + g2],
                         w2_all[woff:woff + g2], b2_all[woff:woff + g2])
        dd = xo * jnp.exp(p1[:G])            # d = x_odd * exp(phi(x_even))
        cc = xe * jnp.exp(p1[G:])            # c = x_even * exp(psi(x_odd))
        # pass 2: U(d) and P(c) fused into one grouped conv
        p2 = conv_branch(jnp.concatenate([dd, cc], axis=0),
                         w1_all[woff + g2:woff + 2 * g2], b1_all[woff + g2:woff + 2 * g2],
                         w2_all[woff + g2:woff + 2 * g2], b2_all[woff + g2:woff + 2 * g2])
        even_u = cc + p2[:G]                 # x_even_update
        odd_u = dd - p2[G:]                  # x_odd_update
        woff += 2 * g2

        if d < LEVEL:
            A = jnp.concatenate([even_u, odd_u], axis=0)   # children node inputs
        else:
            leaf_even, leaf_odd = even_u, odd_u

    # ---- bottom-up: zip_up_the_pants via the same selection matrices --------
    z = None
    for d in range(LEVEL, -1, -1):
        G = B * (2 ** d)
        se, so = sels[d]
        if d == LEVEL:
            e_part, o_part = leaf_even, leaf_odd            # leaf node's own updates
        else:
            e_part, o_part = z[:G], z[G:]                   # children subtree outputs
        z = (jnp.einsum('gcl,gsl->gcs', e_part, se, preferred_element_type=jnp.float32)
             + jnp.einsum('gcl,gsl->gcs', o_part, so, preferred_element_type=jnp.float32))

    out_ref[...] = z                                        # (B, C, T)


# ------------------------------ wrapper ---------------------------------------
def _cost_estimate(B, C, H, T, level):
    flops = 0
    trans = 0
    gtot = 0
    for d in range(level + 1):
        G = B * (2 ** d)
        S = T // (2 ** d)
        L = S // 2
        L1 = L + 2
        g2 = 2 * G
        gtot += 2 * g2
        flops += 4 * (2 * G * C * S * L)                    # split + zip selection matmuls
        flops += 2 * (2 * g2 * H * (KERNEL1 * C) * L1)      # first convs (both passes)
        flops += 2 * (2 * g2 * C * (KERNEL2 * H) * L)       # second convs (both passes)
        trans += 2 * (g2 * H * L1 + g2 * C * L) + 2 * G * C * L
    bytes_accessed = 4 * (2 * B * C * T
                          + gtot * (H * KERNEL1 * C + H + C * KERNEL2 * H + C))
    return pl.CostEstimate(flops=flops, transcendentals=trans,
                           bytes_accessed=bytes_accessed)


def scinet_tree_forward(x, packed_params):
    """x: (B, T, C) -> (B, T, C). Entire LEVEL-deep SCINet tree in one pallas_call."""
    B, T, C = x.shape
    w1_all, b1_all, w2_all, b2_all = packed_params
    H = w1_all.shape[1]
    assert T % (2 ** (LEVEL + 1)) == 0, "T must be divisible by 2**(LEVEL+1)"
    x_bct = jnp.transpose(x, (0, 2, 1))                     # public entry transpose only
    out_bct = pl.pallas_call(
        _scinet_tree_kernel,
        out_shape=jax.ShapeDtypeStruct((B, C, T), jnp.float32),
        cost_estimate=_cost_estimate(B, C, H, T, LEVEL),
    )(x_bct, w1_all, b1_all, w2_all, b2_all)
    return jnp.transpose(out_bct, (0, 2, 1))                # public exit transpose only


# ------------------------------ parameters ------------------------------------
def _make_branch_params(key, C, H):
    k = jax.random.split(key, 4)
    w1 = 0.1 * jax.random.normal(k[0], (KERNEL1, H, C), jnp.float32)   # conv1 (k, out, in)
    b1 = 0.1 * jax.random.normal(k[1], (H, 1), jnp.float32)
    w2 = 0.1 * jax.random.normal(k[2], (KERNEL2, C, H), jnp.float32)   # conv2 (k, out, in)
    b2 = 0.1 * jax.random.normal(k[3], (C, 1), jnp.float32)
    return (w1, b1, w2, b2)


def _make_node_params(key, C, H):
    ks = jax.random.split(key, 4)
    return tuple(_make_branch_params(k, C, H) for k in ks)   # (phi, psi, U, P)


def make_tree_params(key, C, H, level):
    k0, k1, k2 = jax.random.split(key, 3)
    params = {"node": _make_node_params(k0, C, H)}
    if level != 0:
        params["even"] = make_tree_params(k1, C, H, level - 1)
        params["odd"] = make_tree_params(k2, C, H, level - 1)
    return params


def pack_tree_params(params, B, C, H, level):
    """Pack all nodes x branches into 4 arrays along a single group axis.

    Group ordering (must match the kernel): for each depth d = 0..level, for
    each pass (pass1 = (phi, psi), pass2 = (U, P)), for each branch in that
    pass, for each node (enumerated even-children-then-odd-children of the
    previous depth's list), for each batch element b: one group.
    """
    w1_l, b1_l, w2_l, b2_l = [], [], [], []
    nodes = [params]
    for d in range(level + 1):
        for branch_ids in ((0, 1), (2, 3)):                 # (phi, psi) then (U, P)
            for br in branch_ids:
                for node in nodes:
                    w1, b1, w2, b2 = node["node"][br]
                    # (K, O, I) -> (O, K*I) so rows match the kernel's (k, c) im2col order
                    w1p = jnp.transpose(w1, (1, 0, 2)).reshape(H, KERNEL1 * C)
                    w2p = jnp.transpose(w2, (1, 0, 2)).reshape(C, KERNEL2 * H)
                    for _ in range(B):                      # weights shared across batch
                        w1_l.append(w1p)
                        b1_l.append(b1)
                        w2_l.append(w2p)
                        b2_l.append(b2)
        if d < level:
            nodes = [n["even"] for n in nodes] + [n["odd"] for n in nodes]
    return (jnp.stack(w1_l), jnp.stack(b1_l), jnp.stack(w2_l), jnp.stack(b2_l))


# --------------------- pure-JAX reference (PyTorch port) ----------------------
def _ref_branch(x, w1, b1, w2, b2):
    # x: (B, C, L); one phi/psi/U/P branch in eval mode.
    L = x.shape[-1]
    L1 = L + 2 * PAD - (KERNEL1 - 1)
    xp = jnp.concatenate([jnp.repeat(x[:, :, :1], PAD, axis=-1), x,
                          jnp.repeat(x[:, :, -1:], PAD, axis=-1)], axis=-1)
    h = sum(jnp.einsum('hc,bcl->bhl', w1[k], xp[:, :, k:k + L1],
                       precision='highest') for k in range(KERNEL1)) + b1[None]
    h = jnp.where(h >= 0, h, NEG_SLOPE * h)
    o = sum(jnp.einsum('ch,bhl->bcl', w2[k], h[:, :, k:k + L],
                       precision='highest') for k in range(KERNEL2)) + b2[None]
    return jnp.tanh(o)


def _ref_tree(x, params, level):
    # x: (B, T, C) -> (B, T, C); straight port of the PyTorch recursion.
    xe = jnp.transpose(x[:, ::2, :], (0, 2, 1))
    xo = jnp.transpose(x[:, 1::2, :], (0, 2, 1))
    phi, psi, U, P = params["node"]
    d = xo * jnp.exp(_ref_branch(xe, *phi))
    c = xe * jnp.exp(_ref_branch(xo, *psi))
    even_u = jnp.transpose(c + _ref_branch(d, *U), (0, 2, 1))
    odd_u = jnp.transpose(d - _ref_branch(c, *P), (0, 2, 1))
    if level != 0:
        even_u = _ref_tree(even_u, params["even"], level - 1)
        odd_u = _ref_tree(odd_u, params["odd"], level - 1)
    Bb, m, Cc = even_u.shape
    return jnp.stack([even_u, odd_u], axis=2).reshape(Bb, 2 * m, Cc)


# ---------------------------------- main --------------------------------------
if __name__ == "__main__":
    B, T, C = 2, 16, IN_PLANES
    H = C * HIDDEN_SIZE

    key = jax.random.PRNGKey(0)
    kx, kp = jax.random.split(key)
    x = jax.random.normal(kx, (B, T, C), jnp.float32)
    params = make_tree_params(kp, C, H, LEVEL)
    packed = pack_tree_params(params, B, C, H, LEVEL)

    fwd = jax.jit(scinet_tree_forward)
    out = jax.block_until_ready(fwd(x, packed))

    assert out.shape == (B, T, C), out.shape
    assert bool(jnp.all(jnp.isfinite(out)))

    # correctness check against the plain-JAX port of the PyTorch module
    ref = _ref_tree(x, params, LEVEL)
    rel_err = float(jnp.max(jnp.abs(out - ref)) / (jnp.max(jnp.abs(ref)) + 1e-6))
    assert rel_err < 5e-2, f"mismatch vs reference: rel_err={rel_err}"

    print("KERNEL_OK")
</pallas_src>

<mosaic_0001>
module attributes {stable_mosaic.version = 11 : i64} {
  func.func @_scinet_tree_kernel(%arg0: memref<2x4x16xf32, #tpu.memory_space<vmem>>, %arg1: memref<56x16x20xf32, #tpu.memory_space<vmem>>, %arg2: memref<56x16x1xf32, #tpu.memory_space<vmem>>, %arg3: memref<56x4x48xf32, #tpu.memory_space<vmem>>, %arg4: memref<56x4x1xf32, #tpu.memory_space<vmem>>, %arg5: memref<2x4x16xf32, #tpu.memory_space<vmem>>) attributes {dimension_semantics = [], scalar_prefetch = 0 : i64, scratch_operands = 0 : i64, tpu.core_type = #tpu.core_type<tc>} {
    %c0 = arith.constant 0 : index
    %c0_0 = arith.constant 0 : index
    %c0_1 = arith.constant 0 : index
    %0 = vector.load %arg0[%c0, %c0_0, %c0_1] : memref<2x4x16xf32, #tpu.memory_space<vmem>>, vector<2x4x16xf32>
    %c0_2 = arith.constant 0 : index
    %c0_3 = arith.constant 0 : index
    %c0_4 = arith.constant 0 : index
    %1 = vector.load %arg1[%c0_2, %c0_3, %c0_4] : memref<56x16x20xf32, #tpu.memory_space<vmem>>, vector<56x16x20xf32>
    %c0_5 = arith.constant 0 : index
    %c0_6 = arith.constant 0 : index
    %c0_7 = arith.constant 0 : index
    %2 = vector.load %arg2[%c0_5, %c0_6, %c0_7] : memref<56x16x1xf32, #tpu.memory_space<vmem>>, vector<56x16x1xf32>
    %c0_8 = arith.constant 0 : index
    %c0_9 = arith.constant 0 : index
    %c0_10 = arith.constant 0 : index
    %3 = vector.load %arg3[%c0_8, %c0_9, %c0_10] : memref<56x4x48xf32, #tpu.memory_space<vmem>>, vector<56x4x48xf32>
    %c0_11 = arith.constant 0 : index
    %c0_12 = arith.constant 0 : index
    %c0_13 = arith.constant 0 : index
    %4 = vector.load %arg4[%c0_11, %c0_12, %c0_13] : memref<56x4x1xf32, #tpu.memory_space<vmem>>, vector<56x4x1xf32>
    %5 = tpu.iota {dimensions = array<i32: 0>} : vector<16x8xi32>
    %6 = tpu.iota {dimensions = array<i32: 1>} : vector<16x8xi32>
    %c2_i32 = arith.constant 2 : i32
    %7 = vector.broadcast %c2_i32 : i32 to vector<16x8xi32>
    %8 = arith.muli %7, %6 : vector<16x8xi32>
    %9 = arith.cmpi eq, %5, %8 : vector<16x8xi32>
    %cst = arith.constant 1.000000e+00 : f32
    %cst_14 = arith.constant 0.000000e+00 : f32
    %10 = vector.broadcast %cst : f32 to vector<16x8xf32>
    %11 = vector.broadcast %cst_14 : f32 to vector<16x8xf32>
    %12 = arith.select %9, %10, %11 : vector<16x8xi1>, vector<16x8xf32>
    %c2_i32_15 = arith.constant 2 : i32
    %13 = vector.broadcast %c2_i32_15 : i32 to vector<16x8xi32>
    %14 = arith.muli %13, %6 : vector<16x8xi32>
    %c1_i32 = arith.constant 1 : i32
    %15 = vector.broadcast %c1_i32 : i32 to vector<16x8xi32>
    %16 = arith.addi %14, %15 : vector<16x8xi32>
    %17 = arith.cmpi eq, %5, %16 : vector<16x8xi32>
    %cst_16 = arith.constant 1.000000e+00 : f32
    %cst_17 = arith.constant 0.000000e+00 : f32
    %18 = vector.broadcast %cst_16 : f32 to vector<16x8xf32>
    %19 = vector.broadcast %cst_17 : f32 to vector<16x8xf32>
    %20 = arith.select %17, %18, %19 : vector<16x8xi1>, vector<16x8xf32>
    %21 = vector.shape_cast %12 : vector<16x8xf32> to vector<1x16x8xf32>
    %22 = vector.broadcast %21 : vector<1x16x8xf32> to vector<2x16x8xf32>
    %23 = vector.shape_cast %20 : vector<16x8xf32> to vector<1x16x8xf32>
    %24 = vector.broadcast %23 : vector<1x16x8xf32> to vector<2x16x8xf32>
    "tpu.trace_start"() <{level = 10 : i32, message = "gcs,gsl->gcl"}> : () -> ()
    %cst_18 = arith.constant dense<0.000000e+00> : vector<2x4x8xf32>
    %25 = tpu.matmul %0, %22, %cst_18 {dimension_numbers = #tpu.dot_dimension_numbers<[2], [1], [1], [2], [0, 0, 0, 1, 1, 2], [0], [0]>} : vector<2x4x16xf32>, vector<2x16x8xf32>, vector<2x4x8xf32> -> vector<2x4x8xf32>
    %cst_19 = arith.constant dense<0.000000e+00> : vector<2x4x8xf32>
    %26 = tpu.matmul %0, %24, %cst_19 {dimension_numbers = #tpu.dot_dimension_numbers<[2], [1], [1], [2], [0, 0, 0, 1, 1, 2], [0], [0]>} : vector<2x4x16xf32>, vector<2x16x8xf32>, vector<2x4x8xf32> -> vector<2x4x8xf32>
    "tpu.trace_stop"() : () -> ()
    %27 = tpu.concatenate %25, %26 in 0 : vector<2x4x8xf32>, vector<2x4x8xf32> -> vector<4x4x8xf32>
    %28 = vector.extract_strided_slice %1 {offsets = [0, 0, 0], sizes = [4, 16, 20], strides = [1, 1, 1]} : vector<56x16x20xf32> to vector<4x16x20xf32>
    %29 = vector.extract_strided_slice %2 {offsets = [0, 0, 0], sizes = [4, 16, 1], strides = [1, 1, 1]} : vector<56x16x1xf32> to vector<4x16x1xf32>
    %30 = vector.extract_strided_slice %3 {offsets = [0, 0, 0], sizes = [4, 4, 48], strides = [1, 1, 1]} : vector<56x4x48xf32> to vector<4x4x48xf32>
    %31 = vector.extract_strided_slice %4 {offsets = [0, 0, 0], sizes = [4, 4, 1], strides = [1, 1, 1]} : vector<56x4x1xf32> to vector<4x4x1xf32>
    %32 = vector.extract_strided_slice %27 {offsets = [0, 0, 0], sizes = [4, 4, 1], strides = [1, 1, 1]} : vector<4x4x8xf32> to vector<4x4x1xf32>
    %33 = vector.shape_cast %32 : vector<4x4x1xf32> to vector<4x4x1xf32>
    %34 = vector.broadcast %33 : vector<4x4x1xf32> to vector<4x4x3xf32>
    %35 = vector.extract_strided_slice %27 {offsets = [0, 0, 7], sizes = [4, 4, 1], strides = [1, 1, 1]} : vector<4x4x8xf32> to vector<4x4x1xf32>
    %36 = vector.shape_cast %35 : vector<4x4x1xf32> to vector<4x4x1xf32>
    %37 = vector.broadcast %36 : vector<4x4x1xf32> to vector<4x4x3xf32>
    %38 = tpu.concatenate %34, %27, %37 in 2 : vector<4x4x3xf32>, vector<4x4x8xf32>, vector<4x4x3xf32> -> vector<4x4x14xf32>
    %39 = vector.extract_strided_slice %38 {offsets = [0, 0, 0], sizes = [4, 4, 10], strides = [1, 1, 1]} : vector<4x4x14xf32> to vector<4x4x10xf32>
    %40 = vector.extract_strided_slice %38 {offsets = [0, 0, 1], sizes = [4, 4, 10], strides = [1, 1, 1]} : vector<4x4x14xf32> to vector<4x4x10xf32>
    %41 = vector.extract_strided_slice %38 {offsets = [0, 0, 2], sizes = [4, 4, 10], strides = [1, 1, 1]} : vector<4x4x14xf32> to vector<4x4x10xf32>
    %42 = vector.extract_strided_slice %38 {offsets = [0, 0, 3], sizes = [4, 4, 10], strides = [1, 1, 1]} : vector<4x4x14xf32> to vector<4x4x10xf32>
    %43 = vector.extract_strided_slice %38 {offsets = [0, 0, 4], sizes = [4, 4, 10], strides = [1, 1, 1]} : vector<4x4x14xf32> to vector<4x4x10xf32>
    %44 = tpu.concatenate %39, %40, %41, %42, %43 in 1 : vector<4x4x10xf32>, vector<4x4x10xf32>, vector<4x4x10xf32>, vector<4x4x10xf32>, vector<4x4x10xf32> -> vector<4x20x10xf32>
    "tpu.trace_start"() <{level = 10 : i32, message = "ghq,gql->ghl"}> : () -> ()
    %cst_20 = arith.constant dense<0.000000e+00> : vector<4x16x10xf32>
    %45 = tpu.matmul %28, %44, %cst_20 {dimension_numbers = #tpu.dot_dimension_numbers<[2], [1], [1], [2], [0, 0, 0, 1, 1, 2], [0], [0]>} : vector<4x16x20xf32>, vector<4x20x10xf32>, vector<4x16x10xf32> -> vector<4x16x10xf32>
    "tpu.trace_stop"() : () -> ()
    %46 = vector.broadcast %29 : vector<4x16x1xf32> to vector<4x16x10xf32>
    %47 = arith.addf %45, %46 : vector<4x16x10xf32>
    %cst_21 = arith.constant 0.000000e+00 : f32
    %48 = vector.broadcast %cst_21 : f32 to vector<4x16x10xf32>
    %49 = arith.cmpf oge, %47, %48 : vector<4x16x10xf32>
    %cst_22 = arith.constant 0.00999999977 : f32
    %50 = vector.broadcast %cst_22 : f32 to vector<4x16x10xf32>
    %51 = arith.mulf %50, %47 : vector<4x16x10xf32>
    %52 = arith.select %49, %47, %51 : vector<4x16x10xi1>, vector<4x16x10xf32>
    %53 = vector.extract_strided_slice %52 {offsets = [0, 0, 0], sizes = [4, 16, 8], strides = [1, 1, 1]} : vector<4x16x10xf32> to vector<4x16x8xf32>
    %54 = vector.extract_strided_slice %52 {offsets = [0, 0, 1], sizes = [4, 16, 8], strides = [1, 1, 1]} : vector<4x16x10xf32> to vector<4x16x8xf32>
    %55 = vector.extract_strided_slice %52 {offsets = [0, 0, 2], sizes = [4, 16, 8], strides = [1, 1, 1]} : vector<4x16x10xf32> to vector<4x16x8xf32>
    %56 = tpu.concatenate %53, %54, %55 in 1 : vector<4x16x8xf32>, vector<4x16x8xf32>, vector<4x16x8xf32> -> vector<4x48x8xf32>
    "tpu.trace_start"() <{level = 10 : i32, message = "gcq,gql->gcl"}> : () -> ()
    %cst_23 = arith.constant dense<0.000000e+00> : vector<4x4x8xf32>
    %57 = tpu.matmul %30, %56, %cst_23 {dimension_numbers = #tpu.dot_dimension_numbers<[2], [1], [1], [2], [0, 0, 0, 1, 1, 2], [0], [0]>} : vector<4x4x48xf32>, vector<4x48x8xf32>, vector<4x4x8xf32> -> vector<4x4x8xf32>
    "tpu.trace_stop"() : () -> ()
    %58 = vector.broadcast %31 : vector<4x4x1xf32> to vector<4x4x8xf32>
    %59 = arith.addf %57, %58 : vector<4x4x8xf32>
    %60 = math.tanh %59 : vector<4x4x8xf32>
    %61 = vector.extract_strided_slice %60 {offsets = [0, 0, 0], sizes = [2, 4, 8], strides = [1, 1, 1]} : vector<4x4x8xf32> to vector<2x4x8xf32>
    %62 = math.exp %61 : vector<2x4x8xf32>
    %63 = arith.mulf %26, %62 : vector<2x4x8xf32>
    %64 = vector.extract_strided_slice %60 {offsets = [2, 0, 0], sizes = [2, 4, 8], strides = [1, 1, 1]} : vector<4x4x8xf32> to vector<2x4x8xf32>
    %65 = math.exp %64 : vector<2x4x8xf32>
    %66 = arith.mulf %25, %65 : vector<2x4x8xf32>
    %67 = tpu.concatenate %63, %66 in 0 : vector<2x4x8xf32>, vector<2x4x8xf32> -> vector<4x4x8xf32>
    %68 = vector.extract_strided_slice %1 {offsets = [4, 0, 0], sizes = [4, 16, 20], strides = [1, 1, 1]} : vector<56x16x20xf32> to vector<4x16x20xf32>
    %69 = vector.extract_strided_slice %2 {offsets = [4, 0, 0], sizes = [4, 16, 1], strides = [1, 1, 1]} : vector<56x16x1xf32> to vector<4x16x1xf32>
    %70 = vector.extract_strided_slice %3 {offsets = [4, 0, 0], sizes = [4, 4, 48], strides = [1, 1, 1]} : vector<56x4x48xf32> to vector<4x4x48xf32>
    %71 = vector.extract_strided_slice %4 {offsets = [4, 0, 0], sizes = [4, 4, 1], strides = [1, 1, 1]} : vector<56x4x1xf32> to vector<4x4x1xf32>
    %72 = vector.extract_strided_slice %67 {offsets = [0, 0, 0], sizes = [4, 4, 1], strides = [1, 1, 1]} : vector<4x4x8xf32> to vector<4x4x1xf32>
    %73 = vector.shape_cast %72 : vector<4x4x1xf32> to vector<4x4x1xf32>
    %74 = vector.broadcast %73 : vector<4x4x1xf32> to vector<4x4x3xf32>
    %75 = vector.extract_strided_slice %67 {offsets = [0, 0, 7], sizes = [4, 4, 1], strides = [1, 1, 1]} : vector<4x4x8xf32> to vector<4x4x1xf32>
    %76 = vector.shape_cast %75 : vector<4x4x1xf32> to vector<4x4x1xf32>
    %77 = vector.broadcast %76 : vector<4x4x1xf32> to vector<4x4x3xf32>
    %78 = tpu.concatenate %74, %67, %77 in 2 : vector<4x4x3xf32>, vector<4x4x8xf32>, vector<4x4x3xf32> -> vector<4x4x14xf32>
    %79 = vector.extract_strided_slice %78 {offsets = [0, 0, 0], sizes = [4, 4, 10], strides = [1, 1, 1]} : vector<4x4x14xf32> to vector<4x4x10xf32>
    %80 = vector.extract_strided_slice %78 {offsets = [0, 0, 1], sizes = [4, 4, 10], strides = [1, 1, 1]} : vector<4x4x14xf32> to vector<4x4x10xf32>
    %81 = vector.extract_strided_slice %78 {offsets = [0, 0, 2], sizes = [4, 4, 10], strides = [1, 1, 1]} : vector<4x4x14xf32> to vector<4x4x10xf32>
    %82 = vector.extract_strided_slice %78 {offsets = [0, 0, 3], sizes = [4, 4, 10], strides = [1, 1, 1]} : vector<4x4x14xf32> to vector<4x4x10xf32>
    %83 = vector.extract_strided_slice %78 {offsets = [0, 0, 4], sizes = [4, 4, 10], strides = [1, 1, 1]} : vector<4x4x14xf32> to vector<4x4x10xf32>
    %84 = tpu.concatenate %79, %80, %81, %82, %83 in 1 : vector<4x4x10xf32>, vector<4x4x10xf32>, vector<4x4x10xf32>, vector<4x4x10xf32>, vector<4x4x10xf32> -> vector<4x20x10xf32>
    "tpu.trace_start"() <{level = 10 : i32, message = "ghq,gql->ghl"}> : () -> ()
    %cst_24 = arith.constant dense<0.000000e+00> : vector<4x16x10xf32>
    %85 = tpu.matmul %68, %84, %cst_24 {dimension_numbers = #tpu.dot_dimension_numbers<[2], [1], [1], [2], [0, 0, 0, 1, 1, 2], [0], [0]>} : vector<4x16x20xf32>, vector<4x20x10xf32>, vector<4x16x10xf32> -> vector<4x16x10xf32>
    "tpu.trace_stop"() : () -> ()
    %86 = vector.broadcast %69 : vector<4x16x1xf32> to vector<4x16x10xf32>
    %87 = arith.addf %85, %86 : vector<4x16x10xf32>
    %cst_25 = arith.constant 0.000000e+00 : f32
    %88 = vector.broadcast %cst_25 : f32 to vector<4x16x10xf32>
    %89 = arith.cmpf oge, %87, %88 : vector<4x16x10xf32>
    %cst_26 = arith.constant 0.00999999977 : f32
    %90 = vector.broadcast %cst_26 : f32 to vector<4x16x10xf32>
    %91 = arith.mulf %90, %87 : vector<4x16x10xf32>
    %92 = arith.select %89, %87, %91 : vector<4x16x10xi1>, vector<4x16x10xf32>
    %93 = vector.extract_strided_slice %92 {offsets = [0, 0, 0], sizes = [4, 16, 8], strides = [1, 1, 1]} : vector<4x16x10xf32> to vector<4x16x8xf32>
    %94 = vector.extract_strided_slice %92 {offsets = [0, 0, 1], sizes = [4, 16, 8], strides = [1, 1, 1]} : vector<4x16x10xf32> to vector<4x16x8xf32>
    %95 = vector.extract_strided_slice %92 {offsets = [0, 0, 2], sizes = [4, 16, 8], strides = [1, 1, 1]} : vector<4x16x10xf32> to vector<4x16x8xf32>
    %96 = tpu.concatenate %93, %94, %95 in 1 : vector<4x16x8xf32>, vector<4x16x8xf32>, vector<4x16x8xf32> -> vector<4x48x8xf32>
    "tpu.trace_start"() <{level = 10 : i32, message = "gcq,gql->gcl"}> : () -> ()
    %cst_27 = arith.constant dense<0.000000e+00> : vector<4x4x8xf32>
    %97 = tpu.matmul %70, %96, %cst_27 {dimension_numbers = #tpu.dot_dimension_numbers<[2], [1], [1], [2], [0, 0, 0, 1, 1, 2], [0], [0]>} : vector<4x4x48xf32>, vector<4x48x8xf32>, vector<4x4x8xf32> -> vector<4x4x8xf32>
    "tpu.trace_stop"() : () -> ()
    %98 = vector.broadcast %71 : vector<4x4x1xf32> to vector<4x4x8xf32>
    %99 = arith.addf %97, %98 : vector<4x4x8xf32>
    %100 = math.tanh %99 : vector<4x4x8xf32>
    %101 = vector.extract_strided_slice %100 {offsets = [0, 0, 0], sizes = [2, 4, 8], strides = [1, 1, 1]} : vector<4x4x8xf32> to vector<2x4x8xf32>
    %102 = arith.addf %66, %101 : vector<2x4x8xf32>
    %103 = vector.extract_strided_slice %100 {offsets = [2, 0, 0], sizes = [2, 4, 8], strides = [1, 1, 1]} : vector<4x4x8xf32> to vector<2x4x8xf32>
    %104 = arith.subf %63, %103 : vector<2x4x8xf32>
    %105 = tpu.concatenate %102, %104 in 0 : vector<2x4x8xf32>, vector<2x4x8xf32> -> vector<4x4x8xf32>
    %106 = tpu.iota {dimensions = array<i32: 0>} : vector<8x4xi32>
    %107 = tpu.iota {dimensions = array<i32: 1>} : vector<8x4xi32>
    %c2_i32_28 = arith.constant 2 : i32
    %108 = vector.broadcast %c2_i32_28 : i32 to vector<8x4xi32>
    %109 = arith.muli %108, %107 : vector<8x4xi32>
    %110 = arith.cmpi eq, %106, %109 : vector<8x4xi32>
    %cst_29 = arith.constant 1.000000e+00 : f32
    %cst_30 = arith.constant 0.000000e+00 : f32
    %111 = vector.broadcast %cst_29 : f32 to vector<8x4xf32>
    %112 = vector.broadcast %cst_30 : f32 to vector<8x4xf32>
    %113 = arith.select %110, %111, %112 : vector<8x4xi1>, vector<8x4xf32>
    %c2_i32_31 = arith.constant 2 : i32
    %114 = vector.broadcast %c2_i32_31 : i32 to vector<8x4xi32>
    %115 = arith.muli %114, %107 : vector<8x4xi32>
    %c1_i32_32 = arith.constant 1 : i32
    %116 = vector.broadcast %c1_i32_32 : i32 to vector<8x4xi32>
    %117 = arith.addi %115, %116 : vector<8x4xi32>
    %118 = arith.cmpi eq, %106, %117 : vector<8x4xi32>
    %cst_33 = arith.constant 1.000000e+00 : f32
    %cst_34 = arith.constant 0.000000e+00 : f32
    %119 = vector.broadcast %cst_33 : f32 to vector<8x4xf32>
    %120 = vector.broadcast %cst_34 : f32 to vector<8x4xf32>
    %121 = arith.select %118, %119, %120 : vector<8x4xi1>, vector<8x4xf32>
    %122 = vector.shape_cast %113 : vector<8x4xf32> to vector<1x8x4xf32>
    %123 = vector.broadcast %122 : vector<1x8x4xf32> to vector<4x8x4xf32>
    %124 = vector.shape_cast %121 : vector<8x4xf32> to vector<1x8x4xf32>
    %125 = vector.broadcast %124 : vector<1x8x4xf32> to vector<4x8x4xf32>
    "tpu.trace_start"() <{level = 10 : i32, message = "gcs,gsl->gcl"}> : () -> ()
    %cst_35 = arith.constant dense<0.000000e+00> : vector<4x4x4xf32>
    %126 = tpu.matmul %105, %123, %cst_35 {dimension_numbers = #tpu.dot_dimension_numbers<[2], [1], [1], [2], [0, 0, 0, 1, 1, 2], [0], [0]>} : vector<4x4x8xf32>, vector<4x8x4xf32>, vector<4x4x4xf32> -> vector<4x4x4xf32>
    %cst_36 = arith.constant dense<0.000000e+00> : vector<4x4x4xf32>
    %127 = tpu.matmul %105, %125, %cst_36 {dimension_numbers = #tpu.dot_dimension_numbers<[2], [1], [1], [2], [0, 0, 0, 1, 1, 2], [0], [0]>} : vector<4x4x8xf32>, vector<4x8x4xf32>, vector<4x4x4xf32> -> vector<4x4x4xf32>
    "tpu.trace_stop"() : () -> ()
    %128 = tpu.concatenate %126, %127 in 0 : vector<4x4x4xf32>, vector<4x4x4xf32> -> vector<8x4x4xf32>
    %129 = vector.extract_strided_slice %1 {offsets = [8, 0, 0], sizes = [8, 16, 20], strides = [1, 1, 1]} : vector<56x16x20xf32> to vector<8x16x20xf32>
    %130 = vector.extract_strided_slice %2 {offsets = [8, 0, 0], sizes = [8, 16, 1], strides = [1, 1, 1]} : vector<56x16x1xf32> to vector<8x16x1xf32>
    %131 = vector.extract_strided_slice %3 {offsets = [8, 0, 0], sizes = [8, 4, 48], strides = [1, 1, 1]} : vector<56x4x48xf32> to vector<8x4x48xf32>
    %132 = vector.extract_strided_slice %4 {offsets = [8, 0, 0], sizes = [8, 4, 1], strides = [1, 1, 1]} : vector<56x4x1xf32> to vector<8x4x1xf32>
    %133 = vector.extract_strided_slice %128 {offsets = [0, 0, 0], sizes = [8, 4, 1], strides = [1, 1, 1]} : vector<8x4x4xf32> to vector<8x4x1xf32>
    %134 = vector.shape_cast %133 : vector<8x4x1xf32> to vector<8x4x1xf32>
    %135 = vector.broadcast %134 : vector<8x4x1xf32> to vector<8x4x3xf32>
    %136 = vector.extract_strided_slice %128 {offsets = [0, 0, 3], sizes = [8, 4, 1], strides = [1, 1, 1]} : vector<8x4x4xf32> to vector<8x4x1xf32>
    %137 = vector.shape_cast %136 : vector<8x4x1xf32> to vector<8x4x1xf32>
    %138 = vector.broadcast %137 : vector<8x4x1xf32> to vector<8x4x3xf32>
    %139 = tpu.concatenate %135, %128, %138 in 2 : vector<8x4x3xf32>, vector<8x4x4xf32>, vector<8x4x3xf32> -> vector<8x4x10xf32>
    %140 = vector.extract_strided_slice %139 {offsets = [0, 0, 0], sizes = [8, 4, 6], strides = [1, 1, 1]} : vector<8x4x10xf32> to vector<8x4x6xf32>
    %141 = vector.extract_strided_slice %139 {offsets = [0, 0, 1], sizes = [8, 4, 6], strides = [1, 1, 1]} : vector<8x4x10xf32> to vector<8x4x6xf32>
    %142 = vector.extract_strided_slice %139 {offsets = [0, 0, 2], sizes = [8, 4, 6], strides = [1, 1, 1]} : vector<8x4x10xf32> to vector<8x4x6xf32>
    %143 = vector.extract_strided_slice %139 {offsets = [0, 0, 3], sizes = [8, 4, 6], strides = [1, 1, 1]} : vector<8x4x10xf32> to vector<8x4x6xf32>
    %144 = vector.extract_strided_slice %139 {offsets = [0, 0, 4], sizes = [8, 4, 6], strides = [1, 1, 1]} : vector<8x4x10xf32> to vector<8x4x6xf32>
    %145 = tpu.concatenate %140, %141, %142, %143, %144 in 1 : vector<8x4x6xf32>, vector<8x4x6xf32>, vector<8x4x6xf32>, vector<8x4x6xf32>, vector<8x4x6xf32> -> vector<8x20x6xf32>
    "tpu.trace_start"() <{level = 10 : i32, message = "ghq,gql->ghl"}> : () -> ()
    %cst_37 = arith.constant dense<0.000000e+00> : vector<8x16x6xf32>
    %146 = tpu.matmul %129, %145, %cst_37 {dimension_numbers = #tpu.dot_dimension_numbers<[2], [1], [1], [2], [0, 0, 0, 1, 1, 2], [0], [0]>} : vector<8x16x20xf32>, vector<8x20x6xf32>, vector<8x16x6xf32> -> vector<8x16x6xf32>
    "tpu.trace_stop"() : () -> ()
    %147 = vector.broadcast %130 : vector<8x16x1xf32> to vector<8x16x6xf32>
    %148 = arith.addf %146, %147 : vector<8x16x6xf32>
    %cst_38 = arith.constant 0.000000e+00 : f32
    %149 = vector.broadcast %cst_38 : f32 to vector<8x16x6xf32>
    %150 = arith.cmpf oge, %148, %149 : vector<8x16x6xf32>
    %cst_39 = arith.constant 0.00999999977 : f32
    %151 = vector.broadcast %cst_39 : f32 to vector<8x16x6xf32>
    %152 = arith.mulf %151, %148 : vector<8x16x6xf32>
    %153 = arith.select %150, %148, %152 : vector<8x16x6xi1>, vector<8x16x6xf32>
    %154 = vector.extract_strided_slice %153 {offsets = [0, 0, 0], sizes = [8, 16, 4], strides = [1, 1, 1]} : vector<8x16x6xf32> to vector<8x16x4xf32>
    %155 = vector.extract_strided_slice %153 {offsets = [0, 0, 1], sizes = [8, 16, 4], strides = [1, 1, 1]} : vector<8x16x6xf32> to vector<8x16x4xf32>
    %156 = vector.extract_strided_slice %153 {offsets = [0, 0, 2], sizes = [8, 16, 4], strides = [1, 1, 1]} : vector<8x16x6xf32> to vector<8x16x4xf32>
    %157 = tpu.concatenate %154, %155, %156 in 1 : vector<8x16x4xf32>, vector<8x16x4xf32>, vector<8x16x4xf32> -> vector<8x48x4xf32>
    "tpu.trace_start"() <{level = 10 : i32, message = "gcq,gql->gcl"}> : () -> ()
    %cst_40 = arith.constant dense<0.000000e+00> : vector<8x4x4xf32>
    %158 = tpu.matmul %131, %157, %cst_40 {dimension_numbers = #tpu.dot_dimension_numbers<[2], [1], [1], [2], [0, 0, 0, 1, 1, 2], [0], [0]>} : vector<8x4x48xf32>, vector<8x48x4xf32>, vector<8x4x4xf32> -> vector<8x4x4xf32>
    "tpu.trace_stop"() : () -> ()
    %159 = vector.broadcast %132 : vector<8x4x1xf32> to vector<8x4x4xf32>
    %160 = arith.addf %158, %159 : vector<8x4x4xf32>
    %161 = math.tanh %160 : vector<8x4x4xf32>
    %162 = vector.extract_strided_slice %161 {offsets = [0, 0, 0], sizes = [4, 4, 4], strides = [1, 1, 1]} : vector<8x4x4xf32> to vector<4x4x4xf32>
    %163 = math.exp %162 : vector<4x4x4xf32>
    %164 = arith.mulf %127, %163 : vector<4x4x4xf32>
    %165 = vector.extract_strided_slice %161 {offsets = [4, 0, 0], sizes = [4, 4, 4], strides = [1, 1, 1]} : vector<8x4x4xf32> to vector<4x4x4xf32>
    %166 = math.exp %165 : vector<4x4x4xf32>
    %167 = arith.mulf %126, %166 : vector<4x4x4xf32>
    %168 = tpu.concatenate %164, %167 in 0 : vector<4x4x4xf32>, vector<4x4x4xf32> -> vector<8x4x4xf32>
    %169 = vector.extract_strided_slice %1 {offsets = [16, 0, 0], sizes = [8, 16, 20], strides = [1, 1, 1]} : vector<56x16x20xf32> to vector<8x16x20xf32>
    %170 = vector.extract_strided_slice %2 {offsets = [16, 0, 0], sizes = [8, 16, 1], strides = [1, 1, 1]} : vector<56x16x1xf32> to vector<8x16x1xf32>
    %171 = vector.extract_strided_slice %3 {offsets = [16, 0, 0], sizes = [8, 4, 48], strides = [1, 1, 1]} : vector<56x4x48xf32> to vector<8x4x48xf32>
    %172 = vector.extract_strided_slice %4 {offsets = [16, 0, 0], sizes = [8, 4, 1], strides = [1, 1, 1]} : vector<56x4x1xf32> to vector<8x4x1xf32>
    %173 = vector.extract_strided_slice %168 {offsets = [0, 0, 0], sizes = [8, 4, 1], strides = [1, 1, 1]} : vector<8x4x4xf32> to vector<8x4x1xf32>
    %174 = vector.shape_cast %173 : vector<8x4x1xf32> to vector<8x4x1xf32>
    %175 = vector.broadcast %174 : vector<8x4x1xf32> to vector<8x4x3xf32>
    %176 = vector.extract_strided_slice %168 {offsets = [0, 0, 3], sizes = [8, 4, 1], strides = [1, 1, 1]} : vector<8x4x4xf32> to vector<8x4x1xf32>
    %177 = vector.shape_cast %176 : vector<8x4x1xf32> to vector<8x4x1xf32>
    %178 = vector.broadcast %177 : vector<8x4x1xf32> to vector<8x4x3xf32>
    %179 = tpu.concatenate %175, %168, %178 in 2 : vector<8x4x3xf32>, vector<8x4x4xf32>, vector<8x4x3xf32> -> vector<8x4x10xf32>
    %180 = vector.extract_strided_slice %179 {offsets = [0, 0, 0], sizes = [8, 4, 6], strides = [1, 1, 1]} : vector<8x4x10xf32> to vector<8x4x6xf32>
    %181 = vector.extract_strided_slice %179 {offsets = [0, 0, 1], sizes = [8, 4, 6], strides = [1, 1, 1]} : vector<8x4x10xf32> to vector<8x4x6xf32>
    %182 = vector.extract_strided_slice %179 {offsets = [0, 0, 2], sizes = [8, 4, 6], strides = [1, 1, 1]} : vector<8x4x10xf32> to vector<8x4x6xf32>
    %183 = vector.extract_strided_slice %179 {offsets = [0, 0, 3], sizes = [8, 4, 6], strides = [1, 1, 1]} : vector<8x4x10xf32> to vector<8x4x6xf32>
    %184 = vector.extract_strided_slice %179 {offsets = [0, 0, 4], sizes = [8, 4, 6], strides = [1, 1, 1]} : vector<8x4x10xf32> to vector<8x4x6xf32>
    %185 = tpu.concatenate %180, %181, %182, %183, %184 in 1 : vector<8x4x6xf32>, vector<8x4x6xf32>, vector<8x4x6xf32>, vector<8x4x6xf32>, vector<8x4x6xf32> -> vector<8x20x6xf32>
    "tpu.trace_start"() <{level = 10 : i32, message = "ghq,gql->ghl"}> : () -> ()
    %cst_41 = arith.constant dense<0.000000e+00> : vector<8x16x6xf32>
    %186 = tpu.matmul %169, %185, %cst_41 {dimension_numbers = #tpu.dot_dimension_numbers<[2], [1], [1], [2], [0, 0, 0, 1, 1, 2], [0], [0]>} : vector<8x16x20xf32>, vector<8x20x6xf32>, vector<8x16x6xf32> -> vector<8x16x6xf32>
    "tpu.trace_stop"() : () -> ()
    %187 = vector.broadcast %170 : vector<8x16x1xf32> to vector<8x16x6xf32>
    %188 = arith.addf %186, %187 : vector<8x16x6xf32>
    %cst_42 = arith.constant 0.000000e+00 : f32
    %189 = vector.broadcast %cst_42 : f32 to vector<8x16x6xf32>
    %190 = arith.cmpf oge, %188, %189 : vector<8x16x6xf32>
    %cst_43 = arith.constant 0.00999999977 : f32
    %191 = vector.broadcast %cst_43 : f32 to vector<8x16x6xf32>
    %192 = arith.mulf %191, %188 : vector<8x16x6xf32>
    %193 = arith.select %190, %188, %192 : vector<8x16x6xi1>, vector<8x16x6xf32>
    %194 = vector.extract_strided_slice %193 {offsets = [0, 0, 0], sizes = [8, 16, 4], strides = [1, 1, 1]} : vector<8x16x6xf32> to vector<8x16x4xf32>
    %195 = vector.extract_strided_slice %193 {offsets = [0, 0, 1], sizes = [8, 16, 4], strides = [1, 1, 1]} : vector<8x16x6xf32> to vector<8x16x4xf32>
    %196 = vector.extract_strided_slice %193 {offsets = [0, 0, 2], sizes = [8, 16, 4], strides = [1, 1, 1]} : vector<8x16x6xf32> to vector<8x16x4xf32>
    %197 = tpu.concatenate %194, %195, %196 in 1 : vector<8x16x4xf32>, vector<8x16x4xf32>, vector<8x16x4xf32> -> vector<8x48x4xf32>
    "tpu.trace_start"() <{level = 10 : i32, message = "gcq,gql->gcl"}> : () -> ()
    %cst_44 = arith.constant dense<0.000000e+00> : vector<8x4x4xf32>
    %198 = tpu.matmul %171, %197, %cst_44 {dimension_numbers = #tpu.dot_dimension_numbers<[2], [1], [1], [2], [0, 0, 0, 1, 1, 2], [0], [0]>} : vector<8x4x48xf32>, vector<8x48x4xf32>, vector<8x4x4xf32> -> vector<8x4x4xf32>
    "tpu.trace_stop"() : () -> ()
    %199 = vector.broadcast %172 : vector<8x4x1xf32> to vector<8x4x4xf32>
    %200 = arith.addf %198, %199 : vector<8x4x4xf32>
    %201 = math.tanh %200 : vector<8x4x4xf32>
    %202 = vector.extract_strided_slice %201 {offsets = [0, 0, 0], sizes = [4, 4, 4], strides = [1, 1, 1]} : vector<8x4x4xf32> to vector<4x4x4xf32>
    %203 = arith.addf %167, %202 : vector<4x4x4xf32>
    %204 = vector.extract_strided_slice %201 {offsets = [4, 0, 0], sizes = [4, 4, 4], strides = [1, 1, 1]} : vector<8x4x4xf32> to vector<4x4x4xf32>
    %205 = arith.subf %164, %204 : vector<4x4x4xf32>
    %206 = tpu.concatenate %203, %205 in 0 : vector<4x4x4xf32>, vector<4x4x4xf32> -> vector<8x4x4xf32>
    %207 = tpu.iota {dimensions = array<i32: 0>} : vector<4x2xi32>
    %208 = tpu.iota {dimensions = array<i32: 1>} : vector<4x2xi32>
    %c2_i32_45 = arith.constant 2 : i32
    %209 = vector.broadcast %c2_i32_45 : i32 to vector<4x2xi32>
    %210 = arith.muli %209, %208 : vector<4x2xi32>
    %211 = arith.cmpi eq, %207, %210 : vector<4x2xi32>
    %cst_46 = arith.constant 1.000000e+00 : f32
    %cst_47 = arith.constant 0.000000e+00 : f32
    %212 = vector.broadcast %cst_46 : f32 to vector<4x2xf32>
    %213 = vector.broadcast %cst_47 : f32 to vector<4x2xf32>
    %214 = arith.select %211, %212, %213 : vector<4x2xi1>, vector<4x2xf32>
    %c2_i32_48 = arith.constant 2 : i32
    %215 = vector.broadcast %c2_i32_48 : i32 to vector<4x2xi32>
    %216 = arith.muli %215, %208 : vector<4x2xi32>
    %c1_i32_49 = arith.constant 1 : i32
    %217 = vector.broadcast %c1_i32_49 : i32 to vector<4x2xi32>
    %218 = arith.addi %216, %217 : vector<4x2xi32>
    %219 = arith.cmpi eq, %207, %218 : vector<4x2xi32>
    %cst_50 = arith.constant 1.000000e+00 : f32
    %cst_51 = arith.constant 0.000000e+00 : f32
    %220 = vector.broadcast %cst_50 : f32 to vector<4x2xf32>
    %221 = vector.broadcast %cst_51 : f32 to vector<4x2xf32>
    %222 = arith.select %219, %220, %221 : vector<4x2xi1>, vector<4x2xf32>
    %223 = vector.shape_cast %214 : vector<4x2xf32> to vector<1x4x2xf32>
    %224 = vector.broadcast %223 : vector<1x4x2xf32> to vector<8x4x2xf32>
    %225 = vector.shape_cast %222 : vector<4x2xf32> to vector<1x4x2xf32>
    %226 = vector.broadcast %225 : vector<1x4x2xf32> to vector<8x4x2xf32>
    "tpu.trace_start"() <{level = 10 : i32, message = "gcs,gsl->gcl"}> : () -> ()
    %cst_52 = arith.constant dense<0.000000e+00> : vector<8x4x2xf32>
    %227 = tpu.matmul %206, %224, %cst_52 {dimension_numbers = #tpu.dot_dimension_numbers<[2], [1], [1], [2], [0, 0, 0, 1, 1, 2], [0], [0]>} : vector<8x4x4xf32>, vector<8x4x2xf32>, vector<8x4x2xf32> -> vector<8x4x2xf32>
    %cst_53 = arith.constant dense<0.000000e+00> : vector<8x4x2xf32>
    %228 = tpu.matmul %206, %226, %cst_53 {dimension_numbers = #tpu.dot_dimension_numbers<[2], [1], [1], [2], [0, 0, 0, 1, 1, 2], [0], [0]>} : vector<8x4x4xf32>, vector<8x4x2xf32>, vector<8x4x2xf32> -> vector<8x4x2xf32>
    "tpu.trace_stop"() : () -> ()
    %229 = tpu.concatenate %227, %228 in 0 : vector<8x4x2xf32>, vector<8x4x2xf32> -> vector<16x4x2xf32>
    %230 = vector.extract_strided_slice %1 {offsets = [24, 0, 0], sizes = [16, 16, 20], strides = [1, 1, 1]} : vector<56x16x20xf32> to vector<16x16x20xf32>
    %231 = vector.extract_strided_slice %2 {offsets = [24, 0, 0], sizes = [16, 16, 1], strides = [1, 1, 1]} : vector<56x16x1xf32> to vector<16x16x1xf32>
    %232 = vector.extract_strided_slice %3 {offsets = [24, 0, 0], sizes = [16, 4, 48], strides = [1, 1, 1]} : vector<56x4x48xf32> to vector<16x4x48xf32>
    %233 = vector.extract_strided_slice %4 {offsets = [24, 0, 0], sizes = [16, 4, 1], strides = [1, 1, 1]} : vector<56x4x1xf32> to vector<16x4x1xf32>
    %234 = vector.extract_strided_slice %229 {offsets = [0, 0, 0], sizes = [16, 4, 1], strides = [1, 1, 1]} : vector<16x4x2xf32> to vector<16x4x1xf32>
    %235 = vector.shape_cast %234 : vector<16x4x1xf32> to vector<16x4x1xf32>
    %236 = vector.broadcast %235 : vector<16x4x1xf32> to vector<16x4x3xf32>
    %237 = vector.extract_strided_slice %229 {offsets = [0, 0, 1], sizes = [16, 4, 1], strides = [1, 1, 1]} : vector<16x4x2xf32> to vector<16x4x1xf32>
    %238 = vector.shape_cast %237 : vector<16x4x1xf32> to vector<16x4x1xf32>
    %239 = vector.broadcast %238 : vector<16x4x1xf32> to vector<16x4x3xf32>
    %240 = tpu.concatenate %236, %229, %239 in 2 : vector<16x4x3xf32>, vector<16x4x2xf32>, vector<16x4x3xf32> -> vector<16x4x8xf32>
    %241 = vector.extract_strided_slice %240 {offsets = [0, 0, 0], sizes = [16, 4, 4], strides = [1, 1, 1]} : vector<16x4x8xf32> to vector<16x4x4xf32>
    %242 = vector.extract_strided_slice %240 {offsets = [0, 0, 1], sizes = [16, 4, 4], strides = [1, 1, 1]} : vector<16x4x8xf32> to vector<16x4x4xf32>
    %243 = vector.extract_strided_slice %240 {offsets = [0, 0, 2], sizes = [16, 4, 4], strides = [1, 1, 1]} : vector<16x4x8xf32> to vector<16x4x4xf32>
    %244 = vector.extract_strided_slice %240 {offsets = [0, 0, 3], sizes = [16, 4, 4], strides = [1, 1, 1]} : vector<16x4x8xf32> to vector<16x4x4xf32>
    %245 = vector.extract_strided_slice %240 {offsets = [0, 0, 4], sizes = [16, 4, 4], strides = [1, 1, 1]} : vector<16x4x8xf32> to vector<16x4x4xf32>
    %246 = tpu.concatenate %241, %242, %243, %244, %245 in 1 : vector<16x4x4xf32>, vector<16x4x4xf32>, vector<16x4x4xf32>, vector<16x4x4xf32>, vector<16x4x4xf32> -> vector<16x20x4xf32>
    "tpu.trace_start"() <{level = 10 : i32, message = "ghq,gql->ghl"}> : () -> ()
    %cst_54 = arith.constant dense<0.000000e+00> : vector<16x16x4xf32>
    %247 = tpu.matmul %230, %246, %cst_54 {dimension_numbers = #tpu.dot_dimension_numbers<[2], [1], [1], [2], [0, 0, 0, 1, 1, 2], [0], [0]>} : vector<16x16x20xf32>, vector<16x20x4xf32>, vector<16x16x4xf32> -> vector<16x16x4xf32>
    "tpu.trace_stop"() : () -> ()
    %248 = vector.broadcast %231 : vector<16x16x1xf32> to vector<16x16x4xf32>
    %249 = arith.addf %247, %248 : vector<16x16x4xf32>
    %cst_55 = arith.constant 0.000000e+00 : f32
    %250 = vector.broadcast %cst_55 : f32 to vector<16x16x4xf32>
    %251 = arith.cmpf oge, %249, %250 : vector<16x16x4xf32>
    %cst_56 = arith.constant 0.00999999977 : f32
    %252 = vector.broadcast %cst_56 : f32 to vector<16x16x4xf32>
    %253 = arith.mulf %252, %249 : vector<16x16x4xf32>
    %254 = arith.select %251, %249, %253 : vector<16x16x4xi1>, vector<16x16x4xf32>
    %255 = vector.extract_strided_slice %254 {offsets = [0, 0, 0], sizes = [16, 16, 2], strides = [1, 1, 1]} : vector<16x16x4xf32> to vector<16x16x2xf32>
    %256 = vector.extract_strided_slice %254 {offsets = [0, 0, 1], sizes = [16, 16, 2], strides = [1, 1, 1]} : vector<16x16x4xf32> to vector<16x16x2xf32>
    %257 = vector.extract_strided_slice %254 {offsets = [0, 0, 2], sizes = [16, 16, 2], strides = [1, 1, 1]} : vector<16x16x4xf32> to vector<16x16x2xf32>
    %258 = tpu.concatenate %255, %256, %257 in 1 : vector<16x16x2xf32>, vector<16x16x2xf32>, vector<16x16x2xf32> -> vector<16x48x2xf32>
    "tpu.trace_start"() <{level = 10 : i32, message = "gcq,gql->gcl"}> : () -> ()
    %cst_57 = arith.constant dense<0.000000e+00> : vector<16x4x2xf32>
    %259 = tpu.matmul %232, %258, %cst_57 {dimension_numbers = #tpu.dot_dimension_numbers<[2], [1], [1], [2], [0, 0, 0, 1, 1, 2], [0], [0]>} : vector<16x4x48xf32>, vector<16x48x2xf32>, vector<16x4x2xf32> -> vector<16x4x2xf32>
    "tpu.trace_stop"() : () -> ()
    %260 = vector.broadcast %233 : vector<16x4x1xf32> to vector<16x4x2xf32>
    %261 = arith.addf %259, %260 : vector<16x4x2xf32>
    %262 = math.tanh %261 : vector<16x4x2xf32>
    %263 = vector.extract_strided_slice %262 {offsets = [0, 0, 0], sizes = [8, 4, 2], strides = [1, 1, 1]} : vector<16x4x2xf32> to vector<8x4x2xf32>
    %264 = math.exp %263 : vector<8x4x2xf32>
    %265 = arith.mulf %228, %264 : vector<8x4x2xf32>
    %266 = vector.extract_strided_slice %262 {offsets = [8, 0, 0], sizes = [8, 4, 2], strides = [1, 1, 1]} : vector<16x4x2xf32> to vector<8x4x2xf32>
    %267 = math.exp %266 : vector<8x4x2xf32>
    %268 = arith.mulf %227, %267 : vector<8x4x2xf32>
    %269 = tpu.concatenate %265, %268 in 0 : vector<8x4x2xf32>, vector<8x4x2xf32> -> vector<16x4x2xf32>
    %270 = vector.extract_strided_slice %1 {offsets = [40, 0, 0], sizes = [16, 16, 20], strides = [1, 1, 1]} : vector<56x16x20xf32> to vector<16x16x20xf32>
    %271 = vector.extract_strided_slice %2 {offsets = [40, 0, 0], sizes = [16, 16, 1], strides = [1, 1, 1]} : vector<56x16x1xf32> to vector<16x16x1xf32>
    %272 = vector.extract_strided_slice %3 {offsets = [40, 0, 0], sizes = [16, 4, 48], strides = [1, 1, 1]} : vector<56x4x48xf32> to vector<16x4x48xf32>
    %273 = vector.extract_strided_slice %4 {offsets = [40, 0, 0], sizes = [16, 4, 1], strides = [1, 1, 1]} : vector<56x4x1xf32> to vector<16x4x1xf32>
    %274 = vector.extract_strided_slice %269 {offsets = [0, 0, 0], sizes = [16, 4, 1], strides = [1, 1, 1]} : vector<16x4x2xf32> to vector<16x4x1xf32>
    %275 = vector.shape_cast %274 : vector<16x4x1xf32> to vector<16x4x1xf32>
    %276 = vector.broadcast %275 : vector<16x4x1xf32> to vector<16x4x3xf32>
    %277 = vector.extract_strided_slice %269 {offsets = [0, 0, 1], sizes = [16, 4, 1], strides = [1, 1, 1]} : vector<16x4x2xf32> to vector<16x4x1xf32>
    %278 = vector.shape_cast %277 : vector<16x4x1xf32> to vector<16x4x1xf32>
    %279 = vector.broadcast %278 : vector<16x4x1xf32> to vector<16x4x3xf32>
    %280 = tpu.concatenate %276, %269, %279 in 2 : vector<16x4x3xf32>, vector<16x4x2xf32>, vector<16x4x3xf32> -> vector<16x4x8xf32>
    %281 = vector.extract_strided_slice %280 {offsets = [0, 0, 0], sizes = [16, 4, 4], strides = [1, 1, 1]} : vector<16x4x8xf32> to vector<16x4x4xf32>
    %282 = vector.extract_strided_slice %280 {offsets = [0, 0, 1], sizes = [16, 4, 4], strides = [1, 1, 1]} : vector<16x4x8xf32> to vector<16x4x4xf32>
    %283 = vector.extract_strided_slice %280 {offsets = [0, 0, 2], sizes = [16, 4, 4], strides = [1, 1, 1]} : vector<16x4x8xf32> to vector<16x4x4xf32>
    %284 = vector.extract_strided_slice %280 {offsets = [0, 0, 3], sizes = [16, 4, 4], strides = [1, 1, 1]} : vector<16x4x8xf32> to vector<16x4x4xf32>
    %285 = vector.extract_strided_slice %280 {offsets = [0, 0, 4], sizes = [16, 4, 4], strides = [1, 1, 1]} : vector<16x4x8xf32> to vector<16x4x4xf32>
    %286 = tpu.concatenate %281, %282, %283, %284, %285 in 1 : vector<16x4x4xf32>, vector<16x4x4xf32>, vector<16x4x4xf32>, vector<16x4x4xf32>, vector<16x4x4xf32> -> vector<16x20x4xf32>
    "tpu.trace_start"() <{level = 10 : i32, message = "ghq,gql->ghl"}> : () -> ()
    %cst_58 = arith.constant dense<0.000000e+00> : vector<16x16x4xf32>
    %287 = tpu.matmul %270, %286, %cst_58 {dimension_numbers = #tpu.dot_dimension_numbers<[2], [1], [1], [2], [0, 0, 0, 1, 1, 2], [0], [0]>} : vector<16x16x20xf32>, vector<16x20x4xf32>, vector<16x16x4xf32> -> vector<16x16x4xf32>
    "tpu.trace_stop"() : () -> ()
    %288 = vector.broadcast %271 : vector<16x16x1xf32> to vector<16x16x4xf32>
    %289 = arith.addf %287, %288 : vector<16x16x4xf32>
    %cst_59 = arith.constant 0.000000e+00 : f32
    %290 = vector.broadcast %cst_59 : f32 to vector<16x16x4xf32>
    %291 = arith.cmpf oge, %289, %290 : vector<16x16x4xf32>
    %cst_60 = arith.constant 0.00999999977 : f32
    %292 = vector.broadcast %cst_60 : f32 to vector<16x16x4xf32>
    %293 = arith.mulf %292, %289 : vector<16x16x4xf32>
    %294 = arith.select %291, %289, %293 : vector<16x16x4xi1>, vector<16x16x4xf32>
    %295 = vector.extract_strided_slice %294 {offsets = [0, 0, 0], sizes = [16, 16, 2], strides = [1, 1, 1]} : vector<16x16x4xf32> to vector<16x16x2xf32>
    %296 = vector.extract_strided_slice %294 {offsets = [0, 0, 1], sizes = [16, 16, 2], strides = [1, 1, 1]} : vector<16x16x4xf32> to vector<16x16x2xf32>
    %297 = vector.extract_strided_slice %294 {offsets = [0, 0, 2], sizes = [16, 16, 2], strides = [1, 1, 1]} : vector<16x16x4xf32> to vector<16x16x2xf32>
    %298 = tpu.concatenate %295, %296, %297 in 1 : vector<16x16x2xf32>, vector<16x16x2xf32>, vector<16x16x2xf32> -> vector<16x48x2xf32>
    "tpu.trace_start"() <{level = 10 : i32, message = "gcq,gql->gcl"}> : () -> ()
    %cst_61 = arith.constant dense<0.000000e+00> : vector<16x4x2xf32>
    %299 = tpu.matmul %272, %298, %cst_61 {dimension_numbers = #tpu.dot_dimension_numbers<[2], [1], [1], [2], [0, 0, 0, 1, 1, 2], [0], [0]>} : vector<16x4x48xf32>, vector<16x48x2xf32>, vector<16x4x2xf32> -> vector<16x4x2xf32>
    "tpu.trace_stop"() : () -> ()
    %300 = vector.broadcast %273 : vector<16x4x1xf32> to vector<16x4x2xf32>
    %301 = arith.addf %299, %300 : vector<16x4x2xf32>
    %302 = math.tanh %301 : vector<16x4x2xf32>
    %303 = vector.extract_strided_slice %302 {offsets = [0, 0, 0], sizes = [8, 4, 2], strides = [1, 1, 1]} : vector<16x4x2xf32> to vector<8x4x2xf32>
    %304 = arith.addf %268, %303 : vector<8x4x2xf32>
    %305 = vector.extract_strided_slice %302 {offsets = [8, 0, 0], sizes = [8, 4, 2], strides = [1, 1, 1]} : vector<16x4x2xf32> to vector<8x4x2xf32>
    %306 = arith.subf %265, %305 : vector<8x4x2xf32>
    "tpu.trace_start"() <{level = 10 : i32, message = "gcl,gsl->gcs"}> : () -> ()
    %cst_62 = arith.constant dense<0.000000e+00> : vector<8x4x4xf32>
    %307 = tpu.matmul %304, %224, %cst_62 {dimension_numbers = #tpu.dot_dimension_numbers<[2], [2], [1], [1], [0, 0, 0, 1, 1, 1], [0], [0]>} : vector<8x4x2xf32>, vector<8x4x2xf32>, vector<8x4x4xf32> -> vector<8x4x4xf32>
    %cst_63 = arith.constant dense<0.000000e+00> : vector<8x4x4xf32>
    %308 = tpu.matmul %306, %226, %cst_63 {dimension_numbers = #tpu.dot_dimension_numbers<[2], [2], [1], [1], [0, 0, 0, 1, 1, 1], [0], [0]>} : vector<8x4x2xf32>, vector<8x4x2xf32>, vector<8x4x4xf32> -> vector<8x4x4xf32>
    "tpu.trace_stop"() : () -> ()
    %309 = arith.addf %307, %308 : vector<8x4x4xf32>
    %310 = vector.extract_strided_slice %309 {offsets = [0, 0, 0], sizes = [4, 4, 4], strides = [1, 1, 1]} : vector<8x4x4xf32> to vector<4x4x4xf32>
    %311 = vector.extract_strided_slice %309 {offsets = [4, 0, 0], sizes = [4, 4, 4], strides = [1, 1, 1]} : vector<8x4x4xf32> to vector<4x4x4xf32>
    "tpu.trace_start"() <{level = 10 : i32, message = "gcl,gsl->gcs"}> : () -> ()
    %cst_64 = arith.constant dense<0.000000e+00> : vector<4x4x8xf32>
    %312 = tpu.matmul %310, %123, %cst_64 {dimension_numbers = #tpu.dot_dimension_numbers<[2], [2], [1], [1], [0, 0, 0, 1, 1, 1], [0], [0]>} : vector<4x4x4xf32>, vector<4x8x4xf32>, vector<4x4x8xf32> -> vector<4x4x8xf32>
    %cst_65 = arith.constant dense<0.000000e+00> : vector<4x4x8xf32>
    %313 = tpu.matmul %311, %125, %cst_65 {dimension_numbers = #tpu.dot_dimension_numbers<[2], [2], [1], [1], [0, 0, 0, 1, 1, 1], [0], [0]>} : vector<4x4x4xf32>, vector<4x8x4xf32>, vector<4x4x8xf32> -> vector<4x4x8xf32>
    "tpu.trace_stop"() : () -> ()
    %314 = arith.addf %312, %313 : vector<4x4x8xf32>
    %315 = vector.extract_strided_slice %314 {offsets = [0, 0, 0], sizes = [2, 4, 8], strides = [1, 1, 1]} : vector<4x4x8xf32> to vector<2x4x8xf32>
    %316 = vector.extract_strided_slice %314 {offsets = [2, 0, 0], sizes = [2, 4, 8], strides = [1, 1, 1]} : vector<4x4x8xf32> to vector<2x4x8xf32>
    "tpu.trace_start"() <{level = 10 : i32, message = "gcl,gsl->gcs"}> : () -> ()
    %cst_66 = arith.constant dense<0.000000e+00> : vector<2x4x16xf32>
    %317 = tpu.matmul %315, %22, %cst_66 {dimension_numbers = #tpu.dot_dimension_numbers<[2], [2], [1], [1], [0, 0, 0, 1, 1, 1], [0], [0]>} : vector<2x4x8xf32>, vector<2x16x8xf32>, vector<2x4x16xf32> -> vector<2x4x16xf32>
    %cst_67 = arith.constant dense<0.000000e+00> : vector<2x4x16xf32>
    %318 = tpu.matmul %316, %24, %cst_67 {dimension_numbers = #tpu.dot_dimension_numbers<[2], [2], [1], [1], [0, 0, 0, 1, 1, 1], [0], [0]>} : vector<2x4x8xf32>, vector<2x16x8xf32>, vector<2x4x16xf32> -> vector<2x4x16xf32>
    "tpu.trace_stop"() : () -> ()
    %319 = arith.addf %317, %318 : vector<2x4x16xf32>
    %c0_68 = arith.constant 0 : index
    %c0_69 = arith.constant 0 : index
    %c0_70 = arith.constant 0 : index
    %320 = vector.load %arg5[%c0_68, %c0_69, %c0_70] : memref<2x4x16xf32, #tpu.memory_space<vmem>>, vector<2x4x16xf32>
    tpu.vector_store %arg5[%c0_68, %c0_69, %c0_70], %319 {strides = array<i32>} : memref<2x4x16xf32, #tpu.memory_space<vmem>>, vector<2x4x16xf32>,
    return
  }
}

</mosaic_0001>

<bundles_post_ra>
// kernel: scinet_tree_forward.1
= control target key start
LH: loop header
LB: loop body
LE: loop exit
PB: predicated region body
PF: predicated region fallthrough
CT: control target
= control target key end

     0   :  { %v359_v0 = vlaneseq  ;;  %v20028_v1 = vmov 0.0   ;;  %vm20029_vm0 = vmmov 0   ;;  %s24314_s0 = inlined_call_operand.vmem [shape: f32[2,4,16], index: 0, kind: input, shape index: {}]   ;;  %s24315_s1 = inlined_call_operand.vmem [shape: f32[56,16,20], index: 1, kind: input, shape index: {}]   ;;  %s24316_s2 = inlined_call_operand.vmem [shape: f32[56,16,1], index: 2, kind: input, shape index: {}]   ;;  %s24317_s3 = inlined_call_operand.vmem [shape: f32[56,4,48], index: 3, kind: input, shape index: {}]   ;;  %s24318_s4 = inlined_call_operand.vmem [shape: f32[56,4,1], index: 4, kind: input, shape index: {}]   ;;  %s24319_s5 = inlined_call_operand.hbm [shape: f32[2,4,16], index: 5, kind: output, shape index: {}]  }
   0x1   :  { %18098 = vmatprep.subr.mxu0 %v20028_v1  ;;  %18105 = vmatprep.subr.mxu1 %v20028_v1 }
   0x2   :  { %v360_v2 = vshrl.u32 %v359_v0, 7  ;;  %v363_v3 = vand.u32 127, %v359_v0  ;;  %18102 = vmatprep.mubr.msk.f32.mxu0 %vm20029_vm0, %v20028_v1  ;;  %18109 = vmatprep.mubr.msk.f32.mxu1 %vm20029_vm0, %v20028_v1 }
   0x3   :  { %10 = vsyncpa [#allocation3], 0  ;;  %v20030_v4 = vmov 7   ;;  %v24320_v5 = vmov 0   ;;  %v20032_v10 = vmov 1.0   ;;  %vm374_vm3 = vcmask 130048  }
   0x4   :  { %19754 = vset.pattern.permute.xlu1 %v20030_v4  ;;  %19753 = vset.pattern.permute.xlu0 %v24320_v5  ;;  %v20081_v6 = vadd.s32 8, %v360_v2  ;;  %v20083_v7 = vmul.u32 2, %v363_v3  ;;  %v21_v11 = vld [vmem:[%s24314_s0] sm:$0xf]  ;;  %v22_v12 = vld [vmem:[%s24314_s0 + $0x4] sm:$0xf] }
   0x5   :  { %s20033_s0 = smov 3   ;;  %vm709_vm6 = vcmask 23552   ;;  %vm714_vm7 = vcmask 89088   ;;  %s20034_s22 = smov 124   ;;  %v23_v32 = vld [vmem:[%s24315_s1] sm:$0xff]  ;;  %vm820_vm8 = vcmask 162816  }
   0x6   :  { %24326 = vst [vmem:[#allocation5_spill] sm:$0xff] %v20083_v7  ;;  %vm20086_vm1 = vcmp.eq.s32.totalorder %v360_v2, %v20083_v7  ;;  %vm366_vm2 = vcmp.eq.s32.totalorder %v20081_v6, %v20083_v7  ;;  %v20093_v9 = vadd.s32 1, %v20083_v7  ;;  %v25_v33 = vld [vmem:[%s24315_s1 + $0x10] sm:$0xff]  ;;  %s20035_s27 = smov 126   ;;  %s20036_s28 = smov 125   ;;  %v136_v48 = vld [vmem:[%s24316_s2 + $0x8] sm:$0xff] }
   0x7   :  { %18099 = vmatpush3.msk.msra.mxu0 %vm366_vm2, %v20032_v10  ;;  %18106 = vmatpush3.msk.msra.mxu1 %vm366_vm2, %v20032_v10  ;;  %s20037_s29 = smov 127   ;;  %v138_v49 = vld [vmem:[%s24316_s2 + $0x18] sm:$0xff]  ;;  %v135_v50 = vld [vmem:[%s24316_s2] sm:$0xff]  ;;  %v140_v51 = vld [vmem:[%s24316_s2 + $0x28] sm:$0xff]  ;;  %vm771_vm9 = vcmask 1043456  }
   0x8   :  { %24329 = vst [vmem:[#allocation6_spill] sm:$0xff] %v20093_v9  ;;  %18100 = vmatprep.subr.mxu0 %v20028_v1  ;;  %18107 = vmatprep.subr.mxu1 %v20028_v1  ;;  %vm371_vm4 = vcmp.eq.s32.totalorder %v20081_v6, %v20093_v9  ;;  %vm20124_vm5 = vcmp.eq.s32.totalorder %v360_v2, %v20093_v9  ;;  %v137_v52 = vld [vmem:[%s24316_s2 + $0x10] sm:$0xff]  ;;  %v139_v53 = vld [vmem:[%s24316_s2 + $0x20] sm:$0xff]  ;;  %v142_v54 = vld [vmem:[%s24316_s2 + $0x38] sm:$0xff] }
   0x9   :  { %18101 = vmatpush3.msk.msra.mxu0 %vm20086_vm1, %v20032_v10  ;;  %18108 = vmatpush3.msk.msra.mxu1 %vm20086_vm1, %v20032_v10  ;;  %v141_v55 = vld [vmem:[%s24316_s2 + $0x30] sm:$0xff] }
   0xa   :  { %18103 = vmatmul.mubr.msk.f32.vlgmr.msra.gmra.mxu0 %vm374_vm3, %v21_v11  ;;  %18110 = vmatmul.mubr.msk.f32.vlgmr.msra.gmra.mxu1 %vm374_vm3, %v22_v12 }
   0xb   :  { %18112 = vmatprep.subr.mxu0 %v20028_v1  ;;  %18119 = vmatprep.subr.mxu1 %v20028_v1 }
   0xc   :  { %18113 = vmatpush3.msk.msra.mxu0 %vm371_vm4, %v20032_v10  ;;  %18120 = vmatpush3.msk.msra.mxu1 %vm371_vm4, %v20032_v10 }
   0xd   :  { %18114 = vmatprep.subr.mxu0 %v20028_v1  ;;  %18121 = vmatprep.subr.mxu1 %v20028_v1 }
   0xe   :  { %18115 = vmatpush3.msk.msra.mxu0 %vm20124_vm5, %v20032_v10  ;;  %18116 = vmatprep.mubr.msk.f32.mxu0 %vm20029_vm0, %v20028_v1 }
   0xf   :  { %18122 = vmatpush3.msk.msra.mxu1 %vm20124_vm5, %v20032_v10  ;;  %18123 = vmatprep.mubr.msk.f32.mxu1 %vm20029_vm0, %v20028_v1 }
  0x10   :  { %18117 = vmatmul.mubr.msk.f32.vlgmr.msra.gmra.mxu0 %vm374_vm3, %v21_v11  ;;  %18124 = vmatmul.mubr.msk.f32.vlgmr.msra.gmra.mxu1 %vm374_vm3, %v22_v12  ;;  %v24_v12 = vld [vmem:[%s24315_s1 + $0x8] sm:$0xff] }
  0x11   :  { %18132 = vmatprep.mubr.msk.f32.mxu0 %vm820_vm8, %v23_v32  ;;  %18141 = vmatprep.mubr.msk.f32.mxu1 %vm820_vm8, %v25_v33  ;;  %v28_v33 = vld [vmem:[%s24315_s1 + $0x28] sm:$0xff] }
  0xca   :  { %v20150_v14 = vpop.f32.mrf.mxu0  ;;  %v20152_v15 = vpop.f32.mrf.mxu1 }
  0xcb   :  { %682 = vperm.xlu1 %19754, %v20150_v14   ;;  %663 = vperm.xlu0 %19753, %v20150_v14  }
  0xcc   :  { %v18104_v16 = vpop.f32.mrf.mxu0  ;;  %v18111_v17 = vpop.f32.mrf.mxu1 }
  0xcd   :  { %v26_v16 = vld [vmem:[%s24315_s1 + $0x18] sm:$0xff] }
  0xcf   :  { %686 = vperm.xlu1 %19754, %v20152_v15   ;;  %668 = vperm.xlu0 %19753, %v20152_v15  }
  0xd0   :  { %v20158_v18 = vpop.f32.mrf.mxu1  ;;  %v20160_v19 = vpop.f32.mrf.mxu0 }
  0xd2   :  { %v18125_v20 = vpop.f32.mrf.mxu1  ;;  %v18118_v21 = vpop.f32.mrf.mxu0 }
  0xd3   :  { %699 = vrot.lane.b32.xlu1 %v20152_v15, %s20033_s0  ;;  %697 = vrot.lane.b32.xlu0 %v20150_v14, %s20033_s0  ;;  %v27_v21 = vld [vmem:[%s24315_s1 + $0x20] sm:$0xff] }
  0xd4   :  { %19755 = vset.pattern.permute.xlu1 %v24320_v5 }
  0xd7   :  { %678 = vperm.xlu1 %19755, %v20158_v18   ;;  %673 = vperm.xlu0 %19753, %v20160_v19  }
  0xdb   :  { %19757 = vset.pattern.permute.xlu1 %v20030_v4  ;;  %19756 = vset.pattern.permute.xlu0 %v20030_v4 }
  0xdc   :  { %694 = vperm.xlu1 %19757, %v20158_v18   ;;  %690 = vperm.xlu0 %19756, %v20160_v19  }
  0xe0   :  { %701 = vrot.lane.b32.xlu1 %v20160_v19, %s20033_s0  ;;  %703 = vrot.lane.b32.xlu0 %v20158_v18, %s20033_s0 }
  0xe1   :  { %19758 = vset.pattern.permute.xlu1 %v24320_v5  ;;  %19759 = vset.pattern.permute.xlu0 %v24320_v5 }
 0x146   :  { %v683_v22 = vpop.permute.xlu1 %682  ;;  %v664_v23 = vpop.permute.xlu0 %663 }
 0x14a   :  { %v687_v24 = vpop.permute.xlu1 %686  ;;  %v669_v25 = vpop.permute.xlu0 %668 }
 0x14e   :  { %v700_v26 = vpop.permute.xlu1 %699  ;;  %v698_v27 = vpop.permute.xlu0 %697 }
 0x14f   :  { %v711_v28 = vsel %vm709_vm6, %v669_v25, %v700_v26  ;;  %v710_v29 = vsel %vm709_vm6, %v664_v23, %v698_v27 }
 0x150   :  { %v20182_v30 = vsel %vm714_vm7, %v710_v29, %v683_v22  ;;  %v20185_v31 = vsel %vm714_vm7, %v711_v28, %v687_v24  ;;  %v29_v22 = vld [vmem:[%s24315_s1 + $0x30] sm:$0xff] }
 0x151   :  { %763 = vrot.lane.b32.xlu1 %v20182_v30, %s20034_s22  ;;  %765 = vrot.lane.b32.xlu0 %v20185_v31, %s20034_s22  ;;  %v723_v38 = vrot.slane %v20182_v30, 4  ;;  %v724_v39 = vrot.slane %v20185_v31, 4 }
 0x152   :  { %v674_v34 = vpop.permute.xlu0 %673  ;;  %v679_v35 = vpop.permute.xlu1 %678 }
 0x155   :  { %739 = vrot.lane.b32.xlu1 %v20182_v30, %s20035_s27  ;;  %741 = vrot.lane.b32.xlu0 %v20185_v31, %s20035_s27 }
 0x157   :  { %v695_v36 = vpop.permute.xlu1 %694  ;;  %v691_v37 = vpop.permute.xlu0 %690 }
 0x159   :  { %751 = vrot.lane.b32.xlu1 %v723_v38, %s20036_s28  ;;  %753 = vrot.lane.b32.xlu0 %v724_v39, %s20036_s28 }
 0x15b   :  { %v702_v40 = vpop.permute.xlu1 %701  ;;  %v704_v41 = vpop.permute.xlu0 %703 }
 0x15c   :  { %v712_v42 = vsel %vm709_vm6, %v674_v34, %v702_v40  ;;  %v713_v43 = vsel %vm709_vm6, %v679_v35, %v704_v41  ;;  %v30_v34 = vld [vmem:[%s24315_s1 + $0x38] sm:$0xff] }
 0x15d   :  { %727 = vrot.lane.b32.xlu1 %v723_v38, %s20037_s29  ;;  %729 = vrot.lane.b32.xlu0 %v724_v39, %s20037_s29  ;;  %v20212_v44 = vsel %vm714_vm7, %v712_v42, %v691_v37  ;;  %v20215_v45 = vsel %vm714_vm7, %v713_v43, %v695_v36 }
 0x15e   :  { %v725_v46 = vrot.slane %v20212_v44, 4  ;;  %v726_v47 = vrot.slane %v20215_v45, 4 }
 0x161   :  { %767 = vrot.lane.b32.xlu1 %v20212_v44, %s20034_s22  ;;  %769 = vrot.lane.b32.xlu0 %v20215_v45, %s20034_s22 }
 0x165   :  { %743 = vrot.lane.b32.xlu1 %v20212_v44, %s20035_s27  ;;  %745 = vrot.lane.b32.xlu0 %v20215_v45, %s20035_s27 }
 0x169   :  { %755 = vrot.lane.b32.xlu1 %v725_v46, %s20036_s28  ;;  %757 = vrot.lane.b32.xlu0 %v726_v47, %s20036_s28 }
 0x16d   :  { %731 = vrot.lane.b32.xlu1 %v725_v46, %s20037_s29  ;;  %733 = vrot.lane.b32.xlu0 %v726_v47, %s20037_s29 }
 0x171   :  { %787 = vperm.xlu1 %19758, %v136_v48   ;;  %797 = vperm.xlu0 %19759, %v138_v49  }
 0x175   :  { %782 = vperm.xlu1 %19758, %v135_v50   ;;  %807 = vperm.xlu0 %19759, %v140_v51  }
 0x179   :  { %792 = vperm.xlu1 %19758, %v137_v52   ;;  %802 = vperm.xlu0 %19759, %v139_v53  }
 0x17d   :  { %817 = vperm.xlu1 %19758, %v142_v54  }
 0x181   :  { %812 = vperm.xlu1 %19758, %v141_v55  }
 0x1c3   :  { %v764_v56 = vpop.permute.xlu1 %763  ;;  %v766_v57 = vpop.permute.xlu0 %765 }
 0x1c4   :  { %18126 = vmatprep.subr.msk.mxu0 %vm771_vm9, %v764_v56  ;;  %18135 = vmatprep.subr.msk.mxu1 %vm771_vm9, %v766_v57 }
 0x1c5   :  { %18127 = vmatpush3.msk.msra.mxu0 %vm771_vm9, %v764_v56  ;;  %18136 = vmatpush3.msk.msra.mxu1 %vm771_vm9, %v766_v57 }
 0x1c7   :  { %v740_v58 = vpop.permute.xlu1 %739  ;;  %v742_v59 = vpop.permute.xlu0 %741 }
 0x1cb   :  { %v752_v60 = vpop.permute.xlu1 %751  ;;  %v754_v61 = vpop.permute.xlu0 %753 }
 0x1cc   :  { %v776_v62 = vsel %vm771_vm9, %v740_v58, %v752_v60  ;;  %v777_v63 = vsel %vm771_vm9, %v742_v59, %v754_v61 }
 0x1cd   :  { %18128 = vmatprep.subr.mxu0 %v776_v62  ;;  %18137 = vmatprep.subr.mxu1 %v777_v63 }
 0x1ce   :  { %18129 = vmatpush3.msra.mxu0 %v776_v62  ;;  %18138 = vmatpush3.msra.mxu1 %v777_v63 }
 0x1cf   :  { %v728_v0 = vpop.permute.xlu1 %727  ;;  %v730_v2 = vpop.permute.xlu0 %729 }
 0x1d0   :  { %v772_v3 = vsel %vm771_vm9, %v20182_v30, %v728_v0  ;;  %v773_v11 = vsel %vm771_vm9, %v20185_v31, %v730_v2 }
 0x1d1   :  { %18130 = vmatprep.subr.mxu0 %v772_v3  ;;  %18139 = vmatprep.subr.mxu1 %v773_v11 }
 0x1d2   :  { %18131 = vmatpush3.msra.mxu0 %v772_v3  ;;  %18140 = vmatpush3.msra.mxu1 %v773_v11 }
 0x1d3   :  { %18133 = vmatmul.mubr.msk.f32.vlgmr.msra.gmra.mxu0 %vm820_vm8, %v24_v12  ;;  %v768_v17 = vpop.permute.xlu1 %767  ;;  %18142 = vmatmul.mubr.msk.f32.vlgmr.msra.gmra.mxu1 %vm820_vm8, %v26_v16  ;;  %v770_v20 = vpop.permute.xlu0 %769 }
 0x1d4   :  { %18144 = vmatprep.subr.msk.mxu0 %vm771_vm9, %v768_v17  ;;  %18153 = vmatprep.subr.msk.mxu1 %vm771_vm9, %v770_v20 }
 0x1d5   :  { %18145 = vmatpush3.msk.msra.mxu0 %vm771_vm9, %v768_v17  ;;  %18154 = vmatpush3.msk.msra.mxu1 %vm771_vm9, %v770_v20 }
 0x1d6   :  { %18150 = vmatprep.mubr.msk.f32.mxu0 %vm820_vm8, %v27_v21  ;;  %18159 = vmatprep.mubr.msk.f32.mxu1 %vm820_vm8, %v29_v22 }
 0x1d7   :  { %v744_v23 = vpop.permute.xlu1 %743  ;;  %v746_v24 = vpop.permute.xlu0 %745 }
 0x1db   :  { %v756_v25 = vpop.permute.xlu1 %755  ;;  %v758_v26 = vpop.permute.xlu0 %757 }
 0x1dc   :  { %v778_v27 = vsel %vm771_vm9, %v744_v23, %v756_v25  ;;  %v779_v28 = vsel %vm771_vm9, %v746_v24, %v758_v26  ;;  %v304_v24 = vld [vmem:[%s24318_s4 + $0x4] sm:$0xf]  ;;  %v303_v25 = vld [vmem:[%s24318_s4] sm:$0xf]  ;;  %v306_v26 = vld [vmem:[%s24318_s4 + $0xc] sm:$0xf] }
 0x1dd   :  { %18146 = vmatprep.subr.mxu0 %v778_v27  ;;  %18155 = vmatprep.subr.mxu1 %v779_v28 }
 0x1de   :  { %18147 = vmatpush3.msra.mxu0 %v778_v27  ;;  %18156 = vmatpush3.msra.mxu1 %v779_v28  ;;  %v305_v27 = vld [vmem:[%s24318_s4 + $0x8] sm:$0xf] }
 0x1df   :  { %v732_v29 = vpop.permute.xlu1 %731  ;;  %v734_v30 = vpop.permute.xlu0 %733 }
 0x1e0   :  { %v774_v31 = vsel %vm771_vm9, %v20212_v44, %v732_v29  ;;  %v775_v32 = vsel %vm771_vm9, %v20215_v45, %v734_v30 }
 0x1e1   :  { %18148 = vmatprep.subr.mxu0 %v774_v31  ;;  %18157 = vmatprep.subr.mxu1 %v775_v32 }
 0x1e2   :  { %18149 = vmatpush3.msra.mxu0 %v774_v31  ;;  %18158 = vmatpush3.msra.mxu1 %v775_v32 }
 0x1e3   :  { %18151 = vmatmul.mubr.msk.f32.vlgmr.msra.gmra.mxu0 %vm820_vm8, %v28_v33  ;;  %18160 = vmatmul.mubr.msk.f32.vlgmr.msra.gmra.mxu1 %vm820_vm8, %v30_v34 }
 0x1e4   :  { %18162 = vmatprep.subr.mxu0 %v20028_v1  ;;  %18177 = vmatprep.subr.mxu1 %v20028_v1 }
 0x1e5   :  { %18174 = vmatprep.mubr.msk.f32.mxu0 %vm20029_vm0, %v20028_v1  ;;  %18189 = vmatprep.mubr.msk.f32.mxu1 %vm20029_vm0, %v20028_v1 }
 0x1ec   :  { %v788_v35 = vpop.permute.xlu1 %787  ;;  %v798_v37 = vpop.permute.xlu0 %797 }
 0x1f0   :  { %v783_v36 = vpop.permute.xlu1 %782  ;;  %v808_v56 = vpop.permute.xlu0 %807 }
 0x1f4   :  { %v793_v46 = vpop.permute.xlu1 %792  ;;  %v803_v3 = vpop.permute.xlu0 %802 }
 0x1f8   :  { %v818_v55 = vpop.permute.xlu1 %817 }
 0x1fc   :  { %v813_v2 = vpop.permute.xlu1 %812 }
 0x293   :  { %v18143_v38 = vpop.f32.mrf.mxu1  ;;  %v18134_v39 = vpop.f32.mrf.mxu0 }
 0x294   :  { %v984_v40 = vadd.f32 %v18143_v38, %v798_v37  ;;  %v901_v41 = vadd.f32 %v18134_v39, %v788_v35  ;;  %v248_v37 = vld [vmem:[%s24317_s3 + $0x4] sm:$0xf] }
 0x295   :  { %v895_v42 = vpop.f32.mrf.mxu0  ;;  %v978_v43 = vpop.f32.mrf.mxu1 }
 0x296   :  { %v1164_v44 = vmul.f32 0.01, %v984_v40  ;;  %v1162_v45 = vmul.f32 0.01, %v901_v41  ;;  %vm1156_vm10 = vcmp.ge.f32.partialorder %v984_v40, 0.0  ;;  %vm1154_vm11 = vcmp.ge.f32.partialorder %v901_v41, 0.0 }
 0x297   :  { %v896_v47 = vadd.f32 %v895_v42, %v783_v36  ;;  %v979_v48 = vadd.f32 %v978_v43, %v793_v46  ;;  %v247_v36 = vld [vmem:[%s24317_s3] sm:$0xf]  ;;  %v249_v46 = vld [vmem:[%s24317_s3 + $0x8] sm:$0xf] }
 0x298   :  { %v20305_v49 = vsel %vm1156_vm10, %v984_v40, %v1164_v44  ;;  %v20307_v50 = vsel %vm1154_vm11, %v901_v41, %v1162_v45  ;;  %vm1253_vm11 = vcmask 392192  }
 0x299   :  { %1215 = vrot.lane.b32.xlu1 %v20305_v49, %s20035_s27  ;;  %1211 = vrot.lane.b32.xlu0 %v20307_v50, %s20035_s27  ;;  %v1163_v51 = vmul.f32 0.01, %v979_v48  ;;  %v1161_v52 = vmul.f32 0.01, %v896_v47  ;;  %vm1155_vm12 = vcmp.ge.f32.partialorder %v979_v48, 0.0  ;;  %vm1153_vm13 = vcmp.ge.f32.partialorder %v896_v47, 0.0 }
 0x29b   :  { %v20317_v53 = vsel %vm1155_vm12, %v979_v48, %v1163_v51  ;;  %v20319_v54 = vsel %vm1153_vm13, %v896_v47, %v1161_v52  ;;  %v250_v47 = vld [vmem:[%s24317_s3 + $0xc] sm:$0xf] }
 0x29d   :  { %1191 = vrot.lane.b32.xlu1 %v20305_v49, %s20037_s29  ;;  %1187 = vrot.lane.b32.xlu0 %v20307_v50, %s20037_s29 }
 0x2a1   :  { %1213 = vrot.lane.b32.xlu1 %v20317_v53, %s20035_s27  ;;  %1209 = vrot.lane.b32.xlu0 %v20319_v54, %s20035_s27 }
 0x2a3   :  { %v18152_v57 = vpop.f32.mrf.mxu0  ;;  %v18161_v58 = vpop.f32.mrf.mxu1 }
 0x2a4   :  { %v1067_v59 = vadd.f32 %v18152_v57, %v808_v56  ;;  %v1150_v60 = vadd.f32 %v18161_v58, %v818_v55 }
 0x2a5   :  { %v1144_v61 = vpop.f32.mrf.mxu1  ;;  %1189 = vrot.lane.b32.xlu1 %v20317_v53, %s20037_s29  ;;  %v1061_v62 = vpop.f32.mrf.mxu0  ;;  %1185 = vrot.lane.b32.xlu0 %v20319_v54, %s20037_s29 }
 0x2a6   :  { %v1166_v63 = vmul.f32 0.01, %v1067_v59  ;;  %v1168_v0 = vmul.f32 0.01, %v1150_v60  ;;  %vm1160_vm14 = vcmp.ge.f32.partialorder %v1150_v60, 0.0  ;;  %vm1158_vm15 = vcmp.ge.f32.partialorder %v1067_v59, 0.0 }
 0x2a7   :  { %v1145_v11 = vadd.f32 %v1144_v61, %v813_v2  ;;  %v1062_v12 = vadd.f32 %v1061_v62, %v803_v3 }
 0x2a8   :  { %v20329_v16 = vsel %vm1160_vm14, %v1150_v60, %v1168_v0  ;;  %v20331_v17 = vsel %vm1158_vm15, %v1067_v59, %v1166_v63 }
 0x2a9   :  { %1223 = vrot.lane.b32.xlu1 %v20329_v16, %s20035_s27  ;;  %1219 = vrot.lane.b32.xlu0 %v20331_v17, %s20035_s27  ;;  %v1167_v20 = vmul.f32 0.01, %v1145_v11  ;;  %v1165_v21 = vmul.f32 0.01, %v1062_v12  ;;  %vm1159_vm3 = vcmp.ge.f32.partialorder %v1145_v11, 0.0  ;;  %vm1157_vm10 = vcmp.ge.f32.partialorder %v1062_v12, 0.0 }
 0x2ab   :  { %v20341_v22 = vsel %vm1159_vm3, %v1145_v11, %v1167_v20  ;;  %v20343_v23 = vsel %vm1157_vm10, %v1062_v12, %v1165_v21 }
 0x2ad   :  { %1199 = vrot.lane.b32.xlu1 %v20329_v16, %s20037_s29  ;;  %1195 = vrot.lane.b32.xlu0 %v20331_v17, %s20037_s29 }
 0x2b1   :  { %1221 = vrot.lane.b32.xlu1 %v20341_v22, %s20035_s27  ;;  %1217 = vrot.lane.b32.xlu0 %v20343_v23, %s20035_s27 }
 0x2b5   :  { %1197 = vrot.lane.b32.xlu1 %v20341_v22, %s20037_s29  ;;  %1193 = vrot.lane.b32.xlu0 %v20343_v23, %s20037_s29 }
 0x2b9   :  { %1240 = vperm.xlu1 %19758, %v304_v24   ;;  %1235 = vperm.xlu0 %19759, %v303_v25  }
 0x2bd   :  { %1250 = vperm.xlu1 %19758, %v306_v26   ;;  %1245 = vperm.xlu0 %19759, %v305_v27  }
 0x30b   :  { %v1216_v28 = vpop.permute.xlu1 %1215  ;;  %v1212_v29 = vpop.permute.xlu0 %1211 }
 0x30c   :  { %18163 = vmatpush3.msra.mxu0 %v1212_v29  ;;  %18178 = vmatpush3.msra.mxu1 %v1216_v28 }
 0x30d   :  { %18179 = vmatprep.subr.mxu1 %v20028_v1  ;;  %18164 = vmatprep.subr.mxu0 %v20028_v1 }
 0x30f   :  { %v1192_v30 = vpop.permute.xlu1 %1191  ;;  %v1188_v31 = vpop.permute.xlu0 %1187 }
 0x313   :  { %v1214_v32 = vpop.permute.xlu1 %1213  ;;  %v1210_v33 = vpop.permute.xlu0 %1209 }
 0x314   :  { %18165 = vmatpush3.msra.mxu0 %v1210_v33  ;;  %18180 = vmatpush3.msra.mxu1 %v1214_v32 }
 0x315   :  { %18166 = vmatprep.subr.mxu0 %v20028_v1  ;;  %18181 = vmatprep.subr.mxu1 %v20028_v1 }
 0x316   :  { %18167 = vmatpush3.msra.mxu0 %v1188_v31  ;;  %18182 = vmatpush3.msra.mxu1 %v1192_v30 }
 0x317   :  { %18183 = vmatprep.subr.mxu1 %v20028_v1  ;;  %v1190_v34 = vpop.permute.xlu1 %1189  ;;  %18168 = vmatprep.subr.mxu0 %v20028_v1  ;;  %v1186_v35 = vpop.permute.xlu0 %1185 }
 0x318   :  { %18169 = vmatpush3.msra.mxu0 %v1186_v35  ;;  %18184 = vmatpush3.msra.mxu1 %v1190_v34  ;;  %v31_v34 = vld [vmem:[%s24315_s1 + $0x40] sm:$0xff]  ;;  %v33_v35 = vld [vmem:[%s24315_s1 + $0x50] sm:$0xff] }
 0x319   :  { %18170 = vmatprep.subr.mxu0 %v20028_v1  ;;  %18185 = vmatprep.subr.mxu1 %v20028_v1 }
 0x31a   :  { %18171 = vmatpush3.msra.mxu0 %v20307_v50  ;;  %18186 = vmatpush3.msra.mxu1 %v20305_v49 }
 0x31b   :  { %18187 = vmatprep.subr.mxu1 %v20028_v1  ;;  %v1224_v38 = vpop.permute.xlu1 %1223  ;;  %18172 = vmatprep.subr.mxu0 %v20028_v1  ;;  %v1220_v39 = vpop.permute.xlu0 %1219 }
 0x31c   :  { %18173 = vmatpush3.msra.mxu0 %v20319_v54  ;;  %18188 = vmatpush3.msra.mxu1 %v20317_v53 }
 0x31d   :  { %18175 = vmatmul.mubr.msk.f32.vlgmr.msra.gmra.mxu0 %vm1253_vm11, %v247_v36  ;;  %18190 = vmatmul.mubr.msk.f32.vlgmr.msra.gmra.mxu1 %vm1253_vm11, %v248_v37 }
 0x31e   :  { %18192 = vmatprep.subr.mxu0 %v20028_v1  ;;  %18207 = vmatprep.subr.mxu1 %v20028_v1 }
 0x31f   :  { %18193 = vmatpush3.msra.mxu0 %v1220_v39  ;;  %18208 = vmatpush3.msra.mxu1 %v1224_v38  ;;  %v1200_v40 = vpop.permute.xlu1 %1199  ;;  %v1196_v41 = vpop.permute.xlu0 %1195 }
 0x320   :  { %18209 = vmatprep.subr.mxu1 %v20028_v1  ;;  %18194 = vmatprep.subr.mxu0 %v20028_v1 }
 0x321   :  { %18204 = vmatprep.mubr.msk.f32.mxu0 %vm20029_vm0, %v20028_v1  ;;  %18219 = vmatprep.mubr.msk.f32.mxu1 %vm20029_vm0, %v20028_v1 }
 0x323   :  { %v1222_v42 = vpop.permute.xlu1 %1221  ;;  %v1218_v43 = vpop.permute.xlu0 %1217 }
 0x324   :  { %18195 = vmatpush3.msra.mxu0 %v1218_v43  ;;  %18210 = vmatpush3.msra.mxu1 %v1222_v42 }
 0x325   :  { %18196 = vmatprep.subr.mxu0 %v20028_v1  ;;  %18211 = vmatprep.subr.mxu1 %v20028_v1 }
 0x326   :  { %18197 = vmatpush3.msra.mxu0 %v1196_v41  ;;  %18212 = vmatpush3.msra.mxu1 %v1200_v40 }
 0x327   :  { %18213 = vmatprep.subr.mxu1 %v20028_v1  ;;  %v1198_v44 = vpop.permute.xlu1 %1197  ;;  %18198 = vmatprep.subr.mxu0 %v20028_v1  ;;  %v1194_v45 = vpop.permute.xlu0 %1193 }
 0x328   :  { %18199 = vmatpush3.msra.mxu0 %v1194_v45  ;;  %18214 = vmatpush3.msra.mxu1 %v1198_v44 }
 0x329   :  { %18200 = vmatprep.subr.mxu0 %v20028_v1  ;;  %18215 = vmatprep.subr.mxu1 %v20028_v1 }
 0x32a   :  { %18201 = vmatpush3.msra.mxu0 %v20331_v17  ;;  %18216 = vmatpush3.msra.mxu1 %v20329_v16 }
 0x32b   :  { %18202 = vmatprep.subr.mxu0 %v20028_v1  ;;  %18217 = vmatprep.subr.mxu1 %v20028_v1 }
 0x32c   :  { %18203 = vmatpush3.msra.mxu0 %v20343_v23  ;;  %18218 = vmatpush3.msra.mxu1 %v20341_v22 }
 0x32d   :  { %18205 = vmatmul.mubr.msk.f32.vlgmr.msra.gmra.mxu0 %vm1253_vm11, %v249_v46  ;;  %18220 = vmatmul.mubr.msk.f32.vlgmr.msra.gmra.mxu1 %vm1253_vm11, %v250_v47 }
 0x32e   :  { %18228 = vmatprep.mubr.msk.f32.mxu0 %vm820_vm8, %v31_v34  ;;  %18237 = vmatprep.mubr.msk.f32.mxu1 %vm820_vm8, %v33_v35  ;;  %v38_v35 = vld [vmem:[%s24315_s1 + $0x78] sm:$0xff] }
 0x334   :  { %v1241_v48 = vpop.permute.xlu1 %1240  ;;  %v1236_v49 = vpop.permute.xlu0 %1235 }
 0x338   :  { %v1246_v56 = vpop.permute.xlu0 %1245  ;;  %v1251_v61 = vpop.permute.xlu1 %1250 }
 0x3dd   :  { %v1323_v50 = vpop.f32.mrf.mxu0  ;;  %v1396_v51 = vpop.f32.mrf.mxu1 }
 0x3de   :  { %v1324_v52 = vadd.f32 %v1323_v50, %v1236_v49  ;;  %v1397_v53 = vadd.f32 %v1396_v51, %v1241_v48  ;;  %v144_v50 = vld [vmem:[%s24316_s2 + $0x48] sm:$0xff]  ;;  %v143_v51 = vld [vmem:[%s24316_s2 + $0x40] sm:$0xff] }
 0x3df   :  { %v18176_v54 = vpop.f32.mrf.mxu0  ;;  %v18191_v55 = vpop.f32.mrf.mxu1 }
 0x3e0   :  { %19838 = vtanh.f32 %v1324_v52  ;;  %v148_v52 = vld [vmem:[%s24316_s2 + $0x68] sm:$0xff]  ;;  %v147_v54 = vld [vmem:[%s24316_s2 + $0x60] sm:$0xff]  ;;  %v145_v55 = vld [vmem:[%s24316_s2 + $0x50] sm:$0xff] }
 0x3e1   :  { %19840 = vtanh.f32 %v1397_v53  ;;  %v146_v53 = vld [vmem:[%s24316_s2 + $0x58] sm:$0xff] }
 0x3ed   :  { %v19839_v57 = vpop.eup %19838  ;;  %v1469_v58 = vpop.f32.mrf.mxu0 }
 0x3ee   :  { %v1542_v59 = vpop.f32.mrf.mxu1  ;;  %v19841_v60 = vpop.eup %19840  ;;  %v1550_v62 = vmul.f32 1.442695, %v19839_v57  ;;  %v1470_v63 = vadd.f32 %v1469_v58, %v1246_v56  ;;  %v150_v56 = vld [vmem:[%s24316_s2 + $0x78] sm:$0xff]  ;;  %v149_v57 = vld [vmem:[%s24316_s2 + $0x70] sm:$0xff] }
 0x3ef   :  { %v1552_v0 = vmul.f32 1.442695, %v19841_v60  ;;  %v1543_v2 = vadd.f32 %v1542_v59, %v1251_v61  ;;  %v18206_v3 = vpop.f32.mrf.mxu0 }
 0x3f0   :  { %v18221_v11 = vpop.f32.mrf.mxu1  ;;  %19842 = vpow2.f32 %v1550_v62 }
 0x3f1   :  { %19844 = vpow2.f32 %v1552_v0 }
 0x3f2   :  { %19846 = vtanh.f32 %v1470_v63 }
 0x3f3   :  { %19848 = vtanh.f32 %v1543_v2 }
 0x3fd   :  { %v19843_v12 = vpop.eup %19842 }
 0x3fe   :  { %v19845_v16 = vpop.eup %19844  ;;  %v20416_v17 = vmul.f32 %v19843_v12, %v20160_v19 }
 0x3ff   :  { %v19847_v20 = vpop.eup %19846  ;;  %v20419_v21 = vmul.f32 %v19845_v16, %v20158_v18  ;;  %v34_v16 = vld [vmem:[%s24315_s1 + $0x58] sm:$0xff] }
 0x400   :  { %v19849_v22 = vpop.eup %19848  ;;  %v1556_v23 = vmul.f32 1.442695, %v19847_v20  ;;  %1564 = vperm.xlu0 %19759, %v20416_v17  }
 0x401   :  { %v1558_v24 = vmul.f32 1.442695, %v19849_v22  ;;  %1569 = vperm.xlu1 %19758, %v20419_v21   ;;  %v32_v22 = vld [vmem:[%s24315_s1 + $0x48] sm:$0xff] }
 0x402   :  { %19850 = vpow2.f32 %v1556_v23  ;;  %v37_v23 = vld [vmem:[%s24315_s1 + $0x70] sm:$0xff] }
 0x403   :  { %19852 = vpow2.f32 %v1558_v24  ;;  %v35_v24 = vld [vmem:[%s24315_s1 + $0x60] sm:$0xff] }
 0x404   :  { %19760 = vset.pattern.permute.xlu0 %v20030_v4 }
 0x405   :  { %19761 = vset.pattern.permute.xlu1 %v20030_v4  ;;  %1583 = vperm.xlu0 %19760, %v20416_v17  }
 0x406   :  { %1587 = vperm.xlu1 %19761, %v20419_v21  }
 0x409   :  { %1600 = vrot.lane.b32.xlu0 %v20419_v21, %s20033_s0 }
 0x40a   :  { %1598 = vrot.lane.b32.xlu1 %v20416_v17, %s20033_s0  ;;  %19763 = vset.pattern.permute.xlu0 %v24320_v5 }
 0x40b   :  { %19762 = vset.pattern.permute.xlu1 %v24320_v5 }
 0x40f   :  { %v19851_v18 = vpop.eup %19850 }
 0x410   :  { %v19853_v19 = vpop.eup %19852  ;;  %v20434_v25 = vmul.f32 %v19851_v18, %v20150_v14 }
 0x411   :  { %v20437_v26 = vmul.f32 %v19853_v19, %v20152_v15 }
 0x412   :  { %1574 = vperm.xlu1 %19762, %v20434_v25  }
 0x413   :  { %1579 = vperm.xlu0 %19763, %v20437_v26  }
 0x416   :  { %19764 = vset.pattern.permute.xlu1 %v20030_v4 }
 0x417   :  { %1602 = vrot.lane.b32.xlu0 %v20434_v25, %s20033_s0  ;;  %1591 = vperm.xlu1 %19764, %v20434_v25  }
 0x41b   :  { %1595 = vperm.xlu1 %19764, %v20437_v26  }
 0x41f   :  { %1604 = vrot.lane.b32.xlu1 %v20437_v26, %s20033_s0 }
 0x420   :  { %19765 = vset.pattern.permute.xlu1 %v24320_v5 }
 0x47b   :  { %v1565_v14 = vpop.permute.xlu0 %1564 }
 0x47c   :  { %v1570_v15 = vpop.permute.xlu1 %1569 }
 0x480   :  { %v1584_v27 = vpop.permute.xlu0 %1583 }
 0x481   :  { %v1588_v28 = vpop.permute.xlu1 %1587 }
 0x484   :  { %v1601_v29 = vpop.permute.xlu0 %1600 }
 0x485   :  { %v1599_v30 = vpop.permute.xlu1 %1598  ;;  %v1611_v4 = vsel %vm709_vm6, %v1570_v15, %v1601_v29 }
 0x486   :  { %v1610_v31 = vsel %vm709_vm6, %v1565_v14, %v1599_v30  ;;  %v20452_v32 = vsel %vm714_vm7, %v1611_v4, %v1588_v28 }
 0x487   :  { %v20455_v33 = vsel %vm714_vm7, %v1610_v31, %v1584_v27  ;;  %1664 = vrot.lane.b32.xlu1 %v20452_v32, %s20034_s22  ;;  %v1623_v37 = vrot.slane %v20452_v32, 4  ;;  %v36_v31 = vld [vmem:[%s24315_s1 + $0x68] sm:$0xff] }
 0x488   :  { %1662 = vrot.lane.b32.xlu0 %v20455_v33, %s20034_s22  ;;  %v1622_v39 = vrot.slane %v20455_v33, 4 }
 0x48b   :  { %1640 = vrot.lane.b32.xlu1 %v20452_v32, %s20035_s27 }
 0x48c   :  { %1638 = vrot.lane.b32.xlu0 %v20455_v33, %s20035_s27 }
 0x48d   :  { %v1575_v36 = vpop.permute.xlu1 %1574 }
 0x48e   :  { %v1580_v38 = vpop.permute.xlu0 %1579 }
 0x48f   :  { %1652 = vrot.lane.b32.xlu1 %v1623_v37, %s20036_s28 }
 0x490   :  { %1650 = vrot.lane.b32.xlu0 %v1622_v39, %s20036_s28 }
 0x492   :  { %v1603_v40 = vpop.permute.xlu0 %1602  ;;  %v1592_v41 = vpop.permute.xlu1 %1591 }
 0x493   :  { %1628 = vrot.lane.b32.xlu1 %v1623_v37, %s20037_s29  ;;  %v1612_v42 = vsel %vm709_vm6, %v1575_v36, %v1603_v40 }
 0x494   :  { %1626 = vrot.lane.b32.xlu0 %v1622_v39, %s20037_s29  ;;  %v20481_v44 = vsel %vm714_vm7, %v1612_v42, %v1592_v41 }
 0x495   :  { %v1624_v48 = vrot.slane %v20481_v44, 4 }
 0x496   :  { %v1596_v43 = vpop.permute.xlu1 %1595 }
 0x498   :  { %1666 = vrot.lane.b32.xlu0 %v20481_v44, %s20034_s22 }
 0x49a   :  { %v1605_v45 = vpop.permute.xlu1 %1604 }
 0x49b   :  { %v1613_v46 = vsel %vm709_vm6, %v1580_v38, %v1605_v45 }
 0x49c   :  { %v20487_v47 = vsel %vm714_vm7, %v1613_v46, %v1596_v43  ;;  %1642 = vrot.lane.b32.xlu0 %v20481_v44, %s20035_s27 }
 0x49d   :  { %1668 = vrot.lane.b32.xlu1 %v20487_v47, %s20034_s22  ;;  %v1625_v49 = vrot.slane %v20487_v47, 4 }
 0x4a0   :  { %1654 = vrot.lane.b32.xlu0 %v1624_v48, %s20036_s28 }
 0x4a1   :  { %1644 = vrot.lane.b32.xlu1 %v20487_v47, %s20035_s27 }
 0x4a4   :  { %1630 = vrot.lane.b32.xlu0 %v1624_v48, %s20037_s29 }
 0x4a5   :  { %1656 = vrot.lane.b32.xlu1 %v1625_v49, %s20036_s28 }
 0x4a8   :  { %1685 = vperm.xlu0 %19763, %v144_v50  }
 0x4a9   :  { %1632 = vrot.lane.b32.xlu1 %v1625_v49, %s20037_s29 }
 0x4ac   :  { %1680 = vperm.xlu0 %19763, %v143_v51  }
 0x4ad   :  { %1695 = vperm.xlu1 %19765, %v146_v53  }
 0x4b0   :  { %1705 = vperm.xlu0 %19763, %v148_v52  }
 0x4b1   :  { %1690 = vperm.xlu1 %19765, %v145_v55  }
 0x4b4   :  { %1700 = vperm.xlu0 %19763, %v147_v54  }
 0x4b5   :  { %1715 = vperm.xlu1 %19765, %v150_v56  }
 0x4b9   :  { %1710 = vperm.xlu1 %19765, %v149_v57  }
 0x4f9   :  { %v1665_v58 = vpop.permute.xlu1 %1664 }
 0x4fa   :  { %v1663_v59 = vpop.permute.xlu0 %1662  ;;  %18231 = vmatprep.subr.msk.mxu1 %vm771_vm9, %v1665_v58 }
 0x4fb   :  { %18222 = vmatprep.subr.msk.mxu0 %vm771_vm9, %v1663_v59  ;;  %18232 = vmatpush3.msk.msra.mxu1 %vm771_vm9, %v1665_v58 }
 0x4fc   :  { %18223 = vmatpush3.msk.msra.mxu0 %vm771_vm9, %v1663_v59 }
 0x4fd   :  { %v1641_v60 = vpop.permute.xlu1 %1640 }
 0x4fe   :  { %v1639_v61 = vpop.permute.xlu0 %1638 }
 0x501   :  { %v1653_v62 = vpop.permute.xlu1 %1652 }
 0x502   :  { %v1651_v63 = vpop.permute.xlu0 %1650  ;;  %v1675_v0 = vsel %vm771_vm9, %v1641_v60, %v1653_v62 }
 0x503   :  { %v1674_v2 = vsel %vm771_vm9, %v1639_v61, %v1651_v63  ;;  %18233 = vmatprep.subr.mxu1 %v1675_v0 }
 0x504   :  { %18224 = vmatprep.subr.mxu0 %v1674_v2  ;;  %18234 = vmatpush3.msra.mxu1 %v1675_v0 }
 0x505   :  { %18225 = vmatpush3.msra.mxu0 %v1674_v2  ;;  %v1629_v3 = vpop.permute.xlu1 %1628 }
 0x506   :  { %v1627_v11 = vpop.permute.xlu0 %1626  ;;  %v1671_v12 = vsel %vm771_vm9, %v20452_v32, %v1629_v3 }
 0x507   :  { %v1670_v20 = vsel %vm771_vm9, %v20455_v33, %v1627_v11  ;;  %18235 = vmatprep.subr.mxu1 %v1671_v12 }
 0x508   :  { %18226 = vmatprep.subr.mxu0 %v1670_v20  ;;  %18236 = vmatpush3.msra.mxu1 %v1671_v12 }
 0x509   :  { %18227 = vmatpush3.msra.mxu0 %v1670_v20  ;;  %18238 = vmatmul.mubr.msk.f32.vlgmr.msra.gmra.mxu1 %vm820_vm8, %v34_v16 }
 0x50a   :  { %18229 = vmatmul.mubr.msk.f32.vlgmr.msra.gmra.mxu0 %vm820_vm8, %v32_v22  ;;  %v1667_v18 = vpop.permute.xlu0 %1666  ;;  %18255 = vmatprep.mubr.msk.f32.mxu1 %vm820_vm8, %v37_v23 }
 0x50b   :  { %18240 = vmatprep.subr.msk.mxu0 %vm771_vm9, %v1667_v18  ;;  %18246 = vmatprep.mubr.msk.f32.mxu0 %vm820_vm8, %v35_v24 }
 0x50c   :  { %18241 = vmatpush3.msk.msra.mxu0 %vm771_vm9, %v1667_v18 }
 0x50e   :  { %v1643_v19 = vpop.permute.xlu0 %1642 }
 0x50f   :  { %v1669_v14 = vpop.permute.xlu1 %1668 }
 0x510   :  { %18249 = vmatprep.subr.msk.mxu1 %vm771_vm9, %v1669_v14 }
 0x511   :  { %18250 = vmatpush3.msk.msra.mxu1 %vm771_vm9, %v1669_v14  ;;  %v307_v14 = vld [vmem:[%s24318_s4 + $0x10] sm:$0xf] }
 0x512   :  { %v1655_v15 = vpop.permute.xlu0 %1654 }
 0x513   :  { %v1645_v27 = vpop.permute.xlu1 %1644  ;;  %v1676_v28 = vsel %vm771_vm9, %v1643_v19, %v1655_v15  ;;  %v309_v15 = vld [vmem:[%s24318_s4 + $0x18] sm:$0xf] }
 0x514   :  { %18242 = vmatprep.subr.mxu0 %v1676_v28 }
 0x515   :  { %18243 = vmatpush3.msra.mxu0 %v1676_v28  ;;  %v310_v28 = vld [vmem:[%s24318_s4 + $0x1c] sm:$0xf] }
 0x516   :  { %v1631_v29 = vpop.permute.xlu0 %1630 }
 0x517   :  { %v1657_v30 = vpop.permute.xlu1 %1656  ;;  %v1672_v4 = vsel %vm771_vm9, %v20481_v44, %v1631_v29 }
 0x518   :  { %18244 = vmatprep.subr.mxu0 %v1672_v4  ;;  %v1677_v32 = vsel %vm771_vm9, %v1645_v27, %v1657_v30  ;;  %v308_v27 = vld [vmem:[%s24318_s4 + $0x14] sm:$0xf] }
 0x519   :  { %18251 = vmatprep.subr.mxu1 %v1677_v32  ;;  %18245 = vmatpush3.msra.mxu0 %v1672_v4 }
 0x51a   :  { %18252 = vmatpush3.msra.mxu1 %v1677_v32  ;;  %18247 = vmatmul.mubr.msk.f32.vlgmr.msra.gmra.mxu0 %vm820_vm8, %v36_v31 }
 0x51b   :  { %v1633_v33 = vpop.permute.xlu1 %1632  ;;  %18258 = vmatprep.subr.mxu0 %v20028_v1  ;;  %18270 = vmatprep.mubr.msk.f32.mxu0 %vm20029_vm0, %v20028_v1 }
 0x51c   :  { %v1673_v34 = vsel %vm771_vm9, %v20487_v47, %v1633_v33 }
 0x51d   :  { %18253 = vmatprep.subr.mxu1 %v1673_v34 }
 0x51e   :  { %18254 = vmatpush3.msra.mxu1 %v1673_v34 }
 0x51f   :  { %18256 = vmatmul.mubr.msk.f32.vlgmr.msra.gmra.mxu1 %vm820_vm8, %v38_v35  ;;  %18273 = vmatprep.subr.mxu1 %v20028_v1 }
 0x520   :  { %18285 = vmatprep.mubr.msk.f32.mxu1 %vm20029_vm0, %v20028_v1 }
 0x523   :  { %v1686_v37 = vpop.permute.xlu0 %1685 }
 0x527   :  { %v1681_v47 = vpop.permute.xlu0 %1680 }
 0x528   :  { %v1696_v36 = vpop.permute.xlu1 %1695 }
 0x52b   :  { %v1706_v56 = vpop.permute.xlu0 %1705 }
 0x52c   :  { %v1691_v45 = vpop.permute.xlu1 %1690 }
 0x52f   :  { %v1701_v62 = vpop.permute.xlu0 %1700 }
 0x530   :  { %v1716_v60 = vpop.permute.xlu1 %1715 }
 0x534   :  { %v1711_v16 = vpop.permute.xlu1 %1710 }
 0x5c9   :  { %v18239_v38 = vpop.f32.mrf.mxu1 }
 0x5ca   :  { %v18230_v39 = vpop.f32.mrf.mxu0  ;;  %v1881_v40 = vadd.f32 %v18239_v38, %v1696_v36  ;;  %v252_v36 = vld [vmem:[%s24317_s3 + $0x14] sm:$0xf] }
 0x5cb   :  { %v1798_v41 = vadd.f32 %v18230_v39, %v1686_v37  ;;  %v1875_v42 = vpop.f32.mrf.mxu1  ;;  %v251_v37 = vld [vmem:[%s24317_s3 + $0x10] sm:$0xf] }
 0x5cc   :  { %v2061_v43 = vmul.f32 0.01, %v1881_v40  ;;  %v1792_v44 = vpop.f32.mrf.mxu0  ;;  %vm2053_vm7 = vcmp.ge.f32.partialorder %v1881_v40, 0.0  ;;  %v1876_v48 = vadd.f32 %v1875_v42, %v1691_v45  ;;  %v253_v45 = vld [vmem:[%s24317_s3 + $0x18] sm:$0xf] }
 0x5cd   :  { %v2059_v46 = vmul.f32 0.01, %v1798_v41  ;;  %vm2051_vm12 = vcmp.ge.f32.partialorder %v1798_v41, 0.0  ;;  %v1793_v50 = vadd.f32 %v1792_v44, %v1681_v47  ;;  %v254_v47 = vld [vmem:[%s24317_s3 + $0x1c] sm:$0xf] }
 0x5ce   :  { %v20575_v49 = vsel %vm2053_vm7, %v1881_v40, %v2061_v43  ;;  %v2060_v52 = vmul.f32 0.01, %v1876_v48  ;;  %vm2052_vm13 = vcmp.ge.f32.partialorder %v1876_v48, 0.0 }
 0x5cf   :  { %2112 = vrot.lane.b32.xlu1 %v20575_v49, %s20035_s27  ;;  %v20579_v51 = vsel %vm2051_vm12, %v1798_v41, %v2059_v46  ;;  %v2058_v53 = vmul.f32 0.01, %v1793_v50  ;;  %vm2050_vm14 = vcmp.ge.f32.partialorder %v1793_v50, 0.0  ;;  %vm2450_vm12 = vcmask 64512  }
 0x5d0   :  { %2108 = vrot.lane.b32.xlu0 %v20579_v51, %s20035_s27  ;;  %v20587_v54 = vsel %vm2052_vm13, %v1876_v48, %v2060_v52  ;;  %vm3127_vm13 = vcmask 56320  }
 0x5d1   :  { %v20591_v55 = vsel %vm2050_vm14, %v1793_v50, %v2058_v53 }
 0x5d3   :  { %2088 = vrot.lane.b32.xlu1 %v20575_v49, %s20037_s29 }
 0x5d4   :  { %2084 = vrot.lane.b32.xlu0 %v20579_v51, %s20037_s29 }
 0x5d7   :  { %2110 = vrot.lane.b32.xlu1 %v20587_v54, %s20035_s27 }
 0x5d8   :  { %2106 = vrot.lane.b32.xlu0 %v20591_v55, %s20035_s27 }
 0x5da   :  { %v18248_v57 = vpop.f32.mrf.mxu0 }
 0x5db   :  { %v1964_v58 = vadd.f32 %v18248_v57, %v1706_v56  ;;  %2086 = vrot.lane.b32.xlu1 %v20587_v54, %s20037_s29 }
 0x5dc   :  { %v1958_v59 = vpop.f32.mrf.mxu0  ;;  %2082 = vrot.lane.b32.xlu0 %v20591_v55, %s20037_s29 }
 0x5dd   :  { %v2063_v61 = vmul.f32 0.01, %v1964_v58  ;;  %vm2055_vm15 = vcmp.ge.f32.partialorder %v1964_v58, 0.0  ;;  %v1959_v63 = vadd.f32 %v1958_v59, %v1701_v62 }
 0x5df   :  { %v18257_v0 = vpop.f32.mrf.mxu1  ;;  %v20599_v2 = vsel %vm2055_vm15, %v1964_v58, %v2063_v61  ;;  %v2062_v20 = vmul.f32 0.01, %v1959_v63  ;;  %vm2054_vm10 = vcmp.ge.f32.partialorder %v1959_v63, 0.0 }
 0x5e0   :  { %v2047_v3 = vadd.f32 %v18257_v0, %v1716_v60  ;;  %2116 = vrot.lane.b32.xlu0 %v20599_v2, %s20035_s27 }
 0x5e1   :  { %v2041_v11 = vpop.f32.mrf.mxu1  ;;  %v20609_v24 = vsel %vm2054_vm10, %v1959_v63, %v2062_v20 }
 0x5e2   :  { %vm2057_vm3 = vcmp.ge.f32.partialorder %v2047_v3, 0.0  ;;  %v2065_v12 = vmul.f32 0.01, %v2047_v3  ;;  %v2042_v22 = vadd.f32 %v2041_v11, %v1711_v16 }
 0x5e4   :  { %v20603_v23 = vsel %vm2057_vm3, %v2047_v3, %v2065_v12  ;;  %2092 = vrot.lane.b32.xlu0 %v20599_v2, %s20037_s29  ;;  %v2064_v18 = vmul.f32 0.01, %v2042_v22  ;;  %vm2056_vm7 = vcmp.ge.f32.partialorder %v2042_v22, 0.0 }
 0x5e5   :  { %2120 = vrot.lane.b32.xlu1 %v20603_v23, %s20035_s27 }
 0x5e6   :  { %v20615_v19 = vsel %vm2056_vm7, %v2042_v22, %v2064_v18 }
 0x5e8   :  { %2114 = vrot.lane.b32.xlu0 %v20609_v24, %s20035_s27 }
 0x5e9   :  { %2096 = vrot.lane.b32.xlu1 %v20603_v23, %s20037_s29 }
 0x5ec   :  { %2090 = vrot.lane.b32.xlu0 %v20609_v24, %s20037_s29 }
 0x5ed   :  { %2118 = vrot.lane.b32.xlu1 %v20615_v19, %s20035_s27 }
 0x5f0   :  { %2132 = vperm.xlu0 %19763, %v307_v14  }
 0x5f1   :  { %2094 = vrot.lane.b32.xlu1 %v20615_v19, %s20037_s29 }
 0x5f4   :  { %2142 = vperm.xlu0 %19763, %v309_v15  }
 0x5f5   :  { %2137 = vperm.xlu1 %19765, %v308_v27  }
 0x5f9   :  { %2147 = vperm.xlu1 %19765, %v310_v28  }
 0x641   :  { %v2113_v29 = vpop.permute.xlu1 %2112 }
 0x642   :  { %v2109_v30 = vpop.permute.xlu0 %2108  ;;  %18274 = vmatpush3.msra.mxu1 %v2113_v29 }
 0x643   :  { %18259 = vmatpush3.msra.mxu0 %v2109_v30  ;;  %18275 = vmatprep.subr.mxu1 %v20028_v1 }
 0x644   :  { %18260 = vmatprep.subr.mxu0 %v20028_v1 }
 0x645   :  { %v2089_v4 = vpop.permute.xlu1 %2088 }
 0x646   :  { %v2085_v31 = vpop.permute.xlu0 %2084 }
 0x649   :  { %v2111_v32 = vpop.permute.xlu1 %2110 }
 0x64a   :  { %v2107_v33 = vpop.permute.xlu0 %2106  ;;  %18276 = vmatpush3.msra.mxu1 %v2111_v32 }
 0x64b   :  { %18261 = vmatpush3.msra.mxu0 %v2107_v33  ;;  %18277 = vmatprep.subr.mxu1 %v20028_v1 }
 0x64c   :  { %18262 = vmatprep.subr.mxu0 %v20028_v1  ;;  %18278 = vmatpush3.msra.mxu1 %v2089_v4 }
 0x64d   :  { %18263 = vmatpush3.msra.mxu0 %v2085_v31  ;;  %18279 = vmatprep.subr.mxu1 %v20028_v1  ;;  %v2087_v34 = vpop.permute.xlu1 %2086 }
 0x64e   :  { %18264 = vmatprep.subr.mxu0 %v20028_v1  ;;  %v2083_v35 = vpop.permute.xlu0 %2082  ;;  %18280 = vmatpush3.msra.mxu1 %v2087_v34 }
 0x64f   :  { %18265 = vmatpush3.msra.mxu0 %v2083_v35  ;;  %18281 = vmatprep.subr.mxu1 %v20028_v1 }
 0x650   :  { %18266 = vmatprep.subr.mxu0 %v20028_v1  ;;  %18282 = vmatpush3.msra.mxu1 %v20575_v49 }
 0x651   :  { %18267 = vmatpush3.msra.mxu0 %v20579_v51  ;;  %18283 = vmatprep.subr.mxu1 %v20028_v1 }
 0x652   :  { %18268 = vmatprep.subr.mxu0 %v20028_v1  ;;  %v2117_v38 = vpop.permute.xlu0 %2116  ;;  %18284 = vmatpush3.msra.mxu1 %v20587_v54 }
 0x653   :  { %18269 = vmatpush3.msra.mxu0 %v20591_v55  ;;  %18286 = vmatmul.mubr.msk.f32.vlgmr.msra.gmra.mxu1 %vm1253_vm11, %v252_v36 }
 0x654   :  { %18271 = vmatmul.mubr.msk.f32.vlgmr.msra.gmra.mxu0 %vm1253_vm11, %v251_v37  ;;  %18288 = vmatprep.subr.mxu0 %v20028_v1 }
 0x655   :  { %18289 = vmatpush3.msra.mxu0 %v2117_v38  ;;  %18303 = vmatprep.subr.mxu1 %v20028_v1 }
 0x656   :  { %v2093_v39 = vpop.permute.xlu0 %2092  ;;  %18290 = vmatprep.subr.mxu0 %v20028_v1  ;;  %18300 = vmatprep.mubr.msk.f32.mxu0 %vm20029_vm0, %v20028_v1 }
 0x657   :  { %v2121_v40 = vpop.permute.xlu1 %2120  ;;  %18315 = vmatprep.mubr.msk.f32.mxu1 %vm20029_vm0, %v20028_v1 }
 0x658   :  { %18304 = vmatpush3.msra.mxu1 %v2121_v40 }
 0x659   :  { %18305 = vmatprep.subr.mxu1 %v20028_v1 }
 0x65a   :  { %v2115_v41 = vpop.permute.xlu0 %2114 }
 0x65b   :  { %v2097_v42 = vpop.permute.xlu1 %2096  ;;  %18291 = vmatpush3.msra.mxu0 %v2115_v41 }
 0x65c   :  { %18292 = vmatprep.subr.mxu0 %v20028_v1 }
 0x65d   :  { %18293 = vmatpush3.msra.mxu0 %v2093_v39 }
 0x65e   :  { %18294 = vmatprep.subr.mxu0 %v20028_v1  ;;  %v2091_v43 = vpop.permute.xlu0 %2090 }
 0x65f   :  { %v2119_v44 = vpop.permute.xlu1 %2118  ;;  %18295 = vmatpush3.msra.mxu0 %v2091_v43  ;;  %v41_v43 = vld [vmem:[%s24315_s1 + $0x90] sm:$0xff] }
 0x660   :  { %18306 = vmatpush3.msra.mxu1 %v2119_v44  ;;  %18296 = vmatprep.subr.mxu0 %v20028_v1 }
 0x661   :  { %18307 = vmatprep.subr.mxu1 %v20028_v1  ;;  %18297 = vmatpush3.msra.mxu0 %v20599_v2 }
 0x662   :  { %18308 = vmatpush3.msra.mxu1 %v2097_v42  ;;  %18298 = vmatprep.subr.mxu0 %v20028_v1  ;;  %v39_v42 = vld [vmem:[%s24315_s1 + $0x80] sm:$0xff] }
 0x663   :  { %18309 = vmatprep.subr.mxu1 %v20028_v1  ;;  %v2095_v46 = vpop.permute.xlu1 %2094  ;;  %18299 = vmatpush3.msra.mxu0 %v20609_v24 }
 0x664   :  { %18310 = vmatpush3.msra.mxu1 %v2095_v46  ;;  %18301 = vmatmul.mubr.msk.f32.vlgmr.msra.gmra.mxu0 %vm1253_vm11, %v253_v45 }
 0x665   :  { %18311 = vmatprep.subr.mxu1 %v20028_v1  ;;  %18318 = vmatprep.subr.mxu0 %v20028_v1 }
 0x666   :  { %18312 = vmatpush3.msra.mxu1 %v20603_v23  ;;  %18319 = vmatpush3.msk.msra.mxu0 %vm20086_vm1, %v20032_v10  ;;  %v20038_v23 = vmov 3  }
 0x667   :  { %18313 = vmatprep.subr.mxu1 %v20028_v1  ;;  %18320 = vmatprep.mubr.msk.f32.mxu0 %vm20029_vm0, %v20028_v1 }
 0x668   :  { %18314 = vmatpush3.msra.mxu1 %v20615_v19  ;;  %18328 = vmatprep.subr.mxu0 %v20028_v1 }
 0x669   :  { %18316 = vmatmul.mubr.msk.f32.vlgmr.msra.gmra.mxu1 %vm1253_vm11, %v254_v47  ;;  %18323 = vmatprep.subr.mxu1 %v20028_v1 }
 0x66a   :  { %18324 = vmatpush3.msk.msra.mxu1 %vm20086_vm1, %v20032_v10  ;;  %18325 = vmatprep.mubr.msk.f32.mxu1 %vm20029_vm0, %v20028_v1 }
 0x66b   :  { %18333 = vmatprep.subr.mxu1 %v20028_v1  ;;  %v2133_v50 = vpop.permute.xlu0 %2132 }
 0x66f   :  { %v2143_v58 = vpop.permute.xlu0 %2142 }
 0x670   :  { %v2138_v48 = vpop.permute.xlu1 %2137 }
 0x713   :  { %v2292_v49 = vpop.f32.mrf.mxu1 }
 0x714   :  { %v2219_v51 = vpop.f32.mrf.mxu0  ;;  %v2293_v52 = vadd.f32 %v2292_v49, %v2138_v48 }
 0x715   :  { %v2220_v53 = vadd.f32 %v2219_v51, %v2133_v50  ;;  %v18287_v54 = vpop.f32.mrf.mxu1 }
 0x716   :  { %19854 = vtanh.f32 %v2293_v52  ;;  %v18272_v55 = vpop.f32.mrf.mxu0 }
 0x717   :  { %19856 = vtanh.f32 %v2220_v53 }
 0x723   :  { %v19855_v56 = vpop.eup %19854 }
 0x724   :  { %v19857_v57 = vpop.eup %19856  ;;  %v2365_v59 = vpop.f32.mrf.mxu0  ;;  %v2447_v60 = vadd.f32 %v19855_v56, %v20437_v26 }
 0x725   :  { %v2366_v61 = vadd.f32 %v2365_v59, %v2143_v58  ;;  %v2446_v62 = vadd.f32 %v19857_v57, %v20434_v25  ;;  %v2148_v26 = vpop.permute.xlu1 %2147 }
 0x726   :  { %v18302_v63 = vpop.f32.mrf.mxu0  ;;  %18326 = vmatmul.mubr.msk.f32.vlgmr.msra.gmra.mxu1 %vm2450_vm12, %v2447_v60 }
 0x727   :  { %19858 = vtanh.f32 %v2366_v61  ;;  %18321 = vmatmul.mubr.msk.f32.vlgmr.msra.gmra.mxu0 %vm2450_vm12, %v2446_v62  ;;  %18334 = vmatpush3.msk.msra.mxu1 %vm20086_vm1, %v20032_v10 }
 0x728   :  { %18329 = vmatpush3.msk.msra.mxu0 %vm20086_vm1, %v20032_v10  ;;  %18330 = vmatprep.mubr.msk.f32.mxu0 %vm20029_vm0, %v20028_v1 }
 0x729   :  { %v2438_v0 = vpop.f32.mrf.mxu1  ;;  %18338 = vmatprep.subr.mxu0 %v20028_v1  ;;  %18335 = vmatprep.mubr.msk.f32.mxu1 %vm20029_vm0, %v20028_v1 }
 0x72a   :  { %v2439_v25 = vadd.f32 %v2438_v0, %v2148_v26  ;;  %18343 = vmatprep.subr.mxu1 %v20028_v1 }
 0x72b   :  { %v18317_v2 = vpop.f32.mrf.mxu1 }
 0x72c   :  { %19860 = vtanh.f32 %v2439_v25 }
 0x734   :  { %v19859_v3 = vpop.eup %19858 }
 0x735   :  { %v2448_v11 = vsub.f32 %v20416_v17, %v19859_v3 }
 0x737   :  { %18331 = vmatmul.mubr.msk.f32.vlgmr.msra.gmra.mxu0 %vm2450_vm12, %v2448_v11 }
 0x738   :  { %18339 = vmatpush3.msk.msra.mxu0 %vm20124_vm5, %v20032_v10  ;;  %18340 = vmatprep.mubr.msk.f32.mxu0 %vm20029_vm0, %v20028_v1 }
 0x739   :  { %v19861_v12 = vpop.eup %19860  ;;  %18348 = vmatprep.subr.mxu0 %v20028_v1 }
 0x73a   :  { %v2449_v16 = vsub.f32 %v20419_v21, %v19861_v12 }
 0x73b   :  { %18341 = vmatmul.mubr.msk.f32.vlgmr.msra.gmra.mxu0 %vm2450_vm12, %v2446_v62 }
 0x73c   :  { %18336 = vmatmul.mubr.msk.f32.vlgmr.msra.gmra.mxu1 %vm2450_vm12, %v2449_v16  ;;  %18349 = vmatpush3.msk.msra.mxu0 %vm20124_vm5, %v20032_v10 }
 0x73d   :  { %18344 = vmatpush3.msk.msra.mxu1 %vm20124_vm5, %v20032_v10  ;;  %18345 = vmatprep.mubr.msk.f32.mxu1 %vm20029_vm0, %v20028_v1 }
 0x73e   :  { %18350 = vmatprep.mubr.msk.f32.mxu0 %vm20029_vm0, %v20028_v1  ;;  %18353 = vmatprep.subr.mxu1 %v20028_v1 }
 0x73f   :  { %18351 = vmatmul.mubr.msk.f32.vlgmr.msra.gmra.mxu0 %vm2450_vm12, %v2448_v11 }
 0x740   :  { %18346 = vmatmul.mubr.msk.f32.vlgmr.msra.gmra.mxu1 %vm2450_vm12, %v2447_v60  ;;  %18364 = vmatprep.mubr.msk.f32.mxu0 %vm820_vm8, %v39_v42  ;;  %v155_v42 = vld [vmem:[%s24316_s2 + $0xa0] sm:$0xff] }
 0x741   :  { %18354 = vmatpush3.msk.msra.mxu1 %vm20124_vm5, %v20032_v10  ;;  %18355 = vmatprep.mubr.msk.f32.mxu1 %vm20029_vm0, %v20028_v1 }
 0x744   :  { %18356 = vmatmul.mubr.msk.f32.vlgmr.msra.gmra.mxu1 %vm2450_vm12, %v2449_v16 }
 0x745   :  { %18373 = vmatprep.mubr.msk.f32.mxu1 %vm820_vm8, %v41_v43  ;;  %v157_v43 = vld [vmem:[%s24316_s2 + $0xb0] sm:$0xff] }
 0x7e6   :  { %v20745_v17 = vpop.f32.mrf.mxu1 }
 0x7e7   :  { %v20747_v21 = vpop.f32.mrf.mxu0  ;;  %3030 = vperm.xlu1 %19765, %v20745_v17  }
 0x7e8   :  { %3025 = vperm.xlu0 %19763, %v20747_v21   ;;  %v18327_v20 = vpop.f32.mrf.mxu1 }
 0x7e9   :  { %v18322_v22 = vpop.f32.mrf.mxu0 }
 0x7eb   :  { %19767 = vset.pattern.permute.xlu1 %v20038_v23 }
 0x7ec   :  { %19766 = vset.pattern.permute.xlu0 %v20038_v23  ;;  %3068 = vperm.xlu1 %19767, %v20745_v17  }
 0x7ed   :  { %3064 = vperm.xlu0 %19766, %v20747_v21  }
 0x7f0   :  { %3095 = vrot.lane.b32.xlu1 %v20747_v21, %s20033_s0 }
 0x7f1   :  { %3097 = vrot.lane.b32.xlu0 %v20745_v17, %s20033_s0  ;;  %19768 = vset.pattern.permute.xlu1 %v24320_v5 }
 0x7f2   :  { %19769 = vset.pattern.permute.xlu0 %v24320_v5 }
 0x7f7   :  { %v20761_v10 = vpop.f32.mrf.mxu0 }
 0x7f8   :  { %3035 = vperm.xlu1 %19768, %v20761_v10  }
 0x7f9   :  { %v18332_v24 = vpop.f32.mrf.mxu0 }
 0x7fb   :  { %v20764_v18 = vpop.f32.mrf.mxu0 }
 0x7fc   :  { %v20766_v19 = vpop.f32.mrf.mxu1  ;;  %19770 = vset.pattern.permute.xlu1 %v20038_v23 }
 0x7fd   :  { %3040 = vperm.xlu0 %19769, %v20766_v19   ;;  %3072 = vperm.xlu1 %19770, %v20761_v10   ;;  %v18342_v14 = vpop.f32.mrf.mxu0 }
 0x7fe   :  { %v18337_v15 = vpop.f32.mrf.mxu1 }
 0x7ff   :  { %v20771_v27 = vpop.f32.mrf.mxu0 }
 0x800   :  { %v20773_v28 = vpop.f32.mrf.mxu1 }
 0x801   :  { %3099 = vrot.lane.b32.xlu0 %v20761_v10, %s20033_s0  ;;  %3076 = vperm.xlu1 %19770, %v20766_v19   ;;  %v18352_v29 = vpop.f32.mrf.mxu0 }
 0x802   :  { %v18347_v30 = vpop.f32.mrf.mxu1 }
 0x804   :  { %v20778_v4 = vpop.f32.mrf.mxu1 }
 0x805   :  { %3045 = vperm.xlu0 %19769, %v20764_v18   ;;  %3101 = vrot.lane.b32.xlu1 %v20766_v19, %s20033_s0 }
 0x806   :  { %v18357_v31 = vpop.f32.mrf.mxu1  ;;  %19771 = vset.pattern.permute.xlu1 %v24320_v5 }
 0x809   :  { %19772 = vset.pattern.permute.xlu0 %v20038_v23  ;;  %3050 = vperm.xlu1 %19771, %v20773_v28  }
 0x80a   :  { %3080 = vperm.xlu0 %19772, %v20764_v18  }
 0x80d   :  { %19773 = vset.pattern.permute.xlu1 %v20038_v23 }
 0x80e   :  { %3105 = vrot.lane.b32.xlu0 %v20773_v28, %s20033_s0  ;;  %3084 = vperm.xlu1 %19773, %v20773_v28  }
 0x80f   :  { %19775 = vset.pattern.permute.xlu0 %v24320_v5 }
 0x812   :  { %3060 = vperm.xlu0 %19775, %v20778_v4   ;;  %3103 = vrot.lane.b32.xlu1 %v20764_v18, %s20033_s0 }
 0x813   :  { %19774 = vset.pattern.permute.xlu1 %v24320_v5 }
 0x816   :  { %3107 = vrot.lane.b32.xlu0 %v20771_v27, %s20033_s0  ;;  %3055 = vperm.xlu1 %19774, %v20771_v27  }
 0x81a   :  { %19776 = vset.pattern.permute.xlu1 %v20038_v23 }
 0x81b   :  { %3088 = vperm.xlu1 %19776, %v20771_v27  }
 0x81f   :  { %3092 = vperm.xlu1 %19776, %v20778_v4  }
 0x823   :  { %3109 = vrot.lane.b32.xlu1 %v20778_v4, %s20033_s0 }
 0x824   :  { %19777 = vset.pattern.permute.xlu1 %v24320_v5 }
 0x862   :  { %v3031_v32 = vpop.permute.xlu1 %3030 }
 0x863   :  { %v3026_v33 = vpop.permute.xlu0 %3025 }
 0x867   :  { %v3069_v34 = vpop.permute.xlu1 %3068 }
 0x868   :  { %v3065_v35 = vpop.permute.xlu0 %3064 }
 0x86b   :  { %v3096_v36 = vpop.permute.xlu1 %3095 }
 0x86c   :  { %v3119_v37 = vsel %vm709_vm6, %v3026_v33, %v3096_v36  ;;  %v3098_v38 = vpop.permute.xlu0 %3097  ;;  %v151_v36 = vld [vmem:[%s24316_s2 + $0x80] sm:$0xff] }
 0x86d   :  { %v3120_v39 = vsel %vm709_vm6, %v3031_v32, %v3098_v38  ;;  %v20808_v40 = vsel %vm3127_vm13, %v3119_v37, %v3065_v35  ;;  %v154_v35 = vld [vmem:[%s24316_s2 + $0x98] sm:$0xff]  ;;  %v153_v37 = vld [vmem:[%s24316_s2 + $0x90] sm:$0xff]  ;;  %v156_v38 = vld [vmem:[%s24316_s2 + $0xa8] sm:$0xff] }
 0x86e   :  { %3224 = vrot.lane.b32.xlu0 %v20808_v40, %s20034_s22  ;;  %v20813_v41 = vsel %vm3127_vm13, %v3120_v39, %v3069_v34  ;;  %v3144_v45 = vrot.slane %v20808_v40, 4  ;;  %v152_v34 = vld [vmem:[%s24316_s2 + $0x88] sm:$0xff]  ;;  %v158_v39 = vld [vmem:[%s24316_s2 + $0xb8] sm:$0xff] }
 0x86f   :  { %3226 = vrot.lane.b32.xlu1 %v20813_v41, %s20034_s22  ;;  %v3145_v46 = vrot.slane %v20813_v41, 4 }
 0x872   :  { %3176 = vrot.lane.b32.xlu0 %v20808_v40, %s20035_s27 }
 0x873   :  { %v3036_v44 = vpop.permute.xlu1 %3035  ;;  %3178 = vrot.lane.b32.xlu1 %v20813_v41, %s20035_s27 }
 0x876   :  { %3200 = vrot.lane.b32.xlu0 %v3144_v45, %s20036_s28 }
 0x877   :  { %3202 = vrot.lane.b32.xlu1 %v3145_v46, %s20036_s28 }
 0x878   :  { %v3041_v47 = vpop.permute.xlu0 %3040  ;;  %v3073_v48 = vpop.permute.xlu1 %3072 }
 0x87a   :  { %3152 = vrot.lane.b32.xlu0 %v3144_v45, %s20037_s29  ;;  %v162_v45 = vld [vmem:[%s24316_s2 + $0xd8] sm:$0xff] }
 0x87b   :  { %3154 = vrot.lane.b32.xlu1 %v3145_v46, %s20037_s29  ;;  %v159_v46 = vld [vmem:[%s24316_s2 + $0xc0] sm:$0xff] }
 0x87c   :  { %v3100_v49 = vpop.permute.xlu0 %3099  ;;  %v3077_v50 = vpop.permute.xlu1 %3076 }
 0x87d   :  { %v3121_v51 = vsel %vm709_vm6, %v3036_v44, %v3100_v49  ;;  %v160_v44 = vld [vmem:[%s24316_s2 + $0xc8] sm:$0xff]  ;;  %v166_v49 = vld [vmem:[%s24316_s2 + $0xf8] sm:$0xff] }
 0x87e   :  { %v20837_v52 = vsel %vm3127_vm13, %v3121_v51, %v3073_v48  ;;  %v164_v48 = vld [vmem:[%s24316_s2 + $0xe8] sm:$0xff]  ;;  %v165_v51 = vld [vmem:[%s24316_s2 + $0xf0] sm:$0xff] }
 0x87f   :  { %3228 = vrot.lane.b32.xlu0 %v20837_v52, %s20034_s22  ;;  %v3146_v58 = vrot.slane %v20837_v52, 4 }
 0x880   :  { %v3046_v53 = vpop.permute.xlu0 %3045  ;;  %v3102_v54 = vpop.permute.xlu1 %3101 }
 0x881   :  { %v3122_v55 = vsel %vm709_vm6, %v3041_v47, %v3102_v54  ;;  %v161_v47 = vld [vmem:[%s24316_s2 + $0xd0] sm:$0xff] }
 0x882   :  { %v20843_v56 = vsel %vm3127_vm13, %v3122_v55, %v3077_v50  ;;  %v163_v50 = vld [vmem:[%s24316_s2 + $0xe0] sm:$0xff] }
 0x883   :  { %3230 = vrot.lane.b32.xlu1 %v20843_v56, %s20034_s22  ;;  %3180 = vrot.lane.b32.xlu0 %v20837_v52, %s20035_s27  ;;  %v3147_v61 = vrot.slane %v20843_v56, 4 }
 0x884   :  { %v3051_v57 = vpop.permute.xlu1 %3050 }
 0x885   :  { %v3081_v59 = vpop.permute.xlu0 %3080 }
 0x887   :  { %3182 = vrot.lane.b32.xlu1 %v20843_v56, %s20035_s27  ;;  %3204 = vrot.lane.b32.xlu0 %v3146_v58, %s20036_s28 }
 0x889   :  { %v3085_v60 = vpop.permute.xlu1 %3084  ;;  %v3106_v62 = vpop.permute.xlu0 %3105 }
 0x88a   :  { %v3124_v0 = vsel %vm709_vm6, %v3051_v57, %v3106_v62 }
 0x88b   :  { %3206 = vrot.lane.b32.xlu1 %v3147_v61, %s20036_s28  ;;  %3156 = vrot.lane.b32.xlu0 %v3146_v58, %s20037_s29  ;;  %v20865_v3 = vsel %vm3127_vm13, %v3124_v0, %v3085_v60  ;;  %v40_v0 = vld [vmem:[%s24315_s1 + $0x88] sm:$0xff] }
 0x88c   :  { %v3149_v20 = vrot.slane %v20865_v3, 4 }
 0x88d   :  { %v3104_v63 = vpop.permute.xlu1 %3103  ;;  %v3061_v11 = vpop.permute.xlu0 %3060 }
 0x88e   :  { %v3123_v26 = vsel %vm709_vm6, %v3046_v53, %v3104_v63 }
 0x88f   :  { %3158 = vrot.lane.b32.xlu1 %v3147_v61, %s20037_s29  ;;  %v20860_v25 = vsel %vm3127_vm13, %v3123_v26, %v3081_v59 }
 0x890   :  { %3232 = vrot.lane.b32.xlu0 %v20860_v25, %s20034_s22  ;;  %v3148_v16 = vrot.slane %v20860_v25, 4 }
 0x891   :  { %v3056_v2 = vpop.permute.xlu1 %3055  ;;  %v3108_v24 = vpop.permute.xlu0 %3107 }
 0x892   :  { %v3125_v14 = vsel %vm709_vm6, %v3056_v2, %v3108_v24 }
 0x893   :  { %3234 = vrot.lane.b32.xlu1 %v20865_v3, %s20034_s22 }
 0x894   :  { %3184 = vrot.lane.b32.xlu0 %v20860_v25, %s20035_s27 }
 0x896   :  { %v3089_v12 = vpop.permute.xlu1 %3088 }
 0x897   :  { %3186 = vrot.lane.b32.xlu1 %v20865_v3, %s20035_s27  ;;  %v20880_v29 = vsel %vm3127_vm13, %v3125_v14, %v3089_v12  ;;  %v43_v12 = vld [vmem:[%s24315_s1 + $0xa0] sm:$0xff] }
 0x898   :  { %3208 = vrot.lane.b32.xlu0 %v3148_v16, %s20036_s28  ;;  %v3150_v32 = vrot.slane %v20880_v29, 4 }
 0x89a   :  { %v3093_v22 = vpop.permute.xlu1 %3092 }
 0x89b   :  { %3210 = vrot.lane.b32.xlu1 %v3149_v20, %s20036_s28 }
 0x89c   :  { %3160 = vrot.lane.b32.xlu0 %v3148_v16, %s20037_s29 }
 0x89e   :  { %v3110_v15 = vpop.permute.xlu1 %3109 }
 0x89f   :  { %v3126_v30 = vsel %vm709_vm6, %v3061_v11, %v3110_v15  ;;  %3162 = vrot.lane.b32.xlu1 %v3149_v20, %s20037_s29  ;;  %v42_v11 = vld [vmem:[%s24315_s1 + $0x98] sm:$0xff] }
 0x8a0   :  { %3236 = vrot.lane.b32.xlu0 %v20880_v29, %s20034_s22  ;;  %v20887_v31 = vsel %vm3127_vm13, %v3126_v30, %v3093_v22 }
 0x8a1   :  { %v3151_v33 = vrot.slane %v20887_v31, 4 }
 0x8a3   :  { %3238 = vrot.lane.b32.xlu1 %v20887_v31, %s20034_s22 }
 0x8a4   :  { %3188 = vrot.lane.b32.xlu0 %v20880_v29, %s20035_s27 }
 0x8a7   :  { %3190 = vrot.lane.b32.xlu1 %v20887_v31, %s20035_s27 }
 0x8a8   :  { %3212 = vrot.lane.b32.xlu0 %v3150_v32, %s20036_s28 }
 0x8ab   :  { %3214 = vrot.lane.b32.xlu1 %v3151_v33, %s20036_s28 }
 0x8ac   :  { %3164 = vrot.lane.b32.xlu0 %v3150_v32, %s20037_s29 }
 0x8af   :  { %3166 = vrot.lane.b32.xlu1 %v3151_v33, %s20037_s29 }
 0x8b0   :  { %3263 = vperm.xlu0 %19775, %v152_v34   ;;  %v44_v34 = vld [vmem:[%s24315_s1 + $0xa8] sm:$0xff] }
 0x8b3   :  { %3273 = vperm.xlu1 %19777, %v154_v35   ;;  %v47_v35 = vld [vmem:[%s24315_s1 + $0xc0] sm:$0xff] }
 0x8b4   :  { %3258 = vperm.xlu0 %19775, %v151_v36  }
 0x8b7   :  { %3268 = vperm.xlu1 %19777, %v153_v37  }
 0x8b8   :  { %3283 = vperm.xlu0 %19775, %v156_v38   ;;  %v46_v38 = vld [vmem:[%s24315_s1 + $0xb8] sm:$0xff] }
 0x8bb   :  { %3293 = vperm.xlu1 %19777, %v158_v39   ;;  %v49_v39 = vld [vmem:[%s24315_s1 + $0xd0] sm:$0xff] }
 0x8bc   :  { %3278 = vperm.xlu0 %19775, %v155_v42  }
 0x8bf   :  { %3288 = vperm.xlu1 %19777, %v157_v43  }
 0x8c0   :  { %3303 = vperm.xlu0 %19775, %v160_v44  }
 0x8c3   :  { %3313 = vperm.xlu1 %19777, %v162_v45  }
 0x8c4   :  { %3298 = vperm.xlu0 %19775, %v159_v46  }
 0x8c7   :  { %3308 = vperm.xlu1 %19777, %v161_v47  }
 0x8c8   :  { %3323 = vperm.xlu0 %19775, %v164_v48  }
 0x8cb   :  { %3333 = vperm.xlu1 %19777, %v166_v49  }
 0x8cc   :  { %3318 = vperm.xlu0 %19775, %v163_v50   ;;  %v48_v50 = vld [vmem:[%s24315_s1 + $0xc8] sm:$0xff] }
 0x8cf   :  { %3328 = vperm.xlu1 %19777, %v165_v51  }
 0x8e0   :  { %v3225_v53 = vpop.permute.xlu0 %3224 }
 0x8e1   :  { %v3227_v54 = vpop.permute.xlu1 %3226  ;;  %18358 = vmatprep.subr.msk.mxu0 %vm771_vm9, %v3225_v53 }
 0x8e2   :  { %18367 = vmatprep.subr.msk.mxu1 %vm771_vm9, %v3227_v54  ;;  %18359 = vmatpush3.msk.msra.mxu0 %vm771_vm9, %v3225_v53 }
 0x8e3   :  { %18368 = vmatpush3.msk.msra.mxu1 %vm771_vm9, %v3227_v54 }
 0x8e4   :  { %v3177_v55 = vpop.permute.xlu0 %3176 }
 0x8e5   :  { %v3179_v57 = vpop.permute.xlu1 %3178 }
 0x8e8   :  { %v3201_v58 = vpop.permute.xlu0 %3200 }
 0x8e9   :  { %v3203_v59 = vpop.permute.xlu1 %3202  ;;  %v3248_v60 = vsel %vm771_vm9, %v3177_v55, %v3201_v58  ;;  %v50_v55 = vld [vmem:[%s24315_s1 + $0xd8] sm:$0xff] }
 0x8ea   :  { %18360 = vmatprep.subr.mxu0 %v3248_v60  ;;  %v3249_v61 = vsel %vm771_vm9, %v3179_v57, %v3203_v59  ;;  %v53_v57 = vld [vmem:[%s24315_s1 + $0xf0] sm:$0xff] }
 0x8eb   :  { %18369 = vmatprep.subr.mxu1 %v3249_v61  ;;  %18361 = vmatpush3.msra.mxu0 %v3248_v60 }
 0x8ec   :  { %18370 = vmatpush3.msra.mxu1 %v3249_v61  ;;  %v3153_v62 = vpop.permute.xlu0 %3152 }
 0x8ed   :  { %v3155_v63 = vpop.permute.xlu1 %3154  ;;  %v3240_v26 = vsel %vm771_vm9, %v20808_v40, %v3153_v62  ;;  %v45_v40 = vld [vmem:[%s24315_s1 + $0xb0] sm:$0xff] }
 0x8ee   :  { %18362 = vmatprep.subr.mxu0 %v3240_v26  ;;  %v3241_v2 = vsel %vm771_vm9, %v20813_v41, %v3155_v63 }
 0x8ef   :  { %18371 = vmatprep.subr.mxu1 %v3241_v2  ;;  %18363 = vmatpush3.msra.mxu0 %v3240_v26 }
 0x8f0   :  { %18372 = vmatpush3.msra.mxu1 %v3241_v2  ;;  %18365 = vmatmul.mubr.msk.f32.vlgmr.msra.gmra.mxu0 %vm820_vm8, %v40_v0  ;;  %v52_v2 = vld [vmem:[%s24315_s1 + $0xe8] sm:$0xff] }
 0x8f1   :  { %18374 = vmatmul.mubr.msk.f32.vlgmr.msra.gmra.mxu1 %vm820_vm8, %v42_v11  ;;  %v3229_v41 = vpop.permute.xlu0 %3228  ;;  %18382 = vmatprep.mubr.msk.f32.mxu0 %vm820_vm8, %v43_v12 }
 0x8f2   :  { %18376 = vmatprep.subr.msk.mxu0 %vm771_vm9, %v3229_v41  ;;  %18391 = vmatprep.mubr.msk.f32.mxu1 %vm820_vm8, %v45_v40  ;;  %v54_v40 = vld [vmem:[%s24315_s1 + $0xf8] sm:$0xff] }
 0x8f3   :  { %18377 = vmatpush3.msk.msra.mxu0 %vm771_vm9, %v3229_v41 }
 0x8f5   :  { %v3231_v16 = vpop.permute.xlu1 %3230  ;;  %v3181_v20 = vpop.permute.xlu0 %3180 }
 0x8f6   :  { %18385 = vmatprep.subr.msk.mxu1 %vm771_vm9, %v3231_v16 }
 0x8f7   :  { %18386 = vmatpush3.msk.msra.mxu1 %vm771_vm9, %v3231_v16 }
 0x8f9   :  { %v3183_v22 = vpop.permute.xlu1 %3182  ;;  %v3205_v24 = vpop.permute.xlu0 %3204 }
 0x8fa   :  { %v3250_v14 = vsel %vm771_vm9, %v3181_v20, %v3205_v24 }
 0x8fb   :  { %18378 = vmatprep.subr.mxu0 %v3250_v14 }
 0x8fc   :  { %18379 = vmatpush3.msra.mxu0 %v3250_v14 }
 0x8fd   :  { %v3207_v15 = vpop.permute.xlu1 %3206  ;;  %v3157_v30 = vpop.permute.xlu0 %3156 }
 0x8fe   :  { %v3242_v32 = vsel %vm771_vm9, %v20837_v52, %v3157_v30  ;;  %v3251_v33 = vsel %vm771_vm9, %v3183_v22, %v3207_v15 }
 0x8ff   :  { %18380 = vmatprep.subr.mxu0 %v3242_v32  ;;  %18387 = vmatprep.subr.mxu1 %v3251_v33 }
 0x900   :  { %18381 = vmatpush3.msra.mxu0 %v3242_v32  ;;  %18388 = vmatpush3.msra.mxu1 %v3251_v33 }
 0x901   :  { %v3159_v36 = vpop.permute.xlu1 %3158  ;;  %18383 = vmatmul.mubr.msk.f32.vlgmr.msra.gmra.mxu0 %vm820_vm8, %v44_v34 }
 0x902   :  { %v3233_v37 = vpop.permute.xlu0 %3232  ;;  %v3243_v52 = vsel %vm771_vm9, %v20843_v56, %v3159_v36  ;;  %18400 = vmatprep.mubr.msk.f32.mxu0 %vm820_vm8, %v47_v35 }
 0x903   :  { %18389 = vmatprep.subr.mxu1 %v3243_v52  ;;  %18394 = vmatprep.subr.msk.mxu0 %vm771_vm9, %v3233_v37 }
 0x904   :  { %18390 = vmatpush3.msra.mxu1 %v3243_v52  ;;  %18395 = vmatpush3.msk.msra.mxu0 %vm771_vm9, %v3233_v37 }
 0x905   :  { %18392 = vmatmul.mubr.msk.f32.vlgmr.msra.gmra.mxu1 %vm820_vm8, %v46_v38  ;;  %v3235_v42 = vpop.permute.xlu1 %3234 }
 0x906   :  { %18403 = vmatprep.subr.msk.mxu1 %vm771_vm9, %v3235_v42  ;;  %v3185_v56 = vpop.permute.xlu0 %3184  ;;  %18409 = vmatprep.mubr.msk.f32.mxu1 %vm820_vm8, %v49_v39 }
 0x907   :  { %18404 = vmatpush3.msk.msra.mxu1 %vm771_vm9, %v3235_v42 }
 0x909   :  { %v3187_v43 = vpop.permute.xlu1 %3186 }
 0x90a   :  { %v3209_v44 = vpop.permute.xlu0 %3208 }
 0x90b   :  { %v3252_v45 = vsel %vm771_vm9, %v3185_v56, %v3209_v44 }
 0x90c   :  { %18396 = vmatprep.subr.mxu0 %v3252_v45 }
 0x90d   :  { %v3211_v46 = vpop.permute.xlu1 %3210  ;;  %18397 = vmatpush3.msra.mxu0 %v3252_v45 }
 0x90e   :  { %v3161_v47 = vpop.permute.xlu0 %3160  ;;  %v3253_v48 = vsel %vm771_vm9, %v3187_v43, %v3211_v46 }
 0x90f   :  { %18405 = vmatprep.subr.mxu1 %v3253_v48  ;;  %v3244_v49 = vsel %vm771_vm9, %v20860_v25, %v3161_v47  ;;  %v51_v25 = vld [vmem:[%s24315_s1 + $0xe0] sm:$0xff] }
 0x910   :  { %18398 = vmatprep.subr.mxu0 %v3244_v49  ;;  %18406 = vmatpush3.msra.mxu1 %v3253_v48 }
 0x911   :  { %v3163_v51 = vpop.permute.xlu1 %3162  ;;  %18399 = vmatpush3.msra.mxu0 %v3244_v49 }
 0x912   :  { %18401 = vmatmul.mubr.msk.f32.vlgmr.msra.gmra.mxu0 %vm820_vm8, %v48_v50  ;;  %v3237_v53 = vpop.permute.xlu0 %3236  ;;  %v3245_v54 = vsel %vm771_vm9, %v20865_v3, %v3163_v51 }
 0x913   :  { %18407 = vmatprep.subr.mxu1 %v3245_v54  ;;  %18412 = vmatprep.subr.msk.mxu0 %vm771_vm9, %v3237_v53 }
 0x914   :  { %18408 = vmatpush3.msra.mxu1 %v3245_v54  ;;  %18413 = vmatpush3.msk.msra.mxu0 %vm771_vm9, %v3237_v53 }
 0x915   :  { %18410 = vmatmul.mubr.msk.f32.vlgmr.msra.gmra.mxu1 %vm820_vm8, %v50_v55  ;;  %v3239_v3 = vpop.permute.xlu1 %3238  ;;  %18418 = vmatprep.mubr.msk.f32.mxu0 %vm820_vm8, %v51_v25 }
 0x916   :  { %18421 = vmatprep.subr.msk.mxu1 %vm771_vm9, %v3239_v3  ;;  %v3189_v58 = vpop.permute.xlu0 %3188  ;;  %18427 = vmatprep.mubr.msk.f32.mxu1 %vm820_vm8, %v53_v57 }
 0x917   :  { %18422 = vmatpush3.msk.msra.mxu1 %vm771_vm9, %v3239_v3 }
 0x919   :  { %v3191_v59 = vpop.permute.xlu1 %3190 }
 0x91a   :  { %v3213_v60 = vpop.permute.xlu0 %3212 }
 0x91b   :  { %v3254_v61 = vsel %vm771_vm9, %v3189_v58, %v3213_v60 }
 0x91c   :  { %18414 = vmatprep.subr.mxu0 %v3254_v61 }
 0x91d   :  { %v3215_v62 = vpop.permute.xlu1 %3214  ;;  %18415 = vmatpush3.msra.mxu0 %v3254_v61 }
 0x91e   :  { %v3165_v63 = vpop.permute.xlu0 %3164  ;;  %v3255_v26 = vsel %vm771_vm9, %v3191_v59, %v3215_v62 }
 0x91f   :  { %18423 = vmatprep.subr.mxu1 %v3255_v26  ;;  %v3246_v0 = vsel %vm771_vm9, %v20880_v29, %v3165_v63 }
 0x920   :  { %18416 = vmatprep.subr.mxu0 %v3246_v0  ;;  %18424 = vmatpush3.msra.mxu1 %v3255_v26 }
 0x921   :  { %v3167_v11 = vpop.permute.xlu1 %3166  ;;  %18417 = vmatpush3.msra.mxu0 %v3246_v0 }
 0x922   :  { %18419 = vmatmul.mubr.msk.f32.vlgmr.msra.gmra.mxu0 %vm820_vm8, %v52_v2  ;;  %v3247_v12 = vsel %vm771_vm9, %v20887_v31, %v3167_v11  ;;  %18430 = vmatprep.subr.mxu0 %v20028_v1 }
 0x923   :  { %18425 = vmatprep.subr.mxu1 %v3247_v12  ;;  %18442 = vmatprep.mubr.msk.f32.mxu0 %vm20029_vm0, %v20028_v1 }
 0x924   :  { %18426 = vmatpush3.msra.mxu1 %v3247_v12 }
 0x925   :  { %18428 = vmatmul.mubr.msk.f32.vlgmr.msra.gmra.mxu1 %vm820_vm8, %v54_v40  ;;  %18445 = vmatprep.subr.mxu1 %v20028_v1 }
 0x926   :  { %18457 = vmatprep.mubr.msk.f32.mxu1 %vm20029_vm0, %v20028_v1 }
 0x92b   :  { %v3264_v29 = vpop.permute.xlu0 %3263 }
 0x92e   :  { %v3274_v31 = vpop.permute.xlu1 %3273 }
 0x92f   :  { %v3259_v30 = vpop.permute.xlu0 %3258 }
 0x932   :  { %v3269_v33 = vpop.permute.xlu1 %3268 }
 0x933   :  { %v3284_v56 = vpop.permute.xlu0 %3283 }
 0x936   :  { %v3294_v45 = vpop.permute.xlu1 %3293 }
 0x937   :  { %v3279_v48 = vpop.permute.xlu0 %3278 }
 0x93a   :  { %v3289_v25 = vpop.permute.xlu1 %3288 }
 0x93b   :  { %v3304_v61 = vpop.permute.xlu0 %3303 }
 0x93e   :  { %v3314_v26 = vpop.permute.xlu1 %3313 }
 0x93f   :  { %v3299_v40 = vpop.permute.xlu0 %3298 }
 0x9b0   :  { %v18366_v41 = vpop.f32.mrf.mxu0 }
 0x9b1   :  { %v3416_v16 = vadd.f32 %v18366_v41, %v3264_v29  ;;  %v18375_v20 = vpop.f32.mrf.mxu1 }
 0x9b2   :  { %v3499_v22 = vadd.f32 %v18375_v20, %v3274_v31  ;;  %v3410_v24 = vpop.f32.mrf.mxu0 }
 0x9b3   :  { %vm4001_vm14 = vcmp.ge.f32.partialorder %v3416_v16, 0.0  ;;  %v4017_v14 = vmul.f32 0.01, %v3416_v16  ;;  %v3493_v15 = vpop.f32.mrf.mxu1  ;;  %v3411_v34 = vadd.f32 %v3410_v24, %v3259_v30 }
 0x9b4   :  { %vm4003_vm15 = vcmp.ge.f32.partialorder %v3499_v22, 0.0  ;;  %v4019_v32 = vmul.f32 0.01, %v3499_v22  ;;  %v3494_v36 = vadd.f32 %v3493_v15, %v3269_v33  ;;  %v3324_v33 = vpop.permute.xlu0 %3323 }
 0x9b5   :  { %v21051_v35 = vsel %vm4001_vm14, %v3416_v16, %v4017_v14  ;;  %v4016_v52 = vmul.f32 0.01, %v3411_v34  ;;  %vm4000_vm3 = vcmp.ge.f32.partialorder %v3411_v34, 0.0 }
 0x9b6   :  { %v21053_v37 = vsel %vm4003_vm15, %v3499_v22, %v4019_v32  ;;  %4114 = vrot.lane.b32.xlu0 %v21051_v35, %s20035_s27  ;;  %v4018_v38 = vmul.f32 0.01, %v3494_v36  ;;  %vm4002_vm10 = vcmp.ge.f32.partialorder %v3494_v36, 0.0  ;;  %v3309_v22 = vpop.permute.xlu1 %3308 }
 0x9b7   :  { %4118 = vrot.lane.b32.xlu1 %v21053_v37, %s20035_s27  ;;  %v21063_v39 = vsel %vm4000_vm3, %v3411_v34, %v4016_v52 }
 0x9b8   :  { %v21065_v42 = vsel %vm4002_vm10, %v3494_v36, %v4018_v38 }
 0x9ba   :  { %4066 = vrot.lane.b32.xlu0 %v21051_v35, %s20037_s29  ;;  %v3334_v52 = vpop.permute.xlu1 %3333 }
 0x9bb   :  { %4070 = vrot.lane.b32.xlu1 %v21053_v37, %s20037_s29 }
 0x9be   :  { %4112 = vrot.lane.b32.xlu0 %v21063_v39, %s20035_s27 }
 0x9bf   :  { %4116 = vrot.lane.b32.xlu1 %v21065_v42, %s20035_s27 }
 0x9c1   :  { %v18384_v43 = vpop.f32.mrf.mxu0 }
 0x9c2   :  { %v3582_v44 = vadd.f32 %v18384_v43, %v3284_v56  ;;  %4064 = vrot.lane.b32.xlu0 %v21063_v39, %s20037_s29 }
 0x9c3   :  { %4068 = vrot.lane.b32.xlu1 %v21065_v42, %s20037_s29  ;;  %v3576_v46 = vpop.f32.mrf.mxu0 }
 0x9c4   :  { %vm4005_vm7 = vcmp.ge.f32.partialorder %v3582_v44, 0.0  ;;  %v4021_v47 = vmul.f32 0.01, %v3582_v44  ;;  %v3577_v50 = vadd.f32 %v3576_v46, %v3279_v48 }
 0x9c5   :  { %v18393_v49 = vpop.f32.mrf.mxu1 }
 0x9c6   :  { %v3665_v51 = vadd.f32 %v18393_v49, %v3294_v45  ;;  %v21075_v53 = vsel %vm4005_vm7, %v3582_v44, %v4021_v47  ;;  %v4020_v57 = vmul.f32 0.01, %v3577_v50  ;;  %vm4004_vm15 = vcmp.ge.f32.partialorder %v3577_v50, 0.0  ;;  %v3319_v45 = vpop.permute.xlu0 %3318 }
 0x9c7   :  { %v3659_v54 = vpop.f32.mrf.mxu1  ;;  %4122 = vrot.lane.b32.xlu0 %v21075_v53, %s20035_s27 }
 0x9c8   :  { %vm4007_vm14 = vcmp.ge.f32.partialorder %v3665_v51, 0.0  ;;  %v4023_v55 = vmul.f32 0.01, %v3665_v51  ;;  %v3660_v3 = vadd.f32 %v3659_v54, %v3289_v25  ;;  %v21085_v60 = vsel %vm4004_vm15, %v3577_v50, %v4020_v57 }
 0x9ca   :  { %v21079_v58 = vsel %vm4007_vm14, %v3665_v51, %v4023_v55  ;;  %v4022_v59 = vmul.f32 0.01, %v3660_v3  ;;  %vm4006_vm3 = vcmp.ge.f32.partialorder %v3660_v3, 0.0  ;;  %v3329_v51 = vpop.permute.xlu1 %3328 }
 0x9cb   :  { %4126 = vrot.lane.b32.xlu1 %v21079_v58, %s20035_s27  ;;  %4074 = vrot.lane.b32.xlu0 %v21075_v53, %s20037_s29 }
 0x9cc   :  { %v21091_v63 = vsel %vm4006_vm3, %v3660_v3, %v4022_v59 }
 0x9cf   :  { %4078 = vrot.lane.b32.xlu1 %v21079_v58, %s20037_s29  ;;  %4120 = vrot.lane.b32.xlu0 %v21085_v60, %s20035_s27 }
 0x9d2   :  { %v18402_v62 = vpop.f32.mrf.mxu0 }
 0x9d3   :  { %v3748_v0 = vadd.f32 %v18402_v62, %v3304_v61  ;;  %4124 = vrot.lane.b32.xlu1 %v21091_v63, %s20035_s27  ;;  %4072 = vrot.lane.b32.xlu0 %v21085_v60, %s20037_s29  ;;  %v311_v61 = vld [vmem:[%s24318_s4 + $0x20] sm:$0xf]  ;;  %v312_v62 = vld [vmem:[%s24318_s4 + $0x24] sm:$0xf] }
 0x9d4   :  { %v3742_v2 = vpop.f32.mrf.mxu0 }
 0x9d5   :  { %vm4009_vm10 = vcmp.ge.f32.partialorder %v3748_v0, 0.0  ;;  %v4025_v11 = vmul.f32 0.01, %v3748_v0  ;;  %v18411_v12 = vpop.f32.mrf.mxu1  ;;  %v3743_v31 = vadd.f32 %v3742_v2, %v3299_v40  ;;  %v315_v2 = vld [vmem:[%s24318_s4 + $0x30] sm:$0xf] }
 0x9d6   :  { %v3831_v29 = vadd.f32 %v18411_v12, %v3314_v26  ;;  %v313_v26 = vld [vmem:[%s24318_s4 + $0x28] sm:$0xf]  ;;  %v317_v12 = vld [vmem:[%s24318_s4 + $0x38] sm:$0xf]  ;;  %v318_v40 = vld [vmem:[%s24318_s4 + $0x3c] sm:$0xf] }
 0x9d7   :  { %v3825_v41 = vpop.f32.mrf.mxu1  ;;  %4076 = vrot.lane.b32.xlu1 %v21091_v63, %s20037_s29  ;;  %v21099_v16 = vsel %vm4009_vm10, %v3748_v0, %v4025_v11  ;;  %v4024_v15 = vmul.f32 0.01, %v3743_v31  ;;  %vm4008_vm14 = vcmp.ge.f32.partialorder %v3743_v31, 0.0  ;;  %v314_v0 = vld [vmem:[%s24318_s4 + $0x2c] sm:$0xf] }
 0x9d8   :  { %vm4011_vm7 = vcmp.ge.f32.partialorder %v3831_v29, 0.0  ;;  %v4027_v20 = vmul.f32 0.01, %v3831_v29  ;;  %4130 = vrot.lane.b32.xlu0 %v21099_v16, %s20035_s27  ;;  %v3826_v24 = vadd.f32 %v3825_v41, %v3309_v22  ;;  %v316_v11 = vld [vmem:[%s24318_s4 + $0x34] sm:$0xf] }
 0x9d9   :  { %v21111_v32 = vsel %vm4008_vm14, %v3743_v31, %v4024_v15 }
 0x9da   :  { %v21103_v14 = vsel %vm4011_vm7, %v3831_v29, %v4027_v20  ;;  %v4026_v30 = vmul.f32 0.01, %v3826_v24  ;;  %vm4010_vm15 = vcmp.ge.f32.partialorder %v3826_v24, 0.0 }
 0x9db   :  { %4134 = vrot.lane.b32.xlu1 %v21103_v14, %s20035_s27 }
 0x9dc   :  { %4082 = vrot.lane.b32.xlu0 %v21099_v16, %s20037_s29  ;;  %v21115_v36 = vsel %vm4010_vm15, %v3826_v24, %v4026_v30 }
 0x9df   :  { %4086 = vrot.lane.b32.xlu1 %v21103_v14, %s20037_s29 }
 0x9e0   :  { %4128 = vrot.lane.b32.xlu0 %v21111_v32, %s20035_s27 }
 0x9e2   :  { %v18420_v34 = vpop.f32.mrf.mxu0 }
 0x9e3   :  { %v3914_v38 = vadd.f32 %v18420_v34, %v3324_v33  ;;  %4132 = vrot.lane.b32.xlu1 %v21115_v36, %s20035_s27  ;;  %v255_v33 = vld [vmem:[%s24317_s3 + $0x20] sm:$0xf]  ;;  %v256_v34 = vld [vmem:[%s24317_s3 + $0x24] sm:$0xf] }
 0x9e4   :  { %v3908_v56 = vpop.f32.mrf.mxu0  ;;  %4080 = vrot.lane.b32.xlu0 %v21111_v32, %s20037_s29 }
 0x9e5   :  { %vm4013_vm3 = vcmp.ge.f32.partialorder %v3914_v38, 0.0  ;;  %v4029_v43 = vmul.f32 0.01, %v3914_v38  ;;  %v18429_v44 = vpop.f32.mrf.mxu1  ;;  %v3909_v47 = vadd.f32 %v3908_v56, %v3319_v45 }
 0x9e6   :  { %v3997_v46 = vadd.f32 %v18429_v44, %v3334_v52 }
 0x9e7   :  { %v3991_v48 = vpop.f32.mrf.mxu1  ;;  %4084 = vrot.lane.b32.xlu1 %v21115_v36, %s20037_s29  ;;  %v21123_v49 = vsel %vm4013_vm3, %v3914_v38, %v4029_v43  ;;  %v4028_v25 = vmul.f32 0.01, %v3909_v47  ;;  %vm4012_vm7 = vcmp.ge.f32.partialorder %v3909_v47, 0.0  ;;  %v257_v43 = vld [vmem:[%s24317_s3 + $0x28] sm:$0xf] }
 0x9e8   :  { %vm4015_vm10 = vcmp.ge.f32.partialorder %v3997_v46, 0.0  ;;  %v4031_v50 = vmul.f32 0.01, %v3997_v46  ;;  %4138 = vrot.lane.b32.xlu0 %v21123_v49, %s20035_s27  ;;  %v3992_v54 = vadd.f32 %v3991_v48, %v3329_v51  ;;  %v259_v51 = vld [vmem:[%s24317_s3 + $0x30] sm:$0xf] }
 0x9e9   :  { %v21135_v3 = vsel %vm4012_vm7, %v3909_v47, %v4028_v25 }
 0x9ea   :  { %v21127_v55 = vsel %vm4015_vm10, %v3997_v46, %v4031_v50  ;;  %v4030_v57 = vmul.f32 0.01, %v3992_v54  ;;  %vm4014_vm14 = vcmp.ge.f32.partialorder %v3992_v54, 0.0 }
 0x9eb   :  { %4142 = vrot.lane.b32.xlu1 %v21127_v55, %s20035_s27 }
 0x9ec   :  { %4090 = vrot.lane.b32.xlu0 %v21123_v49, %s20037_s29  ;;  %v21139_v59 = vsel %vm4014_vm14, %v3992_v54, %v4030_v57 }
 0x9ef   :  { %4094 = vrot.lane.b32.xlu1 %v21127_v55, %s20037_s29 }
 0x9f0   :  { %4136 = vrot.lane.b32.xlu0 %v21135_v3, %s20035_s27 }
 0x9f3   :  { %4140 = vrot.lane.b32.xlu1 %v21139_v59, %s20035_s27 }
 0x9f4   :  { %4088 = vrot.lane.b32.xlu0 %v21135_v3, %s20037_s29 }
 0x9f7   :  { %4092 = vrot.lane.b32.xlu1 %v21139_v59, %s20037_s29 }
 0x9f8   :  { %4162 = vperm.xlu0 %19775, %v311_v61  }
 0x9fb   :  { %4167 = vperm.xlu1 %19777, %v312_v62  }
 0x9fc   :  { %4172 = vperm.xlu0 %19775, %v313_v26   ;;  %v261_v26 = vld [vmem:[%s24317_s3 + $0x38] sm:$0xf] }
 0x9ff   :  { %4177 = vperm.xlu1 %19777, %v314_v0   ;;  %v262_v0 = vld [vmem:[%s24317_s3 + $0x3c] sm:$0xf] }
 0xa00   :  { %4182 = vperm.xlu0 %19775, %v315_v2  }
 0xa03   :  { %4187 = vperm.xlu1 %19777, %v316_v11  }
 0xa04   :  { %4192 = vperm.xlu0 %19775, %v317_v12  }
 0xa07   :  { %4197 = vperm.xlu1 %19777, %v318_v40  }
 0xa28   :  { %v4115_v29 = vpop.permute.xlu0 %4114 }
 0xa29   :  { %v4119_v31 = vpop.permute.xlu1 %4118  ;;  %18431 = vmatpush3.msra.mxu0 %v4115_v29 }
 0xa2a   :  { %18446 = vmatpush3.msra.mxu1 %v4119_v31  ;;  %18432 = vmatprep.subr.mxu0 %v20028_v1 }
 0xa2b   :  { %18447 = vmatprep.subr.mxu1 %v20028_v1 }
 0xa2c   :  { %v4067_v41 = vpop.permute.xlu0 %4066 }
 0xa2d   :  { %v4071_v20 = vpop.permute.xlu1 %4070 }
 0xa30   :  { %v4113_v22 = vpop.permute.xlu0 %4112 }
 0xa31   :  { %v4117_v24 = vpop.permute.xlu1 %4116  ;;  %18433 = vmatpush3.msra.mxu0 %v4113_v22 }
 0xa32   :  { %18448 = vmatpush3.msra.mxu1 %v4117_v24  ;;  %18434 = vmatprep.subr.mxu0 %v20028_v1 }
 0xa33   :  { %18449 = vmatprep.subr.mxu1 %v20028_v1  ;;  %18435 = vmatpush3.msra.mxu0 %v4067_v41 }
 0xa34   :  { %18450 = vmatpush3.msra.mxu1 %v4071_v20  ;;  %18436 = vmatprep.subr.mxu0 %v20028_v1  ;;  %v4065_v15 = vpop.permute.xlu0 %4064 }
 0xa35   :  { %18451 = vmatprep.subr.mxu1 %v20028_v1  ;;  %v4069_v30 = vpop.permute.xlu1 %4068  ;;  %18437 = vmatpush3.msra.mxu0 %v4065_v15 }
 0xa36   :  { %18452 = vmatpush3.msra.mxu1 %v4069_v30  ;;  %18438 = vmatprep.subr.mxu0 %v20028_v1 }
 0xa37   :  { %18453 = vmatprep.subr.mxu1 %v20028_v1  ;;  %18439 = vmatpush3.msra.mxu0 %v21051_v35 }
 0xa38   :  { %18454 = vmatpush3.msra.mxu1 %v21053_v37  ;;  %18440 = vmatprep.subr.mxu0 %v20028_v1 }
 0xa39   :  { %18455 = vmatprep.subr.mxu1 %v20028_v1  ;;  %v4123_v52 = vpop.permute.xlu0 %4122  ;;  %18441 = vmatpush3.msra.mxu0 %v21063_v39 }
 0xa3a   :  { %18456 = vmatpush3.msra.mxu1 %v21065_v42  ;;  %18443 = vmatmul.mubr.msk.f32.vlgmr.msra.gmra.mxu0 %vm1253_vm11, %v255_v33 }
 0xa3b   :  { %18458 = vmatmul.mubr.msk.f32.vlgmr.msra.gmra.mxu1 %vm1253_vm11, %v256_v34  ;;  %18460 = vmatprep.subr.mxu0 %v20028_v1 }
 0xa3c   :  { %18461 = vmatpush3.msra.mxu0 %v4123_v52  ;;  %18475 = vmatprep.subr.mxu1 %v20028_v1 }
 0xa3d   :  { %v4127_v35 = vpop.permute.xlu1 %4126  ;;  %v4075_v37 = vpop.permute.xlu0 %4074  ;;  %18462 = vmatprep.subr.mxu0 %v20028_v1  ;;  %18472 = vmatprep.mubr.msk.f32.mxu0 %vm20029_vm0, %v20028_v1 }
 0xa3e   :  { %18476 = vmatpush3.msra.mxu1 %v4127_v35  ;;  %18487 = vmatprep.mubr.msk.f32.mxu1 %vm20029_vm0, %v20028_v1 }
 0xa3f   :  { %18477 = vmatprep.subr.mxu1 %v20028_v1 }
 0xa41   :  { %v4079_v39 = vpop.permute.xlu1 %4078  ;;  %v4121_v42 = vpop.permute.xlu0 %4120 }
 0xa42   :  { %18463 = vmatpush3.msra.mxu0 %v4121_v42 }
 0xa43   :  { %18464 = vmatprep.subr.mxu0 %v20028_v1 }
 0xa44   :  { %18465 = vmatpush3.msra.mxu0 %v4075_v37 }
 0xa45   :  { %v4125_v38 = vpop.permute.xlu1 %4124  ;;  %18466 = vmatprep.subr.mxu0 %v20028_v1  ;;  %v4073_v56 = vpop.permute.xlu0 %4072 }
 0xa46   :  { %18467 = vmatpush3.msra.mxu0 %v4073_v56  ;;  %18478 = vmatpush3.msra.mxu1 %v4125_v38 }
 0xa47   :  { %18468 = vmatprep.subr.mxu0 %v20028_v1  ;;  %18479 = vmatprep.subr.mxu1 %v20028_v1 }
 0xa48   :  { %18469 = vmatpush3.msra.mxu0 %v21075_v53  ;;  %18480 = vmatpush3.msra.mxu1 %v4079_v39  ;;  %v258_v53 = vld [vmem:[%s24317_s3 + $0x2c] sm:$0xf] }
 0xa49   :  { %18481 = vmatprep.subr.mxu1 %v20028_v1  ;;  %v4077_v44 = vpop.permute.xlu1 %4076  ;;  %18470 = vmatprep.subr.mxu0 %v20028_v1 }
 0xa4a   :  { %18471 = vmatpush3.msra.mxu0 %v21085_v60  ;;  %18482 = vmatpush3.msra.mxu1 %v4077_v44  ;;  %v4131_v45 = vpop.permute.xlu0 %4130 }
 0xa4b   :  { %18473 = vmatmul.mubr.msk.f32.vlgmr.msra.gmra.mxu0 %vm1253_vm11, %v257_v43  ;;  %18483 = vmatprep.subr.mxu1 %v20028_v1 }
 0xa4c   :  { %18490 = vmatprep.subr.mxu0 %v20028_v1  ;;  %18484 = vmatpush3.msra.mxu1 %v21079_v58 }
 0xa4d   :  { %18491 = vmatpush3.msra.mxu0 %v4131_v45  ;;  %18485 = vmatprep.subr.mxu1 %v20028_v1  ;;  %v4135_v46 = vpop.permute.xlu1 %4134 }
 0xa4e   :  { %18486 = vmatpush3.msra.mxu1 %v21091_v63  ;;  %v4083_v60 = vpop.permute.xlu0 %4082  ;;  %18492 = vmatprep.subr.mxu0 %v20028_v1 }
 0xa4f   :  { %18488 = vmatmul.mubr.msk.f32.vlgmr.msra.gmra.mxu1 %vm1253_vm11, %v258_v53  ;;  %18505 = vmatprep.subr.mxu1 %v20028_v1 }
 0xa50   :  { %18506 = vmatpush3.msra.mxu1 %v4135_v46  ;;  %18502 = vmatprep.mubr.msk.f32.mxu0 %vm20029_vm0, %v20028_v1 }
 0xa51   :  { %v4087_v58 = vpop.permute.xlu1 %4086  ;;  %18507 = vmatprep.subr.mxu1 %v20028_v1  ;;  %18517 = vmatprep.mubr.msk.f32.mxu1 %vm20029_vm0, %v20028_v1 }
 0xa52   :  { %v4129_v47 = vpop.permute.xlu0 %4128 }
 0xa53   :  { %18493 = vmatpush3.msra.mxu0 %v4129_v47 }
 0xa54   :  { %18494 = vmatprep.subr.mxu0 %v20028_v1 }
 0xa55   :  { %v4133_v63 = vpop.permute.xlu1 %4132  ;;  %18495 = vmatpush3.msra.mxu0 %v4083_v60 }
 0xa56   :  { %18496 = vmatprep.subr.mxu0 %v20028_v1  ;;  %18508 = vmatpush3.msra.mxu1 %v4133_v63  ;;  %v4081_v48 = vpop.permute.xlu0 %4080 }
 0xa57   :  { %18497 = vmatpush3.msra.mxu0 %v4081_v48  ;;  %18509 = vmatprep.subr.mxu1 %v20028_v1 }
 0xa58   :  { %18498 = vmatprep.subr.mxu0 %v20028_v1  ;;  %18510 = vmatpush3.msra.mxu1 %v4087_v58 }
 0xa59   :  { %18511 = vmatprep.subr.mxu1 %v20028_v1  ;;  %v4085_v50 = vpop.permute.xlu1 %4084  ;;  %18499 = vmatpush3.msra.mxu0 %v21099_v16  ;;  %v260_v16 = vld [vmem:[%s24317_s3 + $0x34] sm:$0xf] }
 0xa5a   :  { %18500 = vmatprep.subr.mxu0 %v20028_v1  ;;  %18512 = vmatpush3.msra.mxu1 %v4085_v50  ;;  %v4139_v54 = vpop.permute.xlu0 %4138 }
 0xa5b   :  { %18501 = vmatpush3.msra.mxu0 %v21111_v32  ;;  %18513 = vmatprep.subr.mxu1 %v20028_v1 }
 0xa5c   :  { %18503 = vmatmul.mubr.msk.f32.vlgmr.msra.gmra.mxu0 %vm1253_vm11, %v259_v51  ;;  %18514 = vmatpush3.msra.mxu1 %v21103_v14 }
 0xa5d   :  { %18520 = vmatprep.subr.mxu0 %v20028_v1  ;;  %18515 = vmatprep.subr.mxu1 %v20028_v1  ;;  %v4143_v25 = vpop.permute.xlu1 %4142 }
 0xa5e   :  { %18521 = vmatpush3.msra.mxu0 %v4139_v54  ;;  %18516 = vmatpush3.msra.mxu1 %v21115_v36  ;;  %v4091_v57 = vpop.permute.xlu0 %4090 }
 0xa5f   :  { %18518 = vmatmul.mubr.msk.f32.vlgmr.msra.gmra.mxu1 %vm1253_vm11, %v260_v16  ;;  %18535 = vmatprep.subr.mxu1 %v20028_v1 }
 0xa60   :  { %18536 = vmatpush3.msra.mxu1 %v4143_v25  ;;  %18522 = vmatprep.subr.mxu0 %v20028_v1 }
 0xa61   :  { %v4095_v14 = vpop.permute.xlu1 %4094  ;;  %18537 = vmatprep.subr.mxu1 %v20028_v1  ;;  %18532 = vmatprep.mubr.msk.f32.mxu0 %vm20029_vm0, %v20028_v1 }
 0xa62   :  { %v4137_v32 = vpop.permute.xlu0 %4136  ;;  %18547 = vmatprep.mubr.msk.f32.mxu1 %vm20029_vm0, %v20028_v1 }
 0xa63   :  { %18523 = vmatpush3.msra.mxu0 %v4137_v32 }
 0xa64   :  { %18524 = vmatprep.subr.mxu0 %v20028_v1 }
 0xa65   :  { %v4141_v36 = vpop.permute.xlu1 %4140  ;;  %18525 = vmatpush3.msra.mxu0 %v4091_v57 }
 0xa66   :  { %18526 = vmatprep.subr.mxu0 %v20028_v1  ;;  %18538 = vmatpush3.msra.mxu1 %v4141_v36  ;;  %v4089_v61 = vpop.permute.xlu0 %4088 }
 0xa67   :  { %18527 = vmatpush3.msra.mxu0 %v4089_v61  ;;  %18539 = vmatprep.subr.mxu1 %v20028_v1 }
 0xa68   :  { %18528 = vmatprep.subr.mxu0 %v20028_v1  ;;  %18540 = vmatpush3.msra.mxu1 %v4095_v14 }
 0xa69   :  { %18541 = vmatprep.subr.mxu1 %v20028_v1  ;;  %v4093_v62 = vpop.permute.xlu1 %4092  ;;  %18529 = vmatpush3.msra.mxu0 %v21123_v49 }
 0xa6a   :  { %18530 = vmatprep.subr.mxu0 %v20028_v1  ;;  %18542 = vmatpush3.msra.mxu1 %v4093_v62 }
 0xa6b   :  { %18531 = vmatpush3.msra.mxu0 %v21135_v3  ;;  %18543 = vmatprep.subr.mxu1 %v20028_v1 }
 0xa6c   :  { %18533 = vmatmul.mubr.msk.f32.vlgmr.msra.gmra.mxu0 %vm1253_vm11, %v261_v26  ;;  %18544 = vmatpush3.msra.mxu1 %v21127_v55 }
 0xa6d   :  { %18545 = vmatprep.subr.mxu1 %v20028_v1 }
 0xa6e   :  { %18546 = vmatpush3.msra.mxu1 %v21139_v59 }
 0xa6f   :  { %18548 = vmatmul.mubr.msk.f32.vlgmr.msra.gmra.mxu1 %vm1253_vm11, %v262_v0 }
 0xa73   :  { %v4163_v49 = vpop.permute.xlu0 %4162 }
 0xa76   :  { %v4168_v11 = vpop.permute.xlu1 %4167 }
 0xa77   :  { %v4173_v20 = vpop.permute.xlu0 %4172 }
 0xa7a   :  { %v4178_v33 = vpop.permute.xlu1 %4177 }
 0xa7b   :  { %v4183_v56 = vpop.permute.xlu0 %4182 }
 0xa7e   :  { %v4188_v58 = vpop.permute.xlu1 %4187 }
 0xa7f   :  { %v4193_v50 = vpop.permute.xlu0 %4192 }
 0xa82   :  { %v4198_v36 = vpop.permute.xlu1 %4197 }
 0xafa   :  { %v4269_v2 = vpop.f32.mrf.mxu0 }
 0xafb   :  { %v4270_v3 = vadd.f32 %v4269_v2, %v4163_v49  ;;  %v4342_v12 = vpop.f32.mrf.mxu1 }
 0xafc   :  { %v4343_v40 = vadd.f32 %v4342_v12, %v4168_v11  ;;  %v18444_v29 = vpop.f32.mrf.mxu0 }
 0xafd   :  { %19862 = vtanh.f32 %v4270_v3  ;;  %v18459_v31 = vpop.f32.mrf.mxu1 }
 0xafe   :  { %19864 = vtanh.f32 %v4343_v40 }
 0xb0a   :  { %v19863_v55 = vpop.eup %19862 }
 0xb0b   :  { %v19865_v41 = vpop.eup %19864  ;;  %v4792_v22 = vmul.f32 1.442695, %v19863_v55  ;;  %v4415_v24 = vpop.f32.mrf.mxu0 }
 0xb0c   :  { %v4794_v15 = vmul.f32 1.442695, %v19865_v41  ;;  %v4416_v30 = vadd.f32 %v4415_v24, %v4173_v20 }
 0xb0d   :  { %19866 = vpow2.f32 %v4792_v22  ;;  %v18474_v59 = vpop.f32.mrf.mxu0 }
 0xb0e   :  { %19868 = vpow2.f32 %v4794_v15 }
 0xb0f   :  { %19870 = vtanh.f32 %v4416_v30  ;;  %v4488_v34 = vpop.f32.mrf.mxu1 }
 0xb10   :  { %v4489_v52 = vadd.f32 %v4488_v34, %v4178_v33  ;;  %v55_v34 = vld [vmem:[%s24315_s1 + $0x100] sm:$0xff] }
 0xb11   :  { %v18489_v35 = vpop.f32.mrf.mxu1  ;;  %18556 = vmatprep.mubr.msk.f32.mxu0 %vm820_vm8, %v55_v34  ;;  %v173_v34 = vld [vmem:[%s24316_s2 + $0x130] sm:$0xff] }
 0xb12   :  { %19872 = vtanh.f32 %v4489_v52  ;;  %v57_v52 = vld [vmem:[%s24315_s1 + $0x110] sm:$0xff] }
 0xb13   :  { %18565 = vmatprep.mubr.msk.f32.mxu1 %vm820_vm8, %v57_v52  ;;  %v176_v52 = vld [vmem:[%s24316_s2 + $0x148] sm:$0xff] }
 0xb1a   :  { %v19867_v37 = vpop.eup %19866 }
 0xb1b   :  { %v19869_v39 = vpop.eup %19868  ;;  %v21278_v42 = vmul.f32 %v19867_v37, %v20764_v18 }
 0xb1c   :  { %v19871_v38 = vpop.eup %19870  ;;  %v4561_v43 = vpop.f32.mrf.mxu0  ;;  %v21281_v44 = vmul.f32 %v19869_v39, %v20773_v28 }
 0xb1d   :  { %v4796_v45 = vmul.f32 1.442695, %v19871_v38  ;;  %v4562_v53 = vadd.f32 %v4561_v43, %v4183_v56  ;;  %4818 = vperm.xlu0 %19775, %v21278_v42  }
 0xb1e   :  { %4823 = vperm.xlu1 %19777, %v21281_v44   ;;  %v18504_v46 = vpop.f32.mrf.mxu0 }
 0xb1f   :  { %v19873_v60 = vpop.eup %19872  ;;  %19874 = vpow2.f32 %v4796_v45  ;;  %v4634_v47 = vpop.f32.mrf.mxu1 }
 0xb20   :  { %v4798_v63 = vmul.f32 1.442695, %v19873_v60  ;;  %19876 = vtanh.f32 %v4562_v53  ;;  %v4635_v18 = vadd.f32 %v4634_v47, %v4188_v58 }
 0xb21   :  { %v18519_v48 = vpop.f32.mrf.mxu1  ;;  %19778 = vset.pattern.permute.xlu0 %v20038_v23 }
 0xb22   :  { %19878 = vpow2.f32 %v4798_v63  ;;  %19779 = vset.pattern.permute.xlu1 %v20038_v23  ;;  %4857 = vperm.xlu0 %19778, %v21278_v42  }
 0xb23   :  { %19880 = vtanh.f32 %v4635_v18  ;;  %4861 = vperm.xlu1 %19779, %v21281_v44  }
 0xb26   :  { %4890 = vrot.lane.b32.xlu0 %v21281_v44, %s20033_s0 }
 0xb27   :  { %4888 = vrot.lane.b32.xlu1 %v21278_v42, %s20033_s0  ;;  %19781 = vset.pattern.permute.xlu0 %v24320_v5 }
 0xb28   :  { %19780 = vset.pattern.permute.xlu1 %v24320_v5 }
 0xb2c   :  { %v19875_v28 = vpop.eup %19874  ;;  %v4707_v51 = vpop.f32.mrf.mxu0 }
 0xb2d   :  { %v19877_v54 = vpop.eup %19876  ;;  %v4708_v16 = vadd.f32 %v4707_v51, %v4193_v50  ;;  %v21296_v25 = vmul.f32 %v19875_v28, %v20771_v27 }
 0xb2e   :  { %v4804_v57 = vmul.f32 1.442695, %v19877_v54  ;;  %v18534_v14 = vpop.f32.mrf.mxu0 }
 0xb2f   :  { %v19879_v32 = vpop.eup %19878  ;;  %19882 = vtanh.f32 %v4708_v16  ;;  %4828 = vperm.xlu1 %19780, %v21296_v25   ;;  %v4780_v61 = vpop.f32.mrf.mxu1 }
 0xb30   :  { %v19881_v62 = vpop.eup %19880  ;;  %19884 = vpow2.f32 %v4804_v57  ;;  %v4781_v26 = vadd.f32 %v4780_v61, %v4198_v36  ;;  %v21300_v0 = vmul.f32 %v19879_v32, %v20778_v4 }
 0xb31   :  { %v4806_v49 = vmul.f32 1.442695, %v19881_v62  ;;  %v18549_v2 = vpop.f32.mrf.mxu1 }
 0xb32   :  { %19886 = vtanh.f32 %v4781_v26  ;;  %4833 = vperm.xlu0 %19781, %v21300_v0  }
 0xb33   :  { %19888 = vpow2.f32 %v4806_v49  ;;  %19782 = vset.pattern.permute.xlu1 %v20038_v23 }
 0xb34   :  { %4865 = vperm.xlu1 %19782, %v21296_v25  }
 0xb36   :  { %4892 = vrot.lane.b32.xlu0 %v21296_v25, %s20033_s0 }
 0xb38   :  { %4869 = vperm.xlu1 %19782, %v21300_v0  }
 0xb3c   :  { %v19883_v27 = vpop.eup %19882  ;;  %4894 = vrot.lane.b32.xlu1 %v21300_v0, %s20033_s0 }
 0xb3d   :  { %v19885_v4 = vpop.eup %19884  ;;  %v4808_v11 = vmul.f32 1.442695, %v19883_v27  ;;  %19783 = vset.pattern.permute.xlu1 %v24320_v5 }
 0xb3e   :  { %v21312_v3 = vmul.f32 %v19885_v4, %v20747_v21 }
 0xb3f   :  { %v19887_v12 = vpop.eup %19886  ;;  %19890 = vpow2.f32 %v4808_v11 }
 0xb40   :  { %v19889_v40 = vpop.eup %19888  ;;  %v4810_v29 = vmul.f32 1.442695, %v19887_v12  ;;  %4838 = vperm.xlu0 %19781, %v21312_v3  }
 0xb41   :  { %v21316_v31 = vmul.f32 %v19889_v40, %v20745_v17 }
 0xb42   :  { %19892 = vpow2.f32 %v4810_v29 }
 0xb43   :  { %4843 = vperm.xlu1 %19783, %v21316_v31  }
 0xb44   :  { %19784 = vset.pattern.permute.xlu0 %v20038_v23 }
 0xb45   :  { %4873 = vperm.xlu0 %19784, %v21312_v3  }
 0xb47   :  { %19785 = vset.pattern.permute.xlu1 %v20038_v23 }
 0xb48   :  { %4877 = vperm.xlu1 %19785, %v21316_v31  }
 0xb49   :  { %4898 = vrot.lane.b32.xlu0 %v21316_v31, %s20033_s0 }
 0xb4a   :  { %19787 = vset.pattern.permute.xlu0 %v24320_v5 }
 0xb4c   :  { %v19891_v21 = vpop.eup %19890  ;;  %4896 = vrot.lane.b32.xlu1 %v21312_v3, %s20033_s0 }
 0xb4d   :  { %19786 = vset.pattern.permute.xlu1 %v24320_v5  ;;  %v21330_v17 = vmul.f32 %v19891_v21, %v20761_v10 }
 0xb4f   :  { %v19893_v55 = vpop.eup %19892 }
 0xb50   :  { %4848 = vperm.xlu1 %19786, %v21330_v17   ;;  %v21334_v41 = vmul.f32 %v19893_v55, %v20766_v19 }
 0xb52   :  { %4853 = vperm.xlu0 %19787, %v21334_v41  }
 0xb54   :  { %19788 = vset.pattern.permute.xlu1 %v20038_v23 }
 0xb55   :  { %4881 = vperm.xlu1 %19788, %v21330_v17  }
 0xb56   :  { %4900 = vrot.lane.b32.xlu0 %v21330_v17, %s20033_s0 }
 0xb59   :  { %4885 = vperm.xlu1 %19788, %v21334_v41  }
 0xb5d   :  { %4902 = vrot.lane.b32.xlu1 %v21334_v41, %s20033_s0 }
 0xb5e   :  { %19789 = vset.pattern.permute.xlu1 %v24320_v5 }
 0xb98   :  { %v4819_v10 = vpop.permute.xlu0 %4818 }
 0xb99   :  { %v4824_v20 = vpop.permute.xlu1 %4823 }
 0xb9d   :  { %v4858_v19 = vpop.permute.xlu0 %4857 }
 0xb9e   :  { %v4862_v22 = vpop.permute.xlu1 %4861 }
 0xba1   :  { %v4891_v24 = vpop.permute.xlu0 %4890 }
 0xba2   :  { %v4889_v15 = vpop.permute.xlu1 %4888  ;;  %v4913_v23 = vsel %vm709_vm6, %v4824_v20, %v4891_v24  ;;  %v168_v20 = vld [vmem:[%s24316_s2 + $0x108] sm:$0xff]  ;;  %v169_v24 = vld [vmem:[%s24316_s2 + $0x110] sm:$0xff] }
 0xba3   :  { %v4912_v30 = vsel %vm709_vm6, %v4819_v10, %v4889_v15  ;;  %v21348_v59 = vsel %vm3127_vm13, %v4913_v23, %v4862_v22  ;;  %v167_v22 = vld [vmem:[%s24316_s2 + $0x100] sm:$0xff]  ;;  %v172_v15 = vld [vmem:[%s24316_s2 + $0x128] sm:$0xff]  ;;  %v174_v23 = vld [vmem:[%s24316_s2 + $0x138] sm:$0xff] }
 0xba4   :  { %v21351_v33 = vsel %vm3127_vm13, %v4912_v30, %v4858_v19  ;;  %5018 = vrot.lane.b32.xlu1 %v21348_v59, %s20034_s22  ;;  %v4937_v37 = vrot.slane %v21348_v59, 4  ;;  %v170_v19 = vld [vmem:[%s24316_s2 + $0x118] sm:$0xff]  ;;  %v171_v30 = vld [vmem:[%s24316_s2 + $0x120] sm:$0xff] }
 0xba5   :  { %5016 = vrot.lane.b32.xlu0 %v21351_v33, %s20034_s22  ;;  %v4936_v39 = vrot.slane %v21351_v33, 4 }
 0xba8   :  { %4970 = vrot.lane.b32.xlu1 %v21348_v59, %s20035_s27 }
 0xba9   :  { %4968 = vrot.lane.b32.xlu0 %v21351_v33, %s20035_s27 }
 0xbaa   :  { %v4829_v35 = vpop.permute.xlu1 %4828 }
 0xbac   :  { %4994 = vrot.lane.b32.xlu1 %v4937_v37, %s20036_s28 }
 0xbad   :  { %4992 = vrot.lane.b32.xlu0 %v4936_v39, %s20036_s28  ;;  %v4834_v38 = vpop.permute.xlu0 %4833 }
 0xbaf   :  { %v4866_v56 = vpop.permute.xlu1 %4865 }
 0xbb0   :  { %4946 = vrot.lane.b32.xlu1 %v4937_v37, %s20037_s29  ;;  %v175_v37 = vld [vmem:[%s24316_s2 + $0x140] sm:$0xff] }
 0xbb1   :  { %4944 = vrot.lane.b32.xlu0 %v4936_v39, %s20037_s29  ;;  %v4893_v43 = vpop.permute.xlu0 %4892  ;;  %v177_v39 = vld [vmem:[%s24316_s2 + $0x150] sm:$0xff] }
 0xbb2   :  { %v4914_v45 = vsel %vm709_vm6, %v4829_v35, %v4893_v43  ;;  %v178_v35 = vld [vmem:[%s24316_s2 + $0x158] sm:$0xff]  ;;  %v179_v43 = vld [vmem:[%s24316_s2 + $0x160] sm:$0xff] }
 0xbb3   :  { %v4870_v53 = vpop.permute.xlu1 %4869  ;;  %v21377_v46 = vsel %vm3127_vm13, %v4914_v45, %v4866_v56  ;;  %v182_v56 = vld [vmem:[%s24316_s2 + $0x178] sm:$0xff]  ;;  %v181_v45 = vld [vmem:[%s24316_s2 + $0x170] sm:$0xff] }
 0xbb4   :  { %v4938_v18 = vrot.slane %v21377_v46, 4 }
 0xbb5   :  { %5020 = vrot.lane.b32.xlu0 %v21377_v46, %s20034_s22 }
 0xbb7   :  { %v4895_v60 = vpop.permute.xlu1 %4894 }
 0xbb8   :  { %v4915_v58 = vsel %vm709_vm6, %v4834_v38, %v4895_v60  ;;  %v180_v38 = vld [vmem:[%s24316_s2 + $0x168] sm:$0xff] }
 0xbb9   :  { %v21383_v47 = vsel %vm3127_vm13, %v4915_v58, %v4870_v53  ;;  %4972 = vrot.lane.b32.xlu0 %v21377_v46, %s20035_s27 }
 0xbba   :  { %5022 = vrot.lane.b32.xlu1 %v21383_v47, %s20034_s22  ;;  %v4939_v50 = vrot.slane %v21383_v47, 4 }
 0xbbb   :  { %v4839_v63 = vpop.permute.xlu0 %4838 }
 0xbbd   :  { %4996 = vrot.lane.b32.xlu0 %v4938_v18, %s20036_s28 }
 0xbbe   :  { %v4844_v48 = vpop.permute.xlu1 %4843  ;;  %4974 = vrot.lane.b32.xlu1 %v21383_v47, %s20035_s27 }
 0xbc0   :  { %v4874_v28 = vpop.permute.xlu0 %4873 }
 0xbc1   :  { %4948 = vrot.lane.b32.xlu0 %v4938_v18, %s20037_s29 }
 0xbc2   :  { %4998 = vrot.lane.b32.xlu1 %v4939_v50, %s20036_s28 }
 0xbc3   :  { %v4878_v51 = vpop.permute.xlu1 %4877 }
 0xbc4   :  { %v4899_v54 = vpop.permute.xlu0 %4898 }
 0xbc5   :  { %v4917_v16 = vsel %vm709_vm6, %v4844_v48, %v4899_v54 }
 0xbc6   :  { %4950 = vrot.lane.b32.xlu1 %v4939_v50, %s20037_s29  ;;  %v21403_v36 = vsel %vm3127_vm13, %v4917_v16, %v4878_v51 }
 0xbc7   :  { %v4897_v57 = vpop.permute.xlu1 %4896  ;;  %v4941_v2 = vrot.slane %v21403_v36, 4 }
 0xbc8   :  { %v4916_v14 = vsel %vm709_vm6, %v4839_v63, %v4897_v57  ;;  %v58_v57 = vld [vmem:[%s24315_s1 + $0x118] sm:$0xff] }
 0xbc9   :  { %v21400_v32 = vsel %vm3127_vm13, %v4916_v14, %v4874_v28 }
 0xbca   :  { %5024 = vrot.lane.b32.xlu0 %v21400_v32, %s20034_s22  ;;  %5026 = vrot.lane.b32.xlu1 %v21403_v36, %s20034_s22  ;;  %v4940_v49 = vrot.slane %v21400_v32, 4 }
 0xbcb   :  { %v4849_v61 = vpop.permute.xlu1 %4848 }
 0xbcd   :  { %v4854_v62 = vpop.permute.xlu0 %4853 }
 0xbce   :  { %4976 = vrot.lane.b32.xlu0 %v21400_v32, %s20035_s27  ;;  %4978 = vrot.lane.b32.xlu1 %v21403_v36, %s20035_s27 }
 0xbd0   :  { %v4882_v26 = vpop.permute.xlu1 %4881 }
 0xbd1   :  { %v4901_v27 = vpop.permute.xlu0 %4900 }
 0xbd2   :  { %5000 = vrot.lane.b32.xlu0 %v4940_v49, %s20036_s28  ;;  %5002 = vrot.lane.b32.xlu1 %v4941_v2, %s20036_s28  ;;  %v4918_v11 = vsel %vm709_vm6, %v4849_v61, %v4901_v27  ;;  %v56_v61 = vld [vmem:[%s24315_s1 + $0x108] sm:$0xff] }
 0xbd3   :  { %v21422_v29 = vsel %vm3127_vm13, %v4918_v11, %v4882_v26 }
 0xbd4   :  { %v4886_v4 = vpop.permute.xlu1 %4885  ;;  %v4942_v55 = vrot.slane %v21422_v29, 4 }
 0xbd6   :  { %4952 = vrot.lane.b32.xlu0 %v4940_v49, %s20037_s29  ;;  %4954 = vrot.lane.b32.xlu1 %v4941_v2, %s20037_s29 }
 0xbd8   :  { %v4903_v12 = vpop.permute.xlu1 %4902 }
 0xbd9   :  { %v4919_v40 = vsel %vm709_vm6, %v4854_v62, %v4903_v12  ;;  %v61_v62 = vld [vmem:[%s24315_s1 + $0x130] sm:$0xff] }
 0xbda   :  { %5028 = vrot.lane.b32.xlu0 %v21422_v29, %s20034_s22  ;;  %v21427_v21 = vsel %vm3127_vm13, %v4919_v40, %v4886_v4 }
 0xbdb   :  { %5030 = vrot.lane.b32.xlu1 %v21427_v21, %s20034_s22  ;;  %v4943_v10 = vrot.slane %v21427_v21, 4 }
 0xbde   :  { %4980 = vrot.lane.b32.xlu0 %v21422_v29, %s20035_s27 }
 0xbdf   :  { %4982 = vrot.lane.b32.xlu1 %v21427_v21, %s20035_s27 }
 0xbe2   :  { %5004 = vrot.lane.b32.xlu0 %v4942_v55, %s20036_s28 }
 0xbe3   :  { %5006 = vrot.lane.b32.xlu1 %v4943_v10, %s20036_s28 }
 0xbe6   :  { %4956 = vrot.lane.b32.xlu0 %v4942_v55, %s20037_s29  ;;  %v60_v55 = vld [vmem:[%s24315_s1 + $0x128] sm:$0xff] }
 0xbe7   :  { %4958 = vrot.lane.b32.xlu1 %v4943_v10, %s20037_s29 }
 0xbea   :  { %5055 = vperm.xlu0 %19787, %v168_v20   ;;  %v63_v20 = vld [vmem:[%s24315_s1 + $0x140] sm:$0xff] }
 0xbeb   :  { %5065 = vperm.xlu1 %19789, %v170_v19  }
 0xbee   :  { %5050 = vperm.xlu0 %19787, %v167_v22   ;;  %v62_v22 = vld [vmem:[%s24315_s1 + $0x138] sm:$0xff] }
 0xbef   :  { %5060 = vperm.xlu1 %19789, %v169_v24  }
 0xbf2   :  { %5075 = vperm.xlu0 %19787, %v172_v15  }
 0xbf3   :  { %5085 = vperm.xlu1 %19789, %v174_v23   ;;  %v65_v23 = vld [vmem:[%s24315_s1 + $0x150] sm:$0xff] }
 0xbf6   :  { %5070 = vperm.xlu0 %19787, %v171_v30  }
 0xbf7   :  { %5080 = vperm.xlu1 %19789, %v173_v34  }
 0xbfa   :  { %5095 = vperm.xlu0 %19787, %v176_v52  }
 0xbfb   :  { %5105 = vperm.xlu1 %19789, %v178_v35  }
 0xbfe   :  { %5090 = vperm.xlu0 %19787, %v175_v37  }
 0xbff   :  { %5100 = vperm.xlu1 %19789, %v177_v39  }
 0xc02   :  { %5115 = vperm.xlu0 %19787, %v180_v38  }
 0xc03   :  { %5125 = vperm.xlu1 %19789, %v182_v56  }
 0xc06   :  { %5110 = vperm.xlu0 %19787, %v179_v43  }
 0xc07   :  { %5120 = vperm.xlu1 %19789, %v181_v45   ;;  %v64_v45 = vld [vmem:[%s24315_s1 + $0x148] sm:$0xff] }
 0xc16   :  { %v5019_v53 = vpop.permute.xlu1 %5018 }
 0xc17   :  { %v5017_v60 = vpop.permute.xlu0 %5016  ;;  %18559 = vmatprep.subr.msk.mxu1 %vm771_vm9, %v5019_v53 }
 0xc18   :  { %18550 = vmatprep.subr.msk.mxu0 %vm771_vm9, %v5017_v60  ;;  %18560 = vmatpush3.msk.msra.mxu1 %vm771_vm9, %v5019_v53  ;;  %v66_v53 = vld [vmem:[%s24315_s1 + $0x158] sm:$0xff] }
 0xc19   :  { %18551 = vmatpush3.msk.msra.mxu0 %vm771_vm9, %v5017_v60  ;;  %v67_v60 = vld [vmem:[%s24315_s1 + $0x160] sm:$0xff] }
 0xc1a   :  { %v4971_v58 = vpop.permute.xlu1 %4970 }
 0xc1b   :  { %v4969_v63 = vpop.permute.xlu0 %4968 }
 0xc1e   :  { %v4995_v18 = vpop.permute.xlu1 %4994 }
 0xc1f   :  { %v4993_v48 = vpop.permute.xlu0 %4992  ;;  %v5041_v28 = vsel %vm771_vm9, %v4971_v58, %v4995_v18 }
 0xc20   :  { %v5040_v50 = vsel %vm771_vm9, %v4969_v63, %v4993_v48  ;;  %18561 = vmatprep.subr.mxu1 %v5041_v28 }
 0xc21   :  { %18552 = vmatprep.subr.mxu0 %v5040_v50  ;;  %18562 = vmatpush3.msra.mxu1 %v5041_v28 }
 0xc22   :  { %18553 = vmatpush3.msra.mxu0 %v5040_v50  ;;  %v4947_v51 = vpop.permute.xlu1 %4946 }
 0xc23   :  { %v4945_v54 = vpop.permute.xlu0 %4944  ;;  %v5033_v16 = vsel %vm771_vm9, %v21348_v59, %v4947_v51  ;;  %v59_v59 = vld [vmem:[%s24315_s1 + $0x120] sm:$0xff] }
 0xc24   :  { %v5032_v14 = vsel %vm771_vm9, %v21351_v33, %v4945_v54  ;;  %18563 = vmatprep.subr.mxu1 %v5033_v16 }
 0xc25   :  { %18554 = vmatprep.subr.mxu0 %v5032_v14  ;;  %18564 = vmatpush3.msra.mxu1 %v5033_v16 }
 0xc26   :  { %18555 = vmatpush3.msra.mxu0 %v5032_v14  ;;  %18566 = vmatmul.mubr.msk.f32.vlgmr.msra.gmra.mxu1 %vm820_vm8, %v58_v57  ;;  %v68_v14 = vld [vmem:[%s24315_s1 + $0x168] sm:$0xff] }
 0xc27   :  { %18557 = vmatmul.mubr.msk.f32.vlgmr.msra.gmra.mxu0 %vm820_vm8, %v56_v61  ;;  %v5021_v33 = vpop.permute.xlu0 %5020  ;;  %18583 = vmatprep.mubr.msk.f32.mxu1 %vm820_vm8, %v61_v62  ;;  %v70_v62 = vld [vmem:[%s24315_s1 + $0x178] sm:$0xff] }
 0xc28   :  { %18568 = vmatprep.subr.msk.mxu0 %vm771_vm9, %v5021_v33  ;;  %18574 = vmatprep.mubr.msk.f32.mxu0 %vm820_vm8, %v59_v59 }
 0xc29   :  { %18569 = vmatpush3.msk.msra.mxu0 %vm771_vm9, %v5021_v33 }
 0xc2b   :  { %v4973_v26 = vpop.permute.xlu0 %4972 }
 0xc2c   :  { %v5023_v49 = vpop.permute.xlu1 %5022 }
 0xc2d   :  { %18577 = vmatprep.subr.msk.mxu1 %vm771_vm9, %v5023_v49 }
 0xc2e   :  { %18578 = vmatpush3.msk.msra.mxu1 %vm771_vm9, %v5023_v49 }
 0xc2f   :  { %v4997_v2 = vpop.permute.xlu0 %4996 }
 0xc30   :  { %v4975_v27 = vpop.permute.xlu1 %4974  ;;  %v5042_v4 = vsel %vm771_vm9, %v4973_v26, %v4997_v2 }
 0xc31   :  { %18570 = vmatprep.subr.mxu0 %v5042_v4 }
 0xc32   :  { %18571 = vmatpush3.msra.mxu0 %v5042_v4 }
 0xc33   :  { %v4949_v11 = vpop.permute.xlu0 %4948 }
 0xc34   :  { %v4999_v12 = vpop.permute.xlu1 %4998  ;;  %v5034_v40 = vsel %vm771_vm9, %v21377_v46, %v4949_v11 }
 0xc35   :  { %18572 = vmatprep.subr.mxu0 %v5034_v40  ;;  %v5043_v10 = vsel %vm771_vm9, %v4975_v27, %v4999_v12 }
 0xc36   :  { %18579 = vmatprep.subr.mxu1 %v5043_v10  ;;  %18573 = vmatpush3.msra.mxu0 %v5034_v40 }
 0xc37   :  { %18580 = vmatpush3.msra.mxu1 %v5043_v10  ;;  %18575 = vmatmul.mubr.msk.f32.vlgmr.msra.gmra.mxu0 %vm820_vm8, %v60_v55 }
 0xc38   :  { %v4951_v19 = vpop.permute.xlu1 %4950  ;;  %18592 = vmatprep.mubr.msk.f32.mxu0 %vm820_vm8, %v63_v20 }
 0xc39   :  { %v5035_v46 = vsel %vm771_vm9, %v21383_v47, %v4951_v19 }
 0xc3a   :  { %18581 = vmatprep.subr.mxu1 %v5035_v46 }
 0xc3b   :  { %18582 = vmatpush3.msra.mxu1 %v5035_v46 }
 0xc3c   :  { %18584 = vmatmul.mubr.msk.f32.vlgmr.msra.gmra.mxu1 %vm820_vm8, %v62_v22  ;;  %v5027_v24 = vpop.permute.xlu1 %5026  ;;  %v5025_v15 = vpop.permute.xlu0 %5024 }
 0xc3d   :  { %18586 = vmatprep.subr.msk.mxu0 %vm771_vm9, %v5025_v15  ;;  %18595 = vmatprep.subr.msk.mxu1 %vm771_vm9, %v5027_v24 }
 0xc3e   :  { %18587 = vmatpush3.msk.msra.mxu0 %vm771_vm9, %v5025_v15  ;;  %18596 = vmatpush3.msk.msra.mxu1 %vm771_vm9, %v5027_v24 }
 0xc3f   :  { %18601 = vmatprep.mubr.msk.f32.mxu1 %vm820_vm8, %v65_v23 }
 0xc40   :  { %v4979_v47 = vpop.permute.xlu1 %4978  ;;  %v4977_v30 = vpop.permute.xlu0 %4976 }
 0xc44   :  { %v5003_v34 = vpop.permute.xlu1 %5002  ;;  %v5001_v52 = vpop.permute.xlu0 %5000 }
 0xc45   :  { %v5044_v35 = vsel %vm771_vm9, %v4977_v30, %v5001_v52  ;;  %v5045_v37 = vsel %vm771_vm9, %v4979_v47, %v5003_v34 }
 0xc46   :  { %18588 = vmatprep.subr.mxu0 %v5044_v35  ;;  %18597 = vmatprep.subr.mxu1 %v5045_v37 }
 0xc47   :  { %18589 = vmatpush3.msra.mxu0 %v5044_v35  ;;  %18598 = vmatpush3.msra.mxu1 %v5045_v37 }
 0xc48   :  { %v4955_v39 = vpop.permute.xlu1 %4954  ;;  %v4953_v38 = vpop.permute.xlu0 %4952 }
 0xc49   :  { %v5036_v56 = vsel %vm771_vm9, %v21400_v32, %v4953_v38  ;;  %v5037_v43 = vsel %vm771_vm9, %v21403_v36, %v4955_v39  ;;  %v69_v36 = vld [vmem:[%s24315_s1 + $0x170] sm:$0xff] }
 0xc4a   :  { %18590 = vmatprep.subr.mxu0 %v5036_v56  ;;  %18599 = vmatprep.subr.mxu1 %v5037_v43 }
 0xc4b   :  { %18591 = vmatpush3.msra.mxu0 %v5036_v56  ;;  %18600 = vmatpush3.msra.mxu1 %v5037_v43 }
 0xc4c   :  { %18593 = vmatmul.mubr.msk.f32.vlgmr.msra.gmra.mxu0 %vm820_vm8, %v64_v45  ;;  %18602 = vmatmul.mubr.msk.f32.vlgmr.msra.gmra.mxu1 %vm820_vm8, %v66_v53  ;;  %v5029_v32 = vpop.permute.xlu0 %5028 }
 0xc4d   :  { %v5031_v58 = vpop.permute.xlu1 %5030  ;;  %18604 = vmatprep.subr.msk.mxu0 %vm771_vm9, %v5029_v32  ;;  %18610 = vmatprep.mubr.msk.f32.mxu0 %vm820_vm8, %v67_v60 }
 0xc4e   :  { %18605 = vmatpush3.msk.msra.mxu0 %vm771_vm9, %v5029_v32  ;;  %18613 = vmatprep.subr.msk.mxu1 %vm771_vm9, %v5031_v58 }
 0xc4f   :  { %18614 = vmatpush3.msk.msra.mxu1 %vm771_vm9, %v5031_v58  ;;  %18619 = vmatprep.mubr.msk.f32.mxu1 %vm820_vm8, %v69_v36 }
 0xc50   :  { %v4981_v63 = vpop.permute.xlu0 %4980 }
 0xc51   :  { %v4983_v18 = vpop.permute.xlu1 %4982 }
 0xc54   :  { %v5005_v48 = vpop.permute.xlu0 %5004 }
 0xc55   :  { %v5007_v28 = vpop.permute.xlu1 %5006  ;;  %v5046_v50 = vsel %vm771_vm9, %v4981_v63, %v5005_v48 }
 0xc56   :  { %18606 = vmatprep.subr.mxu0 %v5046_v50  ;;  %v5047_v51 = vsel %vm771_vm9, %v4983_v18, %v5007_v28 }
 0xc57   :  { %18607 = vmatpush3.msra.mxu0 %v5046_v50  ;;  %18615 = vmatprep.subr.mxu1 %v5047_v51 }
 0xc58   :  { %18616 = vmatpush3.msra.mxu1 %v5047_v51  ;;  %v4957_v54 = vpop.permute.xlu0 %4956 }
 0xc59   :  { %v4959_v16 = vpop.permute.xlu1 %4958  ;;  %v5038_v57 = vsel %vm771_vm9, %v21422_v29, %v4957_v54 }
 0xc5a   :  { %18608 = vmatprep.subr.mxu0 %v5038_v57  ;;  %v5039_v61 = vsel %vm771_vm9, %v21427_v21, %v4959_v16 }
 0xc5b   :  { %18609 = vmatpush3.msra.mxu0 %v5038_v57  ;;  %18617 = vmatprep.subr.mxu1 %v5039_v61 }
 0xc5c   :  { %18611 = vmatmul.mubr.msk.f32.vlgmr.msra.gmra.mxu0 %vm820_vm8, %v68_v14  ;;  %18618 = vmatpush3.msra.mxu1 %v5039_v61 }
 0xc5d   :  { %18620 = vmatmul.mubr.msk.f32.vlgmr.msra.gmra.mxu1 %vm820_vm8, %v70_v62  ;;  %18622 = vmatprep.subr.mxu0 %v20028_v1 }
 0xc5e   :  { %18637 = vmatprep.subr.mxu1 %v20028_v1  ;;  %18634 = vmatprep.mubr.msk.f32.mxu0 %vm20029_vm0, %v20028_v1 }
 0xc5f   :  { %18649 = vmatprep.mubr.msk.f32.mxu1 %vm20029_vm0, %v20028_v1 }
 0xc65   :  { %v5056_v21 = vpop.permute.xlu0 %5055 }
 0xc66   :  { %v5066_v29 = vpop.permute.xlu1 %5065 }
 0xc69   :  { %v5051_v40 = vpop.permute.xlu0 %5050 }
 0xc6a   :  { %v5061_v11 = vpop.permute.xlu1 %5060 }
 0xc6d   :  { %v5076_v23 = vpop.permute.xlu0 %5075 }
 0xc6e   :  { %v5086_v52 = vpop.permute.xlu1 %5085 }
 0xc71   :  { %v5071_v37 = vpop.permute.xlu0 %5070 }
 0xc72   :  { %v5081_v60 = vpop.permute.xlu1 %5080 }
 0xc75   :  { %v5096_v28 = vpop.permute.xlu0 %5095 }
 0xc76   :  { %v5106_v50 = vpop.permute.xlu1 %5105 }
 0xce6   :  { %v18567_v59 = vpop.f32.mrf.mxu1 }
 0xce7   :  { %v5291_v33 = vadd.f32 %v18567_v59, %v5066_v29  ;;  %v18558_v26 = vpop.f32.mrf.mxu0  ;;  %v5101_v59 = vpop.permute.xlu1 %5100 }
 0xce8   :  { %v5208_v49 = vadd.f32 %v18558_v26, %v5056_v21  ;;  %v5285_v2 = vpop.f32.mrf.mxu1  ;;  %v5091_v21 = vpop.permute.xlu0 %5090 }
 0xce9   :  { %vm5795_vm13 = vcmp.ge.f32.partialorder %v5291_v33, 0.0  ;;  %v5811_v27 = vmul.f32 0.01, %v5291_v33  ;;  %v5202_v4 = vpop.f32.mrf.mxu0  ;;  %v5286_v55 = vadd.f32 %v5285_v2, %v5061_v11 }
 0xcea   :  { %vm5793_vm15 = vcmp.ge.f32.partialorder %v5208_v49, 0.0  ;;  %v5809_v12 = vmul.f32 0.01, %v5208_v49  ;;  %v5203_v20 = vadd.f32 %v5202_v4, %v5051_v40 }
 0xceb   :  { %v21591_v10 = vsel %vm5795_vm13, %v5291_v33, %v5811_v27  ;;  %v5810_v46 = vmul.f32 0.01, %v5286_v55  ;;  %vm5794_vm3 = vcmp.ge.f32.partialorder %v5286_v55, 0.0 }
 0xcec   :  { %5910 = vrot.lane.b32.xlu1 %v21591_v10, %s20035_s27  ;;  %v21595_v19 = vsel %vm5793_vm15, %v5208_v49, %v5809_v12  ;;  %v5808_v22 = vmul.f32 0.01, %v5203_v20  ;;  %vm5792_vm10 = vcmp.ge.f32.partialorder %v5203_v20, 0.0  ;;  %v5116_v40 = vpop.permute.xlu0 %5115 }
 0xced   :  { %5906 = vrot.lane.b32.xlu0 %v21595_v19, %s20035_s27  ;;  %v21603_v24 = vsel %vm5794_vm3, %v5286_v55, %v5810_v46  ;;  %v5126_v55 = vpop.permute.xlu1 %5125 }
 0xcee   :  { %v21607_v15 = vsel %vm5792_vm10, %v5203_v20, %v5808_v22 }
 0xcf0   :  { %5862 = vrot.lane.b32.xlu1 %v21591_v10, %s20037_s29 }
 0xcf1   :  { %5858 = vrot.lane.b32.xlu0 %v21595_v19, %s20037_s29 }
 0xcf4   :  { %5908 = vrot.lane.b32.xlu1 %v21603_v24, %s20035_s27 }
 0xcf5   :  { %5904 = vrot.lane.b32.xlu0 %v21607_v15, %s20035_s27 }
 0xcf7   :  { %v18576_v47 = vpop.f32.mrf.mxu0 }
 0xcf8   :  { %v5374_v30 = vadd.f32 %v18576_v47, %v5076_v23  ;;  %5860 = vrot.lane.b32.xlu1 %v21603_v24, %s20037_s29 }
 0xcf9   :  { %v5368_v34 = vpop.f32.mrf.mxu0  ;;  %5856 = vrot.lane.b32.xlu0 %v21607_v15, %s20037_s29 }
 0xcfa   :  { %vm5797_vm7 = vcmp.ge.f32.partialorder %v5374_v30, 0.0  ;;  %v5813_v35 = vmul.f32 0.01, %v5374_v30  ;;  %v5369_v39 = vadd.f32 %v5368_v34, %v5071_v37  ;;  %v5121_v37 = vpop.permute.xlu1 %5120 }
 0xcfc   :  { %v18585_v38 = vpop.f32.mrf.mxu1  ;;  %v21615_v56 = vsel %vm5797_vm7, %v5374_v30, %v5813_v35  ;;  %v5812_v32 = vmul.f32 0.01, %v5369_v39  ;;  %vm5796_vm13 = vcmp.ge.f32.partialorder %v5369_v39, 0.0 }
 0xcfd   :  { %v5457_v43 = vadd.f32 %v18585_v38, %v5086_v52  ;;  %5914 = vrot.lane.b32.xlu0 %v21615_v56, %s20035_s27  ;;  %v5111_v52 = vpop.permute.xlu0 %5110 }
 0xcfe   :  { %v5451_v45 = vpop.f32.mrf.mxu1  ;;  %v21625_v63 = vsel %vm5796_vm13, %v5369_v39, %v5812_v32 }
 0xcff   :  { %vm5799_vm14 = vcmp.ge.f32.partialorder %v5457_v43, 0.0  ;;  %v5815_v53 = vmul.f32 0.01, %v5457_v43  ;;  %v5452_v36 = vadd.f32 %v5451_v45, %v5081_v60 }
 0xd01   :  { %v21619_v58 = vsel %vm5799_vm14, %v5457_v43, %v5815_v53  ;;  %5866 = vrot.lane.b32.xlu0 %v21615_v56, %s20037_s29  ;;  %v5814_v18 = vmul.f32 0.01, %v5452_v36  ;;  %vm5798_vm15 = vcmp.ge.f32.partialorder %v5452_v36, 0.0 }
 0xd02   :  { %5918 = vrot.lane.b32.xlu1 %v21619_v58, %s20035_s27 }
 0xd03   :  { %v21631_v48 = vsel %vm5798_vm15, %v5452_v36, %v5814_v18  ;;  %v319_v18 = vld [vmem:[%s24318_s4 + $0x40] sm:$0xf] }
 0xd05   :  { %5912 = vrot.lane.b32.xlu0 %v21625_v63, %s20035_s27 }
 0xd06   :  { %5870 = vrot.lane.b32.xlu1 %v21619_v58, %s20037_s29 }
 0xd09   :  { %5864 = vrot.lane.b32.xlu0 %v21625_v63, %s20037_s29 }
 0xd0a   :  { %5916 = vrot.lane.b32.xlu1 %v21631_v48, %s20035_s27 }
 0xd0c   :  { %v18594_v51 = vpop.f32.mrf.mxu0  ;;  %v18603_v54 = vpop.f32.mrf.mxu1 }
 0xd0d   :  { %v5540_v16 = vadd.f32 %v18594_v51, %v5096_v28  ;;  %v5623_v57 = vadd.f32 %v18603_v54, %v5106_v50  ;;  %v320_v28 = vld [vmem:[%s24318_s4 + $0x44] sm:$0xf]  ;;  %v321_v50 = vld [vmem:[%s24318_s4 + $0x48] sm:$0xf]  ;;  %v322_v51 = vld [vmem:[%s24318_s4 + $0x4c] sm:$0xf] }
 0xd0e   :  { %v5617_v14 = vpop.f32.mrf.mxu1  ;;  %5868 = vrot.lane.b32.xlu1 %v21631_v48, %s20037_s29  ;;  %v5534_v61 = vpop.f32.mrf.mxu0  ;;  %v323_v54 = vld [vmem:[%s24318_s4 + $0x50] sm:$0xf] }
 0xd0f   :  { %vm5801_vm3 = vcmp.ge.f32.partialorder %v5540_v16, 0.0  ;;  %v5817_v62 = vmul.f32 0.01, %v5540_v16  ;;  %vm5803_vm10 = vcmp.ge.f32.partialorder %v5623_v57, 0.0  ;;  %v5819_v29 = vmul.f32 0.01, %v5623_v57 }
 0xd10   :  { %v5618_v33 = vadd.f32 %v5617_v14, %v5101_v59  ;;  %v5535_v26 = vadd.f32 %v5534_v61, %v5091_v21  ;;  %v326_v14 = vld [vmem:[%s24318_s4 + $0x5c] sm:$0xf] }
 0xd11   :  { %v21639_v49 = vsel %vm5803_vm10, %v5623_v57, %v5819_v29  ;;  %v21641_v2 = vsel %vm5801_vm3, %v5540_v16, %v5817_v62  ;;  %v324_v16 = vld [vmem:[%s24318_s4 + $0x54] sm:$0xf]  ;;  %v325_v57 = vld [vmem:[%s24318_s4 + $0x58] sm:$0xf] }
 0xd12   :  { %5926 = vrot.lane.b32.xlu1 %v21639_v49, %s20035_s27  ;;  %5922 = vrot.lane.b32.xlu0 %v21641_v2, %s20035_s27  ;;  %v5818_v27 = vmul.f32 0.01, %v5618_v33  ;;  %v5816_v4 = vmul.f32 0.01, %v5535_v26  ;;  %vm5802_vm7 = vcmp.ge.f32.partialorder %v5618_v33, 0.0  ;;  %vm5800_vm14 = vcmp.ge.f32.partialorder %v5535_v26, 0.0 }
 0xd14   :  { %v21651_v11 = vsel %vm5802_vm7, %v5618_v33, %v5818_v27  ;;  %v21653_v12 = vsel %vm5800_vm14, %v5535_v26, %v5816_v4  ;;  %v264_v4 = vld [vmem:[%s24317_s3 + $0x44] sm:$0xf] }
 0xd16   :  { %5878 = vrot.lane.b32.xlu1 %v21639_v49, %s20037_s29  ;;  %5874 = vrot.lane.b32.xlu0 %v21641_v2, %s20037_s29 }
 0xd1a   :  { %5924 = vrot.lane.b32.xlu1 %v21651_v11, %s20035_s27  ;;  %5920 = vrot.lane.b32.xlu0 %v21653_v12, %s20035_s27 }
 0xd1c   :  { %v18612_v20 = vpop.f32.mrf.mxu0 }
 0xd1d   :  { %v5706_v46 = vadd.f32 %v18612_v20, %v5116_v40  ;;  %v18621_v22 = vpop.f32.mrf.mxu1  ;;  %v263_v40 = vld [vmem:[%s24317_s3 + $0x40] sm:$0xf] }
 0xd1e   :  { %v5789_v23 = vadd.f32 %v18621_v22, %v5126_v55  ;;  %5876 = vrot.lane.b32.xlu1 %v21651_v11, %s20037_s29  ;;  %v5700_v47 = vpop.f32.mrf.mxu0  ;;  %5872 = vrot.lane.b32.xlu0 %v21653_v12, %s20037_s29  ;;  %v265_v22 = vld [vmem:[%s24317_s3 + $0x48] sm:$0xf] }
 0xd1f   :  { %vm5805_vm13 = vcmp.ge.f32.partialorder %v5706_v46, 0.0  ;;  %v5821_v30 = vmul.f32 0.01, %v5706_v46  ;;  %v5783_v34 = vpop.f32.mrf.mxu1  ;;  %v5701_v39 = vadd.f32 %v5700_v47, %v5111_v52 }
 0xd20   :  { %vm5807_vm15 = vcmp.ge.f32.partialorder %v5789_v23, 0.0  ;;  %v5823_v35 = vmul.f32 0.01, %v5789_v23  ;;  %v5784_v43 = vadd.f32 %v5783_v34, %v5121_v37  ;;  %v267_v37 = vld [vmem:[%s24317_s3 + $0x50] sm:$0xf] }
 0xd21   :  { %v21663_v38 = vsel %vm5805_vm13, %v5706_v46, %v5821_v30  ;;  %v5820_v53 = vmul.f32 0.01, %v5701_v39  ;;  %vm5804_vm3 = vcmp.ge.f32.partialorder %v5701_v39, 0.0 }
 0xd22   :  { %5930 = vrot.lane.b32.xlu0 %v21663_v38, %s20035_s27  ;;  %v21667_v45 = vsel %vm5807_vm15, %v5789_v23, %v5823_v35  ;;  %v5822_v60 = vmul.f32 0.01, %v5784_v43  ;;  %vm5806_vm10 = vcmp.ge.f32.partialorder %v5784_v43, 0.0 }
 0xd23   :  { %5934 = vrot.lane.b32.xlu1 %v21667_v45, %s20035_s27  ;;  %v21675_v32 = vsel %vm5804_vm3, %v5701_v39, %v5820_v53  ;;  %v268_v39 = vld [vmem:[%s24317_s3 + $0x54] sm:$0xf] }
 0xd24   :  { %v21679_v36 = vsel %vm5806_vm10, %v5784_v43, %v5822_v60 }
 0xd26   :  { %5882 = vrot.lane.b32.xlu0 %v21663_v38, %s20037_s29 }
 0xd27   :  { %5886 = vrot.lane.b32.xlu1 %v21667_v45, %s20037_s29 }
 0xd2a   :  { %5928 = vrot.lane.b32.xlu0 %v21675_v32, %s20035_s27 }
 0xd2b   :  { %5932 = vrot.lane.b32.xlu1 %v21679_v36, %s20035_s27 }
 0xd2e   :  { %5880 = vrot.lane.b32.xlu0 %v21675_v32, %s20037_s29 }
 0xd2f   :  { %5884 = vrot.lane.b32.xlu1 %v21679_v36, %s20037_s29 }
 0xd32   :  { %5954 = vperm.xlu0 %19787, %v319_v18  }
 0xd33   :  { %5959 = vperm.xlu1 %19789, %v320_v28   ;;  %v269_v28 = vld [vmem:[%s24317_s3 + $0x58] sm:$0xf] }
 0xd36   :  { %5964 = vperm.xlu0 %19787, %v321_v50   ;;  %v270_v50 = vld [vmem:[%s24317_s3 + $0x5c] sm:$0xf] }
 0xd37   :  { %5969 = vperm.xlu1 %19789, %v322_v51   ;;  %v21815_v51 = vsel %vm20086_vm1, 1.0, %v20028_v1  ;;  %vm6592_vm1 = vcmask 31744  }
 0xd3a   :  { %5974 = vperm.xlu0 %19787, %v323_v54  }
 0xd3b   :  { %5979 = vperm.xlu1 %19789, %v324_v16  }
 0xd3e   :  { %5984 = vperm.xlu0 %19787, %v325_v57  }
 0xd3f   :  { %5989 = vperm.xlu1 %19789, %v326_v14  }
 0xd5e   :  { %v5911_v61 = vpop.permute.xlu1 %5910 }
 0xd5f   :  { %v5907_v62 = vpop.permute.xlu0 %5906  ;;  %18638 = vmatpush3.msra.mxu1 %v5911_v61 }
 0xd60   :  { %18623 = vmatpush3.msra.mxu0 %v5907_v62  ;;  %18639 = vmatprep.subr.mxu1 %v20028_v1 }
 0xd61   :  { %18624 = vmatprep.subr.mxu0 %v20028_v1 }
 0xd62   :  { %v5863_v29 = vpop.permute.xlu1 %5862 }
 0xd63   :  { %v5859_v21 = vpop.permute.xlu0 %5858 }
 0xd66   :  { %v5909_v59 = vpop.permute.xlu1 %5908 }
 0xd67   :  { %v5905_v33 = vpop.permute.xlu0 %5904  ;;  %18640 = vmatpush3.msra.mxu1 %v5909_v59 }
 0xd68   :  { %18625 = vmatpush3.msra.mxu0 %v5905_v33  ;;  %18641 = vmatprep.subr.mxu1 %v20028_v1 }
 0xd69   :  { %18626 = vmatprep.subr.mxu0 %v20028_v1  ;;  %18642 = vmatpush3.msra.mxu1 %v5863_v29 }
 0xd6a   :  { %18627 = vmatpush3.msra.mxu0 %v5859_v21  ;;  %18643 = vmatprep.subr.mxu1 %v20028_v1  ;;  %v5861_v26 = vpop.permute.xlu1 %5860 }
 0xd6b   :  { %18628 = vmatprep.subr.mxu0 %v20028_v1  ;;  %v5857_v27 = vpop.permute.xlu0 %5856  ;;  %18644 = vmatpush3.msra.mxu1 %v5861_v26 }
 0xd6c   :  { %18629 = vmatpush3.msra.mxu0 %v5857_v27  ;;  %18645 = vmatprep.subr.mxu1 %v20028_v1 }
 0xd6d   :  { %18630 = vmatprep.subr.mxu0 %v20028_v1  ;;  %18646 = vmatpush3.msra.mxu1 %v21591_v10 }
 0xd6e   :  { %18631 = vmatpush3.msra.mxu0 %v21595_v19  ;;  %18647 = vmatprep.subr.mxu1 %v20028_v1 }
 0xd6f   :  { %18632 = vmatprep.subr.mxu0 %v20028_v1  ;;  %v5915_v55 = vpop.permute.xlu0 %5914  ;;  %18648 = vmatpush3.msra.mxu1 %v21603_v24 }
 0xd70   :  { %18633 = vmatpush3.msra.mxu0 %v21607_v15  ;;  %18650 = vmatmul.mubr.msk.f32.vlgmr.msra.gmra.mxu1 %vm1253_vm11, %v264_v4 }
 0xd71   :  { %18635 = vmatmul.mubr.msk.f32.vlgmr.msra.gmra.mxu0 %vm1253_vm11, %v263_v40  ;;  %18652 = vmatprep.subr.mxu0 %v20028_v1 }
 0xd72   :  { %18653 = vmatpush3.msra.mxu0 %v5915_v55  ;;  %18667 = vmatprep.subr.mxu1 %v20028_v1 }
 0xd73   :  { %v5867_v10 = vpop.permute.xlu0 %5866  ;;  %18654 = vmatprep.subr.mxu0 %v20028_v1  ;;  %18664 = vmatprep.mubr.msk.f32.mxu0 %vm20029_vm0, %v20028_v1 }
 0xd74   :  { %v5919_v19 = vpop.permute.xlu1 %5918  ;;  %18679 = vmatprep.mubr.msk.f32.mxu1 %vm20029_vm0, %v20028_v1 }
 0xd75   :  { %18668 = vmatpush3.msra.mxu1 %v5919_v19 }
 0xd76   :  { %18669 = vmatprep.subr.mxu1 %v20028_v1 }
 0xd77   :  { %v5913_v24 = vpop.permute.xlu0 %5912 }
 0xd78   :  { %v5871_v15 = vpop.permute.xlu1 %5870  ;;  %18655 = vmatpush3.msra.mxu0 %v5913_v24 }
 0xd79   :  { %18656 = vmatprep.subr.mxu0 %v20028_v1 }
 0xd7a   :  { %18657 = vmatpush3.msra.mxu0 %v5867_v10 }
 0xd7b   :  { %18658 = vmatprep.subr.mxu0 %v20028_v1  ;;  %v5865_v20 = vpop.permute.xlu0 %5864 }
 0xd7c   :  { %v5917_v46 = vpop.permute.xlu1 %5916  ;;  %18659 = vmatpush3.msra.mxu0 %v5865_v20 }
 0xd7d   :  { %18670 = vmatpush3.msra.mxu1 %v5917_v46  ;;  %18660 = vmatprep.subr.mxu0 %v20028_v1 }
 0xd7e   :  { %18671 = vmatprep.subr.mxu1 %v20028_v1  ;;  %18661 = vmatpush3.msra.mxu0 %v21615_v56  ;;  %v266_v56 = vld [vmem:[%s24317_s3 + $0x4c] sm:$0xf] }
 0xd7f   :  { %18672 = vmatpush3.msra.mxu1 %v5871_v15  ;;  %18662 = vmatprep.subr.mxu0 %v20028_v1 }
 0xd80   :  { %18673 = vmatprep.subr.mxu1 %v20028_v1  ;;  %v5869_v23 = vpop.permute.xlu1 %5868  ;;  %18663 = vmatpush3.msra.mxu0 %v21625_v63 }
 0xd81   :  { %18674 = vmatpush3.msra.mxu1 %v5869_v23  ;;  %18665 = vmatmul.mubr.msk.f32.vlgmr.msra.gmra.mxu0 %vm1253_vm11, %v265_v22 }
 0xd82   :  { %18675 = vmatprep.subr.mxu1 %v20028_v1  ;;  %18682 = vmatprep.subr.mxu0 %v20028_v1 }
 0xd83   :  { %18676 = vmatpush3.msra.mxu1 %v21619_v58  ;;  %18694 = vmatprep.mubr.msk.f32.mxu0 %vm20029_vm0, %v20028_v1 }
 0xd84   :  { %18677 = vmatprep.subr.mxu1 %v20028_v1  ;;  %v5927_v47 = vpop.permute.xlu1 %5926  ;;  %v5923_v63 = vpop.permute.xlu0 %5922 }
 0xd85   :  { %18678 = vmatpush3.msra.mxu1 %v21631_v48  ;;  %18683 = vmatpush3.msra.mxu0 %v5923_v63 }
 0xd86   :  { %18680 = vmatmul.mubr.msk.f32.vlgmr.msra.gmra.mxu1 %vm1253_vm11, %v266_v56  ;;  %18697 = vmatprep.subr.mxu1 %v20028_v1 }
 0xd87   :  { %18698 = vmatpush3.msra.mxu1 %v5927_v47  ;;  %18684 = vmatprep.subr.mxu0 %v20028_v1 }
 0xd88   :  { %v5879_v58 = vpop.permute.xlu1 %5878  ;;  %v5875_v30 = vpop.permute.xlu0 %5874  ;;  %18699 = vmatprep.subr.mxu1 %v20028_v1  ;;  %18709 = vmatprep.mubr.msk.f32.mxu1 %vm20029_vm0, %v20028_v1 }
 0xd8c   :  { %v5925_v34 = vpop.permute.xlu1 %5924  ;;  %v5921_v52 = vpop.permute.xlu0 %5920 }
 0xd8d   :  { %18685 = vmatpush3.msra.mxu0 %v5921_v52  ;;  %18700 = vmatpush3.msra.mxu1 %v5925_v34 }
 0xd8e   :  { %18686 = vmatprep.subr.mxu0 %v20028_v1  ;;  %18701 = vmatprep.subr.mxu1 %v20028_v1 }
 0xd8f   :  { %18687 = vmatpush3.msra.mxu0 %v5875_v30  ;;  %18702 = vmatpush3.msra.mxu1 %v5879_v58 }
 0xd90   :  { %18703 = vmatprep.subr.mxu1 %v20028_v1  ;;  %v5877_v48 = vpop.permute.xlu1 %5876  ;;  %18688 = vmatprep.subr.mxu0 %v20028_v1  ;;  %v5873_v35 = vpop.permute.xlu0 %5872 }
 0xd91   :  { %18689 = vmatpush3.msra.mxu0 %v5873_v35  ;;  %18704 = vmatpush3.msra.mxu1 %v5877_v48 }
 0xd92   :  { %18690 = vmatprep.subr.mxu0 %v20028_v1  ;;  %18705 = vmatprep.subr.mxu1 %v20028_v1 }
 0xd93   :  { %18691 = vmatpush3.msra.mxu0 %v21641_v2  ;;  %18706 = vmatpush3.msra.mxu1 %v21639_v49 }
 0xd94   :  { %18692 = vmatprep.subr.mxu0 %v20028_v1  ;;  %18707 = vmatprep.subr.mxu1 %v20028_v1  ;;  %v5931_v43 = vpop.permute.xlu0 %5930 }
 0xd95   :  { %18708 = vmatpush3.msra.mxu1 %v21651_v11  ;;  %v5935_v53 = vpop.permute.xlu1 %5934  ;;  %18693 = vmatpush3.msra.mxu0 %v21653_v12 }
 0xd96   :  { %18695 = vmatmul.mubr.msk.f32.vlgmr.msra.gmra.mxu0 %vm1253_vm11, %v267_v37  ;;  %18710 = vmatmul.mubr.msk.f32.vlgmr.msra.gmra.mxu1 %vm1253_vm11, %v268_v39 }
 0xd97   :  { %18712 = vmatprep.subr.mxu0 %v20028_v1  ;;  %18727 = vmatprep.subr.mxu1 %v20028_v1 }
 0xd98   :  { %18713 = vmatpush3.msra.mxu0 %v5931_v43  ;;  %18728 = vmatpush3.msra.mxu1 %v5935_v53  ;;  %v5883_v49 = vpop.permute.xlu0 %5882  ;;  %v21888_v53 = vsel %vm20124_vm5, 1.0, %v20028_v1  ;;  %vm7951_vm5 = vcmask 39936  }
 0xd99   :  { %v5887_v2 = vpop.permute.xlu1 %5886  ;;  %18714 = vmatprep.subr.mxu0 %v20028_v1  ;;  %18729 = vmatprep.subr.mxu1 %v20028_v1 }
 0xd9a   :  { %18724 = vmatprep.mubr.msk.f32.mxu0 %vm20029_vm0, %v20028_v1  ;;  %18739 = vmatprep.mubr.msk.f32.mxu1 %vm20029_vm0, %v20028_v1 }
 0xd9c   :  { %v5929_v11 = vpop.permute.xlu0 %5928 }
 0xd9d   :  { %v5933_v12 = vpop.permute.xlu1 %5932  ;;  %18715 = vmatpush3.msra.mxu0 %v5929_v11 }
 0xd9e   :  { %18716 = vmatprep.subr.mxu0 %v20028_v1  ;;  %18730 = vmatpush3.msra.mxu1 %v5933_v12  ;;  %v24322_v12 = vmov 1  }
 0xd9f   :  { %18717 = vmatpush3.msra.mxu0 %v5883_v49  ;;  %18731 = vmatprep.subr.mxu1 %v20028_v1 }
 0xda0   :  { %18718 = vmatprep.subr.mxu0 %v20028_v1  ;;  %18732 = vmatpush3.msra.mxu1 %v5887_v2  ;;  %v5881_v60 = vpop.permute.xlu0 %5880 }
 0xda1   :  { %18733 = vmatprep.subr.mxu1 %v20028_v1  ;;  %v5885_v18 = vpop.permute.xlu1 %5884  ;;  %18719 = vmatpush3.msra.mxu0 %v5881_v60 }
 0xda2   :  { %18720 = vmatprep.subr.mxu0 %v20028_v1  ;;  %18734 = vmatpush3.msra.mxu1 %v5885_v18 }
 0xda3   :  { %18721 = vmatpush3.msra.mxu0 %v21663_v38  ;;  %18735 = vmatprep.subr.mxu1 %v20028_v1 }
 0xda4   :  { %18722 = vmatprep.subr.mxu0 %v20028_v1  ;;  %18736 = vmatpush3.msra.mxu1 %v21667_v45 }
 0xda5   :  { %18723 = vmatpush3.msra.mxu0 %v21675_v32  ;;  %18737 = vmatprep.subr.mxu1 %v20028_v1 }
 0xda6   :  { %18725 = vmatmul.mubr.msk.f32.vlgmr.msra.gmra.mxu0 %vm1253_vm11, %v269_v28  ;;  %18738 = vmatpush3.msra.mxu1 %v21679_v36 }
 0xda7   :  { %18740 = vmatmul.mubr.msk.f32.vlgmr.msra.gmra.mxu1 %vm1253_vm11, %v270_v50  ;;  %18742 = vmatprep.subr.mxu0 %v20028_v1 }
 0xda8   :  { %18747 = vmatprep.subr.mxu1 %v20028_v1  ;;  %18743 = vmatpush3.msk.msra.mxu0 %vm771_vm9, %v21815_v51 }
 0xda9   :  { %18744 = vmatprep.mubr.msk.f32.mxu0 %vm20029_vm0, %v20028_v1  ;;  %18748 = vmatpush3.msk.msra.mxu1 %vm771_vm9, %v21815_v51 }
 0xdaa   :  { %18749 = vmatprep.mubr.msk.f32.mxu1 %vm20029_vm0, %v20028_v1  ;;  %18752 = vmatprep.subr.mxu0 %v20028_v1 }
 0xdab   :  { %18757 = vmatprep.subr.mxu1 %v20028_v1 }
 0xdad   :  { %v5955_v45 = vpop.permute.xlu0 %5954 }
 0xdae   :  { %v5960_v8 = vpop.permute.xlu1 %5959 }
 0xdb1   :  { %v5965_v62 = vpop.permute.xlu0 %5964 }
 0xdb5   :  { %v5975_v10 = vpop.permute.xlu0 %5974 }
 0xdb9   :  { %v5985_v63 = vpop.permute.xlu0 %5984 }
 0xe30   :  { %v6134_v38 = vpop.f32.mrf.mxu1 }
 0xe31   :  { %v6061_v32 = vpop.f32.mrf.mxu0  ;;  %v6135_v36 = vadd.f32 %v6134_v38, %v5960_v8 }
 0xe32   :  { %v6062_v54 = vadd.f32 %v6061_v32, %v5955_v45  ;;  %v18651_v16 = vpop.f32.mrf.mxu1 }
 0xe33   :  { %19894 = vtanh.f32 %v6135_v36  ;;  %v18636_v57 = vpop.f32.mrf.mxu0 }
 0xe34   :  { %19896 = vtanh.f32 %v6062_v54 }
 0xe40   :  { %v19895_v14 = vpop.eup %19894 }
 0xe41   :  { %v19897_v61 = vpop.eup %19896  ;;  %v6207_v29 = vpop.f32.mrf.mxu0  ;;  %v21835_v21 = vadd.f32 %v19895_v14, %v21316_v31 }
 0xe42   :  { %v6208_v59 = vadd.f32 %v6207_v29, %v5965_v62  ;;  %v21838_v33 = vadd.f32 %v19897_v61, %v21312_v3  ;;  %v5970_v31 = vpop.permute.xlu1 %5969 }
 0xe43   :  { %v18666_v26 = vpop.f32.mrf.mxu0  ;;  %18750 = vmatmul.mubr.msk.f32.vlgmr.msra.gmra.mxu1 %vm6592_vm1, %v21835_v21 }
 0xe44   :  { %19898 = vtanh.f32 %v6208_v59  ;;  %18745 = vmatmul.mubr.msk.f32.vlgmr.msra.gmra.mxu0 %vm6592_vm1, %v21838_v33  ;;  %18758 = vmatpush3.msk.msra.mxu1 %vm771_vm9, %v21815_v51 }
 0xe45   :  { %18753 = vmatpush3.msk.msra.mxu0 %vm771_vm9, %v21815_v51  ;;  %18754 = vmatprep.mubr.msk.f32.mxu0 %vm20029_vm0, %v20028_v1 }
 0xe46   :  { %v6280_v3 = vpop.f32.mrf.mxu1  ;;  %18759 = vmatprep.mubr.msk.f32.mxu1 %vm20029_vm0, %v20028_v1  ;;  %18767 = vmatprep.subr.mxu1 %v20028_v1  ;;  %v5980_v19 = vpop.permute.xlu1 %5979 }
 0xe47   :  { %v6281_v27 = vadd.f32 %v6280_v3, %v5970_v31  ;;  %18762 = vmatprep.subr.mxu0 %v20028_v1 }
 0xe48   :  { %v18681_v4 = vpop.f32.mrf.mxu1 }
 0xe49   :  { %19900 = vtanh.f32 %v6281_v27 }
 0xe4a   :  { %v5990_v34 = vpop.permute.xlu1 %5989 }
 0xe51   :  { %v19899_v40 = vpop.eup %19898 }
 0xe52   :  { %v21855_v55 = vadd.f32 %v19899_v40, %v21330_v17 }
 0xe54   :  { %18755 = vmatmul.mubr.msk.f32.vlgmr.msra.gmra.mxu0 %vm6592_vm1, %v21855_v55 }
 0xe55   :  { %18763 = vmatpush3.msk.msra.mxu0 %vm771_vm9, %v21815_v51  ;;  %18764 = vmatprep.mubr.msk.f32.mxu0 %vm20029_vm0, %v20028_v1 }
 0xe56   :  { %v19901_v24 = vpop.eup %19900  ;;  %v6353_v15 = vpop.f32.mrf.mxu0  ;;  %18772 = vmatprep.subr.mxu0 %v20028_v1 }
 0xe57   :  { %v6426_v20 = vpop.f32.mrf.mxu1  ;;  %v6354_v46 = vadd.f32 %v6353_v15, %v5975_v10  ;;  %v6587_v17 = vadd.f32 %v19901_v24, %v21334_v41 }
 0xe58   :  { %v6427_v22 = vadd.f32 %v6426_v20, %v5980_v19  ;;  %v18696_v56 = vpop.f32.mrf.mxu0 }
 0xe59   :  { %v18711_v23 = vpop.f32.mrf.mxu1  ;;  %19902 = vtanh.f32 %v6354_v46  ;;  %18760 = vmatmul.mubr.msk.f32.vlgmr.msra.gmra.mxu1 %vm6592_vm1, %v6587_v17 }
 0xe5a   :  { %19904 = vtanh.f32 %v6427_v22  ;;  %18768 = vmatpush3.msk.msra.mxu1 %vm771_vm9, %v21815_v51  ;;  %18769 = vmatprep.mubr.msk.f32.mxu1 %vm20029_vm0, %v20028_v1 }
 0xe5b   :  { %18777 = vmatprep.subr.mxu1 %v20028_v1 }
 0xe66   :  { %v19903_v47 = vpop.eup %19902  ;;  %v6499_v58 = vpop.f32.mrf.mxu0 }
 0xe67   :  { %v19905_v30 = vpop.eup %19904  ;;  %v6500_v41 = vadd.f32 %v6499_v58, %v5985_v63  ;;  %v6572_v52 = vpop.f32.mrf.mxu1  ;;  %v6588_v48 = vsub.f32 %v21278_v42, %v19903_v47  ;;  %v71_v58 = vld [vmem:[%s24315_s1 + $0x180] sm:$0xff] }
 0xe68   :  { %v6573_v35 = vadd.f32 %v6572_v52, %v5990_v34  ;;  %v18726_v37 = vpop.f32.mrf.mxu0  ;;  %v6589_v39 = vsub.f32 %v21281_v44, %v19905_v30 }
 0xe69   :  { %19906 = vtanh.f32 %v6500_v41  ;;  %18765 = vmatmul.mubr.msk.f32.vlgmr.msra.gmra.mxu0 %vm6592_vm1, %v6588_v48  ;;  %v18741_v43 = vpop.f32.mrf.mxu1  ;;  %v73_v41 = vld [vmem:[%s24315_s1 + $0x190] sm:$0xff] }
 0xe6a   :  { %19908 = vtanh.f32 %v6573_v35  ;;  %18770 = vmatmul.mubr.msk.f32.vlgmr.msra.gmra.mxu1 %vm6592_vm1, %v6589_v39  ;;  %18773 = vmatpush3.msk.msra.mxu0 %vm771_vm9, %v21815_v51 }
 0xe6b   :  { %18774 = vmatprep.mubr.msk.f32.mxu0 %vm20029_vm0, %v20028_v1  ;;  %18778 = vmatpush3.msk.msra.mxu1 %vm771_vm9, %v21815_v51 }
 0xe6c   :  { %18779 = vmatprep.mubr.msk.f32.mxu1 %vm20029_vm0, %v20028_v1  ;;  %18782 = vmatprep.subr.mxu0 %v20028_v1 }
 0xe6d   :  { %18787 = vmatprep.subr.mxu1 %v20028_v1 }
 0xe76   :  { %v19907_v42 = vpop.eup %19906 }
 0xe77   :  { %v19909_v44 = vpop.eup %19908  ;;  %v6590_v49 = vsub.f32 %v21296_v25, %v19907_v42 }
 0xe78   :  { %v6591_v2 = vsub.f32 %v21300_v0, %v19909_v44 }
 0xe79   :  { %18775 = vmatmul.mubr.msk.f32.vlgmr.msra.gmra.mxu0 %vm6592_vm1, %v6590_v49 }
 0xe7a   :  { %18780 = vmatmul.mubr.msk.f32.vlgmr.msra.gmra.mxu1 %vm6592_vm1, %v6591_v2  ;;  %18783 = vmatpush3.msk.msra.mxu0 %vm771_vm9, %v21888_v53 }
 0xe7b   :  { %18784 = vmatprep.mubr.msk.f32.mxu0 %vm20029_vm0, %v20028_v1  ;;  %18788 = vmatpush3.msk.msra.mxu1 %vm771_vm9, %v21888_v53 }
 0xe7c   :  { %18789 = vmatprep.mubr.msk.f32.mxu1 %vm20029_vm0, %v20028_v1  ;;  %18792 = vmatprep.subr.mxu0 %v20028_v1 }
 0xe7d   :  { %18785 = vmatmul.mubr.msk.f32.vlgmr.msra.gmra.mxu0 %vm6592_vm1, %v21838_v33  ;;  %18797 = vmatprep.subr.mxu1 %v20028_v1 }
 0xe7e   :  { %18790 = vmatmul.mubr.msk.f32.vlgmr.msra.gmra.mxu1 %vm6592_vm1, %v21835_v21  ;;  %18793 = vmatpush3.msk.msra.mxu0 %vm771_vm9, %v21888_v53 }
 0xe7f   :  { %18794 = vmatprep.mubr.msk.f32.mxu0 %vm20029_vm0, %v20028_v1  ;;  %18798 = vmatpush3.msk.msra.mxu1 %vm771_vm9, %v21888_v53 }
 0xe80   :  { %18799 = vmatprep.mubr.msk.f32.mxu1 %vm20029_vm0, %v20028_v1  ;;  %18802 = vmatprep.subr.mxu0 %v20028_v1 }
 0xe81   :  { %18795 = vmatmul.mubr.msk.f32.vlgmr.msra.gmra.mxu0 %vm6592_vm1, %v21855_v55  ;;  %18807 = vmatprep.subr.mxu1 %v20028_v1 }
 0xe82   :  { %18800 = vmatmul.mubr.msk.f32.vlgmr.msra.gmra.mxu1 %vm6592_vm1, %v6587_v17  ;;  %18803 = vmatpush3.msk.msra.mxu0 %vm771_vm9, %v21888_v53 }
 0xe83   :  { %18804 = vmatprep.mubr.msk.f32.mxu0 %vm20029_vm0, %v20028_v1  ;;  %18808 = vmatpush3.msk.msra.mxu1 %vm771_vm9, %v21888_v53 }
 0xe84   :  { %18809 = vmatprep.mubr.msk.f32.mxu1 %vm20029_vm0, %v20028_v1  ;;  %18812 = vmatprep.subr.mxu0 %v20028_v1 }
 0xe85   :  { %18805 = vmatmul.mubr.msk.f32.vlgmr.msra.gmra.mxu0 %vm6592_vm1, %v6588_v48  ;;  %18817 = vmatprep.subr.mxu1 %v20028_v1 }
 0xe86   :  { %18810 = vmatmul.mubr.msk.f32.vlgmr.msra.gmra.mxu1 %vm6592_vm1, %v6589_v39  ;;  %18813 = vmatpush3.msk.msra.mxu0 %vm771_vm9, %v21888_v53 }
 0xe87   :  { %18814 = vmatprep.mubr.msk.f32.mxu0 %vm20029_vm0, %v20028_v1  ;;  %18818 = vmatpush3.msk.msra.mxu1 %vm771_vm9, %v21888_v53 }
 0xe88   :  { %18819 = vmatprep.mubr.msk.f32.mxu1 %vm20029_vm0, %v20028_v1 }
 0xe89   :  { %18815 = vmatmul.mubr.msk.f32.vlgmr.msra.gmra.mxu0 %vm6592_vm1, %v6590_v49 }
 0xe8a   :  { %18820 = vmatmul.mubr.msk.f32.vlgmr.msra.gmra.mxu1 %vm6592_vm1, %v6591_v2  ;;  %18828 = vmatprep.mubr.msk.f32.mxu0 %vm820_vm8, %v71_v58 }
 0xe8b   :  { %18837 = vmatprep.mubr.msk.f32.mxu1 %vm820_vm8, %v73_v41 }
 0xf03   :  { %v21943_v13 = vpop.f32.mrf.mxu1 }
 0xf04   :  { %v21945_v25 = vpop.f32.mrf.mxu0  ;;  %7750 = vperm.xlu1 %19789, %v21943_v13  }
 0xf05   :  { %7745 = vperm.xlu0 %19787, %v21945_v25   ;;  %v18751_v0 = vpop.f32.mrf.mxu1 }
 0xf06   :  { %v18746_v11 = vpop.f32.mrf.mxu0 }
 0xf08   :  { %19791 = vset.pattern.permute.xlu1 %v24322_v12 }
 0xf09   :  { %19790 = vset.pattern.permute.xlu0 %v24322_v12  ;;  %7828 = vperm.xlu1 %19791, %v21943_v13  }
 0xf0a   :  { %7824 = vperm.xlu0 %19790, %v21945_v25  }
 0xf0d   :  { %7887 = vrot.lane.b32.xlu1 %v21945_v25, %s20033_s0 }
 0xf0e   :  { %7889 = vrot.lane.b32.xlu0 %v21943_v13, %s20033_s0  ;;  %19792 = vset.pattern.permute.xlu1 %v24320_v5 }
 0xf0f   :  { %19793 = vset.pattern.permute.xlu0 %v24320_v5 }
 0xf14   :  { %v21959_v60 = vpop.f32.mrf.mxu0 }
 0xf15   :  { %7755 = vperm.xlu1 %19792, %v21959_v60  }
 0xf16   :  { %v18756_v18 = vpop.f32.mrf.mxu0 }
 0xf19   :  { %v21962_v28 = vpop.f32.mrf.mxu1  ;;  %19794 = vset.pattern.permute.xlu1 %v24322_v12 }
 0xf1a   :  { %7760 = vperm.xlu0 %19793, %v21962_v28   ;;  %7832 = vperm.xlu1 %19794, %v21959_v60  }
 0xf1b   :  { %v18761_v50 = vpop.f32.mrf.mxu1 }
 0xf1e   :  { %7891 = vrot.lane.b32.xlu0 %v21959_v60, %s20033_s0  ;;  %7836 = vperm.xlu1 %19794, %v21962_v28  }
 0xf22   :  { %7893 = vrot.lane.b32.xlu1 %v21962_v28, %s20033_s0 }
 0xf23   :  { %19795 = vset.pattern.permute.xlu1 %v24320_v5 }
 0xf29   :  { %v21973_v8 = vpop.f32.mrf.mxu0 }
 0xf2a   :  { %v21975_v38 = vpop.f32.mrf.mxu1  ;;  %7765 = vperm.xlu0 %19793, %v21973_v8  }
 0xf2b   :  { %7770 = vperm.xlu1 %19795, %v21975_v38   ;;  %v18766_v45 = vpop.f32.mrf.mxu0 }
 0xf2c   :  { %v18771_v32 = vpop.f32.mrf.mxu1 }
 0xf2e   :  { %19796 = vset.pattern.permute.xlu0 %v24322_v12 }
 0xf2f   :  { %19797 = vset.pattern.permute.xlu1 %v24322_v12  ;;  %7840 = vperm.xlu0 %19796, %v21973_v8  }
 0xf30   :  { %7844 = vperm.xlu1 %19797, %v21975_v38  }
 0xf33   :  { %7897 = vrot.lane.b32.xlu0 %v21975_v38, %s20033_s0 }
 0xf34   :  { %7895 = vrot.lane.b32.xlu1 %v21973_v8, %s20033_s0  ;;  %19799 = vset.pattern.permute.xlu0 %v24320_v5 }
 0xf35   :  { %19798 = vset.pattern.permute.xlu1 %v24320_v5 }
 0xf39   :  { %v21989_v36 = vpop.f32.mrf.mxu0 }
 0xf3a   :  { %v21991_v54 = vpop.f32.mrf.mxu1  ;;  %7775 = vperm.xlu1 %19798, %v21989_v36  }
 0xf3b   :  { %7780 = vperm.xlu0 %19799, %v21991_v54   ;;  %v18776_v16 = vpop.f32.mrf.mxu0 }
 0xf3c   :  { %v18781_v57 = vpop.f32.mrf.mxu1 }
 0xf3d   :  { %v21995_v14 = vpop.f32.mrf.mxu0 }
 0xf3e   :  { %v21997_v61 = vpop.f32.mrf.mxu1  ;;  %19800 = vset.pattern.permute.xlu1 %v24322_v12 }
 0xf3f   :  { %7899 = vrot.lane.b32.xlu0 %v21989_v36, %s20033_s0  ;;  %7848 = vperm.xlu1 %19800, %v21989_v36   ;;  %v18786_v62 = vpop.f32.mrf.mxu0 }
 0xf40   :  { %v18791_v29 = vpop.f32.mrf.mxu1 }
 0xf41   :  { %v22003_v21 = vpop.f32.mrf.mxu0 }
 0xf42   :  { %v22005_v59 = vpop.f32.mrf.mxu1 }
 0xf43   :  { %7852 = vperm.xlu1 %19800, %v21991_v54   ;;  %7785 = vperm.xlu0 %19799, %v21995_v14   ;;  %v18796_v33 = vpop.f32.mrf.mxu0 }
 0xf44   :  { %v18801_v26 = vpop.f32.mrf.mxu1 }
 0xf45   :  { %v22009_v31 = vpop.f32.mrf.mxu0 }
 0xf46   :  { %v22011_v3 = vpop.f32.mrf.mxu1 }
 0xf47   :  { %7901 = vrot.lane.b32.xlu1 %v21991_v54, %s20033_s0  ;;  %19802 = vset.pattern.permute.xlu0 %v24322_v12  ;;  %v18806_v27 = vpop.f32.mrf.mxu0 }
 0xf48   :  { %v18811_v4 = vpop.f32.mrf.mxu1  ;;  %7856 = vperm.xlu0 %19802, %v21995_v14   ;;  %19801 = vset.pattern.permute.xlu1 %v24320_v5 }
 0xf49   :  { %v22018_v40 = vpop.f32.mrf.mxu0 }
 0xf4a   :  { %v22020_v55 = vpop.f32.mrf.mxu1 }
 0xf4b   :  { %7790 = vperm.xlu1 %19801, %v21997_v61   ;;  %v18816_v10 = vpop.f32.mrf.mxu0 }
 0xf4c   :  { %v18821_v19 = vpop.f32.mrf.mxu1  ;;  %7905 = vrot.lane.b32.xlu0 %v21997_v61, %s20033_s0 }
 0xf4d   :  { %19805 = vset.pattern.permute.xlu0 %v24320_v5 }
 0xf4f   :  { %19803 = vset.pattern.permute.xlu1 %v24322_v12 }
 0xf50   :  { %7860 = vperm.xlu1 %19803, %v21997_v61   ;;  %7800 = vperm.xlu0 %19805, %v22005_v59  }
 0xf54   :  { %7903 = vrot.lane.b32.xlu1 %v21995_v14, %s20033_s0  ;;  %7907 = vrot.lane.b32.xlu0 %v22003_v21, %s20033_s0 }
 0xf55   :  { %19804 = vset.pattern.permute.xlu1 %v24320_v5 }
 0xf58   :  { %7795 = vperm.xlu1 %19804, %v22003_v21   ;;  %7805 = vperm.xlu0 %19805, %v22009_v31  }
 0xf5c   :  { %19806 = vset.pattern.permute.xlu1 %v24322_v12  ;;  %19808 = vset.pattern.permute.xlu0 %v24322_v12 }
 0xf5d   :  { %7864 = vperm.xlu1 %19806, %v22003_v21   ;;  %7872 = vperm.xlu0 %19808, %v22009_v31  }
 0xf61   :  { %7868 = vperm.xlu1 %19806, %v22005_v59   ;;  %7913 = vrot.lane.b32.xlu0 %v22011_v3, %s20033_s0 }
 0xf62   :  { %19811 = vset.pattern.permute.xlu0 %v24320_v5 }
 0xf65   :  { %7909 = vrot.lane.b32.xlu1 %v22005_v59, %s20033_s0  ;;  %7820 = vperm.xlu0 %19811, %v22020_v55  }
 0xf66   :  { %19807 = vset.pattern.permute.xlu1 %v24320_v5 }
 0xf69   :  { %7810 = vperm.xlu1 %19807, %v22011_v3   ;;  %7915 = vrot.lane.b32.xlu0 %v22018_v40, %s20033_s0 }
 0xf6d   :  { %19809 = vset.pattern.permute.xlu1 %v24322_v12 }
 0xf6e   :  { %7876 = vperm.xlu1 %19809, %v22011_v3  }
 0xf72   :  { %7911 = vrot.lane.b32.xlu1 %v22009_v31, %s20033_s0 }
 0xf73   :  { %19810 = vset.pattern.permute.xlu1 %v24320_v5 }
 0xf76   :  { %7815 = vperm.xlu1 %19810, %v22018_v40  }
 0xf7a   :  { %19812 = vset.pattern.permute.xlu1 %v24322_v12 }
 0xf7b   :  { %7880 = vperm.xlu1 %19812, %v22018_v40  }
 0xf7f   :  { %7884 = vperm.xlu1 %19812, %v22020_v55   ;;  %v7751_v24 = vpop.permute.xlu1 %7750 }
 0xf80   :  { %v7746_v15 = vpop.permute.xlu0 %7745 }
 0xf83   :  { %7917 = vrot.lane.b32.xlu1 %v22020_v55, %s20033_s0 }
 0xf84   :  { %v7829_v20 = vpop.permute.xlu1 %7828  ;;  %19813 = vset.pattern.permute.xlu1 %v24320_v5 }
 0xf85   :  { %v7825_v46 = vpop.permute.xlu0 %7824 }
 0xf88   :  { %v7888_v22 = vpop.permute.xlu1 %7887 }
 0xf89   :  { %v7935_v17 = vsel %vm709_vm6, %v7746_v15, %v7888_v22  ;;  %v7890_v23 = vpop.permute.xlu0 %7889 }
 0xf8a   :  { %v7936_v56 = vsel %vm709_vm6, %v7751_v24, %v7890_v23  ;;  %v22066_v47 = vsel %vm7951_vm5, %v7935_v17, %v7825_v46 }
 0xf8b   :  { %8144 = vrot.lane.b32.xlu0 %v22066_v47, %s20034_s22  ;;  %v22071_v63 = vsel %vm7951_vm5, %v7936_v56, %v7829_v20  ;;  %v7984_v34 = vrot.slane %v22066_v47, 4 }
 0xf8c   :  { %8146 = vrot.lane.b32.xlu1 %v22071_v63, %s20034_s22  ;;  %v7985_v52 = vrot.slane %v22071_v63, 4 }
 0xf8f   :  { %8048 = vrot.lane.b32.xlu0 %v22066_v47, %s20035_s27 }
 0xf90   :  { %v7756_v30 = vpop.permute.xlu1 %7755  ;;  %8050 = vrot.lane.b32.xlu1 %v22071_v63, %s20035_s27 }
 0xf93   :  { %8096 = vrot.lane.b32.xlu0 %v7984_v34, %s20036_s28 }
 0xf94   :  { %8098 = vrot.lane.b32.xlu1 %v7985_v52, %s20036_s28 }
 0xf95   :  { %v7761_v48 = vpop.permute.xlu0 %7760  ;;  %v7833_v35 = vpop.permute.xlu1 %7832 }
 0xf97   :  { %8000 = vrot.lane.b32.xlu0 %v7984_v34, %s20037_s29 }
 0xf98   :  { %8002 = vrot.lane.b32.xlu1 %v7985_v52, %s20037_s29 }
 0xf99   :  { %v7892_v37 = vpop.permute.xlu0 %7891  ;;  %v7837_v39 = vpop.permute.xlu1 %7836 }
 0xf9a   :  { %v7937_v43 = vsel %vm709_vm6, %v7756_v30, %v7892_v37 }
 0xf9b   :  { %v22095_v42 = vsel %vm7951_vm5, %v7937_v43, %v7833_v35 }
 0xf9c   :  { %8148 = vrot.lane.b32.xlu1 %v22095_v42, %s20034_s22  ;;  %v7986_v0 = vrot.slane %v22095_v42, 4 }
 0xf9d   :  { %v7894_v44 = vpop.permute.xlu1 %7893 }
 0xf9e   :  { %v7938_v49 = vsel %vm709_vm6, %v7761_v48, %v7894_v44 }
 0xf9f   :  { %v22101_v2 = vsel %vm7951_vm5, %v7938_v49, %v7837_v39 }
 0xfa0   :  { %8150 = vrot.lane.b32.xlu0 %v22101_v2, %s20034_s22  ;;  %8052 = vrot.lane.b32.xlu1 %v22095_v42, %s20035_s27  ;;  %v7987_v50 = vrot.slane %v22101_v2, 4 }
 0xfa4   :  { %8054 = vrot.lane.b32.xlu0 %v22101_v2, %s20035_s27  ;;  %8100 = vrot.lane.b32.xlu1 %v7986_v0, %s20036_s28 }
 0xfa5   :  { %v7766_v11 = vpop.permute.xlu0 %7765 }
 0xfa6   :  { %v7771_v18 = vpop.permute.xlu1 %7770 }
 0xfa8   :  { %8102 = vrot.lane.b32.xlu0 %v7987_v50, %s20036_s28  ;;  %8004 = vrot.lane.b32.xlu1 %v7986_v0, %s20037_s29 }
 0xfaa   :  { %v7841_v45 = vpop.permute.xlu0 %7840 }
 0xfab   :  { %v7845_v32 = vpop.permute.xlu1 %7844 }
 0xfac   :  { %8006 = vrot.lane.b32.xlu0 %v7987_v50, %s20037_s29 }
 0xfae   :  { %v7898_v16 = vpop.permute.xlu0 %7897 }
 0xfaf   :  { %v7896_v57 = vpop.permute.xlu1 %7895  ;;  %v7940_v62 = vsel %vm709_vm6, %v7771_v18, %v7898_v16 }
 0xfb0   :  { %v7939_v29 = vsel %vm709_vm6, %v7766_v11, %v7896_v57  ;;  %v22118_v33 = vsel %vm7951_vm5, %v7940_v62, %v7845_v32 }
 0xfb1   :  { %v22121_v26 = vsel %vm7951_vm5, %v7939_v29, %v7841_v45  ;;  %8154 = vrot.lane.b32.xlu1 %v22118_v33, %s20034_s22  ;;  %v7989_v10 = vrot.slane %v22118_v33, 4 }
 0xfb2   :  { %8152 = vrot.lane.b32.xlu0 %v22121_v26, %s20034_s22  ;;  %v7988_v19 = vrot.slane %v22121_v26, 4 }
 0xfb5   :  { %v7776_v27 = vpop.permute.xlu1 %7775  ;;  %8058 = vrot.lane.b32.xlu1 %v22118_v33, %s20035_s27 }
 0xfb6   :  { %8056 = vrot.lane.b32.xlu0 %v22121_v26, %s20035_s27  ;;  %v7781_v4 = vpop.permute.xlu0 %7780 }
 0xfb9   :  { %8106 = vrot.lane.b32.xlu1 %v7989_v10, %s20036_s28 }
 0xfba   :  { %8104 = vrot.lane.b32.xlu0 %v7988_v19, %s20036_s28  ;;  %v7849_v24 = vpop.permute.xlu1 %7848  ;;  %v7900_v15 = vpop.permute.xlu0 %7899 }
 0xfbb   :  { %v7941_v20 = vsel %vm709_vm6, %v7776_v27, %v7900_v15 }
 0xfbc   :  { %v22139_v22 = vsel %vm7951_vm5, %v7941_v20, %v7849_v24 }
 0xfbd   :  { %8010 = vrot.lane.b32.xlu1 %v7989_v10, %s20037_s29  ;;  %v7990_v34 = vrot.slane %v22139_v22, 4 }
 0xfbe   :  { %8008 = vrot.lane.b32.xlu0 %v7988_v19, %s20037_s29  ;;  %v7853_v46 = vpop.permute.xlu1 %7852  ;;  %v7786_v23 = vpop.permute.xlu0 %7785 }
 0xfc2   :  { %8156 = vrot.lane.b32.xlu0 %v22139_v22, %s20034_s22  ;;  %v7902_v17 = vpop.permute.xlu1 %7901 }
 0xfc3   :  { %v7942_v56 = vsel %vm709_vm6, %v7781_v4, %v7902_v17  ;;  %v7857_v41 = vpop.permute.xlu0 %7856 }
 0xfc4   :  { %v22145_v58 = vsel %vm7951_vm5, %v7942_v56, %v7853_v46 }
 0xfc5   :  { %8158 = vrot.lane.b32.xlu1 %v22145_v58, %s20034_s22  ;;  %v7991_v48 = vrot.slane %v22145_v58, 4 }
 0xfc6   :  { %8060 = vrot.lane.b32.xlu0 %v22139_v22, %s20035_s27  ;;  %v7791_v30 = vpop.permute.xlu1 %7790 }
 0xfc7   :  { %v7906_v35 = vpop.permute.xlu0 %7905 }
 0xfc8   :  { %v7944_v44 = vsel %vm709_vm6, %v7791_v30, %v7906_v35 }
 0xfc9   :  { %8062 = vrot.lane.b32.xlu1 %v22145_v58, %s20035_s27 }
 0xfca   :  { %8108 = vrot.lane.b32.xlu0 %v7990_v34, %s20036_s28 }
 0xfcb   :  { %v7861_v52 = vpop.permute.xlu1 %7860  ;;  %v7801_v11 = vpop.permute.xlu0 %7800 }
 0xfcc   :  { %v22167_v0 = vsel %vm7951_vm5, %v7944_v44, %v7861_v52 }
 0xfcd   :  { %8110 = vrot.lane.b32.xlu1 %v7991_v48, %s20036_s28  ;;  %v7993_v45 = vrot.slane %v22167_v0, 4 }
 0xfce   :  { %8012 = vrot.lane.b32.xlu0 %v7990_v34, %s20037_s29 }
 0xfcf   :  { %v7904_v37 = vpop.permute.xlu1 %7903  ;;  %v7908_v32 = vpop.permute.xlu0 %7907 }
 0xfd0   :  { %v7943_v39 = vsel %vm709_vm6, %v7786_v23, %v7904_v37 }
 0xfd1   :  { %8014 = vrot.lane.b32.xlu1 %v7991_v48, %s20037_s29  ;;  %v22161_v43 = vsel %vm7951_vm5, %v7943_v39, %v7857_v41 }
 0xfd2   :  { %8160 = vrot.lane.b32.xlu0 %v22161_v43, %s20034_s22  ;;  %v7992_v50 = vrot.slane %v22161_v43, 4 }
 0xfd3   :  { %v7796_v49 = vpop.permute.xlu1 %7795  ;;  %v7806_v29 = vpop.permute.xlu0 %7805 }
 0xfd4   :  { %v7945_v57 = vsel %vm709_vm6, %v7796_v49, %v7908_v32 }
 0xfd5   :  { %8162 = vrot.lane.b32.xlu1 %v22167_v0, %s20034_s22 }
 0xfd6   :  { %8064 = vrot.lane.b32.xlu0 %v22161_v43, %s20035_s27 }
 0xfd8   :  { %v7865_v18 = vpop.permute.xlu1 %7864  ;;  %v7873_v24 = vpop.permute.xlu0 %7872 }
 0xfd9   :  { %8066 = vrot.lane.b32.xlu1 %v22167_v0, %s20035_s27  ;;  %v22182_v27 = vsel %vm7951_vm5, %v7945_v57, %v7865_v18 }
 0xfda   :  { %8112 = vrot.lane.b32.xlu0 %v7992_v50, %s20036_s28  ;;  %v7994_v15 = vrot.slane %v22182_v27, 4 }
 0xfdc   :  { %v7869_v16 = vpop.permute.xlu1 %7868  ;;  %v7914_v17 = vpop.permute.xlu0 %7913 }
 0xfdd   :  { %8114 = vrot.lane.b32.xlu1 %v7993_v45, %s20036_s28 }
 0xfde   :  { %8016 = vrot.lane.b32.xlu0 %v7992_v50, %s20037_s29 }
 0xfe0   :  { %v7910_v62 = vpop.permute.xlu1 %7909  ;;  %v7821_v41 = vpop.permute.xlu0 %7820 }
 0xfe1   :  { %v7946_v4 = vsel %vm709_vm6, %v7801_v11, %v7910_v62  ;;  %8018 = vrot.lane.b32.xlu1 %v7993_v45, %s20037_s29 }
 0xfe2   :  { %8164 = vrot.lane.b32.xlu0 %v22182_v27, %s20034_s22  ;;  %v22189_v19 = vsel %vm7951_vm5, %v7946_v4, %v7869_v16 }
 0xfe3   :  { %v7995_v46 = vrot.slane %v22189_v19, 4 }
 0xfe4   :  { %v7811_v10 = vpop.permute.xlu1 %7810  ;;  %v7916_v39 = vpop.permute.xlu0 %7915 }
 0xfe5   :  { %8166 = vrot.lane.b32.xlu1 %v22189_v19, %s20034_s22  ;;  %v7948_v52 = vsel %vm709_vm6, %v7811_v10, %v7914_v17 }
 0xfe6   :  { %8068 = vrot.lane.b32.xlu0 %v22182_v27, %s20035_s27 }
 0xfe9   :  { %v7877_v20 = vpop.permute.xlu1 %7876  ;;  %8070 = vrot.lane.b32.xlu1 %v22189_v19, %s20035_s27 }
 0xfea   :  { %8116 = vrot.lane.b32.xlu0 %v7994_v15, %s20036_s28  ;;  %v22211_v48 = vsel %vm7951_vm5, %v7948_v52, %v7877_v20  ;;  %v74_v52 = vld [vmem:[%s24315_s1 + $0x198] sm:$0xff] }
 0xfeb   :  { %v7997_v49 = vrot.slane %v22211_v48, 4 }
 0xfed   :  { %v7912_v23 = vpop.permute.xlu1 %7911  ;;  %8118 = vrot.lane.b32.xlu1 %v7995_v46, %s20036_s28 }
 0xfee   :  { %v7947_v56 = vsel %vm709_vm6, %v7806_v29, %v7912_v23  ;;  %8020 = vrot.lane.b32.xlu0 %v7994_v15, %s20037_s29 }
 0xfef   :  { %v22205_v34 = vsel %vm7951_vm5, %v7947_v56, %v7873_v24  ;;  %v72_v56 = vld [vmem:[%s24315_s1 + $0x188] sm:$0xff] }
 0xff0   :  { %v7996_v37 = vrot.slane %v22205_v34, 4 }
 0xff1   :  { %v7816_v30 = vpop.permute.xlu1 %7815  ;;  %8022 = vrot.lane.b32.xlu1 %v7995_v46, %s20037_s29 }
 0xff2   :  { %8168 = vrot.lane.b32.xlu0 %v22205_v34, %s20034_s22  ;;  %v7949_v50 = vsel %vm709_vm6, %v7816_v30, %v7916_v39  ;;  %v75_v30 = vld [vmem:[%s24315_s1 + $0x1a0] sm:$0xff] }
 0xff5   :  { %8170 = vrot.lane.b32.xlu1 %v22211_v48, %s20034_s22 }
 0xff6   :  { %v7881_v35 = vpop.permute.xlu1 %7880  ;;  %8072 = vrot.lane.b32.xlu0 %v22205_v34, %s20035_s27 }
 0xff7   :  { %v22228_v45 = vsel %vm7951_vm5, %v7949_v50, %v7881_v35  ;;  %v184_v35 = vld [vmem:[%s24316_s2 + $0x188] sm:$0xff]  ;;  %v185_v50 = vld [vmem:[%s24316_s2 + $0x190] sm:$0xff] }
 0xff8   :  { %v7998_v24 = vrot.slane %v22228_v45, 4 }
 0xff9   :  { %8074 = vrot.lane.b32.xlu1 %v22211_v48, %s20035_s27 }
 0xffa   :  { %v7885_v44 = vpop.permute.xlu1 %7884  ;;  %8120 = vrot.lane.b32.xlu0 %v7996_v37, %s20036_s28 }
 0xffd   :  { %8122 = vrot.lane.b32.xlu1 %v7997_v49, %s20036_s28  ;;  %v8145_v11 = vpop.permute.xlu0 %8144 }
 0xffe   :  { %v7918_v18 = vpop.permute.xlu1 %7917  ;;  %8024 = vrot.lane.b32.xlu0 %v7996_v37, %s20037_s29  ;;  %18822 = vmatprep.subr.msk.mxu0 %vm771_vm9, %v8145_v11 }
 0xfff   :  { %18823 = vmatpush3.msk.msra.mxu0 %vm771_vm9, %v8145_v11  ;;  %v7950_v32 = vsel %vm709_vm6, %v7821_v41, %v7918_v18 }
0x1000   :  { %v22237_v62 = vsel %vm7951_vm5, %v7950_v32, %v7885_v44  ;;  %v77_v44 = vld [vmem:[%s24315_s1 + $0x1b0] sm:$0xff]  ;;  %v188_v32 = vld [vmem:[%s24316_s2 + $0x1a8] sm:$0xff] }
0x1001   :  { %8026 = vrot.lane.b32.xlu1 %v7997_v49, %s20037_s29  ;;  %v8049_v16 = vpop.permute.xlu0 %8048  ;;  %v7999_v23 = vrot.slane %v22237_v62, 4  ;;  %v183_v49 = vld [vmem:[%s24316_s2 + $0x180] sm:$0xff] }
0x1002   :  { %v8147_v57 = vpop.permute.xlu1 %8146  ;;  %8172 = vrot.lane.b32.xlu0 %v22228_v45, %s20034_s22 }
0x1003   :  { %18831 = vmatprep.subr.msk.mxu1 %vm771_vm9, %v8147_v57 }
0x1004   :  { %18832 = vmatpush3.msk.msra.mxu1 %vm771_vm9, %v8147_v57 }
0x1005   :  { %8174 = vrot.lane.b32.xlu1 %v22237_v62, %s20034_s22  ;;  %v8097_v29 = vpop.permute.xlu0 %8096 }
0x1006   :  { %v8051_v4 = vpop.permute.xlu1 %8050  ;;  %8076 = vrot.lane.b32.xlu0 %v22228_v45, %s20035_s27  ;;  %v8192_v10 = vsel %vm771_vm9, %v8049_v16, %v8097_v29 }
0x1007   :  { %18824 = vmatprep.subr.mxu0 %v8192_v10 }
0x1008   :  { %18825 = vmatpush3.msra.mxu0 %v8192_v10  ;;  %v187_v10 = vld [vmem:[%s24316_s2 + $0x1a0] sm:$0xff] }
0x1009   :  { %8078 = vrot.lane.b32.xlu1 %v22237_v62, %s20035_s27  ;;  %v8001_v15 = vpop.permute.xlu0 %8000 }
0x100a   :  { %v8099_v20 = vpop.permute.xlu1 %8098  ;;  %8124 = vrot.lane.b32.xlu0 %v7998_v24, %s20036_s28  ;;  %v8176_v46 = vsel %vm771_vm9, %v22066_v47, %v8001_v15 }
0x100b   :  { %v8193_v17 = vsel %vm771_vm9, %v8051_v4, %v8099_v20  ;;  %18826 = vmatprep.subr.mxu0 %v8176_v46 }
0x100c   :  { %18833 = vmatprep.subr.mxu1 %v8193_v17  ;;  %18827 = vmatpush3.msra.mxu0 %v8176_v46 }
0x100d   :  { %18834 = vmatpush3.msra.mxu1 %v8193_v17  ;;  %8126 = vrot.lane.b32.xlu1 %v7999_v23, %s20036_s28 }
0x100e   :  { %v8003_v41 = vpop.permute.xlu1 %8002  ;;  %8028 = vrot.lane.b32.xlu0 %v7998_v24, %s20037_s29  ;;  %18829 = vmatmul.mubr.msk.f32.vlgmr.msra.gmra.mxu0 %vm820_vm8, %v72_v56  ;;  %v190_v24 = vld [vmem:[%s24316_s2 + $0x1b8] sm:$0xff]  ;;  %v76_v56 = vld [vmem:[%s24315_s1 + $0x1a8] sm:$0xff] }
0x100f   :  { %v8177_v47 = vsel %vm771_vm9, %v22071_v63, %v8003_v41  ;;  %18846 = vmatprep.mubr.msk.f32.mxu0 %vm820_vm8, %v75_v30  ;;  %v186_v63 = vld [vmem:[%s24316_s2 + $0x198] sm:$0xff] }
0x1010   :  { %18835 = vmatprep.subr.mxu1 %v8177_v47  ;;  %v78_v30 = vld [vmem:[%s24315_s1 + $0x1b8] sm:$0xff] }
0x1011   :  { %18836 = vmatpush3.msra.mxu1 %v8177_v47  ;;  %8030 = vrot.lane.b32.xlu1 %v7999_v23, %s20037_s29  ;;  %v192_v23 = vld [vmem:[%s24316_s2 + $0x1c8] sm:$0xff]  ;;  %v191_v47 = vld [vmem:[%s24316_s2 + $0x1c0] sm:$0xff] }
0x1012   :  { %18838 = vmatmul.mubr.msk.f32.vlgmr.msra.gmra.mxu1 %vm820_vm8, %v74_v52  ;;  %v8149_v37 = vpop.permute.xlu1 %8148  ;;  %8215 = vperm.xlu0 %19811, %v184_v35   ;;  %v8151_v39 = vpop.permute.xlu0 %8150  ;;  %v194_v35 = vld [vmem:[%s24316_s2 + $0x1d8] sm:$0xff] }
0x1013   :  { %18840 = vmatprep.subr.msk.mxu0 %vm771_vm9, %v8149_v37  ;;  %18849 = vmatprep.subr.msk.mxu1 %vm771_vm9, %v8151_v39 }
0x1014   :  { %18841 = vmatpush3.msk.msra.mxu0 %vm771_vm9, %v8149_v37  ;;  %18850 = vmatpush3.msk.msra.mxu1 %vm771_vm9, %v8151_v39  ;;  %v81_v37 = vld [vmem:[%s24315_s1 + $0x1d0] sm:$0xff] }
0x1015   :  { %8225 = vperm.xlu1 %19813, %v186_v63   ;;  %18855 = vmatprep.mubr.msk.f32.mxu1 %vm820_vm8, %v77_v44  ;;  %v196_v63 = vld [vmem:[%s24316_s2 + $0x1e8] sm:$0xff] }
0x1016   :  { %v8053_v11 = vpop.permute.xlu1 %8052  ;;  %8210 = vperm.xlu0 %19811, %v183_v49   ;;  %v8055_v18 = vpop.permute.xlu0 %8054  ;;  %v193_v49 = vld [vmem:[%s24316_s2 + $0x1d0] sm:$0xff] }
0x1019   :  { %8220 = vperm.xlu1 %19813, %v185_v50  }
0x101a   :  { %v8101_v16 = vpop.permute.xlu1 %8100  ;;  %8235 = vperm.xlu0 %19811, %v188_v32   ;;  %v8103_v57 = vpop.permute.xlu0 %8102 }
0x101b   :  { %v8194_v29 = vsel %vm771_vm9, %v8053_v11, %v8101_v16  ;;  %v8195_v4 = vsel %vm771_vm9, %v8055_v18, %v8103_v57  ;;  %v195_v18 = vld [vmem:[%s24316_s2 + $0x1e0] sm:$0xff]  ;;  %v198_v57 = vld [vmem:[%s24316_s2 + $0x1f8] sm:$0xff] }
0x101c   :  { %18842 = vmatprep.subr.mxu0 %v8194_v29  ;;  %18851 = vmatprep.subr.mxu1 %v8195_v4 }
0x101d   :  { %18843 = vmatpush3.msra.mxu0 %v8194_v29  ;;  %18852 = vmatpush3.msra.mxu1 %v8195_v4  ;;  %v200_v4 = vld [vmem:[%s24316_s2 + $0x208] sm:$0xff] }
0x101e   :  { %v8005_v15 = vpop.permute.xlu1 %8004  ;;  %8230 = vperm.xlu0 %19811, %v187_v10   ;;  %v8007_v20 = vpop.permute.xlu0 %8006  ;;  %8245 = vperm.xlu1 %19813, %v190_v24  }
0x101f   :  { %v8178_v46 = vsel %vm771_vm9, %v22095_v42, %v8005_v15  ;;  %v8179_v17 = vsel %vm771_vm9, %v22101_v2, %v8007_v20  ;;  %v189_v42 = vld [vmem:[%s24316_s2 + $0x1b0] sm:$0xff]  ;;  %v79_v2 = vld [vmem:[%s24315_s1 + $0x1c0] sm:$0xff]  ;;  %v80_v20 = vld [vmem:[%s24315_s1 + $0x1c8] sm:$0xff] }
0x1020   :  { %18844 = vmatprep.subr.mxu0 %v8178_v46  ;;  %18853 = vmatprep.subr.mxu1 %v8179_v17 }
0x1021   :  { %18845 = vmatpush3.msra.mxu0 %v8178_v46  ;;  %18854 = vmatpush3.msra.mxu1 %v8179_v17  ;;  %v82_v46 = vld [vmem:[%s24315_s1 + $0x1d8] sm:$0xff]  ;;  %v197_v17 = vld [vmem:[%s24316_s2 + $0x1f0] sm:$0xff] }
0x1022   :  { %8255 = vperm.xlu0 %19811, %v192_v23   ;;  %18847 = vmatmul.mubr.msk.f32.vlgmr.msra.gmra.mxu0 %vm820_vm8, %v76_v56  ;;  %v83_v23 = vld [vmem:[%s24315_s1 + $0x1e0] sm:$0xff]  ;;  %v85_v56 = vld [vmem:[%s24315_s1 + $0x1f0] sm:$0xff] }
0x1023   :  { %v8155_v41 = vpop.permute.xlu1 %8154  ;;  %18856 = vmatmul.mubr.msk.f32.vlgmr.msra.gmra.mxu1 %vm820_vm8, %v78_v30  ;;  %8240 = vperm.xlu1 %19813, %v189_v42   ;;  %v202_v30 = vld [vmem:[%s24316_s2 + $0x218] sm:$0xff] }
0x1024   :  { %v8153_v52 = vpop.permute.xlu0 %8152  ;;  %18867 = vmatprep.subr.msk.mxu1 %vm771_vm9, %v8155_v41  ;;  %18864 = vmatprep.mubr.msk.f32.mxu0 %vm820_vm8, %v79_v2  ;;  %v204_v2 = vld [vmem:[%s24316_s2 + $0x228] sm:$0xff] }
0x1025   :  { %18858 = vmatprep.subr.msk.mxu0 %vm771_vm9, %v8153_v52  ;;  %18868 = vmatpush3.msk.msra.mxu1 %vm771_vm9, %v8155_v41 }
0x1026   :  { %18859 = vmatpush3.msk.msra.mxu0 %vm771_vm9, %v8153_v52  ;;  %8250 = vperm.xlu0 %19811, %v191_v47   ;;  %v201_v47 = vld [vmem:[%s24316_s2 + $0x210] sm:$0xff] }
0x1027   :  { %v8059_v39 = vpop.permute.xlu1 %8058  ;;  %8265 = vperm.xlu1 %19813, %v194_v35   ;;  %18873 = vmatprep.mubr.msk.f32.mxu1 %vm820_vm8, %v81_v37  ;;  %v203_v35 = vld [vmem:[%s24316_s2 + $0x220] sm:$0xff] }
0x1028   :  { %v8057_v44 = vpop.permute.xlu0 %8056 }
0x102a   :  { %8275 = vperm.xlu0 %19811, %v196_v63   ;;  %v206_v63 = vld [vmem:[%s24316_s2 + $0x238] sm:$0xff] }
0x102b   :  { %v8107_v11 = vpop.permute.xlu1 %8106  ;;  %8260 = vperm.xlu1 %19813, %v193_v49   ;;  %v208_v49 = vld [vmem:[%s24316_s2 + $0x248] sm:$0xff] }
0x102c   :  { %v8105_v50 = vpop.permute.xlu0 %8104  ;;  %v8197_v32 = vsel %vm771_vm9, %v8059_v39, %v8107_v11 }
0x102d   :  { %v8196_v16 = vsel %vm771_vm9, %v8057_v44, %v8105_v50  ;;  %18869 = vmatprep.subr.mxu1 %v8197_v32 }
0x102e   :  { %18860 = vmatprep.subr.mxu0 %v8196_v16  ;;  %8270 = vperm.xlu0 %19811, %v195_v18  }
0x102f   :  { %18861 = vmatpush3.msra.mxu0 %v8196_v16  ;;  %18870 = vmatpush3.msra.mxu1 %v8197_v32  ;;  %v8011_v29 = vpop.permute.xlu1 %8010  ;;  %v84_v32 = vld [vmem:[%s24315_s1 + $0x1e8] sm:$0xff] }
0x1030   :  { %v8009_v10 = vpop.permute.xlu0 %8008  ;;  %v8181_v24 = vsel %vm771_vm9, %v22118_v33, %v8011_v29  ;;  %8285 = vperm.xlu1 %19813, %v198_v57   ;;  %v199_v33 = vld [vmem:[%s24316_s2 + $0x200] sm:$0xff] }
0x1031   :  { %v8180_v15 = vsel %vm771_vm9, %v22121_v26, %v8009_v10  ;;  %18871 = vmatprep.subr.mxu1 %v8181_v24  ;;  %v207_v57 = vld [vmem:[%s24316_s2 + $0x240] sm:$0xff]  ;;  %v205_v10 = vld [vmem:[%s24316_s2 + $0x230] sm:$0xff] }
0x1032   :  { %18862 = vmatprep.subr.mxu0 %v8180_v15  ;;  %8295 = vperm.xlu0 %19811, %v200_v4   ;;  %v86_v4 = vld [vmem:[%s24315_s1 + $0x1f8] sm:$0xff] }
0x1033   :  { %18863 = vmatpush3.msra.mxu0 %v8180_v15  ;;  %18872 = vmatpush3.msra.mxu1 %v8181_v24  ;;  %v87_v24 = vld [vmem:[%s24315_s1 + $0x200] sm:$0xff]  ;;  %v212_v15 = vld [vmem:[%s24316_s2 + $0x268] sm:$0xff] }
0x1034   :  { %18865 = vmatmul.mubr.msk.f32.vlgmr.msra.gmra.mxu0 %vm820_vm8, %v80_v20  ;;  %18874 = vmatmul.mubr.msk.f32.vlgmr.msra.gmra.mxu1 %vm820_vm8, %v82_v46  ;;  %v8157_v26 = vpop.permute.xlu0 %8156  ;;  %v89_v20 = vld [vmem:[%s24315_s1 + $0x210] sm:$0xff] }
0x1035   :  { %18876 = vmatprep.subr.msk.mxu0 %vm771_vm9, %v8157_v26  ;;  %8280 = vperm.xlu1 %19813, %v197_v17   ;;  %v210_v17 = vld [vmem:[%s24316_s2 + $0x258] sm:$0xff] }
0x1036   :  { %18877 = vmatpush3.msk.msra.mxu0 %vm771_vm9, %v8157_v26  ;;  %8290 = vperm.xlu0 %19811, %v199_v33   ;;  %v211_v26 = vld [vmem:[%s24316_s2 + $0x260] sm:$0xff] }
0x1037   :  { %v8159_v42 = vpop.permute.xlu1 %8158  ;;  %18882 = vmatprep.mubr.msk.f32.mxu0 %vm820_vm8, %v83_v23  ;;  %18891 = vmatprep.mubr.msk.f32.mxu1 %vm820_vm8, %v85_v56 }
0x1038   :  { %v8061_v41 = vpop.permute.xlu0 %8060  ;;  %18885 = vmatprep.subr.msk.mxu1 %vm771_vm9, %v8159_v42 }
0x1039   :  { %18886 = vmatpush3.msk.msra.mxu1 %vm771_vm9, %v8159_v42  ;;  %8305 = vperm.xlu1 %19813, %v202_v30   ;;  %v209_v30 = vld [vmem:[%s24316_s2 + $0x250] sm:$0xff] }
0x103a   :  { %8315 = vperm.xlu0 %19811, %v204_v2  }
0x103b   :  { %v8063_v52 = vpop.permute.xlu1 %8062 }
0x103c   :  { %v8109_v37 = vpop.permute.xlu0 %8108 }
0x103d   :  { %v8198_v39 = vsel %vm771_vm9, %v8061_v41, %v8109_v37  ;;  %8300 = vperm.xlu1 %19813, %v201_v47  }
0x103e   :  { %18878 = vmatprep.subr.mxu0 %v8198_v39  ;;  %8310 = vperm.xlu0 %19811, %v203_v35   ;;  %v214_v35 = vld [vmem:[%s24316_s2 + $0x278] sm:$0xff] }
0x103f   :  { %18879 = vmatpush3.msra.mxu0 %v8198_v39  ;;  %v8111_v44 = vpop.permute.xlu1 %8110 }
0x1040   :  { %v8013_v11 = vpop.permute.xlu0 %8012  ;;  %v8199_v18 = vsel %vm771_vm9, %v8063_v52, %v8111_v44  ;;  %v88_v52 = vld [vmem:[%s24315_s1 + $0x208] sm:$0xff]  ;;  %v91_v44 = vld [vmem:[%s24315_s1 + $0x220] sm:$0xff] }
0x1041   :  { %v8182_v50 = vsel %vm771_vm9, %v22139_v22, %v8013_v11  ;;  %18887 = vmatprep.subr.mxu1 %v8199_v18  ;;  %8325 = vperm.xlu1 %19813, %v206_v63  }
0x1042   :  { %18880 = vmatprep.subr.mxu0 %v8182_v50  ;;  %8335 = vperm.xlu0 %19811, %v208_v49   ;;  %v213_v49 = vld [vmem:[%s24316_s2 + $0x270] sm:$0xff] }
0x1043   :  { %18881 = vmatpush3.msra.mxu0 %v8182_v50  ;;  %18888 = vmatpush3.msra.mxu1 %v8199_v18  ;;  %v8015_v16 = vpop.permute.xlu1 %8014 }
0x1044   :  { %18883 = vmatmul.mubr.msk.f32.vlgmr.msra.gmra.mxu0 %vm820_vm8, %v84_v32  ;;  %v8161_v29 = vpop.permute.xlu0 %8160  ;;  %v8183_v22 = vsel %vm771_vm9, %v22145_v58, %v8015_v16 }
0x1045   :  { %18889 = vmatprep.subr.mxu1 %v8183_v22  ;;  %18894 = vmatprep.subr.msk.mxu0 %vm771_vm9, %v8161_v29 }
0x1046   :  { %8330 = vperm.xlu0 %19811, %v207_v57   ;;  %18890 = vmatpush3.msra.mxu1 %v8183_v22 }
0x1047   :  { %18895 = vmatpush3.msk.msra.mxu0 %vm771_vm9, %v8161_v29  ;;  %v8163_v58 = vpop.permute.xlu1 %8162  ;;  %18892 = vmatmul.mubr.msk.f32.vlgmr.msra.gmra.mxu1 %vm820_vm8, %v86_v4 }
0x1048   :  { %18903 = vmatprep.subr.msk.mxu1 %vm771_vm9, %v8163_v58  ;;  %v8065_v46 = vpop.permute.xlu0 %8064  ;;  %8320 = vperm.xlu1 %19813, %v205_v10   ;;  %v92_v10 = vld [vmem:[%s24315_s1 + $0x228] sm:$0xff] }
0x1049   :  { %18904 = vmatpush3.msk.msra.mxu1 %vm771_vm9, %v8163_v58  ;;  %18900 = vmatprep.mubr.msk.f32.mxu0 %vm820_vm8, %v87_v24 }
0x104a   :  { %8355 = vperm.xlu0 %19811, %v212_v15   ;;  %18909 = vmatprep.mubr.msk.f32.mxu1 %vm820_vm8, %v89_v20  ;;  %v94_v20 = vld [vmem:[%s24315_s1 + $0x238] sm:$0xff] }
0x104b   :  { %v8067_v33 = vpop.permute.xlu1 %8066 }
0x104c   :  { %v8113_v23 = vpop.permute.xlu0 %8112  ;;  %8345 = vperm.xlu1 %19813, %v210_v17  }
0x104d   :  { %v8200_v56 = vsel %vm771_vm9, %v8065_v46, %v8113_v23  ;;  %v97_v46 = vld [vmem:[%s24315_s1 + $0x250] sm:$0xff] }
0x104e   :  { %8350 = vperm.xlu0 %19811, %v211_v26   ;;  %18896 = vmatprep.subr.mxu0 %v8200_v56 }
0x104f   :  { %v8115_v42 = vpop.permute.xlu1 %8114  ;;  %18897 = vmatpush3.msra.mxu0 %v8200_v56 }
0x1050   :  { %v8017_v2 = vpop.permute.xlu0 %8016  ;;  %v8201_v41 = vsel %vm771_vm9, %v8067_v33, %v8115_v42  ;;  %8340 = vperm.xlu1 %19813, %v209_v30  }
0x1051   :  { %18905 = vmatprep.subr.mxu1 %v8201_v41  ;;  %v8184_v47 = vsel %vm771_vm9, %v22161_v43, %v8017_v2  ;;  %v90_v43 = vld [vmem:[%s24315_s1 + $0x218] sm:$0xff] }
0x1052   :  { %18898 = vmatprep.subr.mxu0 %v8184_v47  ;;  %18906 = vmatpush3.msra.mxu1 %v8201_v41  ;;  %v96_v41 = vld [vmem:[%s24315_s1 + $0x248] sm:$0xff] }
0x1053   :  { %v8019_v37 = vpop.permute.xlu1 %8018  ;;  %18899 = vmatpush3.msra.mxu0 %v8184_v47 }
0x1054   :  { %18901 = vmatmul.mubr.msk.f32.vlgmr.msra.gmra.mxu0 %vm820_vm8, %v88_v52  ;;  %v8165_v39 = vpop.permute.xlu0 %8164  ;;  %v8185_v63 = vsel %vm771_vm9, %v22167_v0, %v8019_v37  ;;  %8365 = vperm.xlu1 %19813, %v214_v35   ;;  %v93_v0 = vld [vmem:[%s24315_s1 + $0x230] sm:$0xff]  ;;  %v98_v37 = vld [vmem:[%s24315_s1 + $0x258] sm:$0xff] }
0x1055   :  { %18907 = vmatprep.subr.mxu1 %v8185_v63  ;;  %18912 = vmatprep.subr.msk.mxu0 %vm771_vm9, %v8165_v39 }
0x1056   :  { %18908 = vmatpush3.msra.mxu1 %v8185_v63  ;;  %18913 = vmatpush3.msk.msra.mxu0 %vm771_vm9, %v8165_v39  ;;  %v101_v39 = vld [vmem:[%s24315_s1 + $0x270] sm:$0xff] }
0x1057   :  { %v8167_v11 = vpop.permute.xlu1 %8166  ;;  %18910 = vmatmul.mubr.msk.f32.vlgmr.msra.gmra.mxu1 %vm820_vm8, %v90_v43  ;;  %18918 = vmatprep.mubr.msk.f32.mxu0 %vm820_vm8, %v91_v44 }
0x1058   :  { %18921 = vmatprep.subr.msk.mxu1 %vm771_vm9, %v8167_v11  ;;  %v8069_v18 = vpop.permute.xlu0 %8068  ;;  %8360 = vperm.xlu1 %19813, %v213_v49  }
0x1059   :  { %18922 = vmatpush3.msk.msra.mxu1 %vm771_vm9, %v8167_v11  ;;  %18927 = vmatprep.mubr.msk.f32.mxu1 %vm820_vm8, %v93_v0 }
0x105b   :  { %v8071_v50 = vpop.permute.xlu1 %8070 }
0x105c   :  { %v8117_v32 = vpop.permute.xlu0 %8116 }
0x105d   :  { %v8202_v16 = vsel %vm771_vm9, %v8069_v18, %v8117_v32  ;;  %v100_v32 = vld [vmem:[%s24315_s1 + $0x268] sm:$0xff] }
0x105e   :  { %18914 = vmatprep.subr.mxu0 %v8202_v16 }
0x105f   :  { %v8119_v57 = vpop.permute.xlu1 %8118  ;;  %18915 = vmatpush3.msra.mxu0 %v8202_v16 }
0x1060   :  { %v8021_v29 = vpop.permute.xlu0 %8020  ;;  %v8203_v22 = vsel %vm771_vm9, %v8071_v50, %v8119_v57 }
0x1061   :  { %18923 = vmatprep.subr.mxu1 %v8203_v22  ;;  %v8186_v4 = vsel %vm771_vm9, %v22182_v27, %v8021_v29  ;;  %v95_v27 = vld [vmem:[%s24315_s1 + $0x240] sm:$0xff]  ;;  %v102_v29 = vld [vmem:[%s24315_s1 + $0x278] sm:$0xff] }
0x1062   :  { %18916 = vmatprep.subr.mxu0 %v8186_v4  ;;  %18924 = vmatpush3.msra.mxu1 %v8203_v22 }
0x1063   :  { %v8023_v24 = vpop.permute.xlu1 %8022  ;;  %18917 = vmatpush3.msra.mxu0 %v8186_v4 }
0x1064   :  { %18919 = vmatmul.mubr.msk.f32.vlgmr.msra.gmra.mxu0 %vm820_vm8, %v92_v10  ;;  %v8169_v58 = vpop.permute.xlu0 %8168  ;;  %v8187_v15 = vsel %vm771_vm9, %v22189_v19, %v8023_v24 }
0x1065   :  { %18925 = vmatprep.subr.mxu1 %v8187_v15  ;;  %18930 = vmatprep.subr.msk.mxu0 %vm771_vm9, %v8169_v58 }
0x1066   :  { %18926 = vmatpush3.msra.mxu1 %v8187_v15  ;;  %18931 = vmatpush3.msk.msra.mxu0 %vm771_vm9, %v8169_v58 }
0x1067   :  { %v8171_v17 = vpop.permute.xlu1 %8170  ;;  %18928 = vmatmul.mubr.msk.f32.vlgmr.msra.gmra.mxu1 %vm820_vm8, %v94_v20  ;;  %18936 = vmatprep.mubr.msk.f32.mxu0 %vm820_vm8, %v95_v27 }
0x1068   :  { %18939 = vmatprep.subr.msk.mxu1 %vm771_vm9, %v8171_v17  ;;  %v8073_v19 = vpop.permute.xlu0 %8072  ;;  %18945 = vmatprep.mubr.msk.f32.mxu1 %vm820_vm8, %v97_v46 }
0x1069   :  { %18940 = vmatpush3.msk.msra.mxu1 %vm771_vm9, %v8171_v17 }
0x106b   :  { %v8075_v33 = vpop.permute.xlu1 %8074 }
0x106c   :  { %v8121_v26 = vpop.permute.xlu0 %8120 }
0x106d   :  { %v8204_v23 = vsel %vm771_vm9, %v8073_v19, %v8121_v26 }
0x106e   :  { %18932 = vmatprep.subr.mxu0 %v8204_v23 }
0x106f   :  { %v8123_v56 = vpop.permute.xlu1 %8122  ;;  %18933 = vmatpush3.msra.mxu0 %v8204_v23 }
0x1070   :  { %v8025_v30 = vpop.permute.xlu0 %8024  ;;  %v8205_v42 = vsel %vm771_vm9, %v8075_v33, %v8123_v56 }
0x1071   :  { %18941 = vmatprep.subr.mxu1 %v8205_v42  ;;  %v8188_v2 = vsel %vm771_vm9, %v22205_v34, %v8025_v30  ;;  %v99_v34 = vld [vmem:[%s24315_s1 + $0x260] sm:$0xff] }
0x1072   :  { %18934 = vmatprep.subr.mxu0 %v8188_v2  ;;  %18942 = vmatpush3.msra.mxu1 %v8205_v42 }
0x1073   :  { %v8027_v47 = vpop.permute.xlu1 %8026  ;;  %18935 = vmatpush3.msra.mxu0 %v8188_v2 }
0x1074   :  { %18937 = vmatmul.mubr.msk.f32.vlgmr.msra.gmra.mxu0 %vm820_vm8, %v96_v41  ;;  %v8173_v52 = vpop.permute.xlu0 %8172  ;;  %v8189_v35 = vsel %vm771_vm9, %v22211_v48, %v8027_v47 }
0x1075   :  { %18943 = vmatprep.subr.mxu1 %v8189_v35  ;;  %18948 = vmatprep.subr.msk.mxu0 %vm771_vm9, %v8173_v52 }
0x1076   :  { %18944 = vmatpush3.msra.mxu1 %v8189_v35  ;;  %18949 = vmatpush3.msk.msra.mxu0 %vm771_vm9, %v8173_v52 }
0x1077   :  { %v8175_v63 = vpop.permute.xlu1 %8174  ;;  %18946 = vmatmul.mubr.msk.f32.vlgmr.msra.gmra.mxu1 %vm820_vm8, %v98_v37  ;;  %18954 = vmatprep.mubr.msk.f32.mxu0 %vm820_vm8, %v99_v34 }
0x1078   :  { %18957 = vmatprep.subr.msk.mxu1 %vm771_vm9, %v8175_v63  ;;  %v8077_v48 = vpop.permute.xlu0 %8076  ;;  %18963 = vmatprep.mubr.msk.f32.mxu1 %vm820_vm8, %v101_v39 }
0x1079   :  { %18958 = vmatpush3.msk.msra.mxu1 %vm771_vm9, %v8175_v63 }
0x107b   :  { %v8079_v43 = vpop.permute.xlu1 %8078 }
0x107c   :  { %v8125_v44 = vpop.permute.xlu0 %8124 }
0x107d   :  { %v8206_v49 = vsel %vm771_vm9, %v8077_v48, %v8125_v44 }
0x107e   :  { %18950 = vmatprep.subr.mxu0 %v8206_v49 }
0x107f   :  { %v8127_v0 = vpop.permute.xlu1 %8126  ;;  %18951 = vmatpush3.msra.mxu0 %v8206_v49 }
0x1080   :  { %v8029_v11 = vpop.permute.xlu0 %8028  ;;  %v8207_v18 = vsel %vm771_vm9, %v8079_v43, %v8127_v0 }
0x1081   :  { %18959 = vmatprep.subr.mxu1 %v8207_v18  ;;  %v8190_v50 = vsel %vm771_vm9, %v22228_v45, %v8029_v11 }
0x1082   :  { %18952 = vmatprep.subr.mxu0 %v8190_v50  ;;  %18960 = vmatpush3.msra.mxu1 %v8207_v18 }
0x1083   :  { %v8031_v16 = vpop.permute.xlu1 %8030  ;;  %18953 = vmatpush3.msra.mxu0 %v8190_v50 }
0x1084   :  { %18955 = vmatmul.mubr.msk.f32.vlgmr.msra.gmra.mxu0 %vm820_vm8, %v100_v32  ;;  %v8191_v57 = vsel %vm771_vm9, %v22237_v62, %v8031_v16  ;;  %18966 = vmatprep.subr.mxu0 %v20028_v1 }
0x1085   :  { %18961 = vmatprep.subr.mxu1 %v8191_v57  ;;  %18978 = vmatprep.mubr.msk.f32.mxu0 %vm20029_vm0, %v20028_v1 }
0x1086   :  { %18962 = vmatpush3.msra.mxu1 %v8191_v57 }
0x1087   :  { %18964 = vmatmul.mubr.msk.f32.vlgmr.msra.gmra.mxu1 %vm820_vm8, %v102_v29  ;;  %18981 = vmatprep.subr.mxu1 %v20028_v1 }
0x1088   :  { %18993 = vmatprep.mubr.msk.f32.mxu1 %vm20029_vm0, %v20028_v1 }
0x108d   :  { %v8216_v45 = vpop.permute.xlu0 %8215 }
0x1090   :  { %v8226_v4 = vpop.permute.xlu1 %8225 }
0x1091   :  { %v8211_v58 = vpop.permute.xlu0 %8210 }
0x1094   :  { %v8221_v33 = vpop.permute.xlu1 %8220 }
0x1095   :  { %v8236_v41 = vpop.permute.xlu0 %8235 }
0x1099   :  { %v8246_v47 = vpop.permute.xlu1 %8245  ;;  %v8231_v43 = vpop.permute.xlu0 %8230 }
0x109e   :  { %v8241_v49 = vpop.permute.xlu1 %8240 }
0x10ce   :  { %v18830_v62 = vpop.f32.mrf.mxu0 }
0x10cf   :  { %v8448_v22 = vadd.f32 %v18830_v62, %v8216_v45  ;;  %v8256_v45 = vpop.permute.xlu0 %8255  ;;  %v8266_v62 = vpop.permute.xlu1 %8265 }
0x10d0   :  { %v8442_v10 = vpop.f32.mrf.mxu0 }
0x10d1   :  { %vm9697_vm7 = vcmp.ge.f32.partialorder %v8448_v22, 0.0  ;;  %v9729_v24 = vmul.f32 0.01, %v8448_v22  ;;  %v8443_v20 = vadd.f32 %v8442_v10, %v8211_v58 }
0x10d2   :  { %v18839_v15 = vpop.f32.mrf.mxu1 }
0x10d3   :  { %v8531_v27 = vadd.f32 %v18839_v15, %v8226_v4  ;;  %v22549_v46 = vsel %vm9697_vm7, %v8448_v22, %v9729_v24  ;;  %v9728_v26 = vmul.f32 0.01, %v8443_v20  ;;  %vm9696_vm13 = vcmp.ge.f32.partialorder %v8443_v20, 0.0 }
0x10d4   :  { %v8525_v17 = vpop.f32.mrf.mxu1  ;;  %9922 = vrot.lane.b32.xlu0 %v22549_v46, %s20035_s27 }
0x10d5   :  { %vm9699_vm14 = vcmp.ge.f32.partialorder %v8531_v27, 0.0  ;;  %v9731_v19 = vmul.f32 0.01, %v8531_v27  ;;  %v8526_v23 = vadd.f32 %v8525_v17, %v8221_v33  ;;  %v22559_v42 = vsel %vm9696_vm13, %v8443_v20, %v9728_v26  ;;  %v8251_v17 = vpop.permute.xlu0 %8250 }
0x10d7   :  { %v22553_v56 = vsel %vm9699_vm14, %v8531_v27, %v9731_v19  ;;  %v9730_v30 = vmul.f32 0.01, %v8526_v23  ;;  %vm9698_vm15 = vcmp.ge.f32.partialorder %v8526_v23, 0.0  ;;  %v8261_v19 = vpop.permute.xlu1 %8260 }
0x10d8   :  { %9926 = vrot.lane.b32.xlu1 %v22553_v56, %s20035_s27  ;;  %9826 = vrot.lane.b32.xlu0 %v22549_v46, %s20037_s29 }
0x10d9   :  { %v22565_v2 = vsel %vm9698_vm15, %v8526_v23, %v9730_v30 }
0x10dc   :  { %9830 = vrot.lane.b32.xlu1 %v22553_v56, %s20037_s29  ;;  %9920 = vrot.lane.b32.xlu0 %v22559_v42, %s20035_s27 }
0x10e0   :  { %9924 = vrot.lane.b32.xlu1 %v22565_v2, %s20035_s27  ;;  %9824 = vrot.lane.b32.xlu0 %v22559_v42, %s20037_s29 }
0x10e2   :  { %v18848_v52 = vpop.f32.mrf.mxu0 }
0x10e3   :  { %v8614_v35 = vadd.f32 %v18848_v52, %v8236_v41  ;;  %v18857_v37 = vpop.f32.mrf.mxu1 }
0x10e4   :  { %v8697_v34 = vadd.f32 %v18857_v37, %v8246_v47  ;;  %9828 = vrot.lane.b32.xlu1 %v22565_v2, %s20037_s29  ;;  %v8608_v39 = vpop.f32.mrf.mxu0  ;;  %v8276_v37 = vpop.permute.xlu0 %8275 }
0x10e5   :  { %vm9701_vm3 = vcmp.ge.f32.partialorder %v8614_v35, 0.0  ;;  %v9733_v63 = vmul.f32 0.01, %v8614_v35  ;;  %v8691_v48 = vpop.f32.mrf.mxu1  ;;  %v8609_v0 = vadd.f32 %v8608_v39, %v8231_v43  ;;  %v8286_v39 = vpop.permute.xlu1 %8285 }
0x10e6   :  { %vm9703_vm10 = vcmp.ge.f32.partialorder %v8697_v34, 0.0  ;;  %v9735_v44 = vmul.f32 0.01, %v8697_v34  ;;  %v8692_v18 = vadd.f32 %v8691_v48, %v8241_v49 }
0x10e7   :  { %v22573_v11 = vsel %vm9701_vm3, %v8614_v35, %v9733_v63  ;;  %v9732_v32 = vmul.f32 0.01, %v8609_v0  ;;  %vm9700_vm7 = vcmp.ge.f32.partialorder %v8609_v0, 0.0 }
0x10e8   :  { %9930 = vrot.lane.b32.xlu0 %v22573_v11, %s20035_s27  ;;  %v22577_v50 = vsel %vm9703_vm10, %v8697_v34, %v9735_v44  ;;  %v9734_v16 = vmul.f32 0.01, %v8692_v18  ;;  %vm9702_vm14 = vcmp.ge.f32.partialorder %v8692_v18, 0.0  ;;  %v8271_v49 = vpop.permute.xlu0 %8270 }
0x10e9   :  { %9934 = vrot.lane.b32.xlu1 %v22577_v50, %s20035_s27  ;;  %v22585_v57 = vsel %vm9700_vm7, %v8609_v0, %v9732_v32 }
0x10ea   :  { %v22589_v29 = vsel %vm9702_vm14, %v8692_v18, %v9734_v16 }
0x10ec   :  { %9834 = vrot.lane.b32.xlu0 %v22573_v11, %s20037_s29 }
0x10ed   :  { %9838 = vrot.lane.b32.xlu1 %v22577_v50, %s20037_s29 }
0x10f0   :  { %9928 = vrot.lane.b32.xlu0 %v22585_v57, %s20035_s27 }
0x10f1   :  { %9932 = vrot.lane.b32.xlu1 %v22589_v29, %s20035_s27 }
0x10f4   :  { %v18866_v22 = vpop.f32.mrf.mxu0  ;;  %v18875_v4 = vpop.f32.mrf.mxu1  ;;  %9832 = vrot.lane.b32.xlu0 %v22585_v57, %s20037_s29 }
0x10f5   :  { %v8780_v10 = vadd.f32 %v18866_v22, %v8256_v45  ;;  %v8863_v24 = vadd.f32 %v18875_v4, %v8266_v62  ;;  %9836 = vrot.lane.b32.xlu1 %v22589_v29, %s20037_s29  ;;  %v8281_v62 = vpop.permute.xlu1 %8280 }
0x10f6   :  { %v8857_v58 = vpop.f32.mrf.mxu1  ;;  %v8774_v15 = vpop.f32.mrf.mxu0 }
0x10f7   :  { %vm9705_vm13 = vcmp.ge.f32.partialorder %v8780_v10, 0.0  ;;  %v9737_v20 = vmul.f32 0.01, %v8780_v10  ;;  %vm9707_vm15 = vcmp.ge.f32.partialorder %v8863_v24, 0.0  ;;  %v9739_v27 = vmul.f32 0.01, %v8863_v24 }
0x10f8   :  { %v8858_v33 = vadd.f32 %v8857_v58, %v8261_v19  ;;  %v8775_v26 = vadd.f32 %v8774_v15, %v8251_v17  ;;  %v8296_v15 = vpop.permute.xlu0 %8295 }
0x10f9   :  { %v22597_v23 = vsel %vm9707_vm15, %v8863_v24, %v9739_v27  ;;  %v22599_v30 = vsel %vm9705_vm13, %v8780_v10, %v9737_v20  ;;  %v8306_v17 = vpop.permute.xlu1 %8305 }
0x10fa   :  { %9942 = vrot.lane.b32.xlu1 %v22597_v23, %s20035_s27  ;;  %9938 = vrot.lane.b32.xlu0 %v22599_v30, %s20035_s27  ;;  %v9738_v41 = vmul.f32 0.01, %v8858_v33  ;;  %v9736_v47 = vmul.f32 0.01, %v8775_v26  ;;  %vm9706_vm3 = vcmp.ge.f32.partialorder %v8858_v33, 0.0  ;;  %vm9704_vm10 = vcmp.ge.f32.partialorder %v8775_v26, 0.0 }
0x10fc   :  { %v22609_v52 = vsel %vm9706_vm3, %v8858_v33, %v9738_v41  ;;  %v22611_v35 = vsel %vm9704_vm10, %v8775_v26, %v9736_v47  ;;  %v8291_v47 = vpop.permute.xlu0 %8290 }
0x10fe   :  { %9846 = vrot.lane.b32.xlu1 %v22597_v23, %s20037_s29  ;;  %9842 = vrot.lane.b32.xlu0 %v22599_v30, %s20037_s29 }
0x1102   :  { %9940 = vrot.lane.b32.xlu1 %v22609_v52, %s20035_s27  ;;  %9936 = vrot.lane.b32.xlu0 %v22611_v35, %s20035_s27 }
0x1104   :  { %v18884_v34 = vpop.f32.mrf.mxu0 }
0x1105   :  { %v8946_v63 = vadd.f32 %v18884_v34, %v8276_v37 }
0x1106   :  { %9844 = vrot.lane.b32.xlu1 %v22609_v52, %s20037_s29  ;;  %v8940_v48 = vpop.f32.mrf.mxu0  ;;  %9840 = vrot.lane.b32.xlu0 %v22611_v35, %s20037_s29 }
0x1107   :  { %vm9709_vm7 = vcmp.ge.f32.partialorder %v8946_v63, 0.0  ;;  %v9741_v43 = vmul.f32 0.01, %v8946_v63  ;;  %v18893_v44 = vpop.f32.mrf.mxu1  ;;  %v8941_v18 = vadd.f32 %v8940_v48, %v8271_v49 }
0x1108   :  { %v9029_v0 = vadd.f32 %v18893_v44, %v8286_v39 }
0x1109   :  { %v9023_v32 = vpop.f32.mrf.mxu1  ;;  %v22621_v16 = vsel %vm9709_vm7, %v8946_v63, %v9741_v43  ;;  %v9740_v10 = vmul.f32 0.01, %v8941_v18  ;;  %vm9708_vm13 = vcmp.ge.f32.partialorder %v8941_v18, 0.0  ;;  %v8301_v43 = vpop.permute.xlu1 %8300 }
0x110a   :  { %vm9711_vm14 = vcmp.ge.f32.partialorder %v9029_v0, 0.0  ;;  %v9743_v45 = vmul.f32 0.01, %v9029_v0  ;;  %9946 = vrot.lane.b32.xlu0 %v22621_v16, %s20035_s27  ;;  %v9024_v22 = vadd.f32 %v9023_v32, %v8281_v62 }
0x110b   :  { %v22633_v58 = vsel %vm9708_vm13, %v8941_v18, %v9740_v10 }
0x110c   :  { %v22625_v4 = vsel %vm9711_vm14, %v9029_v0, %v9743_v45  ;;  %v9742_v24 = vmul.f32 0.01, %v9024_v22  ;;  %vm9710_vm15 = vcmp.ge.f32.partialorder %v9024_v22, 0.0  ;;  %v8316_v45 = vpop.permute.xlu0 %8315 }
0x110d   :  { %9950 = vrot.lane.b32.xlu1 %v22625_v4, %s20035_s27  ;;  %v8326_v10 = vpop.permute.xlu1 %8325 }
0x110e   :  { %9850 = vrot.lane.b32.xlu0 %v22621_v16, %s20037_s29  ;;  %v22637_v27 = vsel %vm9710_vm15, %v9024_v22, %v9742_v24 }
0x1111   :  { %9854 = vrot.lane.b32.xlu1 %v22625_v4, %s20037_s29 }
0x1112   :  { %9944 = vrot.lane.b32.xlu0 %v22633_v58, %s20035_s27 }
0x1114   :  { %v18902_v20 = vpop.f32.mrf.mxu0 }
0x1115   :  { %v9112_v19 = vadd.f32 %v18902_v20, %v8296_v15  ;;  %9948 = vrot.lane.b32.xlu1 %v22637_v27, %s20035_s27 }
0x1116   :  { %9848 = vrot.lane.b32.xlu0 %v22633_v58, %s20037_s29  ;;  %v9106_v33 = vpop.f32.mrf.mxu0 }
0x1117   :  { %vm9713_vm3 = vcmp.ge.f32.partialorder %v9112_v19, 0.0  ;;  %v9745_v26 = vmul.f32 0.01, %v9112_v19  ;;  %v18911_v41 = vpop.f32.mrf.mxu1  ;;  %v9107_v34 = vadd.f32 %v9106_v33, %v8291_v47 }
0x1118   :  { %v9195_v37 = vadd.f32 %v18911_v41, %v8306_v17 }
0x1119   :  { %v9189_v39 = vpop.f32.mrf.mxu1  ;;  %9852 = vrot.lane.b32.xlu1 %v22637_v27, %s20037_s29  ;;  %v22645_v63 = vsel %vm9713_vm3, %v9112_v19, %v9745_v26  ;;  %v9744_v0 = vmul.f32 0.01, %v9107_v34  ;;  %vm9712_vm7 = vcmp.ge.f32.partialorder %v9107_v34, 0.0  ;;  %v8311_v19 = vpop.permute.xlu0 %8310 }
0x111a   :  { %vm9715_vm10 = vcmp.ge.f32.partialorder %v9195_v37, 0.0  ;;  %v9747_v48 = vmul.f32 0.01, %v9195_v37  ;;  %9954 = vrot.lane.b32.xlu0 %v22645_v63, %s20035_s27  ;;  %v9190_v44 = vadd.f32 %v9189_v39, %v8301_v43 }
0x111b   :  { %v22657_v32 = vsel %vm9712_vm7, %v9107_v34, %v9744_v0  ;;  %v8321_v34 = vpop.permute.xlu1 %8320 }
0x111c   :  { %v22649_v49 = vsel %vm9715_vm10, %v9195_v37, %v9747_v48  ;;  %v9746_v18 = vmul.f32 0.01, %v9190_v44  ;;  %vm9714_vm14 = vcmp.ge.f32.partialorder %v9190_v44, 0.0 }
0x111d   :  { %9958 = vrot.lane.b32.xlu1 %v22649_v49, %s20035_s27 }
0x111e   :  { %9858 = vrot.lane.b32.xlu0 %v22645_v63, %s20037_s29  ;;  %v22661_v22 = vsel %vm9714_vm14, %v9190_v44, %v9746_v18  ;;  %v8336_v44 = vpop.permute.xlu0 %8335 }
0x1121   :  { %9862 = vrot.lane.b32.xlu1 %v22649_v49, %s20037_s29 }
0x1122   :  { %9952 = vrot.lane.b32.xlu0 %v22657_v32, %s20035_s27 }
0x1124   :  { %v18920_v62 = vpop.f32.mrf.mxu0 }
0x1125   :  { %v9278_v24 = vadd.f32 %v18920_v62, %v8316_v45  ;;  %9956 = vrot.lane.b32.xlu1 %v22661_v22, %s20035_s27  ;;  %v8346_v45 = vpop.permute.xlu1 %8345 }
0x1126   :  { %v9272_v15 = vpop.f32.mrf.mxu0  ;;  %9856 = vrot.lane.b32.xlu0 %v22657_v32, %s20037_s29 }
0x1127   :  { %vm9717_vm13 = vcmp.ge.f32.partialorder %v9278_v24, 0.0  ;;  %v9749_v20 = vmul.f32 0.01, %v9278_v24  ;;  %v18929_v17 = vpop.f32.mrf.mxu1  ;;  %v9273_v26 = vadd.f32 %v9272_v15, %v8311_v19  ;;  %v8331_v15 = vpop.permute.xlu0 %8330 }
0x1128   :  { %v9361_v33 = vadd.f32 %v18929_v17, %v8326_v10 }
0x1129   :  { %v9355_v41 = vpop.f32.mrf.mxu1  ;;  %9860 = vrot.lane.b32.xlu1 %v22661_v22, %s20037_s29  ;;  %v22669_v47 = vsel %vm9717_vm13, %v9278_v24, %v9749_v20  ;;  %v9748_v43 = vmul.f32 0.01, %v9273_v26  ;;  %vm9716_vm3 = vcmp.ge.f32.partialorder %v9273_v26, 0.0 }
0x112a   :  { %vm9719_vm15 = vcmp.ge.f32.partialorder %v9361_v33, 0.0  ;;  %v9751_v37 = vmul.f32 0.01, %v9361_v33  ;;  %9962 = vrot.lane.b32.xlu0 %v22669_v47, %s20035_s27  ;;  %v9356_v39 = vadd.f32 %v9355_v41, %v8321_v34 }
0x112b   :  { %v22681_v18 = vsel %vm9716_vm3, %v9273_v26, %v9748_v43  ;;  %v8341_v26 = vpop.permute.xlu1 %8340  ;;  %v8356_v43 = vpop.permute.xlu0 %8355 }
0x112c   :  { %v22673_v48 = vsel %vm9719_vm15, %v9361_v33, %v9751_v37  ;;  %v9750_v0 = vmul.f32 0.01, %v9356_v39  ;;  %vm9718_vm10 = vcmp.ge.f32.partialorder %v9356_v39, 0.0 }
0x112d   :  { %9966 = vrot.lane.b32.xlu1 %v22673_v48, %s20035_s27 }
0x112e   :  { %9866 = vrot.lane.b32.xlu0 %v22669_v47, %s20037_s29  ;;  %v22685_v10 = vsel %vm9718_vm10, %v9356_v39, %v9750_v0 }
0x1131   :  { %9870 = vrot.lane.b32.xlu1 %v22673_v48, %s20037_s29 }
0x1132   :  { %9960 = vrot.lane.b32.xlu0 %v22681_v18, %s20035_s27 }
0x1134   :  { %v18938_v62 = vpop.f32.mrf.mxu0 }
0x1135   :  { %v9444_v24 = vadd.f32 %v18938_v62, %v8336_v44  ;;  %9964 = vrot.lane.b32.xlu1 %v22685_v10, %s20035_s27 }
0x1136   :  { %v9438_v20 = vpop.f32.mrf.mxu0  ;;  %9864 = vrot.lane.b32.xlu0 %v22681_v18, %s20037_s29 }
0x1137   :  { %vm9721_vm7 = vcmp.ge.f32.partialorder %v9444_v24, 0.0  ;;  %v9753_v17 = vmul.f32 0.01, %v9444_v24  ;;  %v18947_v19 = vpop.f32.mrf.mxu1  ;;  %v9439_v41 = vadd.f32 %v9438_v20, %v8331_v15  ;;  %v8351_v20 = vpop.permute.xlu0 %8350 }
0x1138   :  { %v9527_v33 = vadd.f32 %v18947_v19, %v8346_v45  ;;  %v8366_v45 = vpop.permute.xlu1 %8365 }
0x1139   :  { %v9521_v37 = vpop.f32.mrf.mxu1  ;;  %9868 = vrot.lane.b32.xlu1 %v22685_v10, %s20037_s29  ;;  %v22693_v34 = vsel %vm9721_vm7, %v9444_v24, %v9753_v17  ;;  %v9752_v62 = vmul.f32 0.01, %v9439_v41  ;;  %vm9720_vm13 = vcmp.ge.f32.partialorder %v9439_v41, 0.0 }
0x113a   :  { %vm9723_vm14 = vcmp.ge.f32.partialorder %v9527_v33, 0.0  ;;  %v9755_v39 = vmul.f32 0.01, %v9527_v33  ;;  %9970 = vrot.lane.b32.xlu0 %v22693_v34, %s20035_s27  ;;  %v9522_v44 = vadd.f32 %v9521_v37, %v8341_v26 }
0x113b   :  { %v22705_v15 = vsel %vm9720_vm13, %v9439_v41, %v9752_v62 }
0x113c   :  { %v22697_v0 = vsel %vm9723_vm14, %v9527_v33, %v9755_v39  ;;  %v9754_v24 = vmul.f32 0.01, %v9522_v44  ;;  %vm9722_vm15 = vcmp.ge.f32.partialorder %v9522_v44, 0.0  ;;  %v8361_v33 = vpop.permute.xlu1 %8360 }
0x113d   :  { %9974 = vrot.lane.b32.xlu1 %v22697_v0, %s20035_s27 }
0x113e   :  { %9874 = vrot.lane.b32.xlu0 %v22693_v34, %s20037_s29  ;;  %v22709_v19 = vsel %vm9722_vm15, %v9522_v44, %v9754_v24 }
0x1141   :  { %9878 = vrot.lane.b32.xlu1 %v22697_v0, %s20037_s29 }
0x1142   :  { %9968 = vrot.lane.b32.xlu0 %v22705_v15, %s20035_s27 }
0x1144   :  { %v18956_v17 = vpop.f32.mrf.mxu0 }
0x1145   :  { %v9610_v26 = vadd.f32 %v18956_v17, %v8356_v43  ;;  %9972 = vrot.lane.b32.xlu1 %v22709_v19, %s20035_s27 }
0x1146   :  { %v9604_v37 = vpop.f32.mrf.mxu0  ;;  %9872 = vrot.lane.b32.xlu0 %v22705_v15, %s20037_s29  ;;  %v9923_v39 = vpop.permute.xlu0 %9922 }
0x1147   :  { %vm9725_vm3 = vcmp.ge.f32.partialorder %v9610_v26, 0.0  ;;  %v9757_v41 = vmul.f32 0.01, %v9610_v26  ;;  %v18965_v62 = vpop.f32.mrf.mxu1  ;;  %18967 = vmatpush3.msra.mxu0 %v9923_v39  ;;  %v9605_v12 = vadd.f32 %v9604_v37, %v8351_v20 }
0x1148   :  { %v9693_v5 = vadd.f32 %v18965_v62, %v8366_v45  ;;  %18968 = vmatprep.subr.mxu0 %v20028_v1 }
0x1149   :  { %v9687_v44 = vpop.f32.mrf.mxu1  ;;  %9876 = vrot.lane.b32.xlu1 %v22709_v19, %s20037_s29  ;;  %v22718_v43 = vsel %vm9725_vm3, %v9610_v26, %v9757_v41  ;;  %v9756_v45 = vmul.f32 0.01, %v9605_v12  ;;  %vm9724_vm7 = vcmp.ge.f32.partialorder %v9605_v12, 0.0 }
0x114a   :  { %vm9727_vm10 = vcmp.ge.f32.partialorder %v9693_v5, 0.0  ;;  %v9759_v24 = vmul.f32 0.01, %v9693_v5  ;;  %v9927_v17 = vpop.permute.xlu1 %9926  ;;  %9978 = vrot.lane.b32.xlu0 %v22718_v43, %s20035_s27  ;;  %v9827_v7 = vpop.permute.xlu0 %9826  ;;  %v9688_v9 = vadd.f32 %v9687_v44, %v8361_v33  ;;  %v272_v44 = vld [vmem:[%s24317_s3 + $0x64] sm:$0xf] }
0x114b   :  { %18982 = vmatpush3.msra.mxu1 %v9927_v17 }
0x114c   :  { %v22722_v39 = vsel %vm9727_vm10, %v9693_v5, %v9759_v24  ;;  %18983 = vmatprep.subr.mxu1 %v20028_v1  ;;  %v9758_v37 = vmul.f32 0.01, %v9688_v9  ;;  %vm9726_vm14 = vcmp.ge.f32.partialorder %v9688_v9, 0.0  ;;  %v22732_v5 = vsel %vm9724_vm7, %v9605_v12, %v9756_v45  ;;  %v327_v12 = vld [vmem:[%s24318_s4 + $0x60] sm:$0xf] }
0x114d   :  { %9982 = vrot.lane.b32.xlu1 %v22722_v39, %s20035_s27 }
0x114e   :  { %v9831_v20 = vpop.permute.xlu1 %9830  ;;  %9882 = vrot.lane.b32.xlu0 %v22718_v43, %s20037_s29  ;;  %v9921_v26 = vpop.permute.xlu0 %9920  ;;  %v22738_v62 = vsel %vm9726_vm14, %v9688_v9, %v9758_v37  ;;  %v271_v9 = vld [vmem:[%s24317_s3 + $0x60] sm:$0xf] }
0x114f   :  { %18969 = vmatpush3.msra.mxu0 %v9921_v26 }
0x1150   :  { %18970 = vmatprep.subr.mxu0 %v20028_v1 }
0x1151   :  { %9886 = vrot.lane.b32.xlu1 %v22722_v39, %s20037_s29  ;;  %18971 = vmatpush3.msra.mxu0 %v9827_v7 }
0x1152   :  { %v9925_v33 = vpop.permute.xlu1 %9924  ;;  %9976 = vrot.lane.b32.xlu0 %v22732_v5, %s20035_s27  ;;  %18972 = vmatprep.subr.mxu0 %v20028_v1  ;;  %v9825_v41 = vpop.permute.xlu0 %9824 }
0x1153   :  { %18984 = vmatpush3.msra.mxu1 %v9925_v33  ;;  %18973 = vmatpush3.msra.mxu0 %v9825_v41  ;;  %v332_v33 = vld [vmem:[%s24318_s4 + $0x74] sm:$0xf]  ;;  %v333_v41 = vld [vmem:[%s24318_s4 + $0x78] sm:$0xf] }
0x1154   :  { %18985 = vmatprep.subr.mxu1 %v20028_v1  ;;  %18974 = vmatprep.subr.mxu0 %v20028_v1 }
0x1155   :  { %18986 = vmatpush3.msra.mxu1 %v9831_v20  ;;  %9980 = vrot.lane.b32.xlu1 %v22738_v62, %s20035_s27  ;;  %v330_v20 = vld [vmem:[%s24318_s4 + $0x6c] sm:$0xf] }
0x1156   :  { %v9829_v7 = vpop.permute.xlu1 %9828  ;;  %18987 = vmatprep.subr.mxu1 %v20028_v1  ;;  %9880 = vrot.lane.b32.xlu0 %v22732_v5, %s20037_s29 }
0x1157   :  { %18975 = vmatpush3.msra.mxu0 %v22549_v46  ;;  %18988 = vmatpush3.msra.mxu1 %v9829_v7 }
0x1158   :  { %18976 = vmatprep.subr.mxu0 %v20028_v1  ;;  %18989 = vmatprep.subr.mxu1 %v20028_v1 }
0x1159   :  { %18977 = vmatpush3.msra.mxu0 %v22559_v42  ;;  %18990 = vmatpush3.msra.mxu1 %v22553_v56  ;;  %v328_v42 = vld [vmem:[%s24318_s4 + $0x64] sm:$0xf]  ;;  %v329_v56 = vld [vmem:[%s24318_s4 + $0x68] sm:$0xf] }
0x115a   :  { %9884 = vrot.lane.b32.xlu1 %v22738_v62, %s20037_s29  ;;  %18979 = vmatmul.mubr.msk.f32.vlgmr.msra.gmra.mxu0 %vm1253_vm11, %v271_v9  ;;  %v9931_v46 = vpop.permute.xlu0 %9930 }
0x115b   :  { %18991 = vmatprep.subr.mxu1 %v20028_v1  ;;  %10018 = vperm.xlu0 %19811, %v327_v12   ;;  %v9935_v24 = vpop.permute.xlu1 %9934  ;;  %v334_v12 = vld [vmem:[%s24318_s4 + $0x7c] sm:$0xf] }
0x115c   :  { %18996 = vmatprep.subr.mxu0 %v20028_v1  ;;  %18992 = vmatpush3.msra.mxu1 %v22565_v2  ;;  %v331_v2 = vld [vmem:[%s24318_s4 + $0x70] sm:$0xf] }
0x115d   :  { %18997 = vmatpush3.msra.mxu0 %v9931_v46  ;;  %18994 = vmatmul.mubr.msk.f32.vlgmr.msra.gmra.mxu1 %vm1253_vm11, %v272_v44  ;;  %v335_v46 = vld [vmem:[%s24318_s4 + $0x80] sm:$0xf]  ;;  %v273_v44 = vld [vmem:[%s24317_s3 + $0x68] sm:$0xf] }
0x115e   :  { %19011 = vmatprep.subr.mxu1 %v20028_v1  ;;  %10023 = vperm.xlu1 %19813, %v328_v42   ;;  %v9835_v17 = vpop.permute.xlu0 %9834 }
0x115f   :  { %19012 = vmatpush3.msra.mxu1 %v9935_v24  ;;  %10028 = vperm.xlu0 %19811, %v329_v56   ;;  %v9839_v45 = vpop.permute.xlu1 %9838  ;;  %v336_v56 = vld [vmem:[%s24318_s4 + $0x84] sm:$0xf] }
0x1160   :  { %18998 = vmatprep.subr.mxu0 %v20028_v1  ;;  %19013 = vmatprep.subr.mxu1 %v20028_v1 }
0x1161   :  { %19008 = vmatprep.mubr.msk.f32.mxu0 %vm20029_vm0, %v20028_v1  ;;  %19023 = vmatprep.mubr.msk.f32.mxu1 %vm20029_vm0, %v20028_v1 }
0x1162   :  { %10033 = vperm.xlu1 %19813, %v330_v20   ;;  %v9929_v26 = vpop.permute.xlu0 %9928 }
0x1163   :  { %10038 = vperm.xlu0 %19811, %v331_v2   ;;  %v9933_v37 = vpop.permute.xlu1 %9932  ;;  %18999 = vmatpush3.msra.mxu0 %v9929_v26  ;;  %v340_v26 = vld [vmem:[%s24318_s4 + $0x94] sm:$0xf] }
0x1164   :  { %19000 = vmatprep.subr.mxu0 %v20028_v1  ;;  %19014 = vmatpush3.msra.mxu1 %v9933_v37  ;;  %v341_v37 = vld [vmem:[%s24318_s4 + $0x98] sm:$0xf] }
0x1165   :  { %19001 = vmatpush3.msra.mxu0 %v9835_v17  ;;  %19015 = vmatprep.subr.mxu1 %v20028_v1 }
0x1166   :  { %10043 = vperm.xlu1 %19813, %v332_v33   ;;  %19016 = vmatpush3.msra.mxu1 %v9839_v45  ;;  %v9833_v7 = vpop.permute.xlu0 %9832  ;;  %v338_v45 = vld [vmem:[%s24318_s4 + $0x8c] sm:$0xf] }
0x1167   :  { %10048 = vperm.xlu0 %19811, %v333_v41   ;;  %19002 = vmatprep.subr.mxu0 %v20028_v1  ;;  %v9837_v9 = vpop.permute.xlu1 %9836 }
0x1168   :  { %19017 = vmatprep.subr.mxu1 %v20028_v1  ;;  %19003 = vmatpush3.msra.mxu0 %v9833_v7  ;;  %v342_v7 = vld [vmem:[%s24318_s4 + $0x9c] sm:$0xf] }
0x1169   :  { %19004 = vmatprep.subr.mxu0 %v20028_v1  ;;  %19018 = vmatpush3.msra.mxu1 %v9837_v9 }
0x116a   :  { %10053 = vperm.xlu1 %19813, %v334_v12   ;;  %19005 = vmatpush3.msra.mxu0 %v22573_v11  ;;  %v274_v11 = vld [vmem:[%s24317_s3 + $0x6c] sm:$0xf]  ;;  %v275_v12 = vld [vmem:[%s24317_s3 + $0x70] sm:$0xf] }
0x116b   :  { %19019 = vmatprep.subr.mxu1 %v20028_v1  ;;  %10058 = vperm.xlu0 %19811, %v335_v46   ;;  %v276_v46 = vld [vmem:[%s24317_s3 + $0x74] sm:$0xf] }
0x116c   :  { %19020 = vmatpush3.msra.mxu1 %v22577_v50  ;;  %19006 = vmatprep.subr.mxu0 %v20028_v1  ;;  %v9943_v24 = vpop.permute.xlu1 %9942  ;;  %v9939_v42 = vpop.permute.xlu0 %9938  ;;  %v337_v50 = vld [vmem:[%s24318_s4 + $0x88] sm:$0xf] }
0x116d   :  { %19021 = vmatprep.subr.mxu1 %v20028_v1  ;;  %19007 = vmatpush3.msra.mxu0 %v22585_v57 }
0x116e   :  { %19009 = vmatmul.mubr.msk.f32.vlgmr.msra.gmra.mxu0 %vm1253_vm11, %v273_v44  ;;  %19022 = vmatpush3.msra.mxu1 %v22589_v29  ;;  %v339_v29 = vld [vmem:[%s24318_s4 + $0x90] sm:$0xf] }
0x116f   :  { %19026 = vmatprep.subr.mxu0 %v20028_v1  ;;  %10063 = vperm.xlu1 %19813, %v336_v56   ;;  %v277_v56 = vld [vmem:[%s24317_s3 + $0x78] sm:$0xf] }
0x1170   :  { %19024 = vmatmul.mubr.msk.f32.vlgmr.msra.gmra.mxu1 %vm1253_vm11, %v274_v11  ;;  %19027 = vmatpush3.msra.mxu0 %v9939_v42  ;;  %v9847_v17 = vpop.permute.xlu1 %9846  ;;  %v9843_v57 = vpop.permute.xlu0 %9842 }
0x1171   :  { %19041 = vmatprep.subr.mxu1 %v20028_v1  ;;  %10068 = vperm.xlu0 %19811, %v337_v50   ;;  %v278_v50 = vld [vmem:[%s24317_s3 + $0x7c] sm:$0xf] }
0x1172   :  { %19042 = vmatpush3.msra.mxu1 %v9943_v24  ;;  %19028 = vmatprep.subr.mxu0 %v20028_v1 }
0x1173   :  { %10073 = vperm.xlu1 %19813, %v338_v45   ;;  %19043 = vmatprep.subr.mxu1 %v20028_v1 }
0x1174   :  { %v9941_v20 = vpop.permute.xlu1 %9940  ;;  %v9937_v2 = vpop.permute.xlu0 %9936  ;;  %19038 = vmatprep.mubr.msk.f32.mxu0 %vm20029_vm0, %v20028_v1  ;;  %19053 = vmatprep.mubr.msk.f32.mxu1 %vm20029_vm0, %v20028_v1 }
0x1175   :  { %10078 = vperm.xlu0 %19811, %v339_v29   ;;  %19029 = vmatpush3.msra.mxu0 %v9937_v2  ;;  %v279_v29 = vld [vmem:[%s24317_s3 + $0x80] sm:$0xf] }
0x1176   :  { %19044 = vmatpush3.msra.mxu1 %v9941_v20  ;;  %19030 = vmatprep.subr.mxu0 %v20028_v1 }
0x1177   :  { %10083 = vperm.xlu1 %19813, %v340_v26   ;;  %19045 = vmatprep.subr.mxu1 %v20028_v1 }
0x1178   :  { %19046 = vmatpush3.msra.mxu1 %v9847_v17  ;;  %19031 = vmatpush3.msra.mxu0 %v9843_v57  ;;  %v9845_v33 = vpop.permute.xlu1 %9844  ;;  %v9841_v41 = vpop.permute.xlu0 %9840 }
0x1179   :  { %10088 = vperm.xlu0 %19811, %v341_v37   ;;  %19047 = vmatprep.subr.mxu1 %v20028_v1 }
0x117a   :  { %19032 = vmatprep.subr.mxu0 %v20028_v1  ;;  %19048 = vmatpush3.msra.mxu1 %v9845_v33 }
0x117b   :  { %19033 = vmatpush3.msra.mxu0 %v9841_v41  ;;  %10093 = vperm.xlu1 %19813, %v342_v7   ;;  %v281_v41 = vld [vmem:[%s24317_s3 + $0x88] sm:$0xf] }
0x117c   :  { %19034 = vmatprep.subr.mxu0 %v20028_v1  ;;  %19049 = vmatprep.subr.mxu1 %v20028_v1  ;;  %v9947_v9 = vpop.permute.xlu0 %9946 }
0x117d   :  { %19035 = vmatpush3.msra.mxu0 %v22599_v30  ;;  %19050 = vmatpush3.msra.mxu1 %v22597_v23 }
0x117e   :  { %19036 = vmatprep.subr.mxu0 %v20028_v1  ;;  %19051 = vmatprep.subr.mxu1 %v20028_v1 }
0x117f   :  { %19037 = vmatpush3.msra.mxu0 %v22611_v35  ;;  %19052 = vmatpush3.msra.mxu1 %v22609_v52  ;;  %v9951_v44 = vpop.permute.xlu1 %9950 }
0x1180   :  { %19039 = vmatmul.mubr.msk.f32.vlgmr.msra.gmra.mxu0 %vm1253_vm11, %v275_v12  ;;  %19054 = vmatmul.mubr.msk.f32.vlgmr.msra.gmra.mxu1 %vm1253_vm11, %v276_v46  ;;  %v9851_v23 = vpop.permute.xlu0 %9850 }
0x1181   :  { %19056 = vmatprep.subr.mxu0 %v20028_v1  ;;  %19071 = vmatprep.subr.mxu1 %v20028_v1 }
0x1182   :  { %19057 = vmatpush3.msra.mxu0 %v9947_v9  ;;  %19072 = vmatpush3.msra.mxu1 %v9951_v44 }
0x1183   :  { %v9855_v30 = vpop.permute.xlu1 %9854  ;;  %19058 = vmatprep.subr.mxu0 %v20028_v1  ;;  %19073 = vmatprep.subr.mxu1 %v20028_v1 }
0x1184   :  { %v9945_v35 = vpop.permute.xlu0 %9944  ;;  %19068 = vmatprep.mubr.msk.f32.mxu0 %vm20029_vm0, %v20028_v1  ;;  %19083 = vmatprep.mubr.msk.f32.mxu1 %vm20029_vm0, %v20028_v1 }
0x1185   :  { %19059 = vmatpush3.msra.mxu0 %v9945_v35 }
0x1186   :  { %19060 = vmatprep.subr.mxu0 %v20028_v1 }
0x1187   :  { %19061 = vmatpush3.msra.mxu0 %v9851_v23  ;;  %v9949_v52 = vpop.permute.xlu1 %9948  ;;  %v283_v23 = vld [vmem:[%s24317_s3 + $0x90] sm:$0xf] }
0x1188   :  { %19062 = vmatprep.subr.mxu0 %v20028_v1  ;;  %v9849_v24 = vpop.permute.xlu0 %9848  ;;  %19074 = vmatpush3.msra.mxu1 %v9949_v52 }
0x1189   :  { %19063 = vmatpush3.msra.mxu0 %v9849_v24  ;;  %19075 = vmatprep.subr.mxu1 %v20028_v1 }
0x118a   :  { %19064 = vmatprep.subr.mxu0 %v20028_v1  ;;  %19076 = vmatpush3.msra.mxu1 %v9855_v30 }
0x118b   :  { %19065 = vmatpush3.msra.mxu0 %v22621_v16  ;;  %19077 = vmatprep.subr.mxu1 %v20028_v1  ;;  %v9853_v42 = vpop.permute.xlu1 %9852 }
0x118c   :  { %19066 = vmatprep.subr.mxu0 %v20028_v1  ;;  %19078 = vmatpush3.msra.mxu1 %v9853_v42  ;;  %v9955_v11 = vpop.permute.xlu0 %9954  ;;  %v285_v42 = vld [vmem:[%s24317_s3 + $0x98] sm:$0xf] }
0x118d   :  { %19067 = vmatpush3.msra.mxu0 %v22633_v58  ;;  %19079 = vmatprep.subr.mxu1 %v20028_v1 }
0x118e   :  { %19069 = vmatmul.mubr.msk.f32.vlgmr.msra.gmra.mxu0 %vm1253_vm11, %v277_v56  ;;  %19086 = vmatprep.subr.mxu0 %v20028_v1 }
0x118f   :  { %19080 = vmatpush3.msra.mxu1 %v22625_v4  ;;  %19087 = vmatpush3.msra.mxu0 %v9955_v11  ;;  %v9959_v16 = vpop.permute.xlu1 %9958 }
0x1190   :  { %19081 = vmatprep.subr.mxu1 %v20028_v1  ;;  %v9859_v17 = vpop.permute.xlu0 %9858  ;;  %19088 = vmatprep.subr.mxu0 %v20028_v1 }
0x1191   :  { %19082 = vmatpush3.msra.mxu1 %v22637_v27  ;;  %19098 = vmatprep.mubr.msk.f32.mxu0 %vm20029_vm0, %v20028_v1 }
0x1192   :  { %19084 = vmatmul.mubr.msk.f32.vlgmr.msra.gmra.mxu1 %vm1253_vm11, %v278_v50  ;;  %19101 = vmatprep.subr.mxu1 %v20028_v1 }
0x1193   :  { %19102 = vmatpush3.msra.mxu1 %v9959_v16  ;;  %v9863_v4 = vpop.permute.xlu1 %9862  ;;  %19113 = vmatprep.mubr.msk.f32.mxu1 %vm20029_vm0, %v20028_v1 }
0x1194   :  { %v9953_v58 = vpop.permute.xlu0 %9952  ;;  %19103 = vmatprep.subr.mxu1 %v20028_v1 }
0x1195   :  { %19089 = vmatpush3.msra.mxu0 %v9953_v58 }
0x1196   :  { %19090 = vmatprep.subr.mxu0 %v20028_v1 }
0x1197   :  { %v9957_v57 = vpop.permute.xlu1 %9956  ;;  %19091 = vmatpush3.msra.mxu0 %v9859_v17 }
0x1198   :  { %19092 = vmatprep.subr.mxu0 %v20028_v1  ;;  %19104 = vmatpush3.msra.mxu1 %v9957_v57  ;;  %v9857_v27 = vpop.permute.xlu0 %9856 }
0x1199   :  { %19093 = vmatpush3.msra.mxu0 %v9857_v27  ;;  %19105 = vmatprep.subr.mxu1 %v20028_v1 }
0x119a   :  { %19094 = vmatprep.subr.mxu0 %v20028_v1  ;;  %19106 = vmatpush3.msra.mxu1 %v9863_v4 }
0x119b   :  { %19107 = vmatprep.subr.mxu1 %v20028_v1  ;;  %v9861_v45 = vpop.permute.xlu1 %9860  ;;  %19095 = vmatpush3.msra.mxu0 %v22645_v63  ;;  %v280_v63 = vld [vmem:[%s24317_s3 + $0x84] sm:$0xf] }
0x119c   :  { %19096 = vmatprep.subr.mxu0 %v20028_v1  ;;  %19108 = vmatpush3.msra.mxu1 %v9861_v45  ;;  %v9963_v20 = vpop.permute.xlu0 %9962 }
0x119d   :  { %19097 = vmatpush3.msra.mxu0 %v22657_v32  ;;  %19109 = vmatprep.subr.mxu1 %v20028_v1 }
0x119e   :  { %19099 = vmatmul.mubr.msk.f32.vlgmr.msra.gmra.mxu0 %vm1253_vm11, %v279_v29  ;;  %19110 = vmatpush3.msra.mxu1 %v22649_v49 }
0x119f   :  { %19116 = vmatprep.subr.mxu0 %v20028_v1  ;;  %19111 = vmatprep.subr.mxu1 %v20028_v1  ;;  %v9967_v2 = vpop.permute.xlu1 %9966 }
0x11a0   :  { %19117 = vmatpush3.msra.mxu0 %v9963_v20  ;;  %19112 = vmatpush3.msra.mxu1 %v22661_v22  ;;  %v9867_v26 = vpop.permute.xlu0 %9866 }
0x11a1   :  { %19114 = vmatmul.mubr.msk.f32.vlgmr.msra.gmra.mxu1 %vm1253_vm11, %v280_v63  ;;  %19131 = vmatprep.subr.mxu1 %v20028_v1 }
0x11a2   :  { %19132 = vmatpush3.msra.mxu1 %v9967_v2  ;;  %19118 = vmatprep.subr.mxu0 %v20028_v1 }
0x11a3   :  { %v9871_v49 = vpop.permute.xlu1 %9870  ;;  %19133 = vmatprep.subr.mxu1 %v20028_v1  ;;  %19128 = vmatprep.mubr.msk.f32.mxu0 %vm20029_vm0, %v20028_v1 }
0x11a4   :  { %v9961_v32 = vpop.permute.xlu0 %9960  ;;  %19143 = vmatprep.mubr.msk.f32.mxu1 %vm20029_vm0, %v20028_v1 }
0x11a5   :  { %19119 = vmatpush3.msra.mxu0 %v9961_v32 }
0x11a6   :  { %19120 = vmatprep.subr.mxu0 %v20028_v1 }
0x11a7   :  { %v9965_v22 = vpop.permute.xlu1 %9964  ;;  %19121 = vmatpush3.msra.mxu0 %v9867_v26 }
0x11a8   :  { %19122 = vmatprep.subr.mxu0 %v20028_v1  ;;  %19134 = vmatpush3.msra.mxu1 %v9965_v22  ;;  %v9865_v37 = vpop.permute.xlu0 %9864 }
0x11a9   :  { %19123 = vmatpush3.msra.mxu0 %v9865_v37  ;;  %19135 = vmatprep.subr.mxu1 %v20028_v1 }
0x11aa   :  { %19124 = vmatprep.subr.mxu0 %v20028_v1  ;;  %19136 = vmatpush3.msra.mxu1 %v9871_v49 }
0x11ab   :  { %19137 = vmatprep.subr.mxu1 %v20028_v1  ;;  %v9869_v33 = vpop.permute.xlu1 %9868  ;;  %19125 = vmatpush3.msra.mxu0 %v22669_v47  ;;  %v282_v47 = vld [vmem:[%s24317_s3 + $0x8c] sm:$0xf] }
0x11ac   :  { %19126 = vmatprep.subr.mxu0 %v20028_v1  ;;  %19138 = vmatpush3.msra.mxu1 %v9869_v33  ;;  %v9971_v7 = vpop.permute.xlu0 %9970 }
0x11ad   :  { %19127 = vmatpush3.msra.mxu0 %v22681_v18  ;;  %19139 = vmatprep.subr.mxu1 %v20028_v1 }
0x11ae   :  { %19129 = vmatmul.mubr.msk.f32.vlgmr.msra.gmra.mxu0 %vm1253_vm11, %v281_v41  ;;  %19140 = vmatpush3.msra.mxu1 %v22673_v48 }
0x11af   :  { %19146 = vmatprep.subr.mxu0 %v20028_v1  ;;  %19141 = vmatprep.subr.mxu1 %v20028_v1  ;;  %v9975_v9 = vpop.permute.xlu1 %9974 }
0x11b0   :  { %19147 = vmatpush3.msra.mxu0 %v9971_v7  ;;  %19142 = vmatpush3.msra.mxu1 %v22685_v10  ;;  %v9875_v12 = vpop.permute.xlu0 %9874 }
0x11b1   :  { %19144 = vmatmul.mubr.msk.f32.vlgmr.msra.gmra.mxu1 %vm1253_vm11, %v282_v47  ;;  %19161 = vmatprep.subr.mxu1 %v20028_v1 }
0x11b2   :  { %19162 = vmatpush3.msra.mxu1 %v9975_v9  ;;  %19148 = vmatprep.subr.mxu0 %v20028_v1 }
0x11b3   :  { %v9879_v48 = vpop.permute.xlu1 %9878  ;;  %19163 = vmatprep.subr.mxu1 %v20028_v1  ;;  %19158 = vmatprep.mubr.msk.f32.mxu0 %vm20029_vm0, %v20028_v1 }
0x11b4   :  { %v9969_v18 = vpop.permute.xlu0 %9968  ;;  %19173 = vmatprep.mubr.msk.f32.mxu1 %vm20029_vm0, %v20028_v1 }
0x11b5   :  { %19149 = vmatpush3.msra.mxu0 %v9969_v18 }
0x11b6   :  { %19150 = vmatprep.subr.mxu0 %v20028_v1 }
0x11b7   :  { %v9973_v10 = vpop.permute.xlu1 %9972  ;;  %19151 = vmatpush3.msra.mxu0 %v9875_v12 }
0x11b8   :  { %19152 = vmatprep.subr.mxu0 %v20028_v1  ;;  %19164 = vmatpush3.msra.mxu1 %v9973_v10  ;;  %v9873_v46 = vpop.permute.xlu0 %9872 }
0x11b9   :  { %19153 = vmatpush3.msra.mxu0 %v9873_v46  ;;  %19165 = vmatprep.subr.mxu1 %v20028_v1 }
0x11ba   :  { %19154 = vmatprep.subr.mxu0 %v20028_v1  ;;  %19166 = vmatpush3.msra.mxu1 %v9879_v48 }
0x11bb   :  { %19167 = vmatprep.subr.mxu1 %v20028_v1  ;;  %v9877_v44 = vpop.permute.xlu1 %9876  ;;  %19155 = vmatpush3.msra.mxu0 %v22693_v34  ;;  %v284_v34 = vld [vmem:[%s24317_s3 + $0x94] sm:$0xf] }
0x11bc   :  { %19156 = vmatprep.subr.mxu0 %v20028_v1  ;;  %19168 = vmatpush3.msra.mxu1 %v9877_v44  ;;  %v9979_v30 = vpop.permute.xlu0 %9978 }
0x11bd   :  { %19157 = vmatpush3.msra.mxu0 %v22705_v15  ;;  %19169 = vmatprep.subr.mxu1 %v20028_v1 }
0x11be   :  { %19159 = vmatmul.mubr.msk.f32.vlgmr.msra.gmra.mxu0 %vm1253_vm11, %v283_v23  ;;  %19170 = vmatpush3.msra.mxu1 %v22697_v0 }
0x11bf   :  { %19176 = vmatprep.subr.mxu0 %v20028_v1  ;;  %19171 = vmatprep.subr.mxu1 %v20028_v1  ;;  %v9983_v35 = vpop.permute.xlu1 %9982 }
0x11c0   :  { %19177 = vmatpush3.msra.mxu0 %v9979_v30  ;;  %19172 = vmatpush3.msra.mxu1 %v22709_v19  ;;  %v9883_v52 = vpop.permute.xlu0 %9882  ;;  %v24332_v30 = vmov 1  }
0x11c1   :  { %19174 = vmatmul.mubr.msk.f32.vlgmr.msra.gmra.mxu1 %vm1253_vm11, %v284_v34  ;;  %19191 = vmatprep.subr.mxu1 %v20028_v1 }
0x11c2   :  { %19192 = vmatpush3.msra.mxu1 %v9983_v35  ;;  %19178 = vmatprep.subr.mxu0 %v20028_v1 }
0x11c3   :  { %v9887_v0 = vpop.permute.xlu1 %9886  ;;  %19193 = vmatprep.subr.mxu1 %v20028_v1  ;;  %19188 = vmatprep.mubr.msk.f32.mxu0 %vm20029_vm0, %v20028_v1 }
0x11c4   :  { %v9977_v15 = vpop.permute.xlu0 %9976  ;;  %19203 = vmatprep.mubr.msk.f32.mxu1 %vm20029_vm0, %v20028_v1 }
0x11c5   :  { %19179 = vmatpush3.msra.mxu0 %v9977_v15 }
0x11c6   :  { %19180 = vmatprep.subr.mxu0 %v20028_v1 }
0x11c7   :  { %v9981_v19 = vpop.permute.xlu1 %9980  ;;  %19181 = vmatpush3.msra.mxu0 %v9883_v52 }
0x11c8   :  { %19182 = vmatprep.subr.mxu0 %v20028_v1  ;;  %19194 = vmatpush3.msra.mxu1 %v9981_v19  ;;  %v9881_v24 = vpop.permute.xlu0 %9880 }
0x11c9   :  { %19183 = vmatpush3.msra.mxu0 %v9881_v24  ;;  %19195 = vmatprep.subr.mxu1 %v20028_v1 }
0x11ca   :  { %19184 = vmatprep.subr.mxu0 %v20028_v1  ;;  %19196 = vmatpush3.msra.mxu1 %v9887_v0 }
0x11cb   :  { %19197 = vmatprep.subr.mxu1 %v20028_v1  ;;  %19185 = vmatpush3.msra.mxu0 %v22718_v43  ;;  %v286_v43 = vld [vmem:[%s24317_s3 + $0x9c] sm:$0xf] }
0x11cc   :  { %v9885_v56 = vpop.permute.xlu1 %9884  ;;  %19186 = vmatprep.subr.mxu0 %v20028_v1 }
0x11cd   :  { %19198 = vmatpush3.msra.mxu1 %v9885_v56  ;;  %19187 = vmatpush3.msra.mxu0 %v22732_v5 }
0x11ce   :  { %19199 = vmatprep.subr.mxu1 %v20028_v1  ;;  %19189 = vmatmul.mubr.msk.f32.vlgmr.msra.gmra.mxu0 %vm1253_vm11, %v285_v42 }
0x11cf   :  { %19200 = vmatpush3.msra.mxu1 %v22722_v39 }
0x11d0   :  { %19201 = vmatprep.subr.mxu1 %v20028_v1 }
0x11d1   :  { %19202 = vmatpush3.msra.mxu1 %v22738_v62 }
0x11d2   :  { %19204 = vmatmul.mubr.msk.f32.vlgmr.msra.gmra.mxu1 %vm1253_vm11, %v286_v43 }
0x11d6   :  { %v10019_v11 = vpop.permute.xlu0 %10018 }
0x11d9   :  { %v10024_v17 = vpop.permute.xlu1 %10023 }
0x11da   :  { %v10029_v29 = vpop.permute.xlu0 %10028 }
0x11dd   :  { %v10034_v62 = vpop.permute.xlu1 %10033 }
0x11de   :  { %v10039_v9 = vpop.permute.xlu0 %10038 }
0x11e1   :  { %v10044_v12 = vpop.permute.xlu1 %10043 }
0x11e2   :  { %v10049_v0 = vpop.permute.xlu0 %10048 }
0x121a   :  { %v10165_v16 = vpop.f32.mrf.mxu0 }
0x121b   :  { %v10166_v50 = vadd.f32 %v10165_v16, %v10019_v11 }
0x121c   :  { %v18980_v5 = vpop.f32.mrf.mxu0 }
0x121d   :  { %19910 = vtanh.f32 %v10166_v50  ;;  %v10238_v4 = vpop.f32.mrf.mxu1  ;;  %v10054_v50 = vpop.permute.xlu1 %10053 }
0x121e   :  { %v10239_v58 = vadd.f32 %v10238_v4, %v10024_v17 }
0x121f   :  { %v18995_v57 = vpop.f32.mrf.mxu1 }
0x1220   :  { %19912 = vtanh.f32 %v10239_v58  ;;  %v10059_v57 = vpop.permute.xlu0 %10058 }
0x122a   :  { %v19911_v39 = vpop.eup %19910 }
0x122b   :  { %v11280_v27 = vmul.f32 1.442695, %v19911_v39 }
0x122d   :  { %v19913_v45 = vpop.eup %19912  ;;  %19914 = vpow2.f32 %v11280_v27 }
0x122e   :  { %v11282_v20 = vmul.f32 1.442695, %v19913_v45  ;;  %v10311_v63 = vpop.f32.mrf.mxu0 }
0x122f   :  { %v10312_v2 = vadd.f32 %v10311_v63, %v10029_v29  ;;  %v10064_v63 = vpop.permute.xlu1 %10063 }
0x1230   :  { %19916 = vpow2.f32 %v11282_v20  ;;  %v10384_v26 = vpop.f32.mrf.mxu1  ;;  %v19010_v49 = vpop.f32.mrf.mxu0 }
0x1231   :  { %19918 = vtanh.f32 %v10312_v2  ;;  %v10385_v32 = vadd.f32 %v10384_v26, %v10034_v62 }
0x1232   :  { %v19025_v22 = vpop.f32.mrf.mxu1 }
0x1233   :  { %19920 = vtanh.f32 %v10385_v32 }
0x123a   :  { %v19915_v37 = vpop.eup %19914 }
0x123b   :  { %v23008_v33 = vmul.f32 %v19915_v37, %v21995_v14 }
0x123d   :  { %v19917_v41 = vpop.eup %19916  ;;  %11330 = vperm.xlu0 %19811, %v23008_v33  }
0x123e   :  { %v19919_v7 = vpop.eup %19918  ;;  %v23012_v47 = vmul.f32 %v19917_v41, %v21997_v61  ;;  %v24333_v61 = vmov 0  }
0x123f   :  { %v11284_v48 = vmul.f32 1.442695, %v19919_v7 }
0x1240   :  { %v19921_v18 = vpop.eup %19920  ;;  %v10457_v10 = vpop.f32.mrf.mxu0  ;;  %11335 = vperm.xlu1 %19813, %v23012_v47  }
0x1241   :  { %v10530_v46 = vpop.f32.mrf.mxu1  ;;  %19922 = vpow2.f32 %v11284_v48  ;;  %v11286_v44 = vmul.f32 1.442695, %v19921_v18  ;;  %v10458_v23 = vadd.f32 %v10457_v10, %v10039_v9  ;;  %19814 = vset.pattern.permute.xlu0 %v24332_v30 }
0x1242   :  { %v10531_v14 = vadd.f32 %v10530_v46, %v10044_v12  ;;  %11409 = vperm.xlu0 %19814, %v23008_v33   ;;  %v19040_v35 = vpop.f32.mrf.mxu0 }
0x1243   :  { %v19055_v34 = vpop.f32.mrf.mxu1  ;;  %19924 = vpow2.f32 %v11286_v44  ;;  %v10074_v44 = vpop.permute.xlu1 %10073 }
0x1244   :  { %19926 = vtanh.f32 %v10458_v23  ;;  %19815 = vset.pattern.permute.xlu1 %v24332_v30 }
0x1245   :  { %19928 = vtanh.f32 %v10531_v14  ;;  %11413 = vperm.xlu1 %19815, %v23012_v47  }
0x1246   :  { %11474 = vrot.lane.b32.xlu0 %v23012_v47, %s20033_s0 }
0x1247   :  { %19817 = vset.pattern.permute.xlu0 %v24333_v61 }
0x1249   :  { %11472 = vrot.lane.b32.xlu1 %v23008_v33, %s20033_s0 }
0x124a   :  { %19816 = vset.pattern.permute.xlu1 %v24333_v61 }
0x124e   :  { %v19923_v52 = vpop.eup %19922  ;;  %v10603_v15 = vpop.f32.mrf.mxu0 }
0x124f   :  { %v10604_v19 = vadd.f32 %v10603_v15, %v10049_v0  ;;  %v23026_v24 = vmul.f32 %v19923_v52, %v22003_v21 }
0x1250   :  { %v19925_v42 = vpop.eup %19924  ;;  %v19070_v56 = vpop.f32.mrf.mxu0 }
0x1251   :  { %v19927_v43 = vpop.eup %19926  ;;  %19930 = vtanh.f32 %v10604_v19  ;;  %11340 = vperm.xlu1 %19816, %v23026_v24   ;;  %v23030_v11 = vmul.f32 %v19925_v42, %v22005_v59 }
0x1252   :  { %v19929_v16 = vpop.eup %19928  ;;  %v11288_v5 = vmul.f32 1.442695, %v19927_v43  ;;  %v10676_v17 = vpop.f32.mrf.mxu1 }
0x1253   :  { %v11290_v4 = vmul.f32 1.442695, %v19929_v16  ;;  %11345 = vperm.xlu0 %19817, %v23030_v11   ;;  %v10677_v58 = vadd.f32 %v10676_v17, %v10054_v50 }
0x1254   :  { %19932 = vpow2.f32 %v11288_v5  ;;  %v19085_v21 = vpop.f32.mrf.mxu1  ;;  %v10084_v5 = vpop.permute.xlu1 %10083 }
0x1255   :  { %19934 = vpow2.f32 %v11290_v4  ;;  %19818 = vset.pattern.permute.xlu1 %v24332_v30 }
0x1256   :  { %19936 = vtanh.f32 %v10677_v58  ;;  %11417 = vperm.xlu1 %19818, %v23026_v24  }
0x1257   :  { %11476 = vrot.lane.b32.xlu0 %v23026_v24, %s20033_s0 }
0x125a   :  { %11421 = vperm.xlu1 %19818, %v23030_v11  }
0x125e   :  { %v19931_v59 = vpop.eup %19930  ;;  %11478 = vrot.lane.b32.xlu1 %v23030_v11, %s20033_s0  ;;  %v10749_v39 = vpop.f32.mrf.mxu0 }
0x125f   :  { %v11292_v27 = vmul.f32 1.442695, %v19931_v59  ;;  %v10750_v45 = vadd.f32 %v10749_v39, %v10059_v57  ;;  %19819 = vset.pattern.permute.xlu1 %v24333_v61 }
0x1260   :  { %v19100_v29 = vpop.f32.mrf.mxu0 }
0x1261   :  { %v19933_v20 = vpop.eup %19932  ;;  %19938 = vpow2.f32 %v11292_v27  ;;  %v10822_v62 = vpop.f32.mrf.mxu1 }
0x1262   :  { %v19935_v2 = vpop.eup %19934  ;;  %19940 = vtanh.f32 %v10750_v45  ;;  %v23042_v26 = vmul.f32 %v19933_v20, %v22009_v31  ;;  %v10823_v49 = vadd.f32 %v10822_v62, %v10064_v63 }
0x1263   :  { %v19937_v32 = vpop.eup %19936  ;;  %v23045_v22 = vmul.f32 %v19935_v2, %v22011_v3  ;;  %v19115_v37 = vpop.f32.mrf.mxu1 }
0x1264   :  { %v11294_v41 = vmul.f32 1.442695, %v19937_v32  ;;  %11350 = vperm.xlu0 %19817, %v23042_v26   ;;  %19942 = vtanh.f32 %v10823_v49  ;;  %v10069_v3 = vpop.permute.xlu0 %10068  ;;  %v10094_v49 = vpop.permute.xlu1 %10093 }
0x1265   :  { %11355 = vperm.xlu1 %19819, %v23045_v22  }
0x1266   :  { %19944 = vpow2.f32 %v11294_v41 }
0x1268   :  { %19820 = vset.pattern.permute.xlu0 %v24332_v30  ;;  %v10079_v15 = vpop.permute.xlu0 %10078 }
0x1269   :  { %19821 = vset.pattern.permute.xlu1 %v24332_v30  ;;  %11425 = vperm.xlu0 %19820, %v23042_v26  }
0x126a   :  { %11429 = vperm.xlu1 %19821, %v23045_v22  }
0x126d   :  { %11482 = vrot.lane.b32.xlu0 %v23045_v22, %s20033_s0 }
0x126e   :  { %v19939_v31 = vpop.eup %19938  ;;  %11480 = vrot.lane.b32.xlu1 %v23042_v26, %s20033_s0  ;;  %v10895_v7 = vpop.f32.mrf.mxu0  ;;  %19823 = vset.pattern.permute.xlu0 %v24333_v61 }
0x126f   :  { %v19941_v9 = vpop.eup %19940  ;;  %v10896_v12 = vadd.f32 %v10895_v7, %v10069_v3  ;;  %19822 = vset.pattern.permute.xlu1 %v24333_v61  ;;  %v23060_v48 = vmul.f32 %v19939_v31, %v22018_v40 }
0x1270   :  { %v11304_v18 = vmul.f32 1.442695, %v19941_v9  ;;  %v19130_v10 = vpop.f32.mrf.mxu0 }
0x1271   :  { %v19943_v46 = vpop.eup %19942  ;;  %19946 = vtanh.f32 %v10896_v12  ;;  %v10968_v23 = vpop.f32.mrf.mxu1 }
0x1272   :  { %19948 = vpow2.f32 %v11304_v18  ;;  %v11306_v14 = vmul.f32 1.442695, %v19943_v46  ;;  %11360 = vperm.xlu1 %19822, %v23060_v48   ;;  %v10969_v34 = vadd.f32 %v10968_v23, %v10074_v44 }
0x1273   :  { %v19945_v35 = vpop.eup %19944  ;;  %v19145_v52 = vpop.f32.mrf.mxu1 }
0x1274   :  { %19950 = vpow2.f32 %v11306_v14  ;;  %v23064_v0 = vmul.f32 %v19945_v35, %v22020_v55 }
0x1275   :  { %19952 = vtanh.f32 %v10969_v34 }
0x1276   :  { %11365 = vperm.xlu0 %19823, %v23064_v0   ;;  %19824 = vset.pattern.permute.xlu1 %v24332_v30 }
0x1277   :  { %11433 = vperm.xlu1 %19824, %v23060_v48  }
0x127a   :  { %11484 = vrot.lane.b32.xlu0 %v23060_v48, %s20033_s0 }
0x127b   :  { %11437 = vperm.xlu1 %19824, %v23064_v0  }
0x127e   :  { %v19947_v40 = vpop.eup %19946  ;;  %v11041_v19 = vpop.f32.mrf.mxu0 }
0x127f   :  { %v19949_v42 = vpop.eup %19948  ;;  %v11308_v56 = vmul.f32 1.442695, %v19947_v40  ;;  %11486 = vrot.lane.b32.xlu1 %v23064_v0, %s20033_s0  ;;  %v11042_v55 = vadd.f32 %v11041_v19, %v10079_v15 }
0x1280   :  { %v23075_v43 = vmul.f32 %v19949_v42, %v21945_v25  ;;  %v19160_v16 = vpop.f32.mrf.mxu0  ;;  %19825 = vset.pattern.permute.xlu1 %v24333_v61  ;;  %v10089_v25 = vpop.permute.xlu0 %10088 }
0x1281   :  { %v19951_v50 = vpop.eup %19950  ;;  %19954 = vpow2.f32 %v11308_v56  ;;  %v11114_v17 = vpop.f32.mrf.mxu1 }
0x1282   :  { %v19953_v4 = vpop.eup %19952  ;;  %19956 = vtanh.f32 %v11042_v55  ;;  %v11115_v58 = vadd.f32 %v11114_v17, %v10084_v5  ;;  %11370 = vperm.xlu0 %19823, %v23075_v43   ;;  %v23080_v21 = vmul.f32 %v19951_v50, %v21943_v13  ;;  %v105_v55 = vld [vmem:[%s24315_s1 + $0x290] sm:$0xff] }
0x1283   :  { %v11310_v59 = vmul.f32 1.442695, %v19953_v4  ;;  %v19175_v57 = vpop.f32.mrf.mxu1  ;;  %19221 = vmatprep.mubr.msk.f32.mxu1 %vm820_vm8, %v105_v55 }
0x1284   :  { %19958 = vtanh.f32 %v11115_v58  ;;  %11375 = vperm.xlu1 %19825, %v23080_v21  }
0x1285   :  { %19960 = vpow2.f32 %v11310_v59 }
0x1286   :  { %19826 = vset.pattern.permute.xlu0 %v24332_v30 }
0x1287   :  { %11441 = vperm.xlu0 %19826, %v23075_v43  }
0x1288   :  { %19827 = vset.pattern.permute.xlu1 %v24332_v30 }
0x1289   :  { %11445 = vperm.xlu1 %19827, %v23080_v21  }
0x128b   :  { %11490 = vrot.lane.b32.xlu0 %v23080_v21, %s20033_s0 }
0x128c   :  { %19829 = vset.pattern.permute.xlu0 %v24333_v61 }
0x128d   :  { %11488 = vrot.lane.b32.xlu1 %v23075_v43, %s20033_s0 }
0x128e   :  { %v19955_v13 = vpop.eup %19954  ;;  %v11187_v39 = vpop.f32.mrf.mxu0  ;;  %19828 = vset.pattern.permute.xlu1 %v24333_v61 }
0x128f   :  { %v19957_v27 = vpop.eup %19956  ;;  %v11188_v45 = vadd.f32 %v11187_v39, %v10089_v25  ;;  %v23094_v29 = vmul.f32 %v19955_v13, %v21959_v60 }
0x1290   :  { %v11312_v20 = vmul.f32 1.442695, %v19957_v27  ;;  %v19190_v63 = vpop.f32.mrf.mxu0 }
0x1291   :  { %v19959_v62 = vpop.eup %19958  ;;  %19962 = vtanh.f32 %v11188_v45  ;;  %11380 = vperm.xlu1 %19828, %v23094_v29  }
0x1292   :  { %v19961_v2 = vpop.eup %19960  ;;  %19964 = vpow2.f32 %v11312_v20  ;;  %v11314_v32 = vmul.f32 1.442695, %v19959_v62  ;;  %v11260_v37 = vpop.f32.mrf.mxu1 }
0x1293   :  { %v11261_v41 = vadd.f32 %v11260_v37, %v10094_v49  ;;  %v23098_v31 = vmul.f32 %v19961_v2, %v21962_v28 }
0x1294   :  { %19966 = vpow2.f32 %v11314_v32  ;;  %v19205_v3 = vpop.f32.mrf.mxu1 }
0x1295   :  { %19968 = vtanh.f32 %v11261_v41  ;;  %11385 = vperm.xlu0 %19829, %v23098_v31   ;;  %19830 = vset.pattern.permute.xlu1 %v24332_v30 }
0x1296   :  { %11449 = vperm.xlu1 %19830, %v23094_v29  }
0x1299   :  { %11492 = vrot.lane.b32.xlu0 %v23094_v29, %s20033_s0 }
0x129a   :  { %11453 = vperm.xlu1 %19830, %v23098_v31  }
0x129e   :  { %v19963_v60 = vpop.eup %19962  ;;  %11494 = vrot.lane.b32.xlu1 %v23098_v31, %s20033_s0 }
0x129f   :  { %v19965_v28 = vpop.eup %19964  ;;  %v11316_v7 = vmul.f32 1.442695, %v19963_v60  ;;  %19831 = vset.pattern.permute.xlu1 %v24333_v61 }
0x12a0   :  { %v23110_v9 = vmul.f32 %v19965_v28, %v21973_v8 }
0x12a1   :  { %v19967_v12 = vpop.eup %19966  ;;  %19970 = vpow2.f32 %v11316_v7 }
0x12a2   :  { %v19969_v18 = vpop.eup %19968  ;;  %11390 = vperm.xlu0 %19829, %v23110_v9   ;;  %v23114_v10 = vmul.f32 %v19967_v12, %v21975_v38 }
0x12a3   :  { %v11318_v46 = vmul.f32 1.442695, %v19969_v18 }
0x12a4   :  { %11395 = vperm.xlu1 %19831, %v23114_v10  }
0x12a5   :  { %19972 = vpow2.f32 %v11318_v46 }
0x12a6   :  { %19832 = vset.pattern.permute.xlu0 %v24332_v30 }
0x12a7   :  { %11457 = vperm.xlu0 %19832, %v23110_v9  }
0x12a8   :  { %19833 = vset.pattern.permute.xlu1 %v24332_v30 }
0x12a9   :  { %11461 = vperm.xlu1 %19833, %v23114_v10  }
0x12ab   :  { %11498 = vrot.lane.b32.xlu0 %v23114_v10, %s20033_s0 }
0x12ac   :  { %19835 = vset.pattern.permute.xlu0 %v24333_v61 }
0x12ad   :  { %11496 = vrot.lane.b32.xlu1 %v23110_v9, %s20033_s0 }
0x12ae   :  { %v19971_v8 = vpop.eup %19970  ;;  %19834 = vset.pattern.permute.xlu1 %v24333_v61 }
0x12af   :  { %v23128_v38 = vmul.f32 %v19971_v8, %v21989_v36 }
0x12b1   :  { %11400 = vperm.xlu1 %19834, %v23128_v38  }
0x12b2   :  { %v19973_v44 = vpop.eup %19972 }
0x12b3   :  { %v23132_v23 = vmul.f32 %v19973_v44, %v21991_v54 }
0x12b5   :  { %11405 = vperm.xlu0 %19835, %v23132_v23   ;;  %19836 = vset.pattern.permute.xlu1 %v24332_v30 }
0x12b6   :  { %11465 = vperm.xlu1 %19836, %v23128_v38  }
0x12b8   :  { %v11331_v14 = vpop.permute.xlu0 %11330 }
0x12b9   :  { %11500 = vrot.lane.b32.xlu0 %v23128_v38, %s20033_s0 }
0x12ba   :  { %11469 = vperm.xlu1 %19836, %v23132_v23  }
0x12bb   :  { %v11336_v36 = vpop.permute.xlu1 %11335 }
0x12bd   :  { %v11410_v34 = vpop.permute.xlu0 %11409 }
0x12be   :  { %11502 = vrot.lane.b32.xlu1 %v23132_v23, %s20033_s0 }
0x12bf   :  { %19837 = vset.pattern.permute.xlu1 %v24333_v61  ;;  %v103_v61 = vld [vmem:[%s24315_s1 + $0x280] sm:$0xff] }
0x12c0   :  { %v11414_v54 = vpop.permute.xlu1 %11413  ;;  %19212 = vmatprep.mubr.msk.f32.mxu0 %vm820_vm8, %v103_v61 }
0x12c1   :  { %v11475_v35 = vpop.permute.xlu0 %11474 }
0x12c2   :  { %v11521_v52 = vsel %vm709_vm6, %v11336_v36, %v11475_v35 }
0x12c3   :  { %v23145_v30 = vsel %vm7951_vm5, %v11521_v52, %v11414_v54 }
0x12c4   :  { %v11473_v40 = vpop.permute.xlu1 %11472  ;;  %11730 = vrot.lane.b32.xlu1 %v23145_v30, %s20034_s22  ;;  %v11569_v42 = vrot.slane %v23145_v30, 4 }
0x12c5   :  { %v11520_v15 = vsel %vm709_vm6, %v11331_v14, %v11473_v40 }
0x12c6   :  { %v23151_v19 = vsel %vm7951_vm5, %v11520_v15, %v11410_v34 }
0x12c7   :  { %11728 = vrot.lane.b32.xlu0 %v23151_v19, %s20034_s22  ;;  %v11568_v16 = vrot.slane %v23151_v19, 4 }
0x12c8   :  { %11634 = vrot.lane.b32.xlu1 %v23145_v30, %s20035_s27 }
0x12cb   :  { %11632 = vrot.lane.b32.xlu0 %v23151_v19, %s20035_s27 }
0x12cc   :  { %v11341_v56 = vpop.permute.xlu1 %11340  ;;  %11682 = vrot.lane.b32.xlu1 %v11569_v42, %s20036_s28 }
0x12ce   :  { %v11346_v50 = vpop.permute.xlu0 %11345 }
0x12cf   :  { %11680 = vrot.lane.b32.xlu0 %v11568_v16, %s20036_s28 }
0x12d0   :  { %11586 = vrot.lane.b32.xlu1 %v11569_v42, %s20037_s29 }
0x12d1   :  { %v11418_v5 = vpop.permute.xlu1 %11417 }
0x12d2   :  { %v11477_v17 = vpop.permute.xlu0 %11476 }
0x12d3   :  { %v11522_v4 = vsel %vm709_vm6, %v11341_v56, %v11477_v17  ;;  %11584 = vrot.lane.b32.xlu0 %v11568_v16, %s20037_s29 }
0x12d4   :  { %v23175_v58 = vsel %vm7951_vm5, %v11522_v4, %v11418_v5 }
0x12d5   :  { %v11422_v59 = vpop.permute.xlu1 %11421  ;;  %11732 = vrot.lane.b32.xlu1 %v23175_v58, %s20034_s22  ;;  %v11570_v39 = vrot.slane %v23175_v58, 4 }
0x12d9   :  { %v11479_v57 = vpop.permute.xlu1 %11478  ;;  %11636 = vrot.lane.b32.xlu1 %v23175_v58, %s20035_s27 }
0x12da   :  { %v11523_v13 = vsel %vm709_vm6, %v11346_v50, %v11479_v57 }
0x12db   :  { %v23183_v25 = vsel %vm7951_vm5, %v11523_v13, %v11422_v59 }
0x12dc   :  { %11734 = vrot.lane.b32.xlu0 %v23183_v25, %s20034_s22  ;;  %v11571_v20 = vrot.slane %v23183_v25, 4 }
0x12dd   :  { %11684 = vrot.lane.b32.xlu1 %v11570_v39, %s20036_s28 }
0x12df   :  { %v11351_v27 = vpop.permute.xlu0 %11350 }
0x12e0   :  { %v11356_v45 = vpop.permute.xlu1 %11355  ;;  %11638 = vrot.lane.b32.xlu0 %v23183_v25, %s20035_s27 }
0x12e1   :  { %11588 = vrot.lane.b32.xlu1 %v11570_v39, %s20037_s29 }
0x12e4   :  { %v11426_v63 = vpop.permute.xlu0 %11425  ;;  %11686 = vrot.lane.b32.xlu0 %v11571_v20, %s20036_s28 }
0x12e5   :  { %v11430_v62 = vpop.permute.xlu1 %11429 }
0x12e8   :  { %v11483_v2 = vpop.permute.xlu0 %11482  ;;  %11590 = vrot.lane.b32.xlu0 %v11571_v20, %s20037_s29 }
0x12e9   :  { %v11481_v49 = vpop.permute.xlu1 %11480  ;;  %v11525_v32 = vsel %vm709_vm6, %v11356_v45, %v11483_v2 }
0x12ea   :  { %v11524_v37 = vsel %vm709_vm6, %v11351_v27, %v11481_v49  ;;  %v23198_v41 = vsel %vm7951_vm5, %v11525_v32, %v11430_v62 }
0x12eb   :  { %11738 = vrot.lane.b32.xlu1 %v23198_v41, %s20034_s22  ;;  %v23203_v3 = vsel %vm7951_vm5, %v11524_v37, %v11426_v63  ;;  %v11573_v28 = vrot.slane %v23198_v41, 4 }
0x12ec   :  { %11736 = vrot.lane.b32.xlu0 %v23203_v3, %s20034_s22  ;;  %v11572_v18 = vrot.slane %v23203_v3, 4 }
0x12ed   :  { %v11361_v60 = vpop.permute.xlu1 %11360 }
0x12ef   :  { %11642 = vrot.lane.b32.xlu1 %v23198_v41, %s20035_s27 }
0x12f0   :  { %11640 = vrot.lane.b32.xlu0 %v23203_v3, %s20035_s27 }
0x12f1   :  { %v11366_v7 = vpop.permute.xlu0 %11365 }
0x12f2   :  { %v11434_v12 = vpop.permute.xlu1 %11433 }
0x12f3   :  { %11690 = vrot.lane.b32.xlu1 %v11573_v28, %s20036_s28 }
0x12f4   :  { %11688 = vrot.lane.b32.xlu0 %v11572_v18, %s20036_s28 }
0x12f5   :  { %v11485_v46 = vpop.permute.xlu0 %11484 }
0x12f6   :  { %v11438_v8 = vpop.permute.xlu1 %11437  ;;  %v11526_v44 = vsel %vm709_vm6, %v11361_v60, %v11485_v46 }
0x12f7   :  { %11594 = vrot.lane.b32.xlu1 %v11573_v28, %s20037_s29  ;;  %v23220_v34 = vsel %vm7951_vm5, %v11526_v44, %v11434_v12 }
0x12f8   :  { %11592 = vrot.lane.b32.xlu0 %v11572_v18, %s20037_s29  ;;  %v11574_v15 = vrot.slane %v23220_v34, 4 }
0x12fa   :  { %v11487_v14 = vpop.permute.xlu1 %11486 }
0x12fb   :  { %v11527_v36 = vsel %vm709_vm6, %v11366_v7, %v11487_v14 }
0x12fc   :  { %11740 = vrot.lane.b32.xlu0 %v23220_v34, %s20034_s22  ;;  %v23225_v54 = vsel %vm7951_vm5, %v11527_v36, %v11438_v8 }
0x12fd   :  { %11742 = vrot.lane.b32.xlu1 %v23225_v54, %s20034_s22  ;;  %v11371_v35 = vpop.permute.xlu0 %11370  ;;  %v11575_v61 = vrot.slane %v23225_v54, 4 }
0x12ff   :  { %v11376_v52 = vpop.permute.xlu1 %11375 }
0x1300   :  { %11644 = vrot.lane.b32.xlu0 %v23220_v34, %s20035_s27 }
0x1301   :  { %11646 = vrot.lane.b32.xlu1 %v23225_v54, %s20035_s27 }
0x1302   :  { %v11442_v40 = vpop.permute.xlu0 %11441 }
0x1304   :  { %11692 = vrot.lane.b32.xlu0 %v11574_v15, %s20036_s28  ;;  %v11446_v42 = vpop.permute.xlu1 %11445 }
0x1305   :  { %11694 = vrot.lane.b32.xlu1 %v11575_v61, %s20036_s28 }
0x1306   :  { %v11491_v56 = vpop.permute.xlu0 %11490 }
0x1307   :  { %v11529_v16 = vsel %vm709_vm6, %v11376_v52, %v11491_v56 }
0x1308   :  { %11596 = vrot.lane.b32.xlu0 %v11574_v15, %s20037_s29  ;;  %v11489_v55 = vpop.permute.xlu1 %11488  ;;  %v23247_v17 = vsel %vm7951_vm5, %v11529_v16, %v11446_v42 }
0x1309   :  { %11598 = vrot.lane.b32.xlu1 %v11575_v61, %s20037_s29  ;;  %v11528_v50 = vsel %vm709_vm6, %v11371_v35, %v11489_v55  ;;  %v11577_v39 = vrot.slane %v23247_v17, 4 }
0x130a   :  { %v23242_v5 = vsel %vm7951_vm5, %v11528_v50, %v11442_v40 }
0x130b   :  { %v11576_v13 = vrot.slane %v23242_v5, 4 }
0x130c   :  { %11744 = vrot.lane.b32.xlu0 %v23242_v5, %s20034_s22  ;;  %v11381_v4 = vpop.permute.xlu1 %11380 }
0x130d   :  { %11746 = vrot.lane.b32.xlu1 %v23247_v17, %s20034_s22 }
0x1310   :  { %11648 = vrot.lane.b32.xlu0 %v23242_v5, %s20035_s27  ;;  %v11386_v59 = vpop.permute.xlu0 %11385 }
0x1311   :  { %11650 = vrot.lane.b32.xlu1 %v23247_v17, %s20035_s27  ;;  %v11450_v57 = vpop.permute.xlu1 %11449 }
0x1314   :  { %11696 = vrot.lane.b32.xlu0 %v11576_v13, %s20036_s28  ;;  %v11493_v27 = vpop.permute.xlu0 %11492 }
0x1315   :  { %11698 = vrot.lane.b32.xlu1 %v11577_v39, %s20036_s28  ;;  %v11454_v45 = vpop.permute.xlu1 %11453  ;;  %v11530_v20 = vsel %vm709_vm6, %v11381_v4, %v11493_v27 }
0x1316   :  { %v23264_v2 = vsel %vm7951_vm5, %v11530_v20, %v11450_v57 }
0x1317   :  { %v11578_v28 = vrot.slane %v23264_v2, 4 }
0x1318   :  { %11600 = vrot.lane.b32.xlu0 %v11576_v13, %s20037_s29 }
0x1319   :  { %11602 = vrot.lane.b32.xlu1 %v11577_v39, %s20037_s29  ;;  %v11495_v63 = vpop.permute.xlu1 %11494 }
0x131a   :  { %v11531_v62 = vsel %vm709_vm6, %v11386_v59, %v11495_v63 }
0x131b   :  { %v23267_v49 = vsel %vm7951_vm5, %v11531_v62, %v11454_v45 }
0x131c   :  { %11748 = vrot.lane.b32.xlu0 %v23264_v2, %s20034_s22  ;;  %v11579_v7 = vrot.slane %v23267_v49, 4 }
0x131d   :  { %11750 = vrot.lane.b32.xlu1 %v23267_v49, %s20034_s22  ;;  %v11391_v32 = vpop.permute.xlu0 %11390 }
0x131f   :  { %v11396_v37 = vpop.permute.xlu1 %11395 }
0x1320   :  { %11652 = vrot.lane.b32.xlu0 %v23264_v2, %s20035_s27 }
0x1321   :  { %11654 = vrot.lane.b32.xlu1 %v23267_v49, %s20035_s27 }
0x1322   :  { %v11458_v60 = vpop.permute.xlu0 %11457 }
0x1324   :  { %11700 = vrot.lane.b32.xlu0 %v11578_v28, %s20036_s28  ;;  %v11462_v12 = vpop.permute.xlu1 %11461 }
0x1325   :  { %11702 = vrot.lane.b32.xlu1 %v11579_v7, %s20036_s28 }
0x1326   :  { %v11499_v18 = vpop.permute.xlu0 %11498 }
0x1327   :  { %v11533_v8 = vsel %vm709_vm6, %v11396_v37, %v11499_v18 }
0x1328   :  { %11604 = vrot.lane.b32.xlu0 %v11578_v28, %s20037_s29  ;;  %v11497_v46 = vpop.permute.xlu1 %11496  ;;  %v23291_v35 = vsel %vm7951_vm5, %v11533_v8, %v11462_v12  ;;  %v107_v12 = vld [vmem:[%s24315_s1 + $0x2a0] sm:$0xff]  ;;  %v106_v8 = vld [vmem:[%s24315_s1 + $0x298] sm:$0xff] }
0x1329   :  { %v11532_v44 = vsel %vm709_vm6, %v11391_v32, %v11497_v46  ;;  %11606 = vrot.lane.b32.xlu1 %v11579_v7, %s20037_s29  ;;  %v11581_v61 = vrot.slane %v23291_v35, 4  ;;  %v104_v7 = vld [vmem:[%s24315_s1 + $0x288] sm:$0xff] }
0x132a   :  { %v23286_v14 = vsel %vm7951_vm5, %v11532_v44, %v11458_v60  ;;  %v218_v44 = vld [vmem:[%s24316_s2 + $0x298] sm:$0xff] }
0x132b   :  { %v11580_v15 = vrot.slane %v23286_v14, 4 }
0x132c   :  { %11752 = vrot.lane.b32.xlu0 %v23286_v14, %s20034_s22  ;;  %v11401_v36 = vpop.permute.xlu1 %11400 }
0x132d   :  { %11754 = vrot.lane.b32.xlu1 %v23291_v35, %s20034_s22 }
0x1330   :  { %11656 = vrot.lane.b32.xlu0 %v23286_v14, %s20035_s27  ;;  %v11406_v52 = vpop.permute.xlu0 %11405 }
0x1331   :  { %11658 = vrot.lane.b32.xlu1 %v23291_v35, %s20035_s27  ;;  %v11466_v40 = vpop.permute.xlu1 %11465 }
0x1334   :  { %11704 = vrot.lane.b32.xlu0 %v11580_v15, %s20036_s28  ;;  %v11501_v42 = vpop.permute.xlu0 %11500 }
0x1335   :  { %11706 = vrot.lane.b32.xlu1 %v11581_v61, %s20036_s28  ;;  %v11470_v56 = vpop.permute.xlu1 %11469  ;;  %v11534_v55 = vsel %vm709_vm6, %v11401_v36, %v11501_v42  ;;  %v109_v36 = vld [vmem:[%s24315_s1 + $0x2b0] sm:$0xff]  ;;  %v220_v42 = vld [vmem:[%s24316_s2 + $0x2a8] sm:$0xff] }
0x1336   :  { %v23310_v59 = vsel %vm7951_vm5, %v11534_v55, %v11466_v40  ;;  %v222_v55 = vld [vmem:[%s24316_s2 + $0x2b8] sm:$0xff] }
0x1337   :  { %v11582_v63 = vrot.slane %v23310_v59, 4 }
0x1338   :  { %11608 = vrot.lane.b32.xlu0 %v11580_v15, %s20037_s29  ;;  %v217_v15 = vld [vmem:[%s24316_s2 + $0x290] sm:$0xff] }
0x1339   :  { %11610 = vrot.lane.b32.xlu1 %v11581_v61, %s20037_s29  ;;  %v11729_v16 = vpop.permute.xlu0 %11728  ;;  %v11503_v50 = vpop.permute.xlu1 %11502 }
0x133a   :  { %v11535_v4 = vsel %vm709_vm6, %v11406_v52, %v11503_v50  ;;  %19206 = vmatprep.subr.msk.mxu0 %vm771_vm9, %v11729_v16  ;;  %v215_v52 = vld [vmem:[%s24316_s2 + $0x280] sm:$0xff] }
0x133b   :  { %19207 = vmatpush3.msk.msra.mxu0 %vm771_vm9, %v11729_v16  ;;  %v23313_v57 = vsel %vm7951_vm5, %v11535_v4, %v11470_v56  ;;  %v219_v50 = vld [vmem:[%s24316_s2 + $0x2a0] sm:$0xff] }
0x133c   :  { %11756 = vrot.lane.b32.xlu0 %v23310_v59, %s20034_s22  ;;  %v11583_v62 = vrot.slane %v23313_v57, 4 }
0x133d   :  { %11758 = vrot.lane.b32.xlu1 %v23313_v57, %s20034_s22  ;;  %v11633_v13 = vpop.permute.xlu0 %11632  ;;  %v11731_v39 = vpop.permute.xlu1 %11730 }
0x133e   :  { %19215 = vmatprep.subr.msk.mxu1 %vm771_vm9, %v11731_v39 }
0x133f   :  { %19216 = vmatpush3.msk.msra.mxu1 %vm771_vm9, %v11731_v39 }
0x1340   :  { %11660 = vrot.lane.b32.xlu0 %v23310_v59, %s20035_s27 }
0x1341   :  { %11662 = vrot.lane.b32.xlu1 %v23313_v57, %s20035_s27  ;;  %v11681_v27 = vpop.permute.xlu0 %11680  ;;  %v11635_v45 = vpop.permute.xlu1 %11634 }
0x1342   :  { %v11776_v20 = vsel %vm771_vm9, %v11633_v13, %v11681_v27  ;;  %v221_v27 = vld [vmem:[%s24316_s2 + $0x2b0] sm:$0xff] }
0x1343   :  { %19208 = vmatprep.subr.mxu0 %v11776_v20 }
0x1344   :  { %11708 = vrot.lane.b32.xlu0 %v11582_v63, %s20036_s28  ;;  %19209 = vmatpush3.msra.mxu0 %v11776_v20  ;;  %v224_v20 = vld [vmem:[%s24316_s2 + $0x2c8] sm:$0xff] }
0x1345   :  { %11710 = vrot.lane.b32.xlu1 %v11583_v62, %s20036_s28  ;;  %v11585_v32 = vpop.permute.xlu0 %11584  ;;  %v11683_v37 = vpop.permute.xlu1 %11682 }
0x1346   :  { %v11760_v60 = vsel %vm771_vm9, %v23151_v19, %v11585_v32  ;;  %v11777_v28 = vsel %vm771_vm9, %v11635_v45, %v11683_v37  ;;  %v216_v19 = vld [vmem:[%s24316_s2 + $0x288] sm:$0xff]  ;;  %v110_v37 = vld [vmem:[%s24315_s1 + $0x2b8] sm:$0xff] }
0x1347   :  { %19210 = vmatprep.subr.mxu0 %v11760_v60  ;;  %19217 = vmatprep.subr.mxu1 %v11777_v28 }
0x1348   :  { %11612 = vrot.lane.b32.xlu0 %v11582_v63, %s20037_s29  ;;  %19211 = vmatpush3.msra.mxu0 %v11760_v60  ;;  %v108_v60 = vld [vmem:[%s24315_s1 + $0x2a8] sm:$0xff] }
0x1349   :  { %19218 = vmatpush3.msra.mxu1 %v11777_v28  ;;  %11614 = vrot.lane.b32.xlu1 %v11583_v62, %s20037_s29  ;;  %v11587_v18 = vpop.permute.xlu1 %11586 }
0x134a   :  { %19213 = vmatmul.mubr.msk.f32.vlgmr.msra.gmra.mxu0 %vm820_vm8, %v104_v7  ;;  %v11761_v46 = vsel %vm771_vm9, %v23145_v30, %v11587_v18  ;;  %v226_v7 = vld [vmem:[%s24316_s2 + $0x2d8] sm:$0xff]  ;;  %v113_v18 = vld [vmem:[%s24315_s1 + $0x2d0] sm:$0xff] }
0x134b   :  { %19219 = vmatprep.subr.mxu1 %v11761_v46  ;;  %19230 = vmatprep.mubr.msk.f32.mxu0 %vm820_vm8, %v107_v12  ;;  %v111_v12 = vld [vmem:[%s24315_s1 + $0x2c0] sm:$0xff] }
0x134c   :  { %11799 = vperm.xlu0 %19835, %v216_v19   ;;  %19220 = vmatpush3.msra.mxu1 %v11761_v46  ;;  %v228_v46 = vld [vmem:[%s24316_s2 + $0x2e8] sm:$0xff] }
0x134d   :  { %19222 = vmatmul.mubr.msk.f32.vlgmr.msra.gmra.mxu1 %vm820_vm8, %v106_v8  ;;  %v11733_v30 = vpop.permute.xlu1 %11732  ;;  %11809 = vperm.xlu1 %19837, %v218_v44   ;;  %v225_v44 = vld [vmem:[%s24316_s2 + $0x2d0] sm:$0xff] }
0x134e   :  { %v11735_v40 = vpop.permute.xlu0 %11734  ;;  %19224 = vmatprep.subr.msk.mxu0 %vm771_vm9, %v11733_v30  ;;  %19239 = vmatprep.mubr.msk.f32.mxu1 %vm820_vm8, %v109_v36 }
0x134f   :  { %19233 = vmatprep.subr.msk.mxu1 %vm771_vm9, %v11735_v40  ;;  %19225 = vmatpush3.msk.msra.mxu0 %vm771_vm9, %v11733_v30  ;;  %v227_v30 = vld [vmem:[%s24316_s2 + $0x2e0] sm:$0xff] }
0x1350   :  { %19234 = vmatpush3.msk.msra.mxu1 %vm771_vm9, %v11735_v40  ;;  %11794 = vperm.xlu0 %19835, %v215_v52  }
0x1351   :  { %v11637_v61 = vpop.permute.xlu1 %11636  ;;  %11804 = vperm.xlu1 %19837, %v217_v15  }
0x1352   :  { %v11639_v56 = vpop.permute.xlu0 %11638 }
0x1354   :  { %11819 = vperm.xlu0 %19835, %v220_v42  }
0x1355   :  { %v11685_v16 = vpop.permute.xlu1 %11684  ;;  %11829 = vperm.xlu1 %19837, %v222_v55  }
0x1356   :  { %v11687_v4 = vpop.permute.xlu0 %11686  ;;  %v11778_v13 = vsel %vm771_vm9, %v11637_v61, %v11685_v16  ;;  %v230_v61 = vld [vmem:[%s24316_s2 + $0x2f8] sm:$0xff] }
0x1357   :  { %v11779_v39 = vsel %vm771_vm9, %v11639_v56, %v11687_v4  ;;  %19226 = vmatprep.subr.mxu0 %v11778_v13  ;;  %v232_v56 = vld [vmem:[%s24316_s2 + $0x308] sm:$0xff] }
0x1358   :  { %19235 = vmatprep.subr.mxu1 %v11779_v39  ;;  %11814 = vperm.xlu0 %19835, %v219_v50   ;;  %v112_v4 = vld [vmem:[%s24315_s1 + $0x2c8] sm:$0xff] }
0x1359   :  { %19236 = vmatpush3.msra.mxu1 %v11779_v39  ;;  %19227 = vmatpush3.msra.mxu0 %v11778_v13  ;;  %v11589_v45 = vpop.permute.xlu1 %11588  ;;  %v114_v13 = vld [vmem:[%s24315_s1 + $0x2d8] sm:$0xff]  ;;  %v229_v39 = vld [vmem:[%s24316_s2 + $0x2f0] sm:$0xff] }
0x135a   :  { %v11591_v63 = vpop.permute.xlu0 %11590  ;;  %v11762_v62 = vsel %vm771_vm9, %v23175_v58, %v11589_v45  ;;  %11824 = vperm.xlu1 %19837, %v221_v27   ;;  %v223_v58 = vld [vmem:[%s24316_s2 + $0x2c0] sm:$0xff] }
0x135b   :  { %v11763_v32 = vsel %vm771_vm9, %v23183_v25, %v11591_v63  ;;  %19228 = vmatprep.subr.mxu0 %v11762_v62  ;;  %v115_v45 = vld [vmem:[%s24315_s1 + $0x2e0] sm:$0xff]  ;;  %v234_v63 = vld [vmem:[%s24316_s2 + $0x318] sm:$0xff] }
0x135c   :  { %19237 = vmatprep.subr.mxu1 %v11763_v32  ;;  %11839 = vperm.xlu0 %19835, %v224_v20   ;;  %v117_v20 = vld [vmem:[%s24315_s1 + $0x2f0] sm:$0xff] }
0x135d   :  { %19238 = vmatpush3.msra.mxu1 %v11763_v32  ;;  %19229 = vmatpush3.msra.mxu0 %v11762_v62  ;;  %v11739_v28 = vpop.permute.xlu1 %11738  ;;  %v236_v32 = vld [vmem:[%s24316_s2 + $0x328] sm:$0xff] }
0x135e   :  { %19240 = vmatmul.mubr.msk.f32.vlgmr.msra.gmra.mxu1 %vm820_vm8, %v110_v37  ;;  %v11737_v25 = vpop.permute.xlu0 %11736  ;;  %19231 = vmatmul.mubr.msk.f32.vlgmr.msra.gmra.mxu0 %vm820_vm8, %v108_v60  ;;  %v233_v60 = vld [vmem:[%s24316_s2 + $0x310] sm:$0xff] }
0x135f   :  { %19242 = vmatprep.subr.msk.mxu0 %vm771_vm9, %v11737_v25  ;;  %19251 = vmatprep.subr.msk.mxu1 %vm771_vm9, %v11739_v28 }
0x1360   :  { %19243 = vmatpush3.msk.msra.mxu0 %vm771_vm9, %v11737_v25  ;;  %11834 = vperm.xlu0 %19835, %v223_v58   ;;  %v235_v58 = vld [vmem:[%s24316_s2 + $0x320] sm:$0xff] }
0x1361   :  { %19252 = vmatpush3.msk.msra.mxu1 %vm771_vm9, %v11739_v28  ;;  %v11643_v19 = vpop.permute.xlu1 %11642  ;;  %11849 = vperm.xlu1 %19837, %v226_v7  }
0x1362   :  { %v11641_v8 = vpop.permute.xlu0 %11640  ;;  %19248 = vmatprep.mubr.msk.f32.mxu0 %vm820_vm8, %v111_v12  ;;  %19257 = vmatprep.mubr.msk.f32.mxu1 %vm820_vm8, %v113_v18  ;;  %v238_v18 = vld [vmem:[%s24316_s2 + $0x338] sm:$0xff] }
0x1364   :  { %11859 = vperm.xlu0 %19835, %v228_v46   ;;  %v240_v46 = vld [vmem:[%s24316_s2 + $0x348] sm:$0xff] }
0x1365   :  { %v11691_v36 = vpop.permute.xlu1 %11690  ;;  %11844 = vperm.xlu1 %19837, %v225_v44  }
0x1366   :  { %v11689_v52 = vpop.permute.xlu0 %11688  ;;  %v11781_v40 = vsel %vm771_vm9, %v11643_v19, %v11691_v36  ;;  %v116_v36 = vld [vmem:[%s24315_s1 + $0x2e8] sm:$0xff] }
0x1367   :  { %v11780_v15 = vsel %vm771_vm9, %v11641_v8, %v11689_v52  ;;  %19253 = vmatprep.subr.mxu1 %v11781_v40  ;;  %v118_v52 = vld [vmem:[%s24315_s1 + $0x2f8] sm:$0xff] }
0x1368   :  { %19244 = vmatprep.subr.mxu0 %v11780_v15  ;;  %11854 = vperm.xlu0 %19835, %v227_v30  }
0x1369   :  { %19245 = vmatpush3.msra.mxu0 %v11780_v15  ;;  %19254 = vmatpush3.msra.mxu1 %v11781_v40  ;;  %v11595_v42 = vpop.permute.xlu1 %11594 }
0x136a   :  { %v11593_v55 = vpop.permute.xlu0 %11592  ;;  %v11765_v16 = vsel %vm771_vm9, %v23198_v41, %v11595_v42  ;;  %11869 = vperm.xlu1 %19837, %v230_v61   ;;  %v119_v61 = vld [vmem:[%s24315_s1 + $0x300] sm:$0xff]  ;;  %v121_v42 = vld [vmem:[%s24315_s1 + $0x310] sm:$0xff] }
0x136b   :  { %v11764_v50 = vsel %vm771_vm9, %v23203_v3, %v11593_v55  ;;  %19255 = vmatprep.subr.mxu1 %v11765_v16  ;;  %v231_v3 = vld [vmem:[%s24316_s2 + $0x300] sm:$0xff]  ;;  %v244_v55 = vld [vmem:[%s24316_s2 + $0x368] sm:$0xff] }
0x136c   :  { %19246 = vmatprep.subr.mxu0 %v11764_v50  ;;  %11879 = vperm.xlu0 %19835, %v232_v56  }
0x136d   :  { %19247 = vmatpush3.msra.mxu0 %v11764_v50  ;;  %19256 = vmatpush3.msra.mxu1 %v11765_v16  ;;  %v242_v50 = vld [vmem:[%s24316_s2 + $0x358] sm:$0xff] }
0x136e   :  { %19249 = vmatmul.mubr.msk.f32.vlgmr.msra.gmra.mxu0 %vm820_vm8, %v112_v4  ;;  %v11741_v41 = vpop.permute.xlu0 %11740  ;;  %19258 = vmatmul.mubr.msk.f32.vlgmr.msra.gmra.mxu1 %vm820_vm8, %v114_v13  ;;  %v243_v13 = vld [vmem:[%s24316_s2 + $0x360] sm:$0xff] }
0x136f   :  { %v11743_v27 = vpop.permute.xlu1 %11742  ;;  %19260 = vmatprep.subr.msk.mxu0 %vm771_vm9, %v11741_v41  ;;  %11864 = vperm.xlu1 %19837, %v229_v39  }
0x1370   :  { %19261 = vmatpush3.msk.msra.mxu0 %vm771_vm9, %v11741_v41  ;;  %19269 = vmatprep.subr.msk.mxu1 %vm771_vm9, %v11743_v27 }
0x1371   :  { %11874 = vperm.xlu0 %19835, %v231_v3   ;;  %19270 = vmatpush3.msk.msra.mxu1 %vm771_vm9, %v11743_v27  ;;  %v241_v27 = vld [vmem:[%s24316_s2 + $0x350] sm:$0xff] }
0x1372   :  { %v11645_v62 = vpop.permute.xlu0 %11644  ;;  %19266 = vmatprep.mubr.msk.f32.mxu0 %vm820_vm8, %v115_v45  ;;  %19275 = vmatprep.mubr.msk.f32.mxu1 %vm820_vm8, %v117_v20 }
0x1373   :  { %v11647_v37 = vpop.permute.xlu1 %11646  ;;  %11889 = vperm.xlu1 %19837, %v234_v63  }
0x1375   :  { %11899 = vperm.xlu0 %19835, %v236_v32  }
0x1376   :  { %v11693_v28 = vpop.permute.xlu0 %11692 }
0x1377   :  { %v11695_v25 = vpop.permute.xlu1 %11694  ;;  %v11782_v7 = vsel %vm771_vm9, %v11645_v62, %v11693_v28  ;;  %11884 = vperm.xlu1 %19837, %v233_v60   ;;  %v120_v62 = vld [vmem:[%s24315_s1 + $0x308] sm:$0xff]  ;;  %v246_v60 = vld [vmem:[%s24316_s2 + $0x378] sm:$0xff]  ;;  %v123_v28 = vld [vmem:[%s24315_s1 + $0x320] sm:$0xff] }
0x1378   :  { %19262 = vmatprep.subr.mxu0 %v11782_v7  ;;  %v11783_v12 = vsel %vm771_vm9, %v11647_v37, %v11695_v25  ;;  %v122_v37 = vld [vmem:[%s24315_s1 + $0x318] sm:$0xff]  ;;  %v245_v25 = vld [vmem:[%s24316_s2 + $0x370] sm:$0xff] }
0x1379   :  { %11894 = vperm.xlu0 %19835, %v235_v58   ;;  %19263 = vmatpush3.msra.mxu0 %v11782_v7  ;;  %v125_v58 = vld [vmem:[%s24315_s1 + $0x330] sm:$0xff] }
0x137a   :  { %19271 = vmatprep.subr.mxu1 %v11783_v12  ;;  %v11597_v19 = vpop.permute.xlu0 %11596 }
0x137b   :  { %19272 = vmatpush3.msra.mxu1 %v11783_v12  ;;  %v11599_v8 = vpop.permute.xlu1 %11598  ;;  %v11766_v44 = vsel %vm771_vm9, %v23220_v34, %v11597_v19  ;;  %11909 = vperm.xlu1 %19837, %v238_v18   ;;  %v239_v34 = vld [vmem:[%s24316_s2 + $0x340] sm:$0xff] }
0x137c   :  { %19264 = vmatprep.subr.mxu0 %v11766_v44  ;;  %v11767_v30 = vsel %vm771_vm9, %v23225_v54, %v11599_v8  ;;  %v237_v54 = vld [vmem:[%s24316_s2 + $0x330] sm:$0xff] }
0x137d   :  { %11919 = vperm.xlu0 %19835, %v240_v46   ;;  %19265 = vmatpush3.msra.mxu0 %v11766_v44 }
0x137e   :  { %19273 = vmatprep.subr.mxu1 %v11767_v30  ;;  %19267 = vmatmul.mubr.msk.f32.vlgmr.msra.gmra.mxu0 %vm820_vm8, %v116_v36  ;;  %v11745_v40 = vpop.permute.xlu0 %11744 }
0x137f   :  { %19274 = vmatpush3.msra.mxu1 %v11767_v30  ;;  %v11747_v15 = vpop.permute.xlu1 %11746  ;;  %19278 = vmatprep.subr.msk.mxu0 %vm771_vm9, %v11745_v40 }
0x1380   :  { %19276 = vmatmul.mubr.msk.f32.vlgmr.msra.gmra.mxu1 %vm820_vm8, %v118_v52  ;;  %19287 = vmatprep.subr.msk.mxu1 %vm771_vm9, %v11747_v15  ;;  %v124_v52 = vld [vmem:[%s24315_s1 + $0x328] sm:$0xff] }
0x1381   :  { %11914 = vperm.xlu0 %19835, %v239_v34   ;;  %19279 = vmatpush3.msk.msra.mxu0 %vm771_vm9, %v11745_v40  ;;  %v126_v34 = vld [vmem:[%s24315_s1 + $0x338] sm:$0xff] }
0x1382   :  { %19288 = vmatpush3.msk.msra.mxu1 %vm771_vm9, %v11747_v15  ;;  %v11649_v56 = vpop.permute.xlu0 %11648  ;;  %11904 = vperm.xlu1 %19837, %v237_v54  }
0x1383   :  { %v11651_v16 = vpop.permute.xlu1 %11650  ;;  %19284 = vmatprep.mubr.msk.f32.mxu0 %vm820_vm8, %v119_v61  ;;  %19293 = vmatprep.mubr.msk.f32.mxu1 %vm820_vm8, %v121_v42 }
0x1385   :  { %11939 = vperm.xlu0 %19835, %v244_v55  }
0x1386   :  { %v11697_v4 = vpop.permute.xlu0 %11696  ;;  %11929 = vperm.xlu1 %19837, %v242_v50  }
0x1387   :  { %v11699_v39 = vpop.permute.xlu1 %11698  ;;  %v11784_v41 = vsel %vm771_vm9, %v11649_v56, %v11697_v4 }
0x1388   :  { %19280 = vmatprep.subr.mxu0 %v11784_v41  ;;  %v11785_v3 = vsel %vm771_vm9, %v11651_v16, %v11699_v39 }
0x1389   :  { %11934 = vperm.xlu0 %19835, %v243_v13   ;;  %19289 = vmatprep.subr.mxu1 %v11785_v3 }
0x138a   :  { %19281 = vmatpush3.msra.mxu0 %v11784_v41  ;;  %19290 = vmatpush3.msra.mxu1 %v11785_v3  ;;  %v11601_v45 = vpop.permute.xlu0 %11600  ;;  %v128_v41 = vld [vmem:[%s24315_s1 + $0x348] sm:$0xff] }
0x138b   :  { %v11603_v20 = vpop.permute.xlu1 %11602  ;;  %11924 = vperm.xlu1 %19837, %v241_v27   ;;  %v11768_v63 = vsel %vm771_vm9, %v23242_v5, %v11601_v45  ;;  %v130_v27 = vld [vmem:[%s24315_s1 + $0x358] sm:$0xff] }
0x138c   :  { %19282 = vmatprep.subr.mxu0 %v11768_v63  ;;  %v11769_v32 = vsel %vm771_vm9, %v23247_v17, %v11603_v20 }
0x138d   :  { %19291 = vmatprep.subr.mxu1 %v11769_v32  ;;  %19283 = vmatpush3.msra.mxu0 %v11768_v63 }
0x138e   :  { %19292 = vmatpush3.msra.mxu1 %v11769_v32  ;;  %19285 = vmatmul.mubr.msk.f32.vlgmr.msra.gmra.mxu0 %vm820_vm8, %v120_v62  ;;  %v11749_v5 = vpop.permute.xlu0 %11748 }
0x138f   :  { %19294 = vmatmul.mubr.msk.f32.vlgmr.msra.gmra.mxu1 %vm820_vm8, %v122_v37  ;;  %v11751_v17 = vpop.permute.xlu1 %11750  ;;  %19296 = vmatprep.subr.msk.mxu0 %vm771_vm9, %v11749_v5 }
0x1390   :  { %11949 = vperm.xlu1 %19837, %v246_v60   ;;  %19297 = vmatpush3.msk.msra.mxu0 %vm771_vm9, %v11749_v5 }
0x1391   :  { %19305 = vmatprep.subr.msk.mxu1 %vm771_vm9, %v11751_v17  ;;  %19302 = vmatprep.mubr.msk.f32.mxu0 %vm820_vm8, %v123_v28 }
0x1392   :  { %19306 = vmatpush3.msk.msra.mxu1 %vm771_vm9, %v11751_v17  ;;  %v11653_v7 = vpop.permute.xlu0 %11652  ;;  %19311 = vmatprep.mubr.msk.f32.mxu1 %vm820_vm8, %v125_v58 }
0x1393   :  { %v11655_v12 = vpop.permute.xlu1 %11654 }
0x1394   :  { %11944 = vperm.xlu1 %19837, %v245_v25   ;;  %v132_v25 = vld [vmem:[%s24315_s1 + $0x368] sm:$0xff] }
0x1396   :  { %v11701_v18 = vpop.permute.xlu0 %11700 }
0x1397   :  { %v11703_v19 = vpop.permute.xlu1 %11702  ;;  %v11786_v46 = vsel %vm771_vm9, %v11653_v7, %v11701_v18 }
0x1398   :  { %19298 = vmatprep.subr.mxu0 %v11786_v46  ;;  %v11787_v8 = vsel %vm771_vm9, %v11655_v12, %v11703_v19  ;;  %v134_v12 = vld [vmem:[%s24315_s1 + $0x378] sm:$0xff] }
0x1399   :  { %19299 = vmatpush3.msra.mxu0 %v11786_v46  ;;  %19307 = vmatprep.subr.mxu1 %v11787_v8 }
0x139a   :  { %19308 = vmatpush3.msra.mxu1 %v11787_v8  ;;  %v11605_v44 = vpop.permute.xlu0 %11604 }
0x139b   :  { %v11607_v36 = vpop.permute.xlu1 %11606  ;;  %v11770_v30 = vsel %vm771_vm9, %v23264_v2, %v11605_v44  ;;  %v127_v2 = vld [vmem:[%s24315_s1 + $0x340] sm:$0xff] }
0x139c   :  { %19300 = vmatprep.subr.mxu0 %v11770_v30  ;;  %v11771_v40 = vsel %vm771_vm9, %v23267_v49, %v11607_v36  ;;  %v129_v49 = vld [vmem:[%s24315_s1 + $0x350] sm:$0xff] }
0x139d   :  { %19301 = vmatpush3.msra.mxu0 %v11770_v30  ;;  %19309 = vmatprep.subr.mxu1 %v11771_v40 }
0x139e   :  { %19303 = vmatmul.mubr.msk.f32.vlgmr.msra.gmra.mxu0 %vm820_vm8, %v124_v52  ;;  %19310 = vmatpush3.msra.mxu1 %v11771_v40  ;;  %v11753_v15 = vpop.permute.xlu0 %11752 }
0x139f   :  { %v11755_v54 = vpop.permute.xlu1 %11754  ;;  %19312 = vmatmul.mubr.msk.f32.vlgmr.msra.gmra.mxu1 %vm820_vm8, %v126_v34  ;;  %19314 = vmatprep.subr.msk.mxu0 %vm771_vm9, %v11753_v15 }
0x13a0   :  { %19315 = vmatpush3.msk.msra.mxu0 %vm771_vm9, %v11753_v15  ;;  %19323 = vmatprep.subr.msk.mxu1 %vm771_vm9, %v11755_v54 }
0x13a1   :  { %19324 = vmatpush3.msk.msra.mxu1 %vm771_vm9, %v11755_v54  ;;  %19320 = vmatprep.mubr.msk.f32.mxu0 %vm820_vm8, %v127_v2 }
0x13a2   :  { %v11657_v61 = vpop.permute.xlu0 %11656  ;;  %19329 = vmatprep.mubr.msk.f32.mxu1 %vm820_vm8, %v129_v49 }
0x13a3   :  { %v11659_v42 = vpop.permute.xlu1 %11658 }
0x13a6   :  { %v11705_v56 = vpop.permute.xlu0 %11704 }
0x13a7   :  { %v11707_v55 = vpop.permute.xlu1 %11706  ;;  %v11788_v16 = vsel %vm771_vm9, %v11657_v61, %v11705_v56 }
0x13a8   :  { %19316 = vmatprep.subr.mxu0 %v11788_v16  ;;  %v11789_v50 = vsel %vm771_vm9, %v11659_v42, %v11707_v55 }
0x13a9   :  { %19317 = vmatpush3.msra.mxu0 %v11788_v16  ;;  %19325 = vmatprep.subr.mxu1 %v11789_v50 }
0x13aa   :  { %19326 = vmatpush3.msra.mxu1 %v11789_v50  ;;  %v11609_v4 = vpop.permute.xlu0 %11608 }
0x13ab   :  { %v11611_v13 = vpop.permute.xlu1 %11610  ;;  %v11772_v39 = vsel %vm771_vm9, %v23286_v14, %v11609_v4  ;;  %v131_v14 = vld [vmem:[%s24315_s1 + $0x360] sm:$0xff] }
0x13ac   :  { %19318 = vmatprep.subr.mxu0 %v11772_v39  ;;  %v11773_v3 = vsel %vm771_vm9, %v23291_v35, %v11611_v13  ;;  %v133_v35 = vld [vmem:[%s24315_s1 + $0x370] sm:$0xff] }
0x13ad   :  { %19319 = vmatpush3.msra.mxu0 %v11772_v39  ;;  %19327 = vmatprep.subr.mxu1 %v11773_v3 }
0x13ae   :  { %19321 = vmatmul.mubr.msk.f32.vlgmr.msra.gmra.mxu0 %vm820_vm8, %v128_v41  ;;  %19328 = vmatpush3.msra.mxu1 %v11773_v3  ;;  %v11757_v45 = vpop.permute.xlu0 %11756 }
0x13af   :  { %v11759_v20 = vpop.permute.xlu1 %11758  ;;  %19330 = vmatmul.mubr.msk.f32.vlgmr.msra.gmra.mxu1 %vm820_vm8, %v130_v27  ;;  %19332 = vmatprep.subr.msk.mxu0 %vm771_vm9, %v11757_v45 }
0x13b0   :  { %19333 = vmatpush3.msk.msra.mxu0 %vm771_vm9, %v11757_v45  ;;  %19341 = vmatprep.subr.msk.mxu1 %vm771_vm9, %v11759_v20 }
0x13b1   :  { %19342 = vmatpush3.msk.msra.mxu1 %vm771_vm9, %v11759_v20  ;;  %19338 = vmatprep.mubr.msk.f32.mxu0 %vm820_vm8, %v131_v14 }
0x13b2   :  { %v11661_v63 = vpop.permute.xlu0 %11660  ;;  %19347 = vmatprep.mubr.msk.f32.mxu1 %vm820_vm8, %v133_v35 }
0x13b3   :  { %v11663_v62 = vpop.permute.xlu1 %11662 }
0x13b6   :  { %v11709_v32 = vpop.permute.xlu0 %11708 }
0x13b7   :  { %v11711_v37 = vpop.permute.xlu1 %11710  ;;  %v11790_v60 = vsel %vm771_vm9, %v11661_v63, %v11709_v32 }
0x13b8   :  { %19334 = vmatprep.subr.mxu0 %v11790_v60  ;;  %v11791_v5 = vsel %vm771_vm9, %v11663_v62, %v11711_v37 }
0x13b9   :  { %19335 = vmatpush3.msra.mxu0 %v11790_v60  ;;  %19343 = vmatprep.subr.mxu1 %v11791_v5 }
0x13ba   :  { %19344 = vmatpush3.msra.mxu1 %v11791_v5  ;;  %v11613_v28 = vpop.permute.xlu0 %11612 }
0x13bb   :  { %v11615_v17 = vpop.permute.xlu1 %11614  ;;  %v11774_v58 = vsel %vm771_vm9, %v23310_v59, %v11613_v28 }
0x13bc   :  { %19336 = vmatprep.subr.mxu0 %v11774_v58  ;;  %v11775_v7 = vsel %vm771_vm9, %v23313_v57, %v11615_v17 }
0x13bd   :  { %19337 = vmatpush3.msra.mxu0 %v11774_v58  ;;  %19345 = vmatprep.subr.mxu1 %v11775_v7 }
0x13be   :  { %19339 = vmatmul.mubr.msk.f32.vlgmr.msra.gmra.mxu0 %vm820_vm8, %v132_v25  ;;  %19346 = vmatpush3.msra.mxu1 %v11775_v7 }
0x13bf   :  { %19348 = vmatmul.mubr.msk.f32.vlgmr.msra.gmra.mxu1 %vm820_vm8, %v134_v12  ;;  %19350 = vmatprep.subr.mxu0 %v20028_v1 }
0x13c0   :  { %19365 = vmatprep.subr.mxu1 %v20028_v1  ;;  %19362 = vmatprep.mubr.msk.f32.mxu0 %vm20029_vm0, %v20028_v1 }
0x13c1   :  { %19377 = vmatprep.mubr.msk.f32.mxu1 %vm20029_vm0, %v20028_v1 }
0x13c7   :  { %v11800_v59 = vpop.permute.xlu0 %11799 }
0x13c8   :  { %v11810_v18 = vpop.permute.xlu1 %11809 }
0x13cb   :  { %v11795_v36 = vpop.permute.xlu0 %11794 }
0x13cc   :  { %v11805_v2 = vpop.permute.xlu1 %11804 }
0x13cf   :  { %v11820_v16 = vpop.permute.xlu0 %11819 }
0x13d0   :  { %v11830_v50 = vpop.permute.xlu1 %11829 }
0x13d3   :  { %v11815_v20 = vpop.permute.xlu0 %11814 }
0x13d5   :  { %v11825_v35 = vpop.permute.xlu1 %11824 }
0x13d7   :  { %v11840_v58 = vpop.permute.xlu0 %11839 }
0x13dc   :  { %v11850_v25 = vpop.permute.xlu1 %11849 }
0x140a   :  { %v19214_v57 = vpop.f32.mrf.mxu0 }
0x140b   :  { %v12032_v19 = vadd.f32 %v19214_v57, %v11800_v59 }
0x140c   :  { %v12026_v46 = vpop.f32.mrf.mxu0 }
0x140d   :  { %vm13281_vm6 = vcmp.ge.f32.partialorder %v12032_v19, 0.0  ;;  %v13313_v8 = vmul.f32 0.01, %v12032_v19  ;;  %v19223_v44 = vpop.f32.mrf.mxu1  ;;  %v12027_v52 = vadd.f32 %v12026_v46, %v11795_v36  ;;  %v11845_v36 = vpop.permute.xlu1 %11844 }
0x140e   :  { %v12115_v30 = vadd.f32 %v19223_v44, %v11810_v18  ;;  %v11835_v44 = vpop.permute.xlu0 %11834 }
0x140f   :  { %v23629_v40 = vsel %vm13281_vm6, %v12032_v19, %v13313_v8  ;;  %v12109_v34 = vpop.f32.mrf.mxu1  ;;  %v13312_v61 = vmul.f32 0.01, %v12027_v52  ;;  %vm13280_vm9 = vcmp.ge.f32.partialorder %v12027_v52, 0.0 }
0x1410   :  { %vm13283_vm8 = vcmp.ge.f32.partialorder %v12115_v30, 0.0  ;;  %v13315_v15 = vmul.f32 0.01, %v12115_v30  ;;  %13506 = vrot.lane.b32.xlu0 %v23629_v40, %s20035_s27  ;;  %v12110_v54 = vadd.f32 %v12109_v34, %v11805_v2 }
0x1411   :  { %v23639_v56 = vsel %vm13280_vm9, %v12027_v52, %v13312_v61 }
0x1412   :  { %v23633_v49 = vsel %vm13283_vm8, %v12115_v30, %v13315_v15  ;;  %v13314_v42 = vmul.f32 0.01, %v12110_v54  ;;  %vm13282_vm5 = vcmp.ge.f32.partialorder %v12110_v54, 0.0 }
0x1413   :  { %13510 = vrot.lane.b32.xlu1 %v23633_v49, %s20035_s27 }
0x1414   :  { %13410 = vrot.lane.b32.xlu0 %v23629_v40, %s20037_s29  ;;  %v23645_v55 = vsel %vm13282_vm5, %v12110_v54, %v13314_v42 }
0x1417   :  { %13414 = vrot.lane.b32.xlu1 %v23633_v49, %s20037_s29 }
0x1418   :  { %13504 = vrot.lane.b32.xlu0 %v23639_v56, %s20035_s27 }
0x141b   :  { %13508 = vrot.lane.b32.xlu1 %v23645_v55, %s20035_s27 }
0x141c   :  { %13408 = vrot.lane.b32.xlu0 %v23639_v56, %s20037_s29 }
0x141e   :  { %v19241_v4 = vpop.f32.mrf.mxu1  ;;  %v19232_v13 = vpop.f32.mrf.mxu0 }
0x141f   :  { %v12281_v39 = vadd.f32 %v19241_v4, %v11830_v50  ;;  %v12198_v41 = vadd.f32 %v19232_v13, %v11820_v16  ;;  %13412 = vrot.lane.b32.xlu1 %v23645_v55, %s20037_s29  ;;  %v11860_v16 = vpop.permute.xlu0 %11859  ;;  %v11870_v50 = vpop.permute.xlu1 %11869 }
0x1420   :  { %v12275_v3 = vpop.f32.mrf.mxu1  ;;  %v12192_v27 = vpop.f32.mrf.mxu0 }
0x1421   :  { %vm13287_vm13 = vcmp.ge.f32.partialorder %v12281_v39, 0.0  ;;  %v13319_v45 = vmul.f32 0.01, %v12281_v39  ;;  %vm13285_vm15 = vcmp.ge.f32.partialorder %v12198_v41, 0.0  ;;  %v13317_v14 = vmul.f32 0.01, %v12198_v41 }
0x1422   :  { %v12276_v63 = vadd.f32 %v12275_v3, %v11825_v35  ;;  %v12193_v62 = vadd.f32 %v12192_v27, %v11815_v20 }
0x1423   :  { %v23653_v32 = vsel %vm13287_vm13, %v12281_v39, %v13319_v45  ;;  %v23655_v37 = vsel %vm13285_vm15, %v12198_v41, %v13317_v14  ;;  %v11855_v14 = vpop.permute.xlu0 %11854  ;;  %v11865_v35 = vpop.permute.xlu1 %11864 }
0x1424   :  { %13518 = vrot.lane.b32.xlu1 %v23653_v32, %s20035_s27  ;;  %13514 = vrot.lane.b32.xlu0 %v23655_v37, %s20035_s27  ;;  %v13318_v60 = vmul.f32 0.01, %v12276_v63  ;;  %v13316_v5 = vmul.f32 0.01, %v12193_v62  ;;  %vm13286_vm3 = vcmp.ge.f32.partialorder %v12276_v63, 0.0  ;;  %vm13284_vm10 = vcmp.ge.f32.partialorder %v12193_v62, 0.0 }
0x1426   :  { %v23665_v28 = vsel %vm13286_vm3, %v12276_v63, %v13318_v60  ;;  %v23667_v17 = vsel %vm13284_vm10, %v12193_v62, %v13316_v5 }
0x1428   :  { %13422 = vrot.lane.b32.xlu1 %v23653_v32, %s20037_s29  ;;  %13418 = vrot.lane.b32.xlu0 %v23655_v37, %s20037_s29 }
0x142c   :  { %13516 = vrot.lane.b32.xlu1 %v23665_v28, %s20035_s27  ;;  %13512 = vrot.lane.b32.xlu0 %v23667_v17, %s20035_s27 }
0x142e   :  { %v19250_v7 = vpop.f32.mrf.mxu0  ;;  %v19259_v12 = vpop.f32.mrf.mxu1 }
0x142f   :  { %v12364_v59 = vadd.f32 %v19250_v7, %v11840_v58  ;;  %v12447_v57 = vadd.f32 %v19259_v12, %v11850_v25  ;;  %v11880_v12 = vpop.permute.xlu0 %11879 }
0x1430   :  { %v12358_v18 = vpop.f32.mrf.mxu0  ;;  %v12441_v19 = vpop.f32.mrf.mxu1  ;;  %13420 = vrot.lane.b32.xlu1 %v23665_v28, %s20037_s29  ;;  %13416 = vrot.lane.b32.xlu0 %v23667_v17, %s20037_s29 }
0x1431   :  { %vm13289_vm7 = vcmp.ge.f32.partialorder %v12364_v59, 0.0  ;;  %v13321_v46 = vmul.f32 0.01, %v12364_v59  ;;  %vm13291_vm14 = vcmp.ge.f32.partialorder %v12447_v57, 0.0  ;;  %v13323_v8 = vmul.f32 0.01, %v12447_v57 }
0x1432   :  { %v12359_v30 = vadd.f32 %v12358_v18, %v11835_v44  ;;  %v12442_v52 = vadd.f32 %v12441_v19, %v11845_v36 }
0x1433   :  { %v23677_v34 = vsel %vm13291_vm14, %v12447_v57, %v13323_v8  ;;  %v23679_v15 = vsel %vm13289_vm7, %v12364_v59, %v13321_v46  ;;  %v11890_v57 = vpop.permute.xlu1 %11889 }
0x1434   :  { %13526 = vrot.lane.b32.xlu1 %v23677_v34, %s20035_s27  ;;  %13522 = vrot.lane.b32.xlu0 %v23679_v15, %s20035_s27  ;;  %v13320_v2 = vmul.f32 0.01, %v12359_v30  ;;  %v13322_v54 = vmul.f32 0.01, %v12442_v52  ;;  %vm13288_vm6 = vcmp.ge.f32.partialorder %v12359_v30, 0.0  ;;  %vm13290_vm8 = vcmp.ge.f32.partialorder %v12442_v52, 0.0 }
0x1436   :  { %v23689_v61 = vsel %vm13290_vm8, %v12442_v52, %v13322_v54  ;;  %v23691_v42 = vsel %vm13288_vm6, %v12359_v30, %v13320_v2  ;;  %v11875_v2 = vpop.permute.xlu0 %11874 }
0x1438   :  { %13430 = vrot.lane.b32.xlu1 %v23677_v34, %s20037_s29  ;;  %13426 = vrot.lane.b32.xlu0 %v23679_v15, %s20037_s29 }
0x143c   :  { %13524 = vrot.lane.b32.xlu1 %v23689_v61, %s20035_s27  ;;  %13520 = vrot.lane.b32.xlu0 %v23691_v42, %s20035_s27 }
0x143e   :  { %v19268_v4 = vpop.f32.mrf.mxu0 }
0x143f   :  { %v12530_v13 = vadd.f32 %v19268_v4, %v11860_v16  ;;  %v11885_v16 = vpop.permute.xlu1 %11884 }
0x1440   :  { %v19277_v39 = vpop.f32.mrf.mxu1  ;;  %13428 = vrot.lane.b32.xlu1 %v23689_v61, %s20037_s29  ;;  %13424 = vrot.lane.b32.xlu0 %v23691_v42, %s20037_s29  ;;  %v12524_v27 = vpop.f32.mrf.mxu0 }
0x1441   :  { %vm13293_vm9 = vcmp.ge.f32.partialorder %v12530_v13, 0.0  ;;  %v13325_v41 = vmul.f32 0.01, %v12530_v13  ;;  %v12613_v3 = vadd.f32 %v19277_v39, %v11870_v50  ;;  %v12525_v63 = vadd.f32 %v12524_v27, %v11855_v14  ;;  %v11900_v27 = vpop.permute.xlu0 %11899 }
0x1442   :  { %v12607_v45 = vpop.f32.mrf.mxu1 }
0x1443   :  { %vm13295_vm5 = vcmp.ge.f32.partialorder %v12613_v3, 0.0  ;;  %v13327_v20 = vmul.f32 0.01, %v12613_v3  ;;  %v23701_v62 = vsel %vm13293_vm9, %v12530_v13, %v13325_v41  ;;  %v12608_v60 = vadd.f32 %v12607_v45, %v11865_v35  ;;  %v11910_v14 = vpop.permute.xlu1 %11909 }
0x1444   :  { %13530 = vrot.lane.b32.xlu0 %v23701_v62, %s20035_s27  ;;  %v13324_v58 = vmul.f32 0.01, %v12525_v63  ;;  %vm13292_vm13 = vcmp.ge.f32.partialorder %v12525_v63, 0.0 }
0x1445   :  { %v23703_v5 = vsel %vm13295_vm5, %v12613_v3, %v13327_v20  ;;  %v13326_v25 = vmul.f32 0.01, %v12608_v60  ;;  %vm13294_vm15 = vcmp.ge.f32.partialorder %v12608_v60, 0.0 }
0x1446   :  { %13534 = vrot.lane.b32.xlu1 %v23703_v5, %s20035_s27  ;;  %v23713_v7 = vsel %vm13292_vm13, %v12525_v63, %v13324_v58 }
0x1447   :  { %v23715_v59 = vsel %vm13294_vm15, %v12608_v60, %v13326_v25 }
0x1448   :  { %13434 = vrot.lane.b32.xlu0 %v23701_v62, %s20037_s29 }
0x144a   :  { %13438 = vrot.lane.b32.xlu1 %v23703_v5, %s20037_s29 }
0x144c   :  { %13528 = vrot.lane.b32.xlu0 %v23713_v7, %s20035_s27 }
0x144e   :  { %13532 = vrot.lane.b32.xlu1 %v23715_v59, %s20035_s27  ;;  %v19286_v18 = vpop.f32.mrf.mxu0 }
0x144f   :  { %v12696_v19 = vadd.f32 %v19286_v18, %v11880_v12  ;;  %v19295_v46 = vpop.f32.mrf.mxu1  ;;  %v11895_v18 = vpop.permute.xlu0 %11894 }
0x1450   :  { %v12779_v8 = vadd.f32 %v19295_v46, %v11890_v57  ;;  %v12690_v36 = vpop.f32.mrf.mxu0  ;;  %13432 = vrot.lane.b32.xlu0 %v23713_v7, %s20037_s29  ;;  %v11905_v46 = vpop.permute.xlu1 %11904 }
0x1451   :  { %vm13297_vm3 = vcmp.ge.f32.partialorder %v12696_v19, 0.0  ;;  %v13329_v44 = vmul.f32 0.01, %v12696_v19  ;;  %v12773_v52 = vpop.f32.mrf.mxu1  ;;  %v12691_v50 = vadd.f32 %v12690_v36, %v11875_v2 }
0x1452   :  { %vm13299_vm10 = vcmp.ge.f32.partialorder %v12779_v8, 0.0  ;;  %v13331_v30 = vmul.f32 0.01, %v12779_v8  ;;  %13436 = vrot.lane.b32.xlu1 %v23715_v59, %s20037_s29  ;;  %v12774_v13 = vadd.f32 %v12773_v52, %v11885_v16 }
0x1453   :  { %v23725_v54 = vsel %vm13297_vm3, %v12696_v19, %v13329_v44  ;;  %v13328_v39 = vmul.f32 0.01, %v12691_v50  ;;  %vm13296_vm7 = vcmp.ge.f32.partialorder %v12691_v50, 0.0  ;;  %v11920_v2 = vpop.permute.xlu0 %11919 }
0x1454   :  { %v23727_v4 = vsel %vm13299_vm10, %v12779_v8, %v13331_v30  ;;  %13538 = vrot.lane.b32.xlu0 %v23725_v54, %s20035_s27  ;;  %v13330_v41 = vmul.f32 0.01, %v12774_v13  ;;  %vm13298_vm14 = vcmp.ge.f32.partialorder %v12774_v13, 0.0 }
0x1455   :  { %v23737_v3 = vsel %vm13296_vm7, %v12691_v50, %v13328_v39 }
0x1456   :  { %13542 = vrot.lane.b32.xlu1 %v23727_v4, %s20035_s27  ;;  %v23739_v45 = vsel %vm13298_vm14, %v12774_v13, %v13330_v41  ;;  %v11930_v13 = vpop.permute.xlu1 %11929 }
0x1458   :  { %13442 = vrot.lane.b32.xlu0 %v23725_v54, %s20037_s29 }
0x145a   :  { %13446 = vrot.lane.b32.xlu1 %v23727_v4, %s20037_s29 }
0x145c   :  { %13536 = vrot.lane.b32.xlu0 %v23737_v3, %s20035_s27 }
0x145e   :  { %13540 = vrot.lane.b32.xlu1 %v23739_v45, %s20035_s27  ;;  %v19304_v20 = vpop.f32.mrf.mxu0 }
0x145f   :  { %v12862_v35 = vadd.f32 %v19304_v20, %v11900_v27  ;;  %v19313_v63 = vpop.f32.mrf.mxu1 }
0x1460   :  { %v12945_v60 = vadd.f32 %v19313_v63, %v11910_v14  ;;  %v12856_v25 = vpop.f32.mrf.mxu0  ;;  %13440 = vrot.lane.b32.xlu0 %v23737_v3, %s20037_s29  ;;  %v11915_v63 = vpop.permute.xlu0 %11914 }
0x1461   :  { %vm13301_vm6 = vcmp.ge.f32.partialorder %v12862_v35, 0.0  ;;  %v13333_v58 = vmul.f32 0.01, %v12862_v35  ;;  %v12939_v57 = vpop.f32.mrf.mxu1  ;;  %v12857_v8 = vadd.f32 %v12856_v25, %v11895_v18 }
0x1462   :  { %vm13303_vm8 = vcmp.ge.f32.partialorder %v12945_v60, 0.0  ;;  %v13335_v12 = vmul.f32 0.01, %v12945_v60  ;;  %13444 = vrot.lane.b32.xlu1 %v23739_v45, %s20037_s29  ;;  %v12940_v36 = vadd.f32 %v12939_v57, %v11905_v46 }
0x1463   :  { %v23749_v19 = vsel %vm13301_vm6, %v12862_v35, %v13333_v58  ;;  %v13332_v30 = vmul.f32 0.01, %v12857_v8  ;;  %vm13300_vm9 = vcmp.ge.f32.partialorder %v12857_v8, 0.0 }
0x1464   :  { %v23751_v44 = vsel %vm13303_vm8, %v12945_v60, %v13335_v12  ;;  %13546 = vrot.lane.b32.xlu0 %v23749_v19, %s20035_s27  ;;  %v13334_v52 = vmul.f32 0.01, %v12940_v36  ;;  %vm13302_vm5 = vcmp.ge.f32.partialorder %v12940_v36, 0.0  ;;  %v11925_v12 = vpop.permute.xlu1 %11924 }
0x1465   :  { %v23761_v16 = vsel %vm13300_vm9, %v12857_v8, %v13332_v30  ;;  %v11940_v8 = vpop.permute.xlu0 %11939  ;;  %vm14880_vm9 = vcmask 15360  }
0x1466   :  { %13550 = vrot.lane.b32.xlu1 %v23751_v44, %s20035_s27  ;;  %v23765_v50 = vsel %vm13302_vm5, %v12940_v36, %v13334_v52 }
0x1468   :  { %13450 = vrot.lane.b32.xlu0 %v23749_v19, %s20037_s29  ;;  %v11950_v52 = vpop.permute.xlu1 %11949 }
0x146a   :  { %13454 = vrot.lane.b32.xlu1 %v23751_v44, %s20037_s29 }
0x146c   :  { %13544 = vrot.lane.b32.xlu0 %v23761_v16, %s20035_s27 }
0x146e   :  { %13548 = vrot.lane.b32.xlu1 %v23765_v50, %s20035_s27  ;;  %v19322_v39 = vpop.f32.mrf.mxu0 }
0x146f   :  { %v13028_v41 = vadd.f32 %v19322_v39, %v11920_v2  ;;  %v19331_v27 = vpop.f32.mrf.mxu1  ;;  %v11935_v39 = vpop.permute.xlu0 %11934 }
0x1470   :  { %v13111_v14 = vadd.f32 %v19331_v27, %v11930_v13  ;;  %v13022_v35 = vpop.f32.mrf.mxu0  ;;  %13448 = vrot.lane.b32.xlu0 %v23761_v16, %s20037_s29 }
0x1471   :  { %vm13305_vm13 = vcmp.ge.f32.partialorder %v13028_v41, 0.0  ;;  %v13337_v20 = vmul.f32 0.01, %v13028_v41  ;;  %v13105_v58 = vpop.f32.mrf.mxu1  ;;  %v13023_v57 = vadd.f32 %v13022_v35, %v11915_v63  ;;  %v11945_v35 = vpop.permute.xlu1 %11944 }
0x1472   :  { %vm13307_vm15 = vcmp.ge.f32.partialorder %v13111_v14, 0.0  ;;  %v13339_v60 = vmul.f32 0.01, %v13111_v14  ;;  %13452 = vrot.lane.b32.xlu1 %v23765_v50, %s20037_s29  ;;  %v13106_v46 = vadd.f32 %v13105_v58, %v11925_v12 }
0x1473   :  { %v23773_v25 = vsel %vm13305_vm13, %v13028_v41, %v13337_v20  ;;  %v13336_v36 = vmul.f32 0.01, %v13023_v57  ;;  %vm13304_vm3 = vcmp.ge.f32.partialorder %v13023_v57, 0.0 }
0x1474   :  { %v23775_v18 = vsel %vm13307_vm15, %v13111_v14, %v13339_v60  ;;  %13554 = vrot.lane.b32.xlu0 %v23773_v25, %s20035_s27  ;;  %v13338_v30 = vmul.f32 0.01, %v13106_v46  ;;  %vm13306_vm10 = vcmp.ge.f32.partialorder %v13106_v46, 0.0 }
0x1475   :  { %v23785_v2 = vsel %vm13304_vm3, %v13023_v57, %v13336_v36 }
0x1476   :  { %13558 = vrot.lane.b32.xlu1 %v23775_v18, %s20035_s27  ;;  %v23789_v13 = vsel %vm13306_vm10, %v13106_v46, %v13338_v30 }
0x1478   :  { %13458 = vrot.lane.b32.xlu0 %v23773_v25, %s20037_s29 }
0x147a   :  { %13462 = vrot.lane.b32.xlu1 %v23775_v18, %s20037_s29 }
0x147c   :  { %13552 = vrot.lane.b32.xlu0 %v23785_v2, %s20035_s27 }
0x147e   :  { %13556 = vrot.lane.b32.xlu1 %v23789_v13, %s20035_s27  ;;  %v19340_v41 = vpop.f32.mrf.mxu0 }
0x147f   :  { %v13194_v27 = vadd.f32 %v19340_v41, %v11940_v8  ;;  %v19349_v14 = vpop.f32.mrf.mxu1 }
0x1480   :  { %v13277_v20 = vadd.f32 %v19349_v14, %v11950_v52  ;;  %v13188_v60 = vpop.f32.mrf.mxu0  ;;  %13456 = vrot.lane.b32.xlu0 %v23785_v2, %s20037_s29 }
0x1481   :  { %vm13309_vm7 = vcmp.ge.f32.partialorder %v13194_v27, 0.0  ;;  %v13341_v63 = vmul.f32 0.01, %v13194_v27  ;;  %v13271_v12 = vpop.f32.mrf.mxu1  ;;  %v13189_v8 = vadd.f32 %v13188_v60, %v11935_v39 }
0x1482   :  { %vm13311_vm14 = vcmp.ge.f32.partialorder %v13277_v20, 0.0  ;;  %v13343_v58 = vmul.f32 0.01, %v13277_v20  ;;  %13460 = vrot.lane.b32.xlu1 %v23789_v13, %s20037_s29  ;;  %v13507_v57 = vpop.permute.xlu0 %13506  ;;  %v13272_v30 = vadd.f32 %v13271_v12, %v11945_v35 }
0x1483   :  { %19351 = vmatpush3.msra.mxu0 %v13507_v57  ;;  %v23797_v46 = vsel %vm13309_vm7, %v13194_v27, %v13341_v63  ;;  %v13340_v14 = vmul.f32 0.01, %v13189_v8  ;;  %vm13308_vm6 = vcmp.ge.f32.partialorder %v13189_v8, 0.0  ;;  %v287_v57 = vld [vmem:[%s24317_s3 + $0xa0] sm:$0xf] }
0x1484   :  { %v23799_v36 = vsel %vm13311_vm14, %v13277_v20, %v13343_v58  ;;  %19352 = vmatprep.subr.mxu0 %v20028_v1  ;;  %13562 = vrot.lane.b32.xlu0 %v23797_v46, %s20035_s27  ;;  %v13342_v27 = vmul.f32 0.01, %v13272_v30  ;;  %vm13310_vm8 = vcmp.ge.f32.partialorder %v13272_v30, 0.0 }
0x1485   :  { %v13511_v52 = vpop.permute.xlu1 %13510  ;;  %v23812_v35 = vsel %vm13308_vm6, %v13189_v8, %v13340_v14  ;;  %v351_v8 = vld [vmem:[%s24318_s4 + $0xc0] sm:$0xf] }
0x1486   :  { %13566 = vrot.lane.b32.xlu1 %v23799_v36, %s20035_s27  ;;  %v13411_v41 = vpop.permute.xlu0 %13410  ;;  %19366 = vmatpush3.msra.mxu1 %v13511_v52  ;;  %v23816_v63 = vsel %vm13310_vm8, %v13272_v30, %v13342_v27 }
0x1487   :  { %19367 = vmatprep.subr.mxu1 %v20028_v1 }
0x1488   :  { %13466 = vrot.lane.b32.xlu0 %v23797_v46, %s20037_s29 }
0x1489   :  { %v13415_v39 = vpop.permute.xlu1 %13414 }
0x148a   :  { %13470 = vrot.lane.b32.xlu1 %v23799_v36, %s20037_s29  ;;  %v13505_v20 = vpop.permute.xlu0 %13504 }
0x148b   :  { %19353 = vmatpush3.msra.mxu0 %v13505_v20 }
0x148c   :  { %19354 = vmatprep.subr.mxu0 %v20028_v1  ;;  %13560 = vrot.lane.b32.xlu0 %v23812_v35, %s20035_s27 }
0x148d   :  { %19355 = vmatpush3.msra.mxu0 %v13411_v41  ;;  %v13509_v60 = vpop.permute.xlu1 %13508  ;;  %v288_v41 = vld [vmem:[%s24317_s3 + $0xa4] sm:$0xf] }
0x148e   :  { %13564 = vrot.lane.b32.xlu1 %v23816_v63, %s20035_s27  ;;  %19356 = vmatprep.subr.mxu0 %v20028_v1  ;;  %v13409_v58 = vpop.permute.xlu0 %13408 }
0x148f   :  { %19357 = vmatpush3.msra.mxu0 %v13409_v58  ;;  %19368 = vmatpush3.msra.mxu1 %v13509_v60  ;;  %v357_v58 = vld [vmem:[%s24318_s4 + $0xd8] sm:$0xf] }
0x1490   :  { %19358 = vmatprep.subr.mxu0 %v20028_v1  ;;  %19369 = vmatprep.subr.mxu1 %v20028_v1 }
0x1491   :  { %13464 = vrot.lane.b32.xlu0 %v23812_v35, %s20037_s29  ;;  %19359 = vmatpush3.msra.mxu0 %v23629_v40  ;;  %v13413_v12 = vpop.permute.xlu1 %13412  ;;  %v352_v40 = vld [vmem:[%s24318_s4 + $0xc4] sm:$0xf] }
0x1492   :  { %19370 = vmatpush3.msra.mxu1 %v13415_v39  ;;  %13468 = vrot.lane.b32.xlu1 %v23816_v63, %s20037_s29  ;;  %v355_v39 = vld [vmem:[%s24318_s4 + $0xd0] sm:$0xf] }
0x1493   :  { %19360 = vmatprep.subr.mxu0 %v20028_v1  ;;  %19371 = vmatprep.subr.mxu1 %v20028_v1 }
0x1494   :  { %19361 = vmatpush3.msra.mxu0 %v23639_v56  ;;  %19372 = vmatpush3.msra.mxu1 %v13413_v12  ;;  %v353_v56 = vld [vmem:[%s24318_s4 + $0xc8] sm:$0xf]  ;;  %v358_v12 = vld [vmem:[%s24318_s4 + $0xdc] sm:$0xf] }
0x1495   :  { %19363 = vmatmul.mubr.msk.f32.vlgmr.msra.gmra.mxu0 %vm1253_vm11, %v287_v57  ;;  %19373 = vmatprep.subr.mxu1 %v20028_v1 }
0x1496   :  { %13642 = vperm.xlu0 %19835, %v351_v8   ;;  %19374 = vmatpush3.msra.mxu1 %v23633_v49  ;;  %v13519_v30 = vpop.permute.xlu1 %13518  ;;  %v13515_v52 = vpop.permute.xlu0 %13514  ;;  %v354_v49 = vld [vmem:[%s24318_s4 + $0xcc] sm:$0xf] }
0x1497   :  { %13647 = vperm.xlu1 %19837, %v352_v40   ;;  %19375 = vmatprep.subr.mxu1 %v20028_v1  ;;  %v343_v40 = vld [vmem:[%s24318_s4 + $0xa0] sm:$0xf] }
0x1498   :  { %19380 = vmatprep.subr.mxu0 %v20028_v1  ;;  %19376 = vmatpush3.msra.mxu1 %v23645_v55  ;;  %v356_v55 = vld [vmem:[%s24318_s4 + $0xd4] sm:$0xf] }
0x1499   :  { %19381 = vmatpush3.msra.mxu0 %v13515_v52  ;;  %19378 = vmatmul.mubr.msk.f32.vlgmr.msra.gmra.mxu1 %vm1253_vm11, %v288_v41 }
0x149a   :  { %19395 = vmatprep.subr.mxu1 %v20028_v1  ;;  %13652 = vperm.xlu0 %19835, %v353_v56   ;;  %v13423_v14 = vpop.permute.xlu1 %13422  ;;  %v13419_v27 = vpop.permute.xlu0 %13418  ;;  %v345_v56 = vld [vmem:[%s24318_s4 + $0xa8] sm:$0xf] }
0x149b   :  { %19396 = vmatpush3.msra.mxu1 %v13519_v30  ;;  %13657 = vperm.xlu1 %19837, %v354_v49   ;;  %v344_v30 = vld [vmem:[%s24318_s4 + $0xa4] sm:$0xf]  ;;  %v290_v49 = vld [vmem:[%s24317_s3 + $0xac] sm:$0xf] }
0x149c   :  { %19397 = vmatprep.subr.mxu1 %v20028_v1  ;;  %19382 = vmatprep.subr.mxu0 %v20028_v1 }
0x149d   :  { %19392 = vmatprep.mubr.msk.f32.mxu0 %vm20029_vm0, %v20028_v1  ;;  %19407 = vmatprep.mubr.msk.f32.mxu1 %vm20029_vm0, %v20028_v1 }
0x149e   :  { %13662 = vperm.xlu0 %19835, %v355_v39   ;;  %v13517_v20 = vpop.permute.xlu1 %13516  ;;  %v13513_v60 = vpop.permute.xlu0 %13512 }
0x149f   :  { %13667 = vperm.xlu1 %19837, %v356_v55   ;;  %19383 = vmatpush3.msra.mxu0 %v13513_v60  ;;  %v350_v60 = vld [vmem:[%s24318_s4 + $0xbc] sm:$0xf] }
0x14a0   :  { %19398 = vmatpush3.msra.mxu1 %v13517_v20  ;;  %19384 = vmatprep.subr.mxu0 %v20028_v1  ;;  %v349_v20 = vld [vmem:[%s24318_s4 + $0xb8] sm:$0xf] }
0x14a1   :  { %19399 = vmatprep.subr.mxu1 %v20028_v1  ;;  %19385 = vmatpush3.msra.mxu0 %v13419_v27 }
0x14a2   :  { %13672 = vperm.xlu0 %19835, %v357_v58   ;;  %19400 = vmatpush3.msra.mxu1 %v13423_v14  ;;  %v13421_v57 = vpop.permute.xlu1 %13420  ;;  %v13417_v8 = vpop.permute.xlu0 %13416 }
0x14a3   :  { %13677 = vperm.xlu1 %19837, %v358_v12   ;;  %19401 = vmatprep.subr.mxu1 %v20028_v1 }
0x14a4   :  { %19386 = vmatprep.subr.mxu0 %v20028_v1  ;;  %19402 = vmatpush3.msra.mxu1 %v13421_v57 }
0x14a5   :  { %19387 = vmatpush3.msra.mxu0 %v13417_v8  ;;  %19403 = vmatprep.subr.mxu1 %v20028_v1 }
0x14a6   :  { %13602 = vperm.xlu0 %19835, %v343_v40   ;;  %19388 = vmatprep.subr.mxu0 %v20028_v1  ;;  %v13527_v52 = vpop.permute.xlu1 %13526  ;;  %v13523_v41 = vpop.permute.xlu0 %13522  ;;  %v291_v40 = vld [vmem:[%s24317_s3 + $0xb0] sm:$0xf] }
0x14a7   :  { %13607 = vperm.xlu1 %19837, %v344_v30   ;;  %19389 = vmatpush3.msra.mxu0 %v23655_v37  ;;  %v289_v37 = vld [vmem:[%s24317_s3 + $0xa8] sm:$0xf]  ;;  %v292_v30 = vld [vmem:[%s24317_s3 + $0xb4] sm:$0xf] }
0x14a8   :  { %19404 = vmatpush3.msra.mxu1 %v23653_v32  ;;  %19390 = vmatprep.subr.mxu0 %v20028_v1  ;;  %v346_v32 = vld [vmem:[%s24318_s4 + $0xac] sm:$0xf] }
0x14a9   :  { %19405 = vmatprep.subr.mxu1 %v20028_v1  ;;  %19391 = vmatpush3.msra.mxu0 %v23667_v17  ;;  %v347_v17 = vld [vmem:[%s24318_s4 + $0xb0] sm:$0xf] }
0x14aa   :  { %19406 = vmatpush3.msra.mxu1 %v23665_v28  ;;  %13612 = vperm.xlu0 %19835, %v345_v56   ;;  %v13431_v14 = vpop.permute.xlu1 %13430  ;;  %v13427_v27 = vpop.permute.xlu0 %13426  ;;  %v348_v28 = vld [vmem:[%s24318_s4 + $0xb4] sm:$0xf]  ;;  %v293_v56 = vld [vmem:[%s24317_s3 + $0xb8] sm:$0xf] }
0x14ab   :  { %19408 = vmatmul.mubr.msk.f32.vlgmr.msra.gmra.mxu1 %vm1253_vm11, %v290_v49  ;;  %19425 = vmatprep.subr.mxu1 %v20028_v1 }
0x14ac   :  { %19393 = vmatmul.mubr.msk.f32.vlgmr.msra.gmra.mxu0 %vm1253_vm11, %v289_v37  ;;  %19410 = vmatprep.subr.mxu0 %v20028_v1  ;;  %v294_v37 = vld [vmem:[%s24317_s3 + $0xbc] sm:$0xf] }
0x14ad   :  { %13617 = vperm.xlu1 %19837, %v346_v32   ;;  %19411 = vmatpush3.msra.mxu0 %v13523_v41 }
0x14ae   :  { %19426 = vmatpush3.msra.mxu1 %v13527_v52  ;;  %13622 = vperm.xlu0 %19835, %v347_v17   ;;  %v13525_v39 = vpop.permute.xlu1 %13524  ;;  %v13521_v55 = vpop.permute.xlu0 %13520  ;;  %v295_v17 = vld [vmem:[%s24317_s3 + $0xc0] sm:$0xf] }
0x14af   :  { %19427 = vmatprep.subr.mxu1 %v20028_v1  ;;  %19412 = vmatprep.subr.mxu0 %v20028_v1 }
0x14b0   :  { %19413 = vmatpush3.msra.mxu0 %v13521_v55  ;;  %19428 = vmatpush3.msra.mxu1 %v13525_v39  ;;  %v296_v39 = vld [vmem:[%s24317_s3 + $0xc4] sm:$0xf] }
0x14b1   :  { %13627 = vperm.xlu1 %19837, %v348_v28   ;;  %19429 = vmatprep.subr.mxu1 %v20028_v1 }
0x14b2   :  { %13632 = vperm.xlu0 %19835, %v349_v20   ;;  %19414 = vmatprep.subr.mxu0 %v20028_v1  ;;  %v13429_v58 = vpop.permute.xlu1 %13428  ;;  %v13425_v12 = vpop.permute.xlu0 %13424 }
0x14b3   :  { %19415 = vmatpush3.msra.mxu0 %v13427_v27  ;;  %19430 = vmatpush3.msra.mxu1 %v13431_v14 }
0x14b4   :  { %19431 = vmatprep.subr.mxu1 %v20028_v1  ;;  %19416 = vmatprep.subr.mxu0 %v20028_v1 }
0x14b5   :  { %13637 = vperm.xlu1 %19837, %v350_v60   ;;  %19417 = vmatpush3.msra.mxu0 %v13425_v12 }
0x14b6   :  { %19432 = vmatpush3.msra.mxu1 %v13429_v58  ;;  %19418 = vmatprep.subr.mxu0 %v20028_v1  ;;  %v13531_v57 = vpop.permute.xlu0 %13530  ;;  %v297_v58 = vld [vmem:[%s24317_s3 + $0xc8] sm:$0xf] }
0x14b7   :  { %19433 = vmatprep.subr.mxu1 %v20028_v1  ;;  %19419 = vmatpush3.msra.mxu0 %v23679_v15 }
0x14b8   :  { %19434 = vmatpush3.msra.mxu1 %v23677_v34  ;;  %v13535_v8 = vpop.permute.xlu1 %13534  ;;  %19420 = vmatprep.subr.mxu0 %v20028_v1 }
0x14b9   :  { %19435 = vmatprep.subr.mxu1 %v20028_v1  ;;  %19421 = vmatpush3.msra.mxu0 %v23691_v42 }
0x14ba   :  { %19422 = vmatprep.mubr.msk.f32.mxu0 %vm20029_vm0, %v20028_v1  ;;  %19436 = vmatpush3.msra.mxu1 %v23689_v61  ;;  %v13435_v34 = vpop.permute.xlu0 %13434 }
0x14bb   :  { %19437 = vmatprep.mubr.msk.f32.mxu1 %vm20029_vm0, %v20028_v1  ;;  %19423 = vmatmul.mubr.msk.f32.vlgmr.msra.gmra.mxu0 %vm1253_vm11, %v291_v40 }
0x14bc   :  { %19438 = vmatmul.mubr.msk.f32.vlgmr.msra.gmra.mxu1 %vm1253_vm11, %v292_v30  ;;  %19440 = vmatprep.subr.mxu0 %v20028_v1  ;;  %v13439_v15 = vpop.permute.xlu1 %13438 }
0x14bd   :  { %19455 = vmatprep.subr.mxu1 %v20028_v1  ;;  %19441 = vmatpush3.msra.mxu0 %v13531_v57  ;;  %v298_v57 = vld [vmem:[%s24317_s3 + $0xcc] sm:$0xf] }
0x14be   :  { %19456 = vmatpush3.msra.mxu1 %v13535_v8  ;;  %19442 = vmatprep.subr.mxu0 %v20028_v1  ;;  %v13529_v61 = vpop.permute.xlu0 %13528 }
0x14bf   :  { %19457 = vmatprep.subr.mxu1 %v20028_v1  ;;  %19452 = vmatprep.mubr.msk.f32.mxu0 %vm20029_vm0, %v20028_v1 }
0x14c0   :  { %v13533_v42 = vpop.permute.xlu1 %13532  ;;  %19443 = vmatpush3.msra.mxu0 %v13529_v61  ;;  %19467 = vmatprep.mubr.msk.f32.mxu1 %vm20029_vm0, %v20028_v1  ;;  %v300_v61 = vld [vmem:[%s24317_s3 + $0xd4] sm:$0xf] }
0x14c1   :  { %19458 = vmatpush3.msra.mxu1 %v13533_v42  ;;  %19444 = vmatprep.subr.mxu0 %v20028_v1 }
0x14c2   :  { %19459 = vmatprep.subr.mxu1 %v20028_v1  ;;  %19445 = vmatpush3.msra.mxu0 %v13435_v34  ;;  %v13433_v52 = vpop.permute.xlu0 %13432  ;;  %v299_v34 = vld [vmem:[%s24317_s3 + $0xd0] sm:$0xf] }
0x14c3   :  { %19460 = vmatpush3.msra.mxu1 %v13439_v15  ;;  %19446 = vmatprep.subr.mxu0 %v20028_v1 }
0x14c4   :  { %19461 = vmatprep.subr.mxu1 %v20028_v1  ;;  %v13437_v41 = vpop.permute.xlu1 %13436  ;;  %19447 = vmatpush3.msra.mxu0 %v13433_v52 }
0x14c5   :  { %19462 = vmatpush3.msra.mxu1 %v13437_v41  ;;  %19448 = vmatprep.subr.mxu0 %v20028_v1 }
0x14c6   :  { %19463 = vmatprep.subr.mxu1 %v20028_v1  ;;  %19449 = vmatpush3.msra.mxu0 %v23701_v62  ;;  %v13539_v49 = vpop.permute.xlu0 %13538 }
0x14c7   :  { %19464 = vmatpush3.msra.mxu1 %v23703_v5  ;;  %19450 = vmatprep.subr.mxu0 %v20028_v1 }
0x14c8   :  { %19465 = vmatprep.subr.mxu1 %v20028_v1  ;;  %v13543_v32 = vpop.permute.xlu1 %13542  ;;  %19451 = vmatpush3.msra.mxu0 %v23713_v7 }
0x14c9   :  { %19466 = vmatpush3.msra.mxu1 %v23715_v59  ;;  %19453 = vmatmul.mubr.msk.f32.vlgmr.msra.gmra.mxu0 %vm1253_vm11, %v293_v56  ;;  %v301_v56 = vld [vmem:[%s24317_s3 + $0xd8] sm:$0xf] }
0x14ca   :  { %19468 = vmatmul.mubr.msk.f32.vlgmr.msra.gmra.mxu1 %vm1253_vm11, %v294_v37  ;;  %19470 = vmatprep.subr.mxu0 %v20028_v1  ;;  %v13443_v62 = vpop.permute.xlu0 %13442 }
0x14cb   :  { %19485 = vmatprep.subr.mxu1 %v20028_v1  ;;  %19471 = vmatpush3.msra.mxu0 %v13539_v49  ;;  %v302_v49 = vld [vmem:[%s24317_s3 + $0xdc] sm:$0xf]  ;;  %s20040_s3 = smov [#allocation2]  }
0x14cc   :  { %19486 = vmatpush3.msra.mxu1 %v13543_v32  ;;  %v13447_v5 = vpop.permute.xlu1 %13446  ;;  %19472 = vmatprep.subr.mxu0 %v20028_v1  ;;  %s16951_s6 = sshll.u32 %s20040_s3, 4  ;;  %s16952_s6 = int_to_ptr.vmem [resolvable:$true] %s16951_s6 }
0x14cd   :  { %19487 = vmatprep.subr.mxu1 %v20028_v1  ;;  %19497 = vmatprep.mubr.msk.f32.mxu1 %vm20029_vm0, %v20028_v1  ;;  %s20006_s2 = scalar_lea.vmem %s16952_s6, 128  ;;  %p20011_p1 = scmp.lt.s32.totalorder %s16952_s6, %s16952_s6 }
0x14ce   :  { %19482 = vmatprep.mubr.msk.f32.mxu0 %vm20029_vm0, %v20028_v1  ;;  %v13537_v7 = vpop.permute.xlu0 %13536  ;;  %p20007_p0 = scmp.ne.s32.totalorder %s16952_s6, %s20006_s2  ;;  %p20012_p2 = scmp.lt.s32.totalorder %s20006_s2, %s20006_s2 }
0x14cf   :  { %19473 = vmatpush3.msra.mxu0 %v13537_v7 }
0x14d0   :  { %v13541_v59 = vpop.permute.xlu1 %13540  ;;  %19474 = vmatprep.subr.mxu0 %v20028_v1  ;;  %p20013_p3 = por %p20012_p2, %p20011_p1 }
0x14d1   :  { %19488 = vmatpush3.msra.mxu1 %v13541_v59  ;;  %19475 = vmatpush3.msra.mxu0 %v13443_v62 }
0x14d2   :  { %19489 = vmatprep.subr.mxu1 %v20028_v1  ;;  %19476 = vmatprep.subr.mxu0 %v20028_v1  ;;  %v13441_v14 = vpop.permute.xlu0 %13440  ;;  %p20014_p4 = pnand %p20013_p3, %p20007_p0 }
0x14d3   :  { %19490 = vmatpush3.msra.mxu1 %v13447_v5  ;;  %19477 = vmatpush3.msra.mxu0 %v13441_v14 }
0x14d4   :  { %19491 = vmatprep.subr.mxu1 %v20028_v1  ;;  %v13445_v27 = vpop.permute.xlu1 %13444  ;;  %19478 = vmatprep.subr.mxu0 %v20028_v1 }
0x14d5   :  { %19492 = vmatpush3.msra.mxu1 %v13445_v27  ;;  %19479 = vmatpush3.msra.mxu0 %v23725_v54 }
0x14d6   :  { %19493 = vmatprep.subr.mxu1 %v20028_v1  ;;  %19480 = vmatprep.subr.mxu0 %v20028_v1  ;;  %v13547_v28 = vpop.permute.xlu0 %13546 }
0x14d7   :  { %19494 = vmatpush3.msra.mxu1 %v23727_v4  ;;  %19481 = vmatpush3.msra.mxu0 %v23737_v3 }
0x14d8   :  { %19495 = vmatprep.subr.mxu1 %v20028_v1  ;;  %v13551_v55 = vpop.permute.xlu1 %13550  ;;  %19483 = vmatmul.mubr.msk.f32.vlgmr.msra.gmra.mxu0 %vm1253_vm11, %v295_v17 }
0x14d9   :  { %19496 = vmatpush3.msra.mxu1 %v23739_v45  ;;  %19500 = vmatprep.subr.mxu0 %v20028_v1 }
0x14da   :  { %19498 = vmatmul.mubr.msk.f32.vlgmr.msra.gmra.mxu1 %vm1253_vm11, %v296_v39  ;;  %19515 = vmatprep.subr.mxu1 %v20028_v1  ;;  %v13451_v54 = vpop.permute.xlu0 %13450 }
0x14db   :  { %19501 = vmatpush3.msra.mxu0 %v13547_v28  ;;  %19516 = vmatpush3.msra.mxu1 %v13551_v55 }
0x14dc   :  { %v13455_v4 = vpop.permute.xlu1 %13454  ;;  %19502 = vmatprep.subr.mxu0 %v20028_v1  ;;  %19517 = vmatprep.subr.mxu1 %v20028_v1 }
0x14dd   :  { %19512 = vmatprep.mubr.msk.f32.mxu0 %vm20029_vm0, %v20028_v1  ;;  %19527 = vmatprep.mubr.msk.f32.mxu1 %vm20029_vm0, %v20028_v1 }
0x14de   :  { %v13545_v3 = vpop.permute.xlu0 %13544 }
0x14df   :  { %19503 = vmatpush3.msra.mxu0 %v13545_v3 }
0x14e0   :  { %v13549_v45 = vpop.permute.xlu1 %13548  ;;  %19504 = vmatprep.subr.mxu0 %v20028_v1 }
0x14e1   :  { %19518 = vmatpush3.msra.mxu1 %v13549_v45  ;;  %19505 = vmatpush3.msra.mxu0 %v13451_v54 }
0x14e2   :  { %19519 = vmatprep.subr.mxu1 %v20028_v1  ;;  %19506 = vmatprep.subr.mxu0 %v20028_v1  ;;  %v13449_v20 = vpop.permute.xlu0 %13448 }
0x14e3   :  { %19520 = vmatpush3.msra.mxu1 %v13455_v4  ;;  %19507 = vmatpush3.msra.mxu0 %v13449_v20 }
0x14e4   :  { %19521 = vmatprep.subr.mxu1 %v20028_v1  ;;  %v13453_v60 = vpop.permute.xlu1 %13452  ;;  %19508 = vmatprep.subr.mxu0 %v20028_v1 }
0x14e5   :  { %19522 = vmatpush3.msra.mxu1 %v13453_v60  ;;  %19509 = vmatpush3.msra.mxu0 %v23749_v19 }
0x14e6   :  { %19523 = vmatprep.subr.mxu1 %v20028_v1  ;;  %19510 = vmatprep.subr.mxu0 %v20028_v1  ;;  %v13555_v12 = vpop.permute.xlu0 %13554 }
0x14e7   :  { %19524 = vmatpush3.msra.mxu1 %v23751_v44  ;;  %19511 = vmatpush3.msra.mxu0 %v23761_v16 }
0x14e8   :  { %19525 = vmatprep.subr.mxu1 %v20028_v1  ;;  %v13559_v8 = vpop.permute.xlu1 %13558  ;;  %19513 = vmatmul.mubr.msk.f32.vlgmr.msra.gmra.mxu0 %vm1253_vm11, %v297_v58 }
0x14e9   :  { %19526 = vmatpush3.msra.mxu1 %v23765_v50  ;;  %19530 = vmatprep.subr.mxu0 %v20028_v1 }
0x14ea   :  { %19528 = vmatmul.mubr.msk.f32.vlgmr.msra.gmra.mxu1 %vm1253_vm11, %v298_v57  ;;  %19531 = vmatpush3.msra.mxu0 %v13555_v12  ;;  %v13459_v19 = vpop.permute.xlu0 %13458 }
0x14eb   :  { %19545 = vmatprep.subr.mxu1 %v20028_v1  ;;  %19532 = vmatprep.subr.mxu0 %v20028_v1 }
0x14ec   :  { %19546 = vmatpush3.msra.mxu1 %v13559_v8  ;;  %v13463_v44 = vpop.permute.xlu1 %13462  ;;  %19542 = vmatprep.mubr.msk.f32.mxu0 %vm20029_vm0, %v20028_v1 }
0x14ed   :  { %19547 = vmatprep.subr.mxu1 %v20028_v1  ;;  %19557 = vmatprep.mubr.msk.f32.mxu1 %vm20029_vm0, %v20028_v1 }
0x14ee   :  { %v13553_v16 = vpop.permute.xlu0 %13552 }
0x14ef   :  { %19533 = vmatpush3.msra.mxu0 %v13553_v16 }
0x14f0   :  { %v13557_v50 = vpop.permute.xlu1 %13556  ;;  %19534 = vmatprep.subr.mxu0 %v20028_v1 }
0x14f1   :  { %19548 = vmatpush3.msra.mxu1 %v13557_v50  ;;  %19535 = vmatpush3.msra.mxu0 %v13459_v19 }
0x14f2   :  { %19549 = vmatprep.subr.mxu1 %v20028_v1  ;;  %19536 = vmatprep.subr.mxu0 %v20028_v1  ;;  %v13457_v40 = vpop.permute.xlu0 %13456 }
0x14f3   :  { %19550 = vmatpush3.msra.mxu1 %v13463_v44  ;;  %19537 = vmatpush3.msra.mxu0 %v13457_v40 }
0x14f4   :  { %19551 = vmatprep.subr.mxu1 %v20028_v1  ;;  %v13461_v30 = vpop.permute.xlu1 %13460  ;;  %19538 = vmatprep.subr.mxu0 %v20028_v1 }
0x14f5   :  { %19552 = vmatpush3.msra.mxu1 %v13461_v30  ;;  %19539 = vmatpush3.msra.mxu0 %v23773_v25 }
0x14f6   :  { %19553 = vmatprep.subr.mxu1 %v20028_v1  ;;  %19540 = vmatprep.subr.mxu0 %v20028_v1  ;;  %v13563_v15 = vpop.permute.xlu0 %13562 }
0x14f7   :  { %19554 = vmatpush3.msra.mxu1 %v23775_v18  ;;  %19541 = vmatpush3.msra.mxu0 %v23785_v2 }
0x14f8   :  { %19555 = vmatprep.subr.mxu1 %v20028_v1  ;;  %v13567_v42 = vpop.permute.xlu1 %13566  ;;  %19543 = vmatmul.mubr.msk.f32.vlgmr.msra.gmra.mxu0 %vm1253_vm11, %v299_v34 }
0x14f9   :  { %19556 = vmatpush3.msra.mxu1 %v23789_v13  ;;  %19560 = vmatprep.subr.mxu0 %v20028_v1 }
0x14fa   :  { %19558 = vmatmul.mubr.msk.f32.vlgmr.msra.gmra.mxu1 %vm1253_vm11, %v300_v61  ;;  %19561 = vmatpush3.msra.mxu0 %v13563_v15  ;;  %v13467_v25 = vpop.permute.xlu0 %13466 }
0x14fb   :  { %19575 = vmatprep.subr.mxu1 %v20028_v1  ;;  %19562 = vmatprep.subr.mxu0 %v20028_v1 }
0x14fc   :  { %19576 = vmatpush3.msra.mxu1 %v13567_v42  ;;  %v13471_v18 = vpop.permute.xlu1 %13470  ;;  %19572 = vmatprep.mubr.msk.f32.mxu0 %vm20029_vm0, %v20028_v1 }
0x14fd   :  { %19577 = vmatprep.subr.mxu1 %v20028_v1  ;;  %19587 = vmatprep.mubr.msk.f32.mxu1 %vm20029_vm0, %v20028_v1 }
0x14fe   :  { %v13561_v2 = vpop.permute.xlu0 %13560 }
0x14ff   :  { %19563 = vmatpush3.msra.mxu0 %v13561_v2 }
0x1500   :  { %v13565_v13 = vpop.permute.xlu1 %13564  ;;  %19564 = vmatprep.subr.mxu0 %v20028_v1 }
0x1501   :  { %19578 = vmatpush3.msra.mxu1 %v13565_v13  ;;  %19565 = vmatpush3.msra.mxu0 %v13467_v25 }
0x1502   :  { %19579 = vmatprep.subr.mxu1 %v20028_v1  ;;  %19566 = vmatprep.subr.mxu0 %v20028_v1 }
0x1503   :  { %19580 = vmatpush3.msra.mxu1 %v13471_v18  ;;  %v13465_v52 = vpop.permute.xlu0 %13464 }
0x1504   :  { %19581 = vmatprep.subr.mxu1 %v20028_v1  ;;  %v13469_v41 = vpop.permute.xlu1 %13468  ;;  %19567 = vmatpush3.msra.mxu0 %v13465_v52 }
0x1505   :  { %19568 = vmatprep.subr.mxu0 %v20028_v1  ;;  %19582 = vmatpush3.msra.mxu1 %v13469_v41 }
0x1506   :  { %19569 = vmatpush3.msra.mxu0 %v23797_v46  ;;  %19583 = vmatprep.subr.mxu1 %v20028_v1 }
0x1507   :  { %19570 = vmatprep.subr.mxu0 %v20028_v1  ;;  %19584 = vmatpush3.msra.mxu1 %v23799_v36 }
0x1508   :  { %19571 = vmatpush3.msra.mxu0 %v23812_v35  ;;  %19585 = vmatprep.subr.mxu1 %v20028_v1 }
0x1509   :  { %19573 = vmatmul.mubr.msk.f32.vlgmr.msra.gmra.mxu0 %vm1253_vm11, %v301_v56  ;;  %19586 = vmatpush3.msra.mxu1 %v23816_v63 }
0x150a   :  { %19588 = vmatmul.mubr.msk.f32.vlgmr.msra.gmra.mxu1 %vm1253_vm11, %v302_v49  ;;  %19590 = vmatprep.subr.mxu0 %v20028_v1 }
0x150b   :  { %19595 = vmatprep.subr.mxu1 %v20028_v1  ;;  %19592 = vmatprep.mubr.msk.f32.mxu0 %vm20029_vm0, %v20028_v1 }
0x150c   :  { %19597 = vmatprep.mubr.msk.f32.mxu1 %vm20029_vm0, %v20028_v1  ;;  %19591 = vmatpush3.xpose.msk.msra.mxu0 %vm14880_vm9, %v21888_v53 }
0x150d   :  { %19596 = vmatpush3.xpose.msk.msra.mxu1 %vm14880_vm9, %v21888_v53  ;;  %19600 = vmatprep.subr.mxu0 %v20028_v1 }
0x150e   :  { %19605 = vmatprep.subr.mxu1 %v20028_v1 }
0x1511   :  { %v13643_v54 = vpop.permute.xlu0 %13642 }
0x1512   :  { %v13648_v3 = vpop.permute.xlu1 %13647 }
0x1515   :  { %v13653_v8 = vpop.permute.xlu0 %13652 }
0x1516   :  { %v13658_v16 = vpop.permute.xlu1 %13657 }
0x1555   :  { %v24099_v46 = vpop.f32.mrf.mxu0 }
0x1557   :  { %v19364_v36 = vpop.f32.mrf.mxu0 }
0x1559   :  { %v24101_v35 = vpop.f32.mrf.mxu1 }
0x155b   :  { %v19379_v63 = vpop.f32.mrf.mxu1 }
0x156b   :  { %v24103_v37 = vpop.f32.mrf.mxu1 }
0x156c   :  { %v24105_v32 = vpop.f32.mrf.mxu0 }
0x156d   :  { %v19409_v62 = vpop.f32.mrf.mxu1 }
0x156e   :  { %v19394_v5 = vpop.f32.mrf.mxu0 }
0x157b   :  { %v24107_v7 = vpop.f32.mrf.mxu0 }
0x157c   :  { %v24109_v59 = vpop.f32.mrf.mxu1 }
0x157d   :  { %v19424_v14 = vpop.f32.mrf.mxu0 }
0x157e   :  { %v19439_v27 = vpop.f32.mrf.mxu1 }
0x1589   :  { %v24111_v17 = vpop.f32.mrf.mxu0 }
0x158a   :  { %v24113_v28 = vpop.f32.mrf.mxu1 }
0x158b   :  { %v19454_v39 = vpop.f32.mrf.mxu0 }
0x158c   :  { %v19469_v55 = vpop.f32.mrf.mxu1 }
0x1598   :  { %v14333_v4 = vpop.f32.mrf.mxu0 }
0x1599   :  { %v14334_v45 = vadd.f32 %v14333_v4, %v13643_v54 }
0x159a   :  { %v14406_v20 = vpop.f32.mrf.mxu1  ;;  %v19484_v58 = vpop.f32.mrf.mxu0 }
0x159b   :  { %v14407_v60 = vadd.f32 %v14406_v20, %v13648_v3  ;;  %19974 = vtanh.f32 %v14334_v45 }
0x159c   :  { %v19499_v12 = vpop.f32.mrf.mxu1 }
0x159d   :  { %19976 = vtanh.f32 %v14407_v60 }
0x15a8   :  { %v19975_v57 = vpop.eup %19974  ;;  %v14479_v19 = vpop.f32.mrf.mxu0 }
0x15a9   :  { %v14872_v50 = vsub.f32 %v23008_v33, %v19975_v57  ;;  %v14480_v40 = vadd.f32 %v14479_v19, %v13653_v8  ;;  %v13663_v33 = vpop.permute.xlu0 %13662 }
0x15aa   :  { %v19977_v44 = vpop.eup %19976  ;;  %v14552_v30 = vpop.f32.mrf.mxu1 }
0x15ab   :  { %v14873_v34 = vsub.f32 %v23012_v47, %v19977_v44  ;;  %v14553_v15 = vadd.f32 %v14552_v30, %v13658_v16  ;;  %v19514_v61 = vpop.f32.mrf.mxu0  ;;  %19978 = vtanh.f32 %v14480_v40  ;;  %19593 = vmatmul.mubr.msk.f32.vlgmr.msra.gmra.mxu0 %vm14880_vm9, %v14872_v50  ;;  %v13668_v47 = vpop.permute.xlu1 %13667 }
0x15ac   :  { %v19529_v42 = vpop.f32.mrf.mxu1  ;;  %19601 = vmatpush3.xpose.msk.msra.mxu0 %vm14880_vm9, %v21888_v53  ;;  %19602 = vmatprep.mubr.msk.f32.mxu0 %vm20029_vm0, %v20028_v1 }
0x15ad   :  { %19980 = vtanh.f32 %v14553_v15  ;;  %19598 = vmatmul.mubr.msk.f32.vlgmr.msra.gmra.mxu1 %vm14880_vm9, %v14873_v34  ;;  %19610 = vmatprep.subr.mxu0 %v20028_v1  ;;  %v13673_v62 = vpop.permute.xlu0 %13672 }
0x15ae   :  { %19606 = vmatpush3.xpose.msk.msra.mxu1 %vm14880_vm9, %v21888_v53  ;;  %19607 = vmatprep.mubr.msk.f32.mxu1 %vm20029_vm0, %v20028_v1 }
0x15af   :  { %19615 = vmatprep.subr.mxu1 %v20028_v1  ;;  %v13678_v5 = vpop.permute.xlu1 %13677 }
0x15b8   :  { %v19979_v25 = vpop.eup %19978  ;;  %v14625_v18 = vpop.f32.mrf.mxu0 }
0x15b9   :  { %v14874_v13 = vsub.f32 %v23026_v24, %v19979_v25  ;;  %v14626_v52 = vadd.f32 %v14625_v18, %v13663_v33  ;;  %v13603_v24 = vpop.permute.xlu0 %13602 }
0x15ba   :  { %v19981_v2 = vpop.eup %19980  ;;  %v14698_v41 = vpop.f32.mrf.mxu1  ;;  %v13750_v4 = vadd.f32 %v24099_v46, %v13603_v24 }
0x15bb   :  { %v14875_v56 = vsub.f32 %v23030_v11, %v19981_v2  ;;  %v14699_v49 = vadd.f32 %v14698_v41, %v13668_v47  ;;  %v19544_v36 = vpop.f32.mrf.mxu0  ;;  %19982 = vtanh.f32 %v14626_v52  ;;  %19603 = vmatmul.mubr.msk.f32.vlgmr.msra.gmra.mxu0 %vm14880_vm9, %v14874_v13  ;;  %v13608_v11 = vpop.permute.xlu1 %13607 }
0x15bc   :  { %v19559_v63 = vpop.f32.mrf.mxu1  ;;  %19611 = vmatpush3.xpose.msk.msra.mxu0 %vm14880_vm9, %v21888_v53  ;;  %19612 = vmatprep.mubr.msk.f32.mxu0 %vm20029_vm0, %v20028_v1  ;;  %v13823_v60 = vadd.f32 %v24101_v35, %v13608_v11 }
0x15bd   :  { %19984 = vtanh.f32 %v14699_v49  ;;  %19608 = vmatmul.mubr.msk.f32.vlgmr.msra.gmra.mxu1 %vm14880_vm9, %v14875_v56  ;;  %19620 = vmatprep.subr.mxu0 %v20028_v1  ;;  %v13613_v27 = vpop.permute.xlu0 %13612 }
0x15be   :  { %19616 = vmatpush3.xpose.msk.msra.mxu1 %vm14880_vm9, %v21888_v53  ;;  %19617 = vmatprep.mubr.msk.f32.mxu1 %vm20029_vm0, %v20028_v1 }
0x15bf   :  { %19625 = vmatprep.subr.mxu1 %v20028_v1  ;;  %v13618_v54 = vpop.permute.xlu1 %13617 }
0x15c0   :  { %v13969_v46 = vadd.f32 %v24103_v37, %v13618_v54 }
0x15c3   :  { %v13628_v35 = vpop.permute.xlu1 %13627 }
0x15c4   :  { %v14115_v19 = vadd.f32 %v24109_v59, %v13628_v35 }
0x15c7   :  { %v13638_v16 = vpop.permute.xlu1 %13637 }
0x15c8   :  { %v19983_v14 = vpop.eup %19982  ;;  %v14261_v37 = vadd.f32 %v24113_v28, %v13638_v16 }
0x15c9   :  { %v14771_v39 = vpop.f32.mrf.mxu0  ;;  %v14876_v3 = vsub.f32 %v23042_v26, %v19983_v14  ;;  %v13896_v26 = vadd.f32 %v24105_v32, %v13613_v27 }
0x15ca   :  { %v19985_v55 = vpop.eup %19984  ;;  %v14772_v45 = vadd.f32 %v14771_v39, %v13673_v62  ;;  %v14844_v20 = vpop.f32.mrf.mxu1 }
0x15cb   :  { %v14877_v58 = vsub.f32 %v23045_v22, %v19985_v55  ;;  %v14845_v12 = vadd.f32 %v14844_v20, %v13678_v5  ;;  %v19574_v57 = vpop.f32.mrf.mxu0  ;;  %19613 = vmatmul.mubr.msk.f32.vlgmr.msra.gmra.mxu0 %vm14880_vm9, %v14876_v3  ;;  %v13623_v22 = vpop.permute.xlu0 %13622 }
0x15cc   :  { %19986 = vtanh.f32 %v14772_v45  ;;  %v19589_v8 = vpop.f32.mrf.mxu1  ;;  %19621 = vmatpush3.xpose.msk.msra.mxu0 %vm14880_vm9, %v21888_v53  ;;  %19622 = vmatprep.mubr.msk.f32.mxu0 %vm20029_vm0, %v20028_v1  ;;  %v14042_v32 = vadd.f32 %v24107_v7, %v13623_v22 }
0x15cd   :  { %19988 = vtanh.f32 %v14845_v12  ;;  %19618 = vmatmul.mubr.msk.f32.vlgmr.msra.gmra.mxu1 %vm14880_vm9, %v14877_v58  ;;  %19630 = vmatprep.subr.mxu0 %v20028_v1 }
0x15ce   :  { %19990 = vtanh.f32 %v13750_v4  ;;  %19626 = vmatpush3.xpose.msk.msra.mxu1 %vm14880_vm9, %v21888_v53  ;;  %19627 = vmatprep.mubr.msk.f32.mxu1 %vm20029_vm0, %v20028_v1 }
0x15cf   :  { %19992 = vtanh.f32 %v13823_v60  ;;  %19635 = vmatprep.subr.mxu1 %v20028_v1  ;;  %v13633_v44 = vpop.permute.xlu0 %13632 }
0x15d0   :  { %19994 = vtanh.f32 %v13896_v26  ;;  %v14188_v50 = vadd.f32 %v24111_v17, %v13633_v44 }
0x15d1   :  { %19996 = vtanh.f32 %v13969_v46 }
0x15d2   :  { %19998 = vtanh.f32 %v14042_v32 }
0x15d3   :  { %20000 = vtanh.f32 %v14115_v19 }
0x15d4   :  { %20002 = vtanh.f32 %v14188_v50 }
0x15d5   :  { %20004 = vtanh.f32 %v14261_v37 }
0x15d9   :  { %v19987_v40 = vpop.eup %19986 }
0x15da   :  { %v19989_v30 = vpop.eup %19988  ;;  %v14878_v34 = vsub.f32 %v23060_v48, %v19987_v40 }
0x15db   :  { %v19991_v15 = vpop.eup %19990  ;;  %v14879_v7 = vsub.f32 %v23064_v0, %v19989_v30  ;;  %v373_v30 = vsel %vm371_vm4, 1.0, %v20028_v1 }
0x15dc   :  { %v19993_v61 = vpop.eup %19992  ;;  %19623 = vmatmul.mubr.msk.f32.vlgmr.msra.gmra.mxu0 %vm14880_vm9, %v14878_v34  ;;  %v14864_v59 = vadd.f32 %v19991_v15, %v23075_v43 }
0x15dd   :  { %19628 = vmatmul.mubr.msk.f32.vlgmr.msra.gmra.mxu1 %vm14880_vm9, %v14879_v7  ;;  %19631 = vmatpush3.xpose.msk.msra.mxu0 %vm14880_vm9, %v21815_v51  ;;  %v19995_v48 = vpop.eup %19994  ;;  %v14865_v17 = vadd.f32 %v19993_v61, %v23080_v21 }
0x15de   :  { %19636 = vmatpush3.xpose.msk.msra.mxu1 %vm14880_vm9, %v21815_v51  ;;  %19632 = vmatprep.mubr.msk.f32.mxu0 %vm20029_vm0, %v20028_v1  ;;  %v19997_v0 = vpop.eup %19996  ;;  %v14866_v43 = vadd.f32 %v19995_v48, %v23094_v29 }
0x15df   :  { %19637 = vmatprep.mubr.msk.f32.mxu1 %vm20029_vm0, %v20028_v1  ;;  %19640 = vmatprep.subr.mxu0 %v20028_v1  ;;  %v19999_v21 = vpop.eup %19998  ;;  %v14867_v28 = vadd.f32 %v19997_v0, %v23098_v31 }
0x15e0   :  { %19633 = vmatmul.mubr.msk.f32.vlgmr.msra.gmra.mxu0 %vm14880_vm9, %v14864_v59  ;;  %19645 = vmatprep.subr.mxu1 %v20028_v1  ;;  %v20001_v42 = vpop.eup %20000  ;;  %v14868_v29 = vadd.f32 %v19999_v21, %v23110_v9 }
0x15e1   :  { %19638 = vmatmul.mubr.msk.f32.vlgmr.msra.gmra.mxu1 %vm14880_vm9, %v14865_v17  ;;  %19641 = vmatpush3.xpose.msk.msra.mxu0 %vm14880_vm9, %v21815_v51  ;;  %v20003_v31 = vpop.eup %20002  ;;  %v14869_v33 = vadd.f32 %v20001_v42, %v23114_v10 }
0x15e2   :  { %19646 = vmatpush3.xpose.msk.msra.mxu1 %vm14880_vm9, %v21815_v51  ;;  %19642 = vmatprep.mubr.msk.f32.mxu0 %vm20029_vm0, %v20028_v1  ;;  %v20005_v47 = vpop.eup %20004  ;;  %v14870_v9 = vadd.f32 %v20003_v31, %v23128_v38  ;;  %v368_v31 = vsel %vm366_vm2, 1.0, %v20028_v1 }
0x15e3   :  { %19647 = vmatprep.mubr.msk.f32.mxu1 %vm20029_vm0, %v20028_v1  ;;  %19650 = vmatprep.subr.mxu0 %v20028_v1  ;;  %v14871_v10 = vadd.f32 %v20005_v47, %v23132_v23 }
0x15e4   :  { %19643 = vmatmul.mubr.msk.f32.vlgmr.msra.gmra.mxu0 %vm14880_vm9, %v14866_v43  ;;  %19655 = vmatprep.subr.mxu1 %v20028_v1 }
0x15e5   :  { %19648 = vmatmul.mubr.msk.f32.vlgmr.msra.gmra.mxu1 %vm14880_vm9, %v14867_v28  ;;  %19651 = vmatpush3.xpose.msk.msra.mxu0 %vm14880_vm9, %v21815_v51 }
0x15e6   :  { %19656 = vmatpush3.xpose.msk.msra.mxu1 %vm14880_vm9, %v21815_v51  ;;  %19652 = vmatprep.mubr.msk.f32.mxu0 %vm20029_vm0, %v20028_v1 }
0x15e7   :  { %19657 = vmatprep.mubr.msk.f32.mxu1 %vm20029_vm0, %v20028_v1  ;;  %19660 = vmatprep.subr.mxu0 %v20028_v1 }
0x15e8   :  { %19653 = vmatmul.mubr.msk.f32.vlgmr.msra.gmra.mxu0 %vm14880_vm9, %v14868_v29  ;;  %19665 = vmatprep.subr.mxu1 %v20028_v1 }
0x15e9   :  { %19658 = vmatmul.mubr.msk.f32.vlgmr.msra.gmra.mxu1 %vm14880_vm9, %v14869_v33  ;;  %19661 = vmatpush3.xpose.msk.msra.mxu0 %vm14880_vm9, %v21815_v51 }
0x15ea   :  { %19666 = vmatpush3.xpose.msk.msra.mxu1 %vm14880_vm9, %v21815_v51  ;;  %19662 = vmatprep.mubr.msk.f32.mxu0 %vm20029_vm0, %v20028_v1 }
0x15eb   :  { %19667 = vmatprep.mubr.msk.f32.mxu1 %vm20029_vm0, %v20028_v1  ;;  %19670 = vmatprep.subr.mxu0 %v20028_v1 }
0x15ec   :  { %19663 = vmatmul.mubr.msk.f32.vlgmr.msra.gmra.mxu0 %vm14880_vm9, %v14870_v9  ;;  %19675 = vmatprep.subr.mxu1 %v20028_v1 }
0x15ed   :  { %19668 = vmatmul.mubr.msk.f32.vlgmr.msra.gmra.mxu1 %vm14880_vm9, %v14871_v10  ;;  %19671 = vmatpush3.xpose.msk.msra.mxu0 %vm6592_vm1, %v21888_v53 }
0x15ee   :  { %19676 = vmatpush3.xpose.msk.msra.mxu1 %vm6592_vm1, %v21888_v53  ;;  %19672 = vmatprep.mubr.msk.f32.mxu0 %vm20029_vm0, %v20028_v1 }
0x15ef   :  { %19677 = vmatprep.mubr.msk.f32.mxu1 %vm20029_vm0, %v20028_v1  ;;  %19680 = vmatprep.subr.mxu0 %v20028_v1 }
0x15f0   :  { %19685 = vmatprep.subr.mxu1 %v20028_v1 }
0x166b   :  { %v14952_v38 = vpop.f32.mrf.mxu0 }
0x166d   :  { %v15025_v23 = vpop.f32.mrf.mxu1  ;;  %v19594_v25 = vpop.f32.mrf.mxu0 }
0x166f   :  { %v19599_v18 = vpop.f32.mrf.mxu1 }
0x167b   :  { %v15098_v2 = vpop.f32.mrf.mxu0 }
0x167d   :  { %v15171_v13 = vpop.f32.mrf.mxu1  ;;  %v19604_v52 = vpop.f32.mrf.mxu0 }
0x167f   :  { %v19609_v41 = vpop.f32.mrf.mxu1 }
0x168b   :  { %v15244_v56 = vpop.f32.mrf.mxu0 }
0x168d   :  { %v15317_v49 = vpop.f32.mrf.mxu1  ;;  %v19614_v36 = vpop.f32.mrf.mxu0 }
0x168f   :  { %v19619_v63 = vpop.f32.mrf.mxu1 }
0x169c   :  { %v15390_v62 = vpop.f32.mrf.mxu0 }
0x169d   :  { %v15463_v5 = vpop.f32.mrf.mxu1 }
0x169e   :  { %v19624_v24 = vpop.f32.mrf.mxu0 }
0x169f   :  { %v19629_v11 = vpop.f32.mrf.mxu1 }
0x16a0   :  { %v15538_v14 = vpop.f32.mrf.mxu0 }
0x16a1   :  { %v15611_v27 = vpop.f32.mrf.mxu1  ;;  %v15539_v44 = vadd.f32 %v15538_v14, %v14952_v38 }
0x16a2   :  { %v19634_v39 = vpop.f32.mrf.mxu0  ;;  %v15612_v16 = vadd.f32 %v15611_v27, %v15025_v23 }
0x16a3   :  { %v19639_v55 = vpop.f32.mrf.mxu1 }
0x16a4   :  { %v15684_v54 = vpop.f32.mrf.mxu0 }
0x16a5   :  { %v15757_v4 = vpop.f32.mrf.mxu1  ;;  %v15685_v50 = vadd.f32 %v15684_v54, %v15098_v2 }
0x16a6   :  { %v19644_v3 = vpop.f32.mrf.mxu0  ;;  %v15758_v37 = vadd.f32 %v15757_v4, %v15171_v13 }
0x16a7   :  { %v19649_v45 = vpop.f32.mrf.mxu1 }
0x16a8   :  { %v15830_v20 = vpop.f32.mrf.mxu0 }
0x16a9   :  { %v15831_v60 = vadd.f32 %v15830_v20, %v15244_v56  ;;  %v15903_v58 = vpop.f32.mrf.mxu1 }
0x16aa   :  { %v15904_v12 = vadd.f32 %v15903_v58, %v15317_v49  ;;  %v19654_v57 = vpop.f32.mrf.mxu0 }
0x16ab   :  { %v19659_v8 = vpop.f32.mrf.mxu1  ;;  %19673 = vmatmul.mubr.msk.f32.vlgmr.msra.gmra.mxu0 %vm6592_vm1, %v15831_v60 }
0x16ac   :  { %v15976_v26 = vpop.f32.mrf.mxu0  ;;  %19678 = vmatmul.mubr.msk.f32.vlgmr.msra.gmra.mxu1 %vm6592_vm1, %v15904_v12  ;;  %19681 = vmatpush3.xpose.msk.msra.mxu0 %vm6592_vm1, %v21888_v53 }
0x16ad   :  { %v15977_v22 = vadd.f32 %v15976_v26, %v15390_v62  ;;  %19686 = vmatpush3.xpose.msk.msra.mxu1 %vm6592_vm1, %v21888_v53  ;;  %v16049_v46 = vpop.f32.mrf.mxu1  ;;  %19682 = vmatprep.mubr.msk.f32.mxu0 %vm20029_vm0, %v20028_v1 }
0x16ae   :  { %v16050_v35 = vadd.f32 %v16049_v46, %v15463_v5  ;;  %v19664_v32 = vpop.f32.mrf.mxu0  ;;  %19687 = vmatprep.mubr.msk.f32.mxu1 %vm20029_vm0, %v20028_v1  ;;  %19690 = vmatprep.subr.mxu0 %v20028_v1 }
0x16af   :  { %v19669_v19 = vpop.f32.mrf.mxu1  ;;  %19683 = vmatmul.mubr.msk.f32.vlgmr.msra.gmra.mxu0 %vm6592_vm1, %v15977_v22  ;;  %19695 = vmatprep.subr.mxu1 %v20028_v1 }
0x16b0   :  { %19688 = vmatmul.mubr.msk.f32.vlgmr.msra.gmra.mxu1 %vm6592_vm1, %v16050_v35  ;;  %19691 = vmatpush3.xpose.msk.msra.mxu0 %vm6592_vm1, %v21815_v51 }
0x16b1   :  { %19696 = vmatpush3.xpose.msk.msra.mxu1 %vm6592_vm1, %v21815_v51  ;;  %19692 = vmatprep.mubr.msk.f32.mxu0 %vm20029_vm0, %v20028_v1 }
0x16b2   :  { %19697 = vmatprep.mubr.msk.f32.mxu1 %vm20029_vm0, %v20028_v1  ;;  %19700 = vmatprep.subr.mxu0 %v20028_v1 }
0x16b3   :  { %19693 = vmatmul.mubr.msk.f32.vlgmr.msra.gmra.mxu0 %vm6592_vm1, %v15539_v44  ;;  %19705 = vmatprep.subr.mxu1 %v20028_v1 }
0x16b4   :  { %19698 = vmatmul.mubr.msk.f32.vlgmr.msra.gmra.mxu1 %vm6592_vm1, %v15612_v16  ;;  %19701 = vmatpush3.xpose.msk.msra.mxu0 %vm6592_vm1, %v21815_v51 }
0x16b5   :  { %19706 = vmatpush3.xpose.msk.msra.mxu1 %vm6592_vm1, %v21815_v51  ;;  %19702 = vmatprep.mubr.msk.f32.mxu0 %vm20029_vm0, %v20028_v1 }
0x16b6   :  { %19707 = vmatprep.mubr.msk.f32.mxu1 %vm20029_vm0, %v20028_v1  ;;  %19710 = vmatprep.subr.mxu0 %v20028_v1 }
0x16b7   :  { %19703 = vmatmul.mubr.msk.f32.vlgmr.msra.gmra.mxu0 %vm6592_vm1, %v15685_v50  ;;  %19717 = vmatprep.subr.mxu1 %v20028_v1 }
0x16b8   :  { %19708 = vmatmul.mubr.msk.f32.vlgmr.msra.gmra.mxu1 %vm6592_vm1, %v15758_v37  ;;  %19714 = vmatprep.mubr.msk.f32.mxu0 %vm20029_vm0, %v20028_v1 }
0x16b9   :  { %19721 = vmatprep.mubr.msk.f32.mxu1 %vm20029_vm0, %v20028_v1  ;;  %19711 = vmatpush3.xpose.msk.msra.mxu0 %vm2450_vm12, %v373_v30 }
0x16ba   :  { %19718 = vmatpush3.xpose.msk.msra.mxu1 %vm2450_vm12, %v373_v30  ;;  %19712 = vmatprep.subr.mxu0 %v20028_v1 }
0x16bb   :  { %19719 = vmatprep.subr.mxu1 %v20028_v1 }
0x16bd   :  { %19713 = vmatpush3.xpose.msk.msra.mxu0 %vm2450_vm12, %v21888_v53 }
0x16be   :  { %19720 = vmatpush3.xpose.msk.msra.mxu1 %vm2450_vm12, %v21888_v53  ;;  %19724 = vmatprep.subr.mxu0 %v20028_v1 }
0x16bf   :  { %19731 = vmatprep.subr.mxu1 %v20028_v1 }
0x176b   :  { %v16124_v34 = vpop.f32.mrf.mxu0 }
0x176c   :  { %v16197_v15 = vpop.f32.mrf.mxu1 }
0x176d   :  { %v19674_v7 = vpop.f32.mrf.mxu0 }
0x176e   :  { %v19679_v61 = vpop.f32.mrf.mxu1 }
0x176f   :  { %v16270_v59 = vpop.f32.mrf.mxu0 }
0x1770   :  { %v16343_v48 = vpop.f32.mrf.mxu1 }
0x1771   :  { %v19684_v17 = vpop.f32.mrf.mxu0 }
0x1772   :  { %v19689_v0 = vpop.f32.mrf.mxu1 }
0x1773   :  { %v16418_v43 = vpop.f32.mrf.mxu0 }
0x1774   :  { %v16491_v21 = vpop.f32.mrf.mxu1  ;;  %v16419_v6 = vadd.f32 %v16418_v43, %v16124_v34 }
0x1775   :  { %v19694_v28 = vpop.f32.mrf.mxu0  ;;  %v16492_v23 = vadd.f32 %v16491_v21, %v16197_v15 }
0x1776   :  { %v19699_v42 = vpop.f32.mrf.mxu1 }
0x1777   :  { %v16564_v29 = vpop.f32.mrf.mxu0 }
0x1778   :  { %v16565_v33 = vadd.f32 %v16564_v29, %v16270_v59  ;;  %v16637_v47 = vpop.f32.mrf.mxu1 }
0x1779   :  { %v16638_v9 = vadd.f32 %v16637_v47, %v16343_v48  ;;  %v19704_v10 = vpop.f32.mrf.mxu0 }
0x177a   :  { %v19709_v38 = vpop.f32.mrf.mxu1  ;;  %19715 = vmatmul.mubr.msk.f32.vlgmr.msra.gmra.mxu0 %vm2450_vm12, %v16565_v33 }
0x177b   :  { %19725 = vmatpush3.xpose.msk.msra.mxu0 %vm2450_vm12, %v368_v31  ;;  %19722 = vmatmul.mubr.msk.f32.vlgmr.msra.gmra.mxu1 %vm2450_vm12, %v16638_v9 }
0x177c   :  { %19732 = vmatpush3.xpose.msk.msra.mxu1 %vm2450_vm12, %v368_v31  ;;  %19726 = vmatprep.subr.mxu0 %v20028_v1 }
0x177d   :  { %19733 = vmatprep.subr.mxu1 %v20028_v1  ;;  %19728 = vmatprep.mubr.msk.f32.mxu0 %vm20029_vm0, %v20028_v1 }
0x177e   :  { %19735 = vmatprep.mubr.msk.f32.mxu1 %vm20029_vm0, %v20028_v1  ;;  %vm16943_vm0 = vcmask 125952  }
0x177f   :  { %19727 = vmatpush3.xpose.msk.msra.mxu0 %vm2450_vm12, %v21815_v51 }
0x1780   :  { %19734 = vmatpush3.xpose.msk.msra.mxu1 %vm2450_vm12, %v21815_v51 }
0x1782   :  { %19729 = vmatmul.mubr.msk.f32.vlgmr.msra.gmra.mxu0 %vm2450_vm12, %v16419_v6 }
0x1783   :  { %19736 = vmatmul.mubr.msk.f32.vlgmr.msra.gmra.mxu1 %vm2450_vm12, %v16492_v23 }
0x183a   :  { %v16715_v25 = vpop.f32.mrf.mxu0 }
0x183b   :  { %v16788_v18 = vpop.f32.mrf.mxu1 }
0x183c   :  { %v19716_v2 = vpop.f32.mrf.mxu0 }
0x183d   :  { %v19723_v13 = vpop.f32.mrf.mxu1 }
0x1842   :  { %v16866_v52 = vpop.f32.mrf.mxu0 }
0x1843   :  { %v16867_v1 = vadd.f32 %v16866_v52, %v16715_v25  ;;  %v16939_v41 = vpop.f32.mrf.mxu1 }
0x1844   :  { %v16940_v56 = vadd.f32 %v16939_v41, %v16788_v18  ;;  %v19730_v49 = vpop.f32.mrf.mxu0 }
0x1845   :  { %16944 = vst.msk [vmem:[#allocation2] sm:$0xf] %vm16943_vm0, %v16867_v1  ;;  %v19737_v51 = vpop.f32.mrf.mxu1 }
0x1846   :  { %16945 = vst.msk [vmem:[#allocation2 + $0x4] sm:$0xf] %vm16943_vm0, %v16940_v56 }
0x1847   :  { %20017 = shalt.err (!%p20014_p4)
}
0x1848   :  { %s20041_s7 = smov 64   ;;  %s20042_s8 = smov 4  }
0x1849   :  { %16957 = dma.vmem_to_hbm [thread:$0]  %s16952_s6, 128, %s24319_s5, [#allocation3], %s20041_s7, %s20041_s7, %s20042_s8  }
0x184a   :  { %20026 = dma.done.wait [#allocation3], 128  }
0x184b   :  { %20027 = vsyncadd [#allocation3], 4294967168 }
0x184c   :  { %16961 = vsyncpa [#allocation3], 1 }

</bundles_post_ra>
